<compile_context>
chip_gen: v6e
topology: v6e:2x2x1
jax: 0.10.0
libtpu: 0.0.40
codegen_flags: <defaults>
</compile_context>

<pallas_src>
import jax
import jax.numpy as jnp
from jax.experimental import pallas as pl
from jax.experimental.pallas import tpu as pltpu


_MXU_DTYPE = jnp.float32   # set to jnp.bfloat16 on v6e/v7x (loosen the check)


def _vmem_limit_bytes():
    """3/4 of physical VMEM, capped at 64 MiB (48 MiB on v7x, 64 on v5e/v6e)."""
    try:
        cap = int(pltpu.get_tpu_info().vmem_capacity_bytes)
        return int(min(64 * 1024 * 1024, (cap * 3) // 4))
    except Exception:
        return 48 * 1024 * 1024


def _pick_batch_block(B, target=32):
    """Largest batch block <= target dividing B; for B > target use a multiple
    of 8 and guarantee >= 2 grid steps (v7x megacore sharding)."""
    if B <= target:
        return B
    bb = (min(target, B // 2) // 8) * 8
    while bb >= 8:
        if B % bb == 0:
            return bb
        bb -= 8
    return B


# ----------------------------------------------------------------------------
# Fused LeNet forward kernel (one grid step == one batch block of Bb images)
# ----------------------------------------------------------------------------
def lenet_kernel(p1_ref, w1_ref, b1_ref, w2_ref, b2_ref,
                 wf1_ref, bf1_ref, wf2_ref, bf2_ref, wf3_ref, bf3_ref,
                 lp_ref, x1_ref,
                 a1_scr, a1w_scr, acc_scr):
    Bb = p1_ref.shape[0]

    # ---- conv1 (+bias+ReLU) and its 2x2/2 max-pool in a single MXU matmul ----
    # p1 lanes = phase*32 + (kh*5+kw), phase = dh*2+dw of the pool window.
    # w1 is block-diagonal (128, 256): [phase*32+f, phase*64+co] = conv1_w[f,co].
    z1 = jnp.dot(p1_ref[...].reshape(Bb * 144, 128), w1_ref[...],
                 preferred_element_type=jnp.float32)               # (Bb*144, 256)
    pooled1 = jnp.maximum(jnp.maximum(z1[:, 0:64], z1[:, 64:128]),
                          jnp.maximum(z1[:, 128:192], z1[:, 192:256]))
    a1 = jnp.maximum(pooled1 + b1_ref[...], 0.0)                   # (Bb*144, 64)
    a1 = a1.astype(a1_scr.dtype).reshape(Bb, 144, 64)              # cast hoisted

    # Stage a1 as (b, h, w, c).  Kept as 12 slice-stores (validated lowering);
    # a single bulk reshape-store would need a non-8-aligned sublane split.
    for h in range(12):
        a1_scr[:, h, :, :] = a1[:, h * 12:(h + 1) * 12, :]

    # ---- conv2: width-unfold scratch, then 5 matmuls over kh with K = 320 ----
    # a1w[b, h, ow, kw*64+c] = a1[b, h, ow+kw, c]
    for kw in range(5):
        a1w_scr[:, :, :, kw * 64:(kw + 1) * 64] = a1_scr[:, :, kw:kw + 8, :]

    for kh in range(5):
        op = a1w_scr[:, kh:kh + 8, :, :].reshape(Bb * 64, 320)     # aligned slice
        part = jnp.dot(op, w2_ref[kh], preferred_element_type=jnp.float32)
        if kh == 0:
            acc_scr[...] = part
        else:
            acc_scr[...] = acc_scr[...] + part                     # VMEM accumulator

    # ---- 2x2/2 max-pool of conv2 + (h,w,c) flatten; bias+ReLU after the max ----
    z2 = acc_scr[...].reshape(Bb, 8, 8, 64)                        # (b, oh, ow, co)
    cols = []
    for ph in range(4):
        hp = jnp.maximum(z2[:, 2 * ph], z2[:, 2 * ph + 1])         # (Bb, 8, 64)
        for pw in range(4):
            cols.append(jnp.maximum(hp[:, 2 * pw], hp[:, 2 * pw + 1]))  # (Bb, 64)
    feat = jnp.concatenate(cols, axis=-1)                          # (Bb, 1024)
    feat = jnp.maximum(feat + b2_ref[...], 0.0)                    # b2 pre-tiled

    # ---- MLP head: fc1 (+ReLU -> x1), fc2 (+ReLU), fc3, log_softmax ----------
    x1 = jnp.maximum(
        jnp.dot(feat.astype(wf1_ref.dtype), wf1_ref[...],
                preferred_element_type=jnp.float32) + bf1_ref[...], 0.0)
    x1_ref[...] = x1.astype(x1_ref.dtype)
    x2 = jnp.maximum(
        jnp.dot(x1.astype(wf2_ref.dtype), wf2_ref[...],
                preferred_element_type=jnp.float32) + bf2_ref[...], 0.0)
    logits = jnp.dot(x2.astype(wf3_ref.dtype), wf3_ref[...],
                     preferred_element_type=jnp.float32) + bf3_ref[...]
    m = jnp.max(logits, axis=-1, keepdims=True)
    s = logits - m
    lse = jnp.log(jnp.sum(jnp.exp(s), axis=-1, keepdims=True))
    lp_ref[...] = (s - lse).astype(lp_ref.dtype)


# ----------------------------------------------------------------------------
# pallas_call wrapper
# ----------------------------------------------------------------------------
def lenet_pallas(p1, w1bd, b1, w2g, b2t, wf1, bf1, wf2, bf2, wf3, bf3):
    B = p1.shape[0]
    Bb = _pick_batch_block(B)
    return pl.pallas_call(
        lenet_kernel,
        out_shape=(jax.ShapeDtypeStruct((B, 10), jnp.float32),
                   jax.ShapeDtypeStruct((B, 384), jnp.float32)),
        grid=(B // Bb,),
        in_specs=[
            pl.BlockSpec((Bb, 144, 128), lambda i: (i, 0, 0)),   # conv1 patches
            pl.BlockSpec((128, 256), lambda i: (0, 0)),          # conv1 block-diag W
            pl.BlockSpec((1, 64), lambda i: (0, 0)),             # conv1 bias
            pl.BlockSpec((5, 320, 64), lambda i: (0, 0, 0)),     # conv2 W by kh
            pl.BlockSpec((1, 1024), lambda i: (0, 0)),           # conv2 bias (tiled)
            pl.BlockSpec((1024, 384), lambda i: (0, 0)),         # fc1 W
            pl.BlockSpec((1, 384), lambda i: (0, 0)),
            pl.BlockSpec((384, 192), lambda i: (0, 0)),          # fc2 W
            pl.BlockSpec((1, 192), lambda i: (0, 0)),
            pl.BlockSpec((192, 10), lambda i: (0, 0)),           # fc3 W
            pl.BlockSpec((1, 10), lambda i: (0, 0)),
        ],
        out_specs=(pl.BlockSpec((Bb, 10), lambda i: (i, 0)),
                   pl.BlockSpec((Bb, 384), lambda i: (i, 0))),
        scratch_shapes=[
            pltpu.VMEM((Bb, 12, 12, 64), _MXU_DTYPE),            # conv1 activations
            pltpu.VMEM((Bb, 12, 8, 320), _MXU_DTYPE),            # width-unfold
            pltpu.VMEM((Bb * 64, 64), jnp.float32),              # conv2 accumulator
        ],
        compiler_params=pltpu.CompilerParams(
            dimension_semantics=("parallel",),
            vmem_limit_bytes=_vmem_limit_bytes()),
    )(p1, w1bd, b1, w2g, b2t, wf1, bf1, wf2, bf2, wf3, bf3)


# ----------------------------------------------------------------------------
# Plain-JAX glue: conv1 im2col (phase-grouped, lane-packed), weight permutations
# ----------------------------------------------------------------------------
def _im2col_phased(x_hwc, k):
    """(B, H, W, C) -> (B, 4, (OH/2)*(OW/2), k*k*C); phases = (oh%2, ow%2)."""
    B, H, W, C = x_hwc.shape
    oh, ow = H - k + 1, W - k + 1
    cols = []
    for kh in range(k):
        for kw in range(k):
            cols.append(x_hwc[:, kh:kh + oh, kw:kw + ow, :])
    p = jnp.stack(cols, axis=3)                                   # (B, oh, ow, k*k, C)
    p = p.reshape(B, oh, ow, k * k * C)
    p = p.reshape(B, oh // 2, 2, ow // 2, 2, k * k * C)
    p = jnp.transpose(p, (0, 2, 4, 1, 3, 5))                      # (B, dh, dw, ph, pw, F)
    return p.reshape(B, 4, (oh // 2) * (ow // 2), k * k * C)


def lenet_forward(x, params):
    """x: NCHW (B, 1, 28, 28); params in PyTorch layouts. Returns (log_probs, x1)."""
    W1, b1, W2, b2, Wf1, bf1, Wf2, bf2, Wf3, bf3 = params
    B = x.shape[0]

    # conv1 im2col grouped by pool phase; phases packed into lanes -> (B, 144, 128)
    x_hwc = jnp.transpose(x, (0, 2, 3, 1))                            # (B, 28, 28, 1)
    p1 = _im2col_phased(x_hwc, 5)                                     # (B, 4, 144, 25)
    p1 = jnp.pad(p1, ((0, 0), (0, 0), (0, 0), (0, 7)))                # F: 25 -> 32
    p1 = jnp.transpose(p1, (0, 2, 1, 3)).reshape(B, 144, 128)         # lane = phase*32+f
    p1 = p1.astype(_MXU_DTYPE)

    # conv1 weight: (kh,kw,ci) x co, padded to 32, block-diag over the 4 phases
    w1f = jnp.transpose(W1, (2, 3, 1, 0)).reshape(25, 64)
    w1f = jnp.pad(w1f, ((0, 7), (0, 0)))                              # (32, 64)
    w1bd = jnp.kron(jnp.eye(4, dtype=w1f.dtype), w1f).astype(_MXU_DTYPE)   # (128, 256)

    # conv2 weights grouped by kh: (5, 5*64, 64) rows = kw*64 + ci
    w2g = jnp.transpose(W2, (2, 3, 1, 0)).reshape(5, 320, 64).astype(_MXU_DTYPE)
    b2t = jnp.tile(b2, 16).reshape(1, 1024)                           # bias in (h,w,c) order

    # fc1 weight: PyTorch flatten order is (c, h, w); kernel feat order is (h, w, c)
    wf1 = jnp.transpose(Wf1.reshape(384, 64, 4, 4), (2, 3, 1, 0)).reshape(1024, 384)

    lp, x1 = lenet_pallas(
        p1, w1bd, b1.reshape(1, 64), w2g, b2t,
        wf1.astype(_MXU_DTYPE), bf1.reshape(1, 384),
        Wf2.T.astype(_MXU_DTYPE), bf2.reshape(1, 192),
        Wf3.T.astype(_MXU_DTYPE), bf3.reshape(1, 10))
    return lp, x1


# ----------------------------------------------------------------------------
# Deterministic synthetic parameters (PyTorch layouts) + pure-JAX reference
# ----------------------------------------------------------------------------
def init_params(key):
    ks = jax.random.split(key, 10)

    def u(k, shape, fan_in):
        bound = 1.0 / float(fan_in) ** 0.5
        return jax.random.uniform(k, shape, jnp.float32, -bound, bound)

    W1 = u(ks[0], (64, 1, 5, 5), 25);        b1 = u(ks[1], (64,), 25)
    W2 = u(ks[2], (64, 64, 5, 5), 64 * 25);  b2 = u(ks[3], (64,), 64 * 25)
    Wf1 = u(ks[4], (384, 1024), 1024);       bf1 = u(ks[5], (384,), 1024)
    Wf2 = u(ks[6], (192, 384), 384);         bf2 = u(ks[7], (192,), 384)
    Wf3 = u(ks[8], (10, 192), 192);          bf3 = u(ks[9], (10,), 192)
    return (W1, b1, W2, b2, Wf1, bf1, Wf2, bf2, Wf3, bf3)


def reference_forward(x, params):
    W1, b1, W2, b2, Wf1, bf1, Wf2, bf2, Wf3, bf3 = params

    def conv(y, w, b):
        y = jax.lax.conv_general_dilated(y, w, (1, 1), 'VALID',
                                         dimension_numbers=('NCHW', 'OIHW', 'NCHW'))
        return jax.nn.relu(y + b[None, :, None, None])

    def pool(y):
        B, C, H, W = y.shape
        return y.reshape(B, C, H // 2, 2, W // 2, 2).max(axis=(3, 5))

    y = pool(conv(x, W1, b1))
    y = pool(conv(y, W2, b2))
    y = y.reshape(y.shape[0], -1)
    x1 = jax.nn.relu(y @ Wf1.T + bf1)
    x2 = jax.nn.relu(x1 @ Wf2.T + bf2)
    logits = x2 @ Wf3.T + bf3
    return jax.nn.log_softmax(logits, axis=1), x1


# ----------------------------------------------------------------------------
if __name__ == "__main__":
    key = jax.random.PRNGKey(0)
    kx, kp = jax.random.split(key)
    # MNIST-sized input is required by the architecture (fc1 expects 64*4*4).
    x = jax.random.normal(kx, (2, 1, 28, 28), jnp.float32)
    params = init_params(kp)

    log_probs, x1 = jax.jit(lenet_forward)(x, params)
    jax.block_until_ready((log_probs, x1))

    assert log_probs.shape == (2, 10) and x1.shape == (2, 384)

    lp_ref, x1_ref = reference_forward(x, params)
    err_lp = float(jnp.max(jnp.abs(log_probs - lp_ref)))
    err_x1 = float(jnp.max(jnp.abs(x1 - x1_ref)))
    assert err_lp < 1e-3 and err_x1 < 1e-3, (err_lp, err_x1)

    print("KERNEL_OK")
</pallas_src>

<mosaic_0001>
module attributes {stable_mosaic.version = 11 : i64} {
  func.func @lenet_kernel(%arg0: i32, %arg1: memref<2x144x128xf32, #tpu.memory_space<vmem>>, %arg2: memref<128x256xf32, #tpu.memory_space<vmem>>, %arg3: memref<1x64xf32, #tpu.memory_space<vmem>>, %arg4: memref<5x320x64xf32, #tpu.memory_space<vmem>>, %arg5: memref<1x1024xf32, #tpu.memory_space<vmem>>, %arg6: memref<1024x384xf32, #tpu.memory_space<vmem>>, %arg7: memref<1x384xf32, #tpu.memory_space<vmem>>, %arg8: memref<384x192xf32, #tpu.memory_space<vmem>>, %arg9: memref<1x192xf32, #tpu.memory_space<vmem>>, %arg10: memref<192x10xf32, #tpu.memory_space<vmem>>, %arg11: memref<1x10xf32, #tpu.memory_space<vmem>>, %arg12: memref<2x10xf32, #tpu.memory_space<vmem>>, %arg13: memref<2x384xf32, #tpu.memory_space<vmem>>, %arg14: memref<2x12x12x64xf32, #tpu.memory_space<vmem>>, %arg15: memref<2x12x8x320xf32, #tpu.memory_space<vmem>>, %arg16: memref<128x64xf32, #tpu.memory_space<vmem>>) attributes {dimension_semantics = [#tpu.dimension_semantics<parallel>], iteration_bounds = array<i64: 1>, scalar_prefetch = 0 : i64, scratch_operands = 3 : i64, tpu.core_type = #tpu.core_type<tc>, window_params = [{transform_indices = @transform_0, window_bounds = array<i64: 2, 144, 128>}, {pipeline_mode = #tpu.pipeline_mode<synchronous>, transform_indices = @transform_1, window_bounds = array<i64: 128, 256>}, {pipeline_mode = #tpu.pipeline_mode<synchronous>, transform_indices = @transform_2, window_bounds = array<i64: 1, 64>}, {pipeline_mode = #tpu.pipeline_mode<synchronous>, transform_indices = @transform_3, window_bounds = array<i64: 5, 320, 64>}, {pipeline_mode = #tpu.pipeline_mode<synchronous>, transform_indices = @transform_4, window_bounds = array<i64: 1, 1024>}, {pipeline_mode = #tpu.pipeline_mode<synchronous>, transform_indices = @transform_5, window_bounds = array<i64: 1024, 384>}, {pipeline_mode = #tpu.pipeline_mode<synchronous>, transform_indices = @transform_6, window_bounds = array<i64: 1, 384>}, {pipeline_mode = #tpu.pipeline_mode<synchronous>, transform_indices = @transform_7, window_bounds = array<i64: 384, 192>}, {pipeline_mode = #tpu.pipeline_mode<synchronous>, transform_indices = @transform_8, window_bounds = array<i64: 1, 192>}, {pipeline_mode = #tpu.pipeline_mode<synchronous>, transform_indices = @transform_9, window_bounds = array<i64: 192, 10>}, {pipeline_mode = #tpu.pipeline_mode<synchronous>, transform_indices = @transform_10, window_bounds = array<i64: 1, 10>}, {transform_indices = @transform_11, window_bounds = array<i64: 2, 10>}, {transform_indices = @transform_12, window_bounds = array<i64: 2, 384>}]} {
    %c0 = arith.constant 0 : index
    %c0_0 = arith.constant 0 : index
    %c0_1 = arith.constant 0 : index
    %0 = vector.load %arg1[%c0, %c0_0, %c0_1] : memref<2x144x128xf32, #tpu.memory_space<vmem>>, vector<2x144x128xf32>
    %1 = vector.shape_cast %0 : vector<2x144x128xf32> to vector<288x128xf32>
    %c0_2 = arith.constant 0 : index
    %c0_3 = arith.constant 0 : index
    %2 = vector.load %arg2[%c0_2, %c0_3] : memref<128x256xf32, #tpu.memory_space<vmem>>, vector<128x256xf32>
    %cst = arith.constant dense<0.000000e+00> : vector<288x256xf32>
    %3 = tpu.matmul %1, %2, %cst {dimension_numbers = #tpu.dot_dimension_numbers<[1], [0], [0], [1], [0, 0, 1, 1], [], []>} : vector<288x128xf32>, vector<128x256xf32>, vector<288x256xf32> -> vector<288x256xf32>
    %4 = vector.extract_strided_slice %3 {offsets = [0, 0], sizes = [288, 64], strides = [1, 1]} : vector<288x256xf32> to vector<288x64xf32>
    %5 = vector.extract_strided_slice %3 {offsets = [0, 64], sizes = [288, 64], strides = [1, 1]} : vector<288x256xf32> to vector<288x64xf32>
    %6 = arith.maximumf %4, %5 : vector<288x64xf32>
    %7 = vector.extract_strided_slice %3 {offsets = [0, 128], sizes = [288, 64], strides = [1, 1]} : vector<288x256xf32> to vector<288x64xf32>
    %8 = vector.extract_strided_slice %3 {offsets = [0, 192], sizes = [288, 64], strides = [1, 1]} : vector<288x256xf32> to vector<288x64xf32>
    %9 = arith.maximumf %7, %8 : vector<288x64xf32>
    %10 = arith.maximumf %6, %9 : vector<288x64xf32>
    %c0_4 = arith.constant 0 : index
    %c0_5 = arith.constant 0 : index
    %11 = vector.load %arg3[%c0_4, %c0_5] : memref<1x64xf32, #tpu.memory_space<vmem>>, vector<1x64xf32>
    %12 = vector.broadcast %11 : vector<1x64xf32> to vector<288x64xf32>
    %13 = arith.addf %10, %12 : vector<288x64xf32>
    %cst_6 = arith.constant 0.000000e+00 : f32
    %14 = vector.broadcast %cst_6 : f32 to vector<288x64xf32>
    %15 = arith.maximumf %13, %14 : vector<288x64xf32>
    %16 = vector.shape_cast %15 : vector<288x64xf32> to vector<2x144x64xf32>
    %17 = vector.extract_strided_slice %16 {offsets = [0, 0, 0], sizes = [2, 12, 64], strides = [1, 1, 1]} : vector<2x144x64xf32> to vector<2x12x64xf32>
    %c0_7 = arith.constant 0 : index
    %c0_8 = arith.constant 0 : index
    %c0_9 = arith.constant 0 : index
    %c0_10 = arith.constant 0 : index
    %18 = vector.load %arg14[%c0_7, %c0_8, %c0_9, %c0_10] : memref<2x12x12x64xf32, #tpu.memory_space<vmem>>, vector<2x1x12x64xf32>
    %19 = vector.shape_cast %18 : vector<2x1x12x64xf32> to vector<2x12x64xf32>
    %20 = vector.shape_cast %17 : vector<2x12x64xf32> to vector<2x1x12x64xf32>
    tpu.vector_store %arg14[%c0_7, %c0_8, %c0_9, %c0_10], %20 {strides = array<i32>} : memref<2x12x12x64xf32, #tpu.memory_space<vmem>>, vector<2x1x12x64xf32>,
    %21 = vector.extract_strided_slice %16 {offsets = [0, 12, 0], sizes = [2, 12, 64], strides = [1, 1, 1]} : vector<2x144x64xf32> to vector<2x12x64xf32>
    %c0_11 = arith.constant 0 : index
    %c1 = arith.constant 1 : index
    %c0_12 = arith.constant 0 : index
    %c0_13 = arith.constant 0 : index
    %22 = vector.load %arg14[%c0_11, %c1, %c0_12, %c0_13] : memref<2x12x12x64xf32, #tpu.memory_space<vmem>>, vector<2x1x12x64xf32>
    %23 = vector.shape_cast %22 : vector<2x1x12x64xf32> to vector<2x12x64xf32>
    %24 = vector.shape_cast %21 : vector<2x12x64xf32> to vector<2x1x12x64xf32>
    tpu.vector_store %arg14[%c0_11, %c1, %c0_12, %c0_13], %24 {strides = array<i32>} : memref<2x12x12x64xf32, #tpu.memory_space<vmem>>, vector<2x1x12x64xf32>,
    %25 = vector.extract_strided_slice %16 {offsets = [0, 24, 0], sizes = [2, 12, 64], strides = [1, 1, 1]} : vector<2x144x64xf32> to vector<2x12x64xf32>
    %c0_14 = arith.constant 0 : index
    %c2 = arith.constant 2 : index
    %c0_15 = arith.constant 0 : index
    %c0_16 = arith.constant 0 : index
    %26 = vector.load %arg14[%c0_14, %c2, %c0_15, %c0_16] : memref<2x12x12x64xf32, #tpu.memory_space<vmem>>, vector<2x1x12x64xf32>
    %27 = vector.shape_cast %26 : vector<2x1x12x64xf32> to vector<2x12x64xf32>
    %28 = vector.shape_cast %25 : vector<2x12x64xf32> to vector<2x1x12x64xf32>
    tpu.vector_store %arg14[%c0_14, %c2, %c0_15, %c0_16], %28 {strides = array<i32>} : memref<2x12x12x64xf32, #tpu.memory_space<vmem>>, vector<2x1x12x64xf32>,
    %29 = vector.extract_strided_slice %16 {offsets = [0, 36, 0], sizes = [2, 12, 64], strides = [1, 1, 1]} : vector<2x144x64xf32> to vector<2x12x64xf32>
    %c0_17 = arith.constant 0 : index
    %c3 = arith.constant 3 : index
    %c0_18 = arith.constant 0 : index
    %c0_19 = arith.constant 0 : index
    %30 = vector.load %arg14[%c0_17, %c3, %c0_18, %c0_19] : memref<2x12x12x64xf32, #tpu.memory_space<vmem>>, vector<2x1x12x64xf32>
    %31 = vector.shape_cast %30 : vector<2x1x12x64xf32> to vector<2x12x64xf32>
    %32 = vector.shape_cast %29 : vector<2x12x64xf32> to vector<2x1x12x64xf32>
    tpu.vector_store %arg14[%c0_17, %c3, %c0_18, %c0_19], %32 {strides = array<i32>} : memref<2x12x12x64xf32, #tpu.memory_space<vmem>>, vector<2x1x12x64xf32>,
    %33 = vector.extract_strided_slice %16 {offsets = [0, 48, 0], sizes = [2, 12, 64], strides = [1, 1, 1]} : vector<2x144x64xf32> to vector<2x12x64xf32>
    %c0_20 = arith.constant 0 : index
    %c4 = arith.constant 4 : index
    %c0_21 = arith.constant 0 : index
    %c0_22 = arith.constant 0 : index
    %34 = vector.load %arg14[%c0_20, %c4, %c0_21, %c0_22] : memref<2x12x12x64xf32, #tpu.memory_space<vmem>>, vector<2x1x12x64xf32>
    %35 = vector.shape_cast %34 : vector<2x1x12x64xf32> to vector<2x12x64xf32>
    %36 = vector.shape_cast %33 : vector<2x12x64xf32> to vector<2x1x12x64xf32>
    tpu.vector_store %arg14[%c0_20, %c4, %c0_21, %c0_22], %36 {strides = array<i32>} : memref<2x12x12x64xf32, #tpu.memory_space<vmem>>, vector<2x1x12x64xf32>,
    %37 = vector.extract_strided_slice %16 {offsets = [0, 60, 0], sizes = [2, 12, 64], strides = [1, 1, 1]} : vector<2x144x64xf32> to vector<2x12x64xf32>
    %c0_23 = arith.constant 0 : index
    %c5 = arith.constant 5 : index
    %c0_24 = arith.constant 0 : index
    %c0_25 = arith.constant 0 : index
    %38 = vector.load %arg14[%c0_23, %c5, %c0_24, %c0_25] : memref<2x12x12x64xf32, #tpu.memory_space<vmem>>, vector<2x1x12x64xf32>
    %39 = vector.shape_cast %38 : vector<2x1x12x64xf32> to vector<2x12x64xf32>
    %40 = vector.shape_cast %37 : vector<2x12x64xf32> to vector<2x1x12x64xf32>
    tpu.vector_store %arg14[%c0_23, %c5, %c0_24, %c0_25], %40 {strides = array<i32>} : memref<2x12x12x64xf32, #tpu.memory_space<vmem>>, vector<2x1x12x64xf32>,
    %41 = vector.extract_strided_slice %16 {offsets = [0, 72, 0], sizes = [2, 12, 64], strides = [1, 1, 1]} : vector<2x144x64xf32> to vector<2x12x64xf32>
    %c0_26 = arith.constant 0 : index
    %c6 = arith.constant 6 : index
    %c0_27 = arith.constant 0 : index
    %c0_28 = arith.constant 0 : index
    %42 = vector.load %arg14[%c0_26, %c6, %c0_27, %c0_28] : memref<2x12x12x64xf32, #tpu.memory_space<vmem>>, vector<2x1x12x64xf32>
    %43 = vector.shape_cast %42 : vector<2x1x12x64xf32> to vector<2x12x64xf32>
    %44 = vector.shape_cast %41 : vector<2x12x64xf32> to vector<2x1x12x64xf32>
    tpu.vector_store %arg14[%c0_26, %c6, %c0_27, %c0_28], %44 {strides = array<i32>} : memref<2x12x12x64xf32, #tpu.memory_space<vmem>>, vector<2x1x12x64xf32>,
    %45 = vector.extract_strided_slice %16 {offsets = [0, 84, 0], sizes = [2, 12, 64], strides = [1, 1, 1]} : vector<2x144x64xf32> to vector<2x12x64xf32>
    %c0_29 = arith.constant 0 : index
    %c7 = arith.constant 7 : index
    %c0_30 = arith.constant 0 : index
    %c0_31 = arith.constant 0 : index
    %46 = vector.load %arg14[%c0_29, %c7, %c0_30, %c0_31] : memref<2x12x12x64xf32, #tpu.memory_space<vmem>>, vector<2x1x12x64xf32>
    %47 = vector.shape_cast %46 : vector<2x1x12x64xf32> to vector<2x12x64xf32>
    %48 = vector.shape_cast %45 : vector<2x12x64xf32> to vector<2x1x12x64xf32>
    tpu.vector_store %arg14[%c0_29, %c7, %c0_30, %c0_31], %48 {strides = array<i32>} : memref<2x12x12x64xf32, #tpu.memory_space<vmem>>, vector<2x1x12x64xf32>,
    %49 = vector.extract_strided_slice %16 {offsets = [0, 96, 0], sizes = [2, 12, 64], strides = [1, 1, 1]} : vector<2x144x64xf32> to vector<2x12x64xf32>
    %c0_32 = arith.constant 0 : index
    %c8 = arith.constant 8 : index
    %c0_33 = arith.constant 0 : index
    %c0_34 = arith.constant 0 : index
    %50 = vector.load %arg14[%c0_32, %c8, %c0_33, %c0_34] : memref<2x12x12x64xf32, #tpu.memory_space<vmem>>, vector<2x1x12x64xf32>
    %51 = vector.shape_cast %50 : vector<2x1x12x64xf32> to vector<2x12x64xf32>
    %52 = vector.shape_cast %49 : vector<2x12x64xf32> to vector<2x1x12x64xf32>
    tpu.vector_store %arg14[%c0_32, %c8, %c0_33, %c0_34], %52 {strides = array<i32>} : memref<2x12x12x64xf32, #tpu.memory_space<vmem>>, vector<2x1x12x64xf32>,
    %53 = vector.extract_strided_slice %16 {offsets = [0, 108, 0], sizes = [2, 12, 64], strides = [1, 1, 1]} : vector<2x144x64xf32> to vector<2x12x64xf32>
    %c0_35 = arith.constant 0 : index
    %c9 = arith.constant 9 : index
    %c0_36 = arith.constant 0 : index
    %c0_37 = arith.constant 0 : index
    %54 = vector.load %arg14[%c0_35, %c9, %c0_36, %c0_37] : memref<2x12x12x64xf32, #tpu.memory_space<vmem>>, vector<2x1x12x64xf32>
    %55 = vector.shape_cast %54 : vector<2x1x12x64xf32> to vector<2x12x64xf32>
    %56 = vector.shape_cast %53 : vector<2x12x64xf32> to vector<2x1x12x64xf32>
    tpu.vector_store %arg14[%c0_35, %c9, %c0_36, %c0_37], %56 {strides = array<i32>} : memref<2x12x12x64xf32, #tpu.memory_space<vmem>>, vector<2x1x12x64xf32>,
    %57 = vector.extract_strided_slice %16 {offsets = [0, 120, 0], sizes = [2, 12, 64], strides = [1, 1, 1]} : vector<2x144x64xf32> to vector<2x12x64xf32>
    %c0_38 = arith.constant 0 : index
    %c10 = arith.constant 10 : index
    %c0_39 = arith.constant 0 : index
    %c0_40 = arith.constant 0 : index
    %58 = vector.load %arg14[%c0_38, %c10, %c0_39, %c0_40] : memref<2x12x12x64xf32, #tpu.memory_space<vmem>>, vector<2x1x12x64xf32>
    %59 = vector.shape_cast %58 : vector<2x1x12x64xf32> to vector<2x12x64xf32>
    %60 = vector.shape_cast %57 : vector<2x12x64xf32> to vector<2x1x12x64xf32>
    tpu.vector_store %arg14[%c0_38, %c10, %c0_39, %c0_40], %60 {strides = array<i32>} : memref<2x12x12x64xf32, #tpu.memory_space<vmem>>, vector<2x1x12x64xf32>,
    %61 = vector.extract_strided_slice %16 {offsets = [0, 132, 0], sizes = [2, 12, 64], strides = [1, 1, 1]} : vector<2x144x64xf32> to vector<2x12x64xf32>
    %c0_41 = arith.constant 0 : index
    %c11 = arith.constant 11 : index
    %c0_42 = arith.constant 0 : index
    %c0_43 = arith.constant 0 : index
    %62 = vector.load %arg14[%c0_41, %c11, %c0_42, %c0_43] : memref<2x12x12x64xf32, #tpu.memory_space<vmem>>, vector<2x1x12x64xf32>
    %63 = vector.shape_cast %62 : vector<2x1x12x64xf32> to vector<2x12x64xf32>
    %64 = vector.shape_cast %61 : vector<2x12x64xf32> to vector<2x1x12x64xf32>
    tpu.vector_store %arg14[%c0_41, %c11, %c0_42, %c0_43], %64 {strides = array<i32>} : memref<2x12x12x64xf32, #tpu.memory_space<vmem>>, vector<2x1x12x64xf32>,
    %c0_44 = arith.constant 0 : index
    %c0_45 = arith.constant 0 : index
    %c0_46 = arith.constant 0 : index
    %c0_47 = arith.constant 0 : index
    %65 = vector.load %arg14[%c0_44, %c0_45, %c0_46, %c0_47] : memref<2x12x12x64xf32, #tpu.memory_space<vmem>>, vector<2x12x8x64xf32>
    %c0_48 = arith.constant 0 : index
    %c0_49 = arith.constant 0 : index
    %c0_50 = arith.constant 0 : index
    %c0_51 = arith.constant 0 : index
    %66 = vector.load %arg15[%c0_48, %c0_49, %c0_50, %c0_51] : memref<2x12x8x320xf32, #tpu.memory_space<vmem>>, vector<2x12x8x64xf32>
    tpu.vector_store %arg15[%c0_48, %c0_49, %c0_50, %c0_51], %65 {strides = array<i32>} : memref<2x12x8x320xf32, #tpu.memory_space<vmem>>, vector<2x12x8x64xf32>,
    %c0_52 = arith.constant 0 : index
    %c0_53 = arith.constant 0 : index
    %c1_54 = arith.constant 1 : index
    %c0_55 = arith.constant 0 : index
    %67 = vector.load %arg14[%c0_52, %c0_53, %c1_54, %c0_55] : memref<2x12x12x64xf32, #tpu.memory_space<vmem>>, vector<2x12x8x64xf32>
    %c0_56 = arith.constant 0 : index
    %c0_57 = arith.constant 0 : index
    %c0_58 = arith.constant 0 : index
    %c64 = arith.constant 64 : index
    %68 = vector.load %arg15[%c0_56, %c0_57, %c0_58, %c64] : memref<2x12x8x320xf32, #tpu.memory_space<vmem>>, vector<2x12x8x64xf32>
    tpu.vector_store %arg15[%c0_56, %c0_57, %c0_58, %c64], %67 {strides = array<i32>} : memref<2x12x8x320xf32, #tpu.memory_space<vmem>>, vector<2x12x8x64xf32>,
    %c0_59 = arith.constant 0 : index
    %c0_60 = arith.constant 0 : index
    %c2_61 = arith.constant 2 : index
    %c0_62 = arith.constant 0 : index
    %69 = vector.load %arg14[%c0_59, %c0_60, %c2_61, %c0_62] : memref<2x12x12x64xf32, #tpu.memory_space<vmem>>, vector<2x12x8x64xf32>
    %c0_63 = arith.constant 0 : index
    %c0_64 = arith.constant 0 : index
    %c0_65 = arith.constant 0 : index
    %c128 = arith.constant 128 : index
    %70 = vector.load %arg15[%c0_63, %c0_64, %c0_65, %c128] : memref<2x12x8x320xf32, #tpu.memory_space<vmem>>, vector<2x12x8x64xf32>
    tpu.vector_store %arg15[%c0_63, %c0_64, %c0_65, %c128], %69 {strides = array<i32>} : memref<2x12x8x320xf32, #tpu.memory_space<vmem>>, vector<2x12x8x64xf32>,
    %c0_66 = arith.constant 0 : index
    %c0_67 = arith.constant 0 : index
    %c3_68 = arith.constant 3 : index
    %c0_69 = arith.constant 0 : index
    %71 = vector.load %arg14[%c0_66, %c0_67, %c3_68, %c0_69] : memref<2x12x12x64xf32, #tpu.memory_space<vmem>>, vector<2x12x8x64xf32>
    %c0_70 = arith.constant 0 : index
    %c0_71 = arith.constant 0 : index
    %c0_72 = arith.constant 0 : index
    %c192 = arith.constant 192 : index
    %72 = vector.load %arg15[%c0_70, %c0_71, %c0_72, %c192] : memref<2x12x8x320xf32, #tpu.memory_space<vmem>>, vector<2x12x8x64xf32>
    tpu.vector_store %arg15[%c0_70, %c0_71, %c0_72, %c192], %71 {strides = array<i32>} : memref<2x12x8x320xf32, #tpu.memory_space<vmem>>, vector<2x12x8x64xf32>,
    %c0_73 = arith.constant 0 : index
    %c0_74 = arith.constant 0 : index
    %c4_75 = arith.constant 4 : index
    %c0_76 = arith.constant 0 : index
    %73 = vector.load %arg14[%c0_73, %c0_74, %c4_75, %c0_76] : memref<2x12x12x64xf32, #tpu.memory_space<vmem>>, vector<2x12x8x64xf32>
    %c0_77 = arith.constant 0 : index
    %c0_78 = arith.constant 0 : index
    %c0_79 = arith.constant 0 : index
    %c256 = arith.constant 256 : index
    %74 = vector.load %arg15[%c0_77, %c0_78, %c0_79, %c256] : memref<2x12x8x320xf32, #tpu.memory_space<vmem>>, vector<2x12x8x64xf32>
    tpu.vector_store %arg15[%c0_77, %c0_78, %c0_79, %c256], %73 {strides = array<i32>} : memref<2x12x8x320xf32, #tpu.memory_space<vmem>>, vector<2x12x8x64xf32>,
    %c0_80 = arith.constant 0 : index
    %c0_81 = arith.constant 0 : index
    %c0_82 = arith.constant 0 : index
    %c0_83 = arith.constant 0 : index
    %75 = vector.load %arg15[%c0_80, %c0_81, %c0_82, %c0_83] : memref<2x12x8x320xf32, #tpu.memory_space<vmem>>, vector<2x8x8x320xf32>
    %76 = vector.shape_cast %75 : vector<2x8x8x320xf32> to vector<128x320xf32>
    %c0_84 = arith.constant 0 : index
    %c0_85 = arith.constant 0 : index
    %c0_86 = arith.constant 0 : index
    %77 = vector.load %arg4[%c0_84, %c0_85, %c0_86] : memref<5x320x64xf32, #tpu.memory_space<vmem>>, vector<1x320x64xf32>
    %78 = vector.shape_cast %77 : vector<1x320x64xf32> to vector<320x64xf32>
    %cst_87 = arith.constant dense<0.000000e+00> : vector<128x64xf32>
    %79 = tpu.matmul %76, %78, %cst_87 {dimension_numbers = #tpu.dot_dimension_numbers<[1], [0], [0], [1], [0, 0, 1, 1], [], []>} : vector<128x320xf32>, vector<320x64xf32>, vector<128x64xf32> -> vector<128x64xf32>
    %c0_88 = arith.constant 0 : index
    %c0_89 = arith.constant 0 : index
    %80 = vector.load %arg16[%c0_88, %c0_89] : memref<128x64xf32, #tpu.memory_space<vmem>>, vector<128x64xf32>
    tpu.vector_store %arg16[%c0_88, %c0_89], %79 {strides = array<i32>} : memref<128x64xf32, #tpu.memory_space<vmem>>, vector<128x64xf32>,
    %c0_90 = arith.constant 0 : index
    %c1_91 = arith.constant 1 : index
    %c0_92 = arith.constant 0 : index
    %c0_93 = arith.constant 0 : index
    %81 = vector.load %arg15[%c0_90, %c1_91, %c0_92, %c0_93] : memref<2x12x8x320xf32, #tpu.memory_space<vmem>>, vector<2x8x8x320xf32>
    %82 = vector.shape_cast %81 : vector<2x8x8x320xf32> to vector<128x320xf32>
    %c1_94 = arith.constant 1 : index
    %c0_95 = arith.constant 0 : index
    %c0_96 = arith.constant 0 : index
    %83 = vector.load %arg4[%c1_94, %c0_95, %c0_96] : memref<5x320x64xf32, #tpu.memory_space<vmem>>, vector<1x320x64xf32>
    %84 = vector.shape_cast %83 : vector<1x320x64xf32> to vector<320x64xf32>
    %cst_97 = arith.constant dense<0.000000e+00> : vector<128x64xf32>
    %85 = tpu.matmul %82, %84, %cst_97 {dimension_numbers = #tpu.dot_dimension_numbers<[1], [0], [0], [1], [0, 0, 1, 1], [], []>} : vector<128x320xf32>, vector<320x64xf32>, vector<128x64xf32> -> vector<128x64xf32>
    %c0_98 = arith.constant 0 : index
    %c0_99 = arith.constant 0 : index
    %86 = vector.load %arg16[%c0_98, %c0_99] : memref<128x64xf32, #tpu.memory_space<vmem>>, vector<128x64xf32>
    %87 = arith.addf %86, %85 : vector<128x64xf32>
    %c0_100 = arith.constant 0 : index
    %c0_101 = arith.constant 0 : index
    %88 = vector.load %arg16[%c0_100, %c0_101] : memref<128x64xf32, #tpu.memory_space<vmem>>, vector<128x64xf32>
    tpu.vector_store %arg16[%c0_100, %c0_101], %87 {strides = array<i32>} : memref<128x64xf32, #tpu.memory_space<vmem>>, vector<128x64xf32>,
    %c0_102 = arith.constant 0 : index
    %c2_103 = arith.constant 2 : index
    %c0_104 = arith.constant 0 : index
    %c0_105 = arith.constant 0 : index
    %89 = vector.load %arg15[%c0_102, %c2_103, %c0_104, %c0_105] : memref<2x12x8x320xf32, #tpu.memory_space<vmem>>, vector<2x8x8x320xf32>
    %90 = vector.shape_cast %89 : vector<2x8x8x320xf32> to vector<128x320xf32>
    %c2_106 = arith.constant 2 : index
    %c0_107 = arith.constant 0 : index
    %c0_108 = arith.constant 0 : index
    %91 = vector.load %arg4[%c2_106, %c0_107, %c0_108] : memref<5x320x64xf32, #tpu.memory_space<vmem>>, vector<1x320x64xf32>
    %92 = vector.shape_cast %91 : vector<1x320x64xf32> to vector<320x64xf32>
    %cst_109 = arith.constant dense<0.000000e+00> : vector<128x64xf32>
    %93 = tpu.matmul %90, %92, %cst_109 {dimension_numbers = #tpu.dot_dimension_numbers<[1], [0], [0], [1], [0, 0, 1, 1], [], []>} : vector<128x320xf32>, vector<320x64xf32>, vector<128x64xf32> -> vector<128x64xf32>
    %c0_110 = arith.constant 0 : index
    %c0_111 = arith.constant 0 : index
    %94 = vector.load %arg16[%c0_110, %c0_111] : memref<128x64xf32, #tpu.memory_space<vmem>>, vector<128x64xf32>
    %95 = arith.addf %94, %93 : vector<128x64xf32>
    %c0_112 = arith.constant 0 : index
    %c0_113 = arith.constant 0 : index
    %96 = vector.load %arg16[%c0_112, %c0_113] : memref<128x64xf32, #tpu.memory_space<vmem>>, vector<128x64xf32>
    tpu.vector_store %arg16[%c0_112, %c0_113], %95 {strides = array<i32>} : memref<128x64xf32, #tpu.memory_space<vmem>>, vector<128x64xf32>,
    %c0_114 = arith.constant 0 : index
    %c3_115 = arith.constant 3 : index
    %c0_116 = arith.constant 0 : index
    %c0_117 = arith.constant 0 : index
    %97 = vector.load %arg15[%c0_114, %c3_115, %c0_116, %c0_117] : memref<2x12x8x320xf32, #tpu.memory_space<vmem>>, vector<2x8x8x320xf32>
    %98 = vector.shape_cast %97 : vector<2x8x8x320xf32> to vector<128x320xf32>
    %c3_118 = arith.constant 3 : index
    %c0_119 = arith.constant 0 : index
    %c0_120 = arith.constant 0 : index
    %99 = vector.load %arg4[%c3_118, %c0_119, %c0_120] : memref<5x320x64xf32, #tpu.memory_space<vmem>>, vector<1x320x64xf32>
    %100 = vector.shape_cast %99 : vector<1x320x64xf32> to vector<320x64xf32>
    %cst_121 = arith.constant dense<0.000000e+00> : vector<128x64xf32>
    %101 = tpu.matmul %98, %100, %cst_121 {dimension_numbers = #tpu.dot_dimension_numbers<[1], [0], [0], [1], [0, 0, 1, 1], [], []>} : vector<128x320xf32>, vector<320x64xf32>, vector<128x64xf32> -> vector<128x64xf32>
    %c0_122 = arith.constant 0 : index
    %c0_123 = arith.constant 0 : index
    %102 = vector.load %arg16[%c0_122, %c0_123] : memref<128x64xf32, #tpu.memory_space<vmem>>, vector<128x64xf32>
    %103 = arith.addf %102, %101 : vector<128x64xf32>
    %c0_124 = arith.constant 0 : index
    %c0_125 = arith.constant 0 : index
    %104 = vector.load %arg16[%c0_124, %c0_125] : memref<128x64xf32, #tpu.memory_space<vmem>>, vector<128x64xf32>
    tpu.vector_store %arg16[%c0_124, %c0_125], %103 {strides = array<i32>} : memref<128x64xf32, #tpu.memory_space<vmem>>, vector<128x64xf32>,
    %c0_126 = arith.constant 0 : index
    %c4_127 = arith.constant 4 : index
    %c0_128 = arith.constant 0 : index
    %c0_129 = arith.constant 0 : index
    %105 = vector.load %arg15[%c0_126, %c4_127, %c0_128, %c0_129] : memref<2x12x8x320xf32, #tpu.memory_space<vmem>>, vector<2x8x8x320xf32>
    %106 = vector.shape_cast %105 : vector<2x8x8x320xf32> to vector<128x320xf32>
    %c4_130 = arith.constant 4 : index
    %c0_131 = arith.constant 0 : index
    %c0_132 = arith.constant 0 : index
    %107 = vector.load %arg4[%c4_130, %c0_131, %c0_132] : memref<5x320x64xf32, #tpu.memory_space<vmem>>, vector<1x320x64xf32>
    %108 = vector.shape_cast %107 : vector<1x320x64xf32> to vector<320x64xf32>
    %cst_133 = arith.constant dense<0.000000e+00> : vector<128x64xf32>
    %109 = tpu.matmul %106, %108, %cst_133 {dimension_numbers = #tpu.dot_dimension_numbers<[1], [0], [0], [1], [0, 0, 1, 1], [], []>} : vector<128x320xf32>, vector<320x64xf32>, vector<128x64xf32> -> vector<128x64xf32>
    %c0_134 = arith.constant 0 : index
    %c0_135 = arith.constant 0 : index
    %110 = vector.load %arg16[%c0_134, %c0_135] : memref<128x64xf32, #tpu.memory_space<vmem>>, vector<128x64xf32>
    %111 = arith.addf %110, %109 : vector<128x64xf32>
    %c0_136 = arith.constant 0 : index
    %c0_137 = arith.constant 0 : index
    %112 = vector.load %arg16[%c0_136, %c0_137] : memref<128x64xf32, #tpu.memory_space<vmem>>, vector<128x64xf32>
    tpu.vector_store %arg16[%c0_136, %c0_137], %111 {strides = array<i32>} : memref<128x64xf32, #tpu.memory_space<vmem>>, vector<128x64xf32>,
    %c0_138 = arith.constant 0 : index
    %c0_139 = arith.constant 0 : index
    %113 = vector.load %arg16[%c0_138, %c0_139] : memref<128x64xf32, #tpu.memory_space<vmem>>, vector<128x64xf32>
    %114 = vector.shape_cast %113 : vector<128x64xf32> to vector<2x8x8x64xf32>
    %115 = vector.extract_strided_slice %114 {offsets = [0, 0, 0, 0], sizes = [2, 1, 8, 64], strides = [1, 1, 1, 1]} : vector<2x8x8x64xf32> to vector<2x1x8x64xf32>
    %116 = vector.shape_cast %115 : vector<2x1x8x64xf32> to vector<2x8x64xf32>
    %117 = vector.extract_strided_slice %114 {offsets = [0, 1, 0, 0], sizes = [2, 1, 8, 64], strides = [1, 1, 1, 1]} : vector<2x8x8x64xf32> to vector<2x1x8x64xf32>
    %118 = vector.shape_cast %117 : vector<2x1x8x64xf32> to vector<2x8x64xf32>
    %119 = arith.maximumf %116, %118 : vector<2x8x64xf32>
    %120 = vector.extract_strided_slice %119 {offsets = [0, 0, 0], sizes = [2, 1, 64], strides = [1, 1, 1]} : vector<2x8x64xf32> to vector<2x1x64xf32>
    %121 = vector.shape_cast %120 : vector<2x1x64xf32> to vector<2x64xf32>
    %122 = vector.extract_strided_slice %119 {offsets = [0, 1, 0], sizes = [2, 1, 64], strides = [1, 1, 1]} : vector<2x8x64xf32> to vector<2x1x64xf32>
    %123 = vector.shape_cast %122 : vector<2x1x64xf32> to vector<2x64xf32>
    %124 = arith.maximumf %121, %123 : vector<2x64xf32>
    %125 = vector.extract_strided_slice %119 {offsets = [0, 2, 0], sizes = [2, 1, 64], strides = [1, 1, 1]} : vector<2x8x64xf32> to vector<2x1x64xf32>
    %126 = vector.shape_cast %125 : vector<2x1x64xf32> to vector<2x64xf32>
    %127 = vector.extract_strided_slice %119 {offsets = [0, 3, 0], sizes = [2, 1, 64], strides = [1, 1, 1]} : vector<2x8x64xf32> to vector<2x1x64xf32>
    %128 = vector.shape_cast %127 : vector<2x1x64xf32> to vector<2x64xf32>
    %129 = arith.maximumf %126, %128 : vector<2x64xf32>
    %130 = vector.extract_strided_slice %119 {offsets = [0, 4, 0], sizes = [2, 1, 64], strides = [1, 1, 1]} : vector<2x8x64xf32> to vector<2x1x64xf32>
    %131 = vector.shape_cast %130 : vector<2x1x64xf32> to vector<2x64xf32>
    %132 = vector.extract_strided_slice %119 {offsets = [0, 5, 0], sizes = [2, 1, 64], strides = [1, 1, 1]} : vector<2x8x64xf32> to vector<2x1x64xf32>
    %133 = vector.shape_cast %132 : vector<2x1x64xf32> to vector<2x64xf32>
    %134 = arith.maximumf %131, %133 : vector<2x64xf32>
    %135 = vector.extract_strided_slice %119 {offsets = [0, 6, 0], sizes = [2, 1, 64], strides = [1, 1, 1]} : vector<2x8x64xf32> to vector<2x1x64xf32>
    %136 = vector.shape_cast %135 : vector<2x1x64xf32> to vector<2x64xf32>
    %137 = vector.extract_strided_slice %119 {offsets = [0, 7, 0], sizes = [2, 1, 64], strides = [1, 1, 1]} : vector<2x8x64xf32> to vector<2x1x64xf32>
    %138 = vector.shape_cast %137 : vector<2x1x64xf32> to vector<2x64xf32>
    %139 = arith.maximumf %136, %138 : vector<2x64xf32>
    %140 = vector.extract_strided_slice %114 {offsets = [0, 2, 0, 0], sizes = [2, 1, 8, 64], strides = [1, 1, 1, 1]} : vector<2x8x8x64xf32> to vector<2x1x8x64xf32>
    %141 = vector.shape_cast %140 : vector<2x1x8x64xf32> to vector<2x8x64xf32>
    %142 = vector.extract_strided_slice %114 {offsets = [0, 3, 0, 0], sizes = [2, 1, 8, 64], strides = [1, 1, 1, 1]} : vector<2x8x8x64xf32> to vector<2x1x8x64xf32>
    %143 = vector.shape_cast %142 : vector<2x1x8x64xf32> to vector<2x8x64xf32>
    %144 = arith.maximumf %141, %143 : vector<2x8x64xf32>
    %145 = vector.extract_strided_slice %144 {offsets = [0, 0, 0], sizes = [2, 1, 64], strides = [1, 1, 1]} : vector<2x8x64xf32> to vector<2x1x64xf32>
    %146 = vector.shape_cast %145 : vector<2x1x64xf32> to vector<2x64xf32>
    %147 = vector.extract_strided_slice %144 {offsets = [0, 1, 0], sizes = [2, 1, 64], strides = [1, 1, 1]} : vector<2x8x64xf32> to vector<2x1x64xf32>
    %148 = vector.shape_cast %147 : vector<2x1x64xf32> to vector<2x64xf32>
    %149 = arith.maximumf %146, %148 : vector<2x64xf32>
    %150 = vector.extract_strided_slice %144 {offsets = [0, 2, 0], sizes = [2, 1, 64], strides = [1, 1, 1]} : vector<2x8x64xf32> to vector<2x1x64xf32>
    %151 = vector.shape_cast %150 : vector<2x1x64xf32> to vector<2x64xf32>
    %152 = vector.extract_strided_slice %144 {offsets = [0, 3, 0], sizes = [2, 1, 64], strides = [1, 1, 1]} : vector<2x8x64xf32> to vector<2x1x64xf32>
    %153 = vector.shape_cast %152 : vector<2x1x64xf32> to vector<2x64xf32>
    %154 = arith.maximumf %151, %153 : vector<2x64xf32>
    %155 = vector.extract_strided_slice %144 {offsets = [0, 4, 0], sizes = [2, 1, 64], strides = [1, 1, 1]} : vector<2x8x64xf32> to vector<2x1x64xf32>
    %156 = vector.shape_cast %155 : vector<2x1x64xf32> to vector<2x64xf32>
    %157 = vector.extract_strided_slice %144 {offsets = [0, 5, 0], sizes = [2, 1, 64], strides = [1, 1, 1]} : vector<2x8x64xf32> to vector<2x1x64xf32>
    %158 = vector.shape_cast %157 : vector<2x1x64xf32> to vector<2x64xf32>
    %159 = arith.maximumf %156, %158 : vector<2x64xf32>
    %160 = vector.extract_strided_slice %144 {offsets = [0, 6, 0], sizes = [2, 1, 64], strides = [1, 1, 1]} : vector<2x8x64xf32> to vector<2x1x64xf32>
    %161 = vector.shape_cast %160 : vector<2x1x64xf32> to vector<2x64xf32>
    %162 = vector.extract_strided_slice %144 {offsets = [0, 7, 0], sizes = [2, 1, 64], strides = [1, 1, 1]} : vector<2x8x64xf32> to vector<2x1x64xf32>
    %163 = vector.shape_cast %162 : vector<2x1x64xf32> to vector<2x64xf32>
    %164 = arith.maximumf %161, %163 : vector<2x64xf32>
    %165 = vector.extract_strided_slice %114 {offsets = [0, 4, 0, 0], sizes = [2, 1, 8, 64], strides = [1, 1, 1, 1]} : vector<2x8x8x64xf32> to vector<2x1x8x64xf32>
    %166 = vector.shape_cast %165 : vector<2x1x8x64xf32> to vector<2x8x64xf32>
    %167 = vector.extract_strided_slice %114 {offsets = [0, 5, 0, 0], sizes = [2, 1, 8, 64], strides = [1, 1, 1, 1]} : vector<2x8x8x64xf32> to vector<2x1x8x64xf32>
    %168 = vector.shape_cast %167 : vector<2x1x8x64xf32> to vector<2x8x64xf32>
    %169 = arith.maximumf %166, %168 : vector<2x8x64xf32>
    %170 = vector.extract_strided_slice %169 {offsets = [0, 0, 0], sizes = [2, 1, 64], strides = [1, 1, 1]} : vector<2x8x64xf32> to vector<2x1x64xf32>
    %171 = vector.shape_cast %170 : vector<2x1x64xf32> to vector<2x64xf32>
    %172 = vector.extract_strided_slice %169 {offsets = [0, 1, 0], sizes = [2, 1, 64], strides = [1, 1, 1]} : vector<2x8x64xf32> to vector<2x1x64xf32>
    %173 = vector.shape_cast %172 : vector<2x1x64xf32> to vector<2x64xf32>
    %174 = arith.maximumf %171, %173 : vector<2x64xf32>
    %175 = vector.extract_strided_slice %169 {offsets = [0, 2, 0], sizes = [2, 1, 64], strides = [1, 1, 1]} : vector<2x8x64xf32> to vector<2x1x64xf32>
    %176 = vector.shape_cast %175 : vector<2x1x64xf32> to vector<2x64xf32>
    %177 = vector.extract_strided_slice %169 {offsets = [0, 3, 0], sizes = [2, 1, 64], strides = [1, 1, 1]} : vector<2x8x64xf32> to vector<2x1x64xf32>
    %178 = vector.shape_cast %177 : vector<2x1x64xf32> to vector<2x64xf32>
    %179 = arith.maximumf %176, %178 : vector<2x64xf32>
    %180 = vector.extract_strided_slice %169 {offsets = [0, 4, 0], sizes = [2, 1, 64], strides = [1, 1, 1]} : vector<2x8x64xf32> to vector<2x1x64xf32>
    %181 = vector.shape_cast %180 : vector<2x1x64xf32> to vector<2x64xf32>
    %182 = vector.extract_strided_slice %169 {offsets = [0, 5, 0], sizes = [2, 1, 64], strides = [1, 1, 1]} : vector<2x8x64xf32> to vector<2x1x64xf32>
    %183 = vector.shape_cast %182 : vector<2x1x64xf32> to vector<2x64xf32>
    %184 = arith.maximumf %181, %183 : vector<2x64xf32>
    %185 = vector.extract_strided_slice %169 {offsets = [0, 6, 0], sizes = [2, 1, 64], strides = [1, 1, 1]} : vector<2x8x64xf32> to vector<2x1x64xf32>
    %186 = vector.shape_cast %185 : vector<2x1x64xf32> to vector<2x64xf32>
    %187 = vector.extract_strided_slice %169 {offsets = [0, 7, 0], sizes = [2, 1, 64], strides = [1, 1, 1]} : vector<2x8x64xf32> to vector<2x1x64xf32>
    %188 = vector.shape_cast %187 : vector<2x1x64xf32> to vector<2x64xf32>
    %189 = arith.maximumf %186, %188 : vector<2x64xf32>
    %190 = vector.extract_strided_slice %114 {offsets = [0, 6, 0, 0], sizes = [2, 1, 8, 64], strides = [1, 1, 1, 1]} : vector<2x8x8x64xf32> to vector<2x1x8x64xf32>
    %191 = vector.shape_cast %190 : vector<2x1x8x64xf32> to vector<2x8x64xf32>
    %192 = vector.extract_strided_slice %114 {offsets = [0, 7, 0, 0], sizes = [2, 1, 8, 64], strides = [1, 1, 1, 1]} : vector<2x8x8x64xf32> to vector<2x1x8x64xf32>
    %193 = vector.shape_cast %192 : vector<2x1x8x64xf32> to vector<2x8x64xf32>
    %194 = arith.maximumf %191, %193 : vector<2x8x64xf32>
    %195 = vector.extract_strided_slice %194 {offsets = [0, 0, 0], sizes = [2, 1, 64], strides = [1, 1, 1]} : vector<2x8x64xf32> to vector<2x1x64xf32>
    %196 = vector.shape_cast %195 : vector<2x1x64xf32> to vector<2x64xf32>
    %197 = vector.extract_strided_slice %194 {offsets = [0, 1, 0], sizes = [2, 1, 64], strides = [1, 1, 1]} : vector<2x8x64xf32> to vector<2x1x64xf32>
    %198 = vector.shape_cast %197 : vector<2x1x64xf32> to vector<2x64xf32>
    %199 = arith.maximumf %196, %198 : vector<2x64xf32>
    %200 = vector.extract_strided_slice %194 {offsets = [0, 2, 0], sizes = [2, 1, 64], strides = [1, 1, 1]} : vector<2x8x64xf32> to vector<2x1x64xf32>
    %201 = vector.shape_cast %200 : vector<2x1x64xf32> to vector<2x64xf32>
    %202 = vector.extract_strided_slice %194 {offsets = [0, 3, 0], sizes = [2, 1, 64], strides = [1, 1, 1]} : vector<2x8x64xf32> to vector<2x1x64xf32>
    %203 = vector.shape_cast %202 : vector<2x1x64xf32> to vector<2x64xf32>
    %204 = arith.maximumf %201, %203 : vector<2x64xf32>
    %205 = vector.extract_strided_slice %194 {offsets = [0, 4, 0], sizes = [2, 1, 64], strides = [1, 1, 1]} : vector<2x8x64xf32> to vector<2x1x64xf32>
    %206 = vector.shape_cast %205 : vector<2x1x64xf32> to vector<2x64xf32>
    %207 = vector.extract_strided_slice %194 {offsets = [0, 5, 0], sizes = [2, 1, 64], strides = [1, 1, 1]} : vector<2x8x64xf32> to vector<2x1x64xf32>
    %208 = vector.shape_cast %207 : vector<2x1x64xf32> to vector<2x64xf32>
    %209 = arith.maximumf %206, %208 : vector<2x64xf32>
    %210 = vector.extract_strided_slice %194 {offsets = [0, 6, 0], sizes = [2, 1, 64], strides = [1, 1, 1]} : vector<2x8x64xf32> to vector<2x1x64xf32>
    %211 = vector.shape_cast %210 : vector<2x1x64xf32> to vector<2x64xf32>
    %212 = vector.extract_strided_slice %194 {offsets = [0, 7, 0], sizes = [2, 1, 64], strides = [1, 1, 1]} : vector<2x8x64xf32> to vector<2x1x64xf32>
    %213 = vector.shape_cast %212 : vector<2x1x64xf32> to vector<2x64xf32>
    %214 = arith.maximumf %211, %213 : vector<2x64xf32>
    %215 = tpu.concatenate %124, %129, %134, %139, %149, %154, %159, %164, %174, %179, %184, %189, %199, %204, %209, %214 in 1 : vector<2x64xf32>, vector<2x64xf32>, vector<2x64xf32>, vector<2x64xf32>, vector<2x64xf32>, vector<2x64xf32>, vector<2x64xf32>, vector<2x64xf32>, vector<2x64xf32>, vector<2x64xf32>, vector<2x64xf32>, vector<2x64xf32>, vector<2x64xf32>, vector<2x64xf32>, vector<2x64xf32>, vector<2x64xf32> -> vector<2x1024xf32>
    %c0_140 = arith.constant 0 : index
    %c0_141 = arith.constant 0 : index
    %216 = vector.load %arg5[%c0_140, %c0_141] : memref<1x1024xf32, #tpu.memory_space<vmem>>, vector<1x1024xf32>
    %217 = vector.broadcast %216 : vector<1x1024xf32> to vector<2x1024xf32>
    %218 = arith.addf %215, %217 : vector<2x1024xf32>
    %cst_142 = arith.constant 0.000000e+00 : f32
    %219 = vector.broadcast %cst_142 : f32 to vector<2x1024xf32>
    %220 = arith.maximumf %218, %219 : vector<2x1024xf32>
    %c0_143 = arith.constant 0 : index
    %c0_144 = arith.constant 0 : index
    %221 = vector.load %arg6[%c0_143, %c0_144] : memref<1024x384xf32, #tpu.memory_space<vmem>>, vector<1024x384xf32>
    %cst_145 = arith.constant dense<0.000000e+00> : vector<2x384xf32>
    %222 = tpu.matmul %220, %221, %cst_145 {dimension_numbers = #tpu.dot_dimension_numbers<[1], [0], [0], [1], [0, 0, 1, 1], [], []>} : vector<2x1024xf32>, vector<1024x384xf32>, vector<2x384xf32> -> vector<2x384xf32>
    %c0_146 = arith.constant 0 : index
    %c0_147 = arith.constant 0 : index
    %223 = vector.load %arg7[%c0_146, %c0_147] : memref<1x384xf32, #tpu.memory_space<vmem>>, vector<1x384xf32>
    %224 = vector.broadcast %223 : vector<1x384xf32> to vector<2x384xf32>
    %225 = arith.addf %222, %224 : vector<2x384xf32>
    %cst_148 = arith.constant 0.000000e+00 : f32
    %226 = vector.broadcast %cst_148 : f32 to vector<2x384xf32>
    %227 = arith.maximumf %225, %226 : vector<2x384xf32>
    %c0_149 = arith.constant 0 : index
    %c0_150 = arith.constant 0 : index
    %228 = vector.load %arg13[%c0_149, %c0_150] : memref<2x384xf32, #tpu.memory_space<vmem>>, vector<2x384xf32>
    tpu.vector_store %arg13[%c0_149, %c0_150], %227 {strides = array<i32>} : memref<2x384xf32, #tpu.memory_space<vmem>>, vector<2x384xf32>,
    %c0_151 = arith.constant 0 : index
    %c0_152 = arith.constant 0 : index
    %229 = vector.load %arg8[%c0_151, %c0_152] : memref<384x192xf32, #tpu.memory_space<vmem>>, vector<384x192xf32>
    %cst_153 = arith.constant dense<0.000000e+00> : vector<2x192xf32>
    %230 = tpu.matmul %227, %229, %cst_153 {dimension_numbers = #tpu.dot_dimension_numbers<[1], [0], [0], [1], [0, 0, 1, 1], [], []>} : vector<2x384xf32>, vector<384x192xf32>, vector<2x192xf32> -> vector<2x192xf32>
    %c0_154 = arith.constant 0 : index
    %c0_155 = arith.constant 0 : index
    %231 = vector.load %arg9[%c0_154, %c0_155] : memref<1x192xf32, #tpu.memory_space<vmem>>, vector<1x192xf32>
    %232 = vector.broadcast %231 : vector<1x192xf32> to vector<2x192xf32>
    %233 = arith.addf %230, %232 : vector<2x192xf32>
    %cst_156 = arith.constant 0.000000e+00 : f32
    %234 = vector.broadcast %cst_156 : f32 to vector<2x192xf32>
    %235 = arith.maximumf %233, %234 : vector<2x192xf32>
    %c0_157 = arith.constant 0 : index
    %c0_158 = arith.constant 0 : index
    %236 = vector.load %arg10[%c0_157, %c0_158] : memref<192x10xf32, #tpu.memory_space<vmem>>, vector<192x10xf32>
    %cst_159 = arith.constant dense<0.000000e+00> : vector<2x10xf32>
    %237 = tpu.matmul %235, %236, %cst_159 {dimension_numbers = #tpu.dot_dimension_numbers<[1], [0], [0], [1], [0, 0, 1, 1], [], []>} : vector<2x192xf32>, vector<192x10xf32>, vector<2x10xf32> -> vector<2x10xf32>
    %c0_160 = arith.constant 0 : index
    %c0_161 = arith.constant 0 : index
    %238 = vector.load %arg11[%c0_160, %c0_161] : memref<1x10xf32, #tpu.memory_space<vmem>>, vector<1x10xf32>
    %239 = vector.broadcast %238 : vector<1x10xf32> to vector<2x10xf32>
    %240 = arith.addf %237, %239 : vector<2x10xf32>
    %cst_162 = arith.constant dense<0xFF800000> : vector<2xf32>
    %241 = vector.multi_reduction <maximumf>, %240, %cst_162 [1] : vector<2x10xf32> to vector<2xf32>
    %242 = vector.shape_cast %241 : vector<2xf32> to vector<2x1xf32>
    %243 = vector.broadcast %242 : vector<2x1xf32> to vector<2x10xf32>
    %244 = arith.subf %240, %243 : vector<2x10xf32>
    %245 = math.exp %244 : vector<2x10xf32>
    %cst_163 = arith.constant dense<0.000000e+00> : vector<2xf32>
    %246 = vector.multi_reduction <add>, %245, %cst_163 [1] : vector<2x10xf32> to vector<2xf32>
    %247 = vector.shape_cast %246 : vector<2xf32> to vector<2x1xf32>
    %248 = math.log %247 : vector<2x1xf32>
    %249 = vector.broadcast %248 : vector<2x1xf32> to vector<2x10xf32>
    %250 = arith.subf %244, %249 : vector<2x10xf32>
    %c0_164 = arith.constant 0 : index
    %c0_165 = arith.constant 0 : index
    %251 = vector.load %arg12[%c0_164, %c0_165] : memref<2x10xf32, #tpu.memory_space<vmem>>, vector<2x10xf32>
    tpu.vector_store %arg12[%c0_164, %c0_165], %250 {strides = array<i32>} : memref<2x10xf32, #tpu.memory_space<vmem>>, vector<2x10xf32>,
    return
  }
  func.func @transform_0(%arg0: i32) -> (i32, i32, i32) {
    %c0_i32 = arith.constant 0 : i32
    %c0_i32_0 = arith.constant 0 : i32
    %c0_i32_1 = arith.constant 0 : i32
    return %arg0, %c0_i32, %c0_i32_0 : i32, i32, i32
  }
  func.func @transform_1(%arg0: i32) -> (i32, i32) {
    %c0_i32 = arith.constant 0 : i32
    %c0_i32_0 = arith.constant 0 : i32
    %c0_i32_1 = arith.constant 0 : i32
    return %c0_i32, %c0_i32_0 : i32, i32
  }
  func.func @transform_2(%arg0: i32) -> (i32, i32) {
    %c0_i32 = arith.constant 0 : i32
    %c0_i32_0 = arith.constant 0 : i32
    %c0_i32_1 = arith.constant 0 : i32
    return %c0_i32, %c0_i32_0 : i32, i32
  }
  func.func @transform_3(%arg0: i32) -> (i32, i32, i32) {
    %c0_i32 = arith.constant 0 : i32
    %c0_i32_0 = arith.constant 0 : i32
    %c0_i32_1 = arith.constant 0 : i32
    %c0_i32_2 = arith.constant 0 : i32
    return %c0_i32, %c0_i32_0, %c0_i32_1 : i32, i32, i32
  }
  func.func @transform_4(%arg0: i32) -> (i32, i32) {
    %c0_i32 = arith.constant 0 : i32
    %c0_i32_0 = arith.constant 0 : i32
    %c0_i32_1 = arith.constant 0 : i32
    return %c0_i32, %c0_i32_0 : i32, i32
  }
  func.func @transform_5(%arg0: i32) -> (i32, i32) {
    %c0_i32 = arith.constant 0 : i32
    %c0_i32_0 = arith.constant 0 : i32
    %c0_i32_1 = arith.constant 0 : i32
    return %c0_i32, %c0_i32_0 : i32, i32
  }
  func.func @transform_6(%arg0: i32) -> (i32, i32) {
    %c0_i32 = arith.constant 0 : i32
    %c0_i32_0 = arith.constant 0 : i32
    %c0_i32_1 = arith.constant 0 : i32
    return %c0_i32, %c0_i32_0 : i32, i32
  }
  func.func @transform_7(%arg0: i32) -> (i32, i32) {
    %c0_i32 = arith.constant 0 : i32
    %c0_i32_0 = arith.constant 0 : i32
    %c0_i32_1 = arith.constant 0 : i32
    return %c0_i32, %c0_i32_0 : i32, i32
  }
  func.func @transform_8(%arg0: i32) -> (i32, i32) {
    %c0_i32 = arith.constant 0 : i32
    %c0_i32_0 = arith.constant 0 : i32
    %c0_i32_1 = arith.constant 0 : i32
    return %c0_i32, %c0_i32_0 : i32, i32
  }
  func.func @transform_9(%arg0: i32) -> (i32, i32) {
    %c0_i32 = arith.constant 0 : i32
    %c0_i32_0 = arith.constant 0 : i32
    %c0_i32_1 = arith.constant 0 : i32
    return %c0_i32, %c0_i32_0 : i32, i32
  }
  func.func @transform_10(%arg0: i32) -> (i32, i32) {
    %c0_i32 = arith.constant 0 : i32
    %c0_i32_0 = arith.constant 0 : i32
    %c0_i32_1 = arith.constant 0 : i32
    return %c0_i32, %c0_i32_0 : i32, i32
  }
  func.func @transform_11(%arg0: i32) -> (i32, i32) {
    %c0_i32 = arith.constant 0 : i32
    %c0_i32_0 = arith.constant 0 : i32
    return %arg0, %c0_i32 : i32, i32
  }
  func.func @transform_12(%arg0: i32) -> (i32, i32) {
    %c0_i32 = arith.constant 0 : i32
    %c0_i32_0 = arith.constant 0 : i32
    return %arg0, %c0_i32 : i32, i32
  }
}

</mosaic_0001>

<bundles_post_ra>
// kernel: tile.8
= control target key start
LH: loop header
LB: loop body
LE: loop exit
PB: predicated region body
PF: predicated region fallthrough
CT: control target
= control target key end

     0   :  { %s28_s0 = inlined_call_operand.vmem [shape: f32[64], index: 0, kind: input, shape index: {}]   ;;  %s29_s1 = inlined_call_operand.vmem [shape: f32[16,64], index: 1, kind: output, shape index: {}]  }
   0x1   :  { %v4_v0 = vld [vmem:[%s28_s0] ss:$0 sm:$0xff] }
   0x2   :  { %5 = vst [vmem:[%s29_s1] sm:$0xff] %v4_v0  ;;  %8 = vst [vmem:[%s29_s1 + $0x8] sm:$0xff] %v4_v0 }

// kernel: tile.9
= control target key start
LH: loop header
LB: loop body
LE: loop exit
PB: predicated region body
PF: predicated region fallthrough
CT: control target
= control target key end

     0   :  { %vm3_vm0 = vcmask 523264   ;;  %vm10_vm1 = vcmask 1048064   ;;  %s125_s0 = inlined_call_operand.vmem [shape: f32[16,64], index: 0, kind: input, shape index: {}]   ;;  %s126_s1 = inlined_call_operand.vmem [shape: f32[1,1024], index: 1, kind: output, shape index: {}]  }
   0x1   :  { %v75_v0 = vld [vmem:[%s125_s0 + $0x1] ss:$2 sm:$0xff]   ;;  %v2_v1 = vld [vmem:[%s125_s0] ss:$2 sm:$0xff]   ;;  %s84_s0 = smov 64  }
   0x2   :  { %8 = vrot.lane.b32.xlu0 %v75_v0, %s84_s0  ;;  %4 = vst.msk [vmem:[#allocation0] ss:$8 sm:$0xf] %vm3_vm0, %v2_v1   ;;  %5 = vst.msk [vmem:[#allocation0] ss:$8 sm:$0xf0] %vm3_vm0, %v2_v1  }
  0x74   :  { %v9_v2 = vpop.permute.xlu0 %8  }
  0x75   :  { %11 = vst.msk [vmem:[#allocation0] ss:$8 sm:$0xf] %vm10_vm1, %v9_v2   ;;  %12 = vst.msk [vmem:[#allocation0] ss:$8 sm:$0xf0] %vm10_vm1, %v9_v2  }
  0x7c   :  { %v17_v3 = vld [vmem:[#allocation0] sm:$0x1]  ;;  %v22_v4 = vld [vmem:[#allocation0 + $0x8] sm:$0x1]  ;;  %v28_v5 = vld [vmem:[#allocation0 + $0x10] sm:$0x1] }
  0x7d   :  { %20 = vst [vmem:[%s126_s1] sm:$0x1] %v17_v3  ;;  %76 = vst [vmem:[%s126_s1 + $0x1] sm:$0x1] %v22_v4  ;;  %v35_v6 = vld [vmem:[#allocation0 + $0x18] sm:$0x1] }
  0x7e   :  { %77 = vst [vmem:[%s126_s1 + $0x2] sm:$0x1] %v28_v5  ;;  %v42_v7 = vld [vmem:[#allocation0 + $0x20] sm:$0x1]  ;;  %v49_v8 = vld [vmem:[#allocation0 + $0x28] sm:$0x1] }
  0x7f   :  { %78 = vst [vmem:[%s126_s1 + $0x3] sm:$0x1] %v35_v6  ;;  %79 = vst [vmem:[%s126_s1 + $0x4] sm:$0x1] %v42_v7  ;;  %v56_v9 = vld [vmem:[#allocation0 + $0x30] sm:$0x1] }
  0x80   :  { %80 = vst [vmem:[%s126_s1 + $0x5] sm:$0x1] %v49_v8  ;;  %v63_v10 = vld [vmem:[#allocation0 + $0x38] sm:$0x1]  ;;  %81 = vst [vmem:[%s126_s1 + $0x6] sm:$0x1] %v56_v9 }
  0x81   :  { %82 = vst [vmem:[%s126_s1 + $0x7] sm:$0x1] %v63_v10 }

// kernel: lenet_forward.1
= control target key start
LH: loop header
LB: loop body
LE: loop exit
PB: predicated region body
PF: predicated region fallthrough
CT: control target
= control target key end

     0   :  { %18 = vsyncpa [#allocation6], 0  ;;  %v10507_v4 = vmov 0.0   ;;  %s10494_s0 = inlined_call_operand.vmem [shape: f32[2,144,128], index: 0, kind: input, shape index: {}]   ;;  %s10495_s1 = inlined_call_operand.vmem [shape: f32[128,256], index: 1, kind: input, shape index: {}]   ;;  %s10496_s2 = inlined_call_operand.vmem [shape: f32[1,64], index: 2, kind: input, shape index: {}]   ;;  %s10497_s3 = inlined_call_operand.vmem [shape: f32[5,320,64], index: 3, kind: input, shape index: {}]   ;;  %s10498_s4 = inlined_call_operand.vmem [shape: f32[1,1024], index: 4, kind: input, shape index: {}]   ;;  %s10499_s5 = inlined_call_operand.vmem [shape: f32[1024,384], index: 5, kind: input, shape index: {}]   ;;  %s10500_s6 = inlined_call_operand.vmem [shape: f32[1,384], index: 6, kind: input, shape index: {}]   ;;  %s10501_s7 = inlined_call_operand.vmem [shape: f32[384,192], index: 7, kind: input, shape index: {}]   ;;  %s10502_s8 = inlined_call_operand.vmem [shape: f32[1,192], index: 8, kind: input, shape index: {}]   ;;  %s10503_s9 = inlined_call_operand.vmem [shape: f32[192,10], index: 9, kind: input, shape index: {}]   ;;  %s10504_s10 = inlined_call_operand.vmem [shape: f32[1,10], index: 10, kind: input, shape index: {}]   ;;  %s10505_s11 = inlined_call_operand.hbm [shape: f32[2,10], index: 11, kind: output, shape index: {0}]   ;;  %s10506_s12 = inlined_call_operand.hbm [shape: f32[2,384], index: 12, kind: output, shape index: {1}]  }
   0x1   :  { %v109_v0 = vld [vmem:[%s10495_s1 + $0xf8] sm:$0xff]  ;;  %v108_v1 = vld [vmem:[%s10495_s1 + $0xf0] sm:$0xff]  ;;  %v107_v2 = vld [vmem:[%s10495_s1 + $0xe8] sm:$0xff]  ;;  %174 = vmatprep.mubr.f32.mxu0 %v10507_v4 }
   0x2   :  { %110 = vmatprep.subr.mxu0 %v109_v0  ;;  %v106_v3 = vld [vmem:[%s10495_s1 + $0xe0] sm:$0xff]  ;;  %v105_v5 = vld [vmem:[%s10495_s1 + $0xd8] sm:$0xff]  ;;  %v104_v6 = vld [vmem:[%s10495_s1 + $0xd0] sm:$0xff] }
   0x3   :  { %111 = vmatpush1.msra.mxu0 %v108_v1  ;;  %v103_v7 = vld [vmem:[%s10495_s1 + $0xc8] sm:$0xff]  ;;  %v102_v8 = vld [vmem:[%s10495_s1 + $0xc0] sm:$0xff]  ;;  %v101_v9 = vld [vmem:[%s10495_s1 + $0xb8] sm:$0xff] }
   0x4   :  { %112 = vmatprep.subr.mxu0 %v107_v2  ;;  %v100_v10 = vld [vmem:[%s10495_s1 + $0xb0] sm:$0xff]  ;;  %v99_v11 = vld [vmem:[%s10495_s1 + $0xa8] sm:$0xff]  ;;  %v98_v12 = vld [vmem:[%s10495_s1 + $0xa0] sm:$0xff] }
   0x5   :  { %113 = vmatpush1.msra.mxu0 %v106_v3  ;;  %v97_v13 = vld [vmem:[%s10495_s1 + $0x98] sm:$0xff]  ;;  %v96_v14 = vld [vmem:[%s10495_s1 + $0x90] sm:$0xff]  ;;  %v95_v15 = vld [vmem:[%s10495_s1 + $0x88] sm:$0xff] }
   0x6   :  { %114 = vmatprep.subr.mxu0 %v105_v5  ;;  %v94_v16 = vld [vmem:[%s10495_s1 + $0x80] sm:$0xff]  ;;  %v93_v17 = vld [vmem:[%s10495_s1 + $0x78] sm:$0xff]  ;;  %v92_v18 = vld [vmem:[%s10495_s1 + $0x70] sm:$0xff] }
   0x7   :  { %115 = vmatpush1.msra.mxu0 %v104_v6  ;;  %v91_v19 = vld [vmem:[%s10495_s1 + $0x68] sm:$0xff]  ;;  %v90_v20 = vld [vmem:[%s10495_s1 + $0x60] sm:$0xff]  ;;  %v89_v21 = vld [vmem:[%s10495_s1 + $0x58] sm:$0xff] }
   0x8   :  { %116 = vmatprep.subr.mxu0 %v103_v7  ;;  %v88_v22 = vld [vmem:[%s10495_s1 + $0x50] sm:$0xff]  ;;  %v87_v23 = vld [vmem:[%s10495_s1 + $0x48] sm:$0xff] }
   0x9   :  { %117 = vmatpush1.msra.mxu0 %v102_v8 }
   0xa   :  { %118 = vmatprep.subr.mxu0 %v101_v9 }
   0xb   :  { %119 = vmatpush1.msra.mxu0 %v100_v10 }
   0xc   :  { %120 = vmatprep.subr.mxu0 %v99_v11 }
   0xd   :  { %121 = vmatpush1.msra.mxu0 %v98_v12 }
   0xe   :  { %122 = vmatprep.subr.mxu0 %v97_v13 }
   0xf   :  { %123 = vmatpush1.msra.mxu0 %v96_v14 }
  0x10   :  { %124 = vmatprep.subr.mxu0 %v95_v15 }
  0x11   :  { %125 = vmatpush1.msra.mxu0 %v94_v16 }
  0x12   :  { %126 = vmatprep.subr.mxu0 %v93_v17 }
  0x13   :  { %127 = vmatpush1.msra.mxu0 %v92_v18 }
  0x14   :  { %128 = vmatprep.subr.mxu0 %v91_v19 }
  0x15   :  { %129 = vmatpush1.msra.mxu0 %v90_v20 }
  0x16   :  { %19 = vsyncpa [#allocation8], 0  ;;  %130 = vmatprep.subr.mxu0 %v89_v21  ;;  %v86_v24 = vld [vmem:[%s10495_s1 + $0x40] sm:$0xff]  ;;  %v85_v25 = vld [vmem:[%s10495_s1 + $0x38] sm:$0xff]  ;;  %s6492_s21 = smov 64   ;;  %vm866_vm0 = vcmask 523264  }
  0x17   :  { %131 = vmatpush1.msra.mxu0 %v88_v22  ;;  %v84_v26 = vld [vmem:[%s10495_s1 + $0x30] sm:$0xff]  ;;  %v83_v27 = vld [vmem:[%s10495_s1 + $0x28] sm:$0xff]  ;;  %v82_v28 = vld [vmem:[%s10495_s1 + $0x20] sm:$0xff]  ;;  %vm868_vm1 = vcmask 519168   ;;  %vm873_vm2 = vcmask 523268   ;;  %vm1096_vm3 = vcmask 1048064  }
  0x18   :  { %132 = vmatprep.subr.mxu0 %v87_v23  ;;  %v81_v29 = vld [vmem:[%s10495_s1 + $0x18] sm:$0xff]  ;;  %v80_v30 = vld [vmem:[%s10495_s1 + $0x10] sm:$0xff]  ;;  %v79_v31 = vld [vmem:[%s10495_s1 + $0x8] sm:$0xff]  ;;  %vm3766_vm4 = vcmask 1041409   ;;  %vm5259_vm5 = vcmask 74752  }
  0x19   :  { %133 = vmatpush1.msra.mxu0 %v86_v24  ;;  %v78_v32 = vld [vmem:[%s10495_s1] sm:$0xff]  ;;  %v43_v34 = vld [vmem:[%s10494_s0 + $0x8] sm:$0xff]  ;;  %v44_v35 = vld [vmem:[%s10494_s0 + $0x10] sm:$0xff] }
  0x1a   :  { %134 = vmatprep.subr.mxu0 %v85_v25  ;;  %v42_v33 = vld [vmem:[%s10494_s0] sm:$0xff]  ;;  %v45_v36 = vld [vmem:[%s10494_s0 + $0x18] sm:$0xff]  ;;  %v47_v38 = vld [vmem:[%s10494_s0 + $0x28] sm:$0xff] }
  0x1b   :  { %135 = vmatpush1.msra.mxu0 %v84_v26  ;;  %v46_v37 = vld [vmem:[%s10494_s0 + $0x20] sm:$0xff]  ;;  %v48_v39 = vld [vmem:[%s10494_s0 + $0x30] sm:$0xff]  ;;  %v49_v40 = vld [vmem:[%s10494_s0 + $0x38] sm:$0xff] }
  0x1c   :  { %136 = vmatprep.subr.mxu0 %v83_v27  ;;  %v50_v41 = vld [vmem:[%s10494_s0 + $0x40] sm:$0xff]  ;;  %v51_v42 = vld [vmem:[%s10494_s0 + $0x48] sm:$0xff]  ;;  %v52_v43 = vld [vmem:[%s10494_s0 + $0x50] sm:$0xff] }
  0x1d   :  { %137 = vmatpush1.msra.mxu0 %v82_v28  ;;  %v53_v44 = vld [vmem:[%s10494_s0 + $0x58] sm:$0xff]  ;;  %v54_v45 = vld [vmem:[%s10494_s0 + $0x60] sm:$0xff]  ;;  %v55_v46 = vld [vmem:[%s10494_s0 + $0x68] sm:$0xff] }
  0x1e   :  { %138 = vmatprep.subr.mxu0 %v81_v29  ;;  %v56_v47 = vld [vmem:[%s10494_s0 + $0x70] sm:$0xff]  ;;  %v57_v48 = vld [vmem:[%s10494_s0 + $0x78] sm:$0xff]  ;;  %v58_v49 = vld [vmem:[%s10494_s0 + $0x80] sm:$0xff] }
  0x1f   :  { %139 = vmatpush1.msra.mxu0 %v80_v30  ;;  %v59_v50 = vld [vmem:[%s10494_s0 + $0x88] sm:$0xff]  ;;  %v60_v51 = vld [vmem:[%s10494_s0 + $0x90] sm:$0xff]  ;;  %v61_v52 = vld [vmem:[%s10494_s0 + $0x98] sm:$0xff] }
  0x20   :  { %140 = vmatprep.subr.mxu0 %v79_v31  ;;  %v62_v53 = vld [vmem:[%s10494_s0 + $0xa0] sm:$0xff]  ;;  %v63_v54 = vld [vmem:[%s10494_s0 + $0xa8] sm:$0xff]  ;;  %v64_v55 = vld [vmem:[%s10494_s0 + $0xb0] sm:$0xff] }
  0x21   :  { %141 = vmatpush1.msra.mxu0 %v78_v32  ;;  %v65_v56 = vld [vmem:[%s10494_s0 + $0xb8] sm:$0xff]  ;;  %v66_v57 = vld [vmem:[%s10494_s0 + $0xc0] sm:$0xff]  ;;  %v67_v58 = vld [vmem:[%s10494_s0 + $0xc8] sm:$0xff] }
  0x22   :  { %175 = vmatmul.mubr.f32.vlgmr.msra.gmra.mxu0 %v42_v33  ;;  %v68_v59 = vld [vmem:[%s10494_s0 + $0xd0] sm:$0xff]  ;;  %v69_v60 = vld [vmem:[%s10494_s0 + $0xd8] sm:$0xff]  ;;  %v70_v61 = vld [vmem:[%s10494_s0 + $0xe0] sm:$0xff] }
  0x23   :  { %180 = vmatprep.mubr.f32.mxu0 %v10507_v4  ;;  %v71_v62 = vld [vmem:[%s10494_s0 + $0xe8] sm:$0xff]  ;;  %v72_v63 = vld [vmem:[%s10494_s0 + $0xf0] sm:$0xff]  ;;  %v73_v0 = vld [vmem:[%s10494_s0 + $0xf8] sm:$0xff] }
  0x24   :  { %v74_v1 = vld [vmem:[%s10494_s0 + $0x100] sm:$0xff]  ;;  %v75_v10 = vld [vmem:[%s10494_s0 + $0x108] sm:$0xff]  ;;  %v5357_v12 = vld [vmem:[%s10497_s3 + $0x278] sm:$0xff] }
  0x25   :  { %6244 = vmatprep.subr.mxu0 %v5357_v12  ;;  %v76_v14 = vld [vmem:[%s10494_s0 + $0x110] sm:$0xff]  ;;  %v5355_v18 = vld [vmem:[%s10497_s3 + $0x268] sm:$0xff]  ;;  %v77_v19 = vld [vmem:[%s10494_s0 + $0x118] sm:$0xff] }
  0x26   :  { %181 = vmatmul.mubr.f32.gmra.mxu0 %v43_v34  ;;  %v5356_v15 = vld [vmem:[%s10497_s3 + $0x270] sm:$0xff]  ;;  %v5354_v21 = vld [vmem:[%s10497_s3 + $0x260] sm:$0xff]  ;;  %v5353_v23 = vld [vmem:[%s10497_s3 + $0x258] sm:$0xff] }
  0x27   :  { %186 = vmatprep.mubr.f32.mxu0 %v10507_v4  ;;  %6245 = vmatpush3.msra.mxu0 %v5357_v12  ;;  %v5352_v26 = vld [vmem:[%s10497_s3 + $0x250] sm:$0xff]  ;;  %v5351_v28 = vld [vmem:[%s10497_s3 + $0x248] sm:$0xff]  ;;  %v5350_v30 = vld [vmem:[%s10497_s3 + $0x240] sm:$0xff] }
  0x28   :  { %6246 = vmatprep.subr.mxu0 %v5356_v15  ;;  %v1424_v12 = vld [vmem:[%s10497_s3 + $0x78] sm:$0xff] }
  0x29   :  { %6247 = vmatpush3.msra.mxu0 %v5356_v15  ;;  %v1439_v15 = vld [vmem:[%s10497_s3 + $0xf0] sm:$0xff] }
  0x2a   :  { %187 = vmatmul.mubr.f32.gmra.mxu0 %v44_v35  ;;  %6248 = vmatprep.subr.mxu0 %v5355_v18 }
  0x2b   :  { %192 = vmatprep.mubr.f32.mxu0 %v10507_v4  ;;  %6249 = vmatpush3.msra.mxu0 %v5355_v18  ;;  %v1423_v18 = vld [vmem:[%s10497_s3 + $0x70] sm:$0xff] }
  0x2c   :  { %6250 = vmatprep.subr.mxu0 %v5354_v21 }
  0x2d   :  { %6251 = vmatpush3.msra.mxu0 %v5354_v21  ;;  %v1438_v21 = vld [vmem:[%s10497_s3 + $0xe8] sm:$0xff] }
  0x2e   :  { %193 = vmatmul.mubr.f32.gmra.mxu0 %v45_v36  ;;  %6252 = vmatprep.subr.mxu0 %v5353_v23 }
  0x2f   :  { %198 = vmatprep.mubr.f32.mxu0 %v10507_v4  ;;  %6253 = vmatpush3.msra.mxu0 %v5353_v23  ;;  %v1422_v23 = vld [vmem:[%s10497_s3 + $0x68] sm:$0xff] }
  0x30   :  { %6254 = vmatprep.subr.mxu0 %v5352_v26 }
  0x31   :  { %6255 = vmatpush3.msra.mxu0 %v5352_v26 }
  0x32   :  { %199 = vmatmul.mubr.f32.gmra.mxu0 %v46_v37  ;;  %6256 = vmatprep.subr.mxu0 %v5351_v28 }
  0x33   :  { %204 = vmatprep.mubr.f32.mxu0 %v10507_v4  ;;  %6257 = vmatpush3.msra.mxu0 %v5351_v28  ;;  %v1437_v28 = vld [vmem:[%s10497_s3 + $0xe0] sm:$0xff] }
  0x34   :  { %6258 = vmatprep.subr.mxu0 %v5350_v30 }
  0x35   :  { %6259 = vmatpush3.msra.mxu0 %v5350_v30  ;;  %v1421_v30 = vld [vmem:[%s10497_s3 + $0x60] sm:$0xff] }
  0x36   :  { %205 = vmatmul.mubr.f32.gmra.mxu0 %v47_v38 }
  0x37   :  { %210 = vmatprep.mubr.f32.mxu0 %v10507_v4 }
  0x3a   :  { %211 = vmatmul.mubr.f32.gmra.mxu0 %v48_v39 }
  0x3b   :  { %216 = vmatprep.mubr.f32.mxu0 %v10507_v4 }
  0x3e   :  { %217 = vmatmul.mubr.f32.gmra.mxu0 %v49_v40 }
  0x3f   :  { %222 = vmatprep.mubr.f32.mxu0 %v10507_v4 }
  0x42   :  { %223 = vmatmul.mubr.f32.gmra.mxu0 %v50_v41 }
  0x43   :  { %228 = vmatprep.mubr.f32.mxu0 %v10507_v4 }
  0x46   :  { %229 = vmatmul.mubr.f32.gmra.mxu0 %v51_v42 }
  0x47   :  { %234 = vmatprep.mubr.f32.mxu0 %v10507_v4 }
  0x4a   :  { %235 = vmatmul.mubr.f32.gmra.mxu0 %v52_v43 }
  0x4b   :  { %240 = vmatprep.mubr.f32.mxu0 %v10507_v4 }
  0x4e   :  { %241 = vmatmul.mubr.f32.gmra.mxu0 %v53_v44 }
  0x4f   :  { %246 = vmatprep.mubr.f32.mxu0 %v10507_v4 }
  0x52   :  { %247 = vmatmul.mubr.f32.gmra.mxu0 %v54_v45 }
  0x53   :  { %252 = vmatprep.mubr.f32.mxu0 %v10507_v4 }
  0x56   :  { %253 = vmatmul.mubr.f32.gmra.mxu0 %v55_v46 }
  0x57   :  { %258 = vmatprep.mubr.f32.mxu0 %v10507_v4 }
  0x5a   :  { %259 = vmatmul.mubr.f32.gmra.mxu0 %v56_v47 }
  0x5b   :  { %264 = vmatprep.mubr.f32.mxu0 %v10507_v4 }
  0x5e   :  { %265 = vmatmul.mubr.f32.gmra.mxu0 %v57_v48 }
  0x5f   :  { %270 = vmatprep.mubr.f32.mxu0 %v10507_v4 }
  0x62   :  { %271 = vmatmul.mubr.f32.gmra.mxu0 %v58_v49 }
  0x63   :  { %276 = vmatprep.mubr.f32.mxu0 %v10507_v4 }
  0x66   :  { %277 = vmatmul.mubr.f32.gmra.mxu0 %v59_v50 }
  0x67   :  { %282 = vmatprep.mubr.f32.mxu0 %v10507_v4 }
  0x6a   :  { %283 = vmatmul.mubr.f32.gmra.mxu0 %v60_v51 }
  0x6b   :  { %288 = vmatprep.mubr.f32.mxu0 %v10507_v4 }
  0x6e   :  { %289 = vmatmul.mubr.f32.gmra.mxu0 %v61_v52 }
  0x6f   :  { %294 = vmatprep.mubr.f32.mxu0 %v10507_v4 }
  0x72   :  { %295 = vmatmul.mubr.f32.gmra.mxu0 %v62_v53 }
  0x73   :  { %300 = vmatprep.mubr.f32.mxu0 %v10507_v4 }
  0x76   :  { %301 = vmatmul.mubr.f32.gmra.mxu0 %v63_v54 }
  0x77   :  { %306 = vmatprep.mubr.f32.mxu0 %v10507_v4 }
  0x7a   :  { %307 = vmatmul.mubr.f32.gmra.mxu0 %v64_v55 }
  0x7b   :  { %312 = vmatprep.mubr.f32.mxu0 %v10507_v4 }
  0x7e   :  { %313 = vmatmul.mubr.f32.gmra.mxu0 %v65_v56 }
  0x7f   :  { %318 = vmatprep.mubr.f32.mxu0 %v10507_v4 }
  0x82   :  { %319 = vmatmul.mubr.f32.gmra.mxu0 %v66_v57 }
  0x83   :  { %324 = vmatprep.mubr.f32.mxu0 %v10507_v4 }
  0x86   :  { %325 = vmatmul.mubr.f32.gmra.mxu0 %v67_v58 }
  0x87   :  { %330 = vmatprep.mubr.f32.mxu0 %v10507_v4 }
  0x8a   :  { %331 = vmatmul.mubr.f32.gmra.mxu0 %v68_v59 }
  0x8b   :  { %336 = vmatprep.mubr.f32.mxu0 %v10507_v4 }
  0x8e   :  { %337 = vmatmul.mubr.f32.gmra.mxu0 %v69_v60 }
  0x8f   :  { %342 = vmatprep.mubr.f32.mxu0 %v10507_v4 }
  0x92   :  { %343 = vmatmul.mubr.f32.gmra.mxu0 %v70_v61 }
  0x93   :  { %348 = vmatprep.mubr.f32.mxu0 %v10507_v4 }
  0x96   :  { %349 = vmatmul.mubr.f32.gmra.mxu0 %v71_v62 }
  0x97   :  { %354 = vmatprep.mubr.f32.mxu0 %v10507_v4 }
  0x9a   :  { %355 = vmatmul.mubr.f32.gmra.mxu0 %v72_v63 }
  0x9b   :  { %360 = vmatprep.mubr.f32.mxu0 %v10507_v4 }
  0x9e   :  { %361 = vmatmul.mubr.f32.gmra.mxu0 %v73_v0 }
  0x9f   :  { %366 = vmatprep.mubr.f32.mxu0 %v10507_v4 }
  0xa2   :  { %367 = vmatmul.mubr.f32.gmra.mxu0 %v74_v1 }
  0xa3   :  { %372 = vmatprep.mubr.f32.mxu0 %v10507_v4 }
  0xa6   :  { %373 = vmatmul.mubr.f32.gmra.mxu0 %v75_v10  ;;  %v1440_v10 = vld [vmem:[%s10497_s3 + $0xf8] sm:$0xff] }
  0xa7   :  { %378 = vmatprep.mubr.f32.mxu0 %v10507_v4  ;;  %5544 = vmatprep.subr.mxu1 %v1440_v10 }
  0xa8   :  { %5545 = vmatpush3.msra.mxu1 %v1424_v12  ;;  %v1436_v12 = vld [vmem:[%s10497_s3 + $0xd8] sm:$0xff] }
  0xa9   :  { %5546 = vmatprep.subr.mxu1 %v1439_v15 }
  0xaa   :  { %379 = vmatmul.mubr.f32.gmra.mxu0 %v76_v14  ;;  %5547 = vmatpush3.msra.mxu1 %v1423_v18  ;;  %v1420_v18 = vld [vmem:[%s10497_s3 + $0x58] sm:$0xff] }
  0xab   :  { %384 = vmatprep.mubr.f32.mxu0 %v10507_v4  ;;  %5548 = vmatprep.subr.mxu1 %v1438_v21  ;;  %v1435_v21 = vld [vmem:[%s10497_s3 + $0xd0] sm:$0xff] }
  0xac   :  { %5549 = vmatpush3.msra.mxu1 %v1422_v23 }
  0xad   :  { %5550 = vmatprep.subr.mxu1 %v1437_v28 }
  0xae   :  { %385 = vmatmul.mubr.f32.gmra.mxu0 %v77_v19  ;;  %5551 = vmatpush3.msra.mxu1 %v1421_v30  ;;  %v1419_v30 = vld [vmem:[%s10497_s3 + $0x50] sm:$0xff] }
  0xaf   :  { %5552 = vmatprep.subr.mxu1 %v1436_v12  ;;  %v1418_v12 = vld [vmem:[%s10497_s3 + $0x48] sm:$0xff] }
  0xb0   :  { %5553 = vmatpush3.msra.mxu1 %v1420_v18 }
  0xb1   :  { %5554 = vmatprep.subr.mxu1 %v1435_v21  ;;  %v7084_v21 = vld [vmem:[%s10496_s2] ss:$0 sm:$0xff] }
  0xb2   :  { %5555 = vmatpush3.msra.mxu1 %v1419_v30 }
  0xe2   :  { %v6790_v2 = vpop.f32.mrf.mxu0 }
  0xe3   :  { %427 = vrot.lane.b32.xlu0 %v6790_v2, %s6492_s21 }
  0xe4   :  { %v6794_v3 = vpop.f32.mrf.mxu0 }
  0xe5   :  { %607 = vrot.lane.b32.xlu1 %v6794_v3, %s6492_s21 }
  0xe6   :  { %v6798_v5 = vpop.f32.mrf.mxu0 }
  0xe7   :  { %429 = vrot.lane.b32.xlu0 %v6798_v5, %s6492_s21 }
  0xe8   :  { %v6802_v6 = vpop.f32.mrf.mxu0 }
  0xe9   :  { %609 = vrot.lane.b32.xlu1 %v6802_v6, %s6492_s21 }
  0xea   :  { %v6806_v7 = vpop.f32.mrf.mxu0 }
  0xeb   :  { %431 = vrot.lane.b32.xlu0 %v6806_v7, %s6492_s21 }
  0xec   :  { %v6810_v8 = vpop.f32.mrf.mxu0 }
  0xed   :  { %611 = vrot.lane.b32.xlu1 %v6810_v8, %s6492_s21 }
  0xee   :  { %v6814_v9 = vpop.f32.mrf.mxu0 }
  0xef   :  { %433 = vrot.lane.b32.xlu0 %v6814_v9, %s6492_s21 }
  0xf0   :  { %v6821_v11 = vpop.f32.mrf.mxu0 }
  0xf2   :  { %v6827_v13 = vpop.f32.mrf.mxu0 }
  0xf3   :  { %613 = vrot.lane.b32.xlu0 %v6821_v11, %s6492_s21  ;;  %435 = vrot.lane.b32.xlu1 %v6827_v13, %s6492_s21 }
  0xf4   :  { %v6839_v16 = vpop.f32.mrf.mxu0 }
  0xf6   :  { %v6842_v17 = vpop.f32.mrf.mxu0 }
  0xf7   :  { %615 = vrot.lane.b32.xlu1 %v6839_v16, %s6492_s21  ;;  %437 = vrot.lane.b32.xlu0 %v6842_v17, %s6492_s21 }
  0xf8   :  { %v6854_v20 = vpop.f32.mrf.mxu0 }
  0xfa   :  { %v6859_v22 = vpop.f32.mrf.mxu0 }
  0xfb   :  { %617 = vrot.lane.b32.xlu1 %v6854_v20, %s6492_s21  ;;  %439 = vrot.lane.b32.xlu0 %v6859_v22, %s6492_s21 }
  0xfc   :  { %v6868_v24 = vpop.f32.mrf.mxu0 }
  0xfe   :  { %v6870_v25 = vpop.f32.mrf.mxu0 }
  0xff   :  { %619 = vrot.lane.b32.xlu0 %v6868_v24, %s6492_s21  ;;  %441 = vrot.lane.b32.xlu1 %v6870_v25, %s6492_s21 }
 0x100   :  { %v6879_v27 = vpop.f32.mrf.mxu0 }
 0x102   :  { %v6884_v29 = vpop.f32.mrf.mxu0 }
 0x103   :  { %621 = vrot.lane.b32.xlu1 %v6879_v27, %s6492_s21  ;;  %443 = vrot.lane.b32.xlu0 %v6884_v29, %s6492_s21 }
 0x104   :  { %v6893_v31 = vpop.f32.mrf.mxu0 }
 0x106   :  { %v6895_v32 = vpop.f32.mrf.mxu0 }
 0x107   :  { %623 = vrot.lane.b32.xlu1 %v6893_v31, %s6492_s21  ;;  %445 = vrot.lane.b32.xlu0 %v6895_v32, %s6492_s21 }
 0x108   :  { %v6901_v33 = vpop.f32.mrf.mxu0 }
 0x10a   :  { %v6903_v34 = vpop.f32.mrf.mxu0 }
 0x10b   :  { %625 = vrot.lane.b32.xlu0 %v6901_v33, %s6492_s21  ;;  %447 = vrot.lane.b32.xlu1 %v6903_v34, %s6492_s21 }
 0x10c   :  { %v6909_v35 = vpop.f32.mrf.mxu0 }
 0x10e   :  { %v6911_v36 = vpop.f32.mrf.mxu0 }
 0x10f   :  { %627 = vrot.lane.b32.xlu1 %v6909_v35, %s6492_s21  ;;  %449 = vrot.lane.b32.xlu0 %v6911_v36, %s6492_s21 }
 0x110   :  { %v6917_v37 = vpop.f32.mrf.mxu0 }
 0x112   :  { %v6919_v38 = vpop.f32.mrf.mxu0 }
 0x113   :  { %10524 = vst [vmem:[#allocation11_spill] sm:$0xff] %v6919_v38  ;;  %629 = vrot.lane.b32.xlu1 %v6917_v37, %s6492_s21 }
 0x114   :  { %v6923_v39 = vpop.f32.mrf.mxu0 }
 0x116   :  { %v6925_v40 = vpop.f32.mrf.mxu0 }
 0x118   :  { %v6927_v41 = vpop.f32.mrf.mxu0 }
 0x11a   :  { %v6929_v42 = vpop.f32.mrf.mxu0 }
 0x11b   :  { %10525 = vst [vmem:[#allocation12_spill] sm:$0xff] %v6929_v42 }
 0x11c   :  { %v6931_v43 = vpop.f32.mrf.mxu0 }
 0x11d   :  { %10526 = vst [vmem:[#allocation13_spill] sm:$0xff] %v6931_v43 }
 0x11e   :  { %v6933_v44 = vpop.f32.mrf.mxu0 }
 0x11f   :  { %10527 = vst [vmem:[#allocation14_spill] sm:$0xff] %v6933_v44 }
 0x120   :  { %v6935_v45 = vpop.f32.mrf.mxu0 }
 0x121   :  { %10528 = vst [vmem:[#allocation15_spill] sm:$0xff] %v6935_v45 }
 0x122   :  { %v6937_v46 = vpop.f32.mrf.mxu0 }
 0x123   :  { %10529 = vst [vmem:[#allocation16_spill] sm:$0xff] %v6937_v46  ;;  %v1433_v46 = vld [vmem:[%s10497_s3 + $0xc0] sm:$0xff] }
 0x124   :  { %v6939_v47 = vpop.f32.mrf.mxu0 }
 0x125   :  { %10530 = vst [vmem:[#allocation17_spill] sm:$0xff] %v6939_v47 }
 0x126   :  { %v6941_v48 = vpop.f32.mrf.mxu0 }
 0x127   :  { %10531 = vst [vmem:[#allocation18_spill] sm:$0xff] %v6941_v48 }
 0x128   :  { %v6943_v49 = vpop.f32.mrf.mxu0 }
 0x129   :  { %10532 = vst [vmem:[#allocation19_spill] sm:$0xff] %v6943_v49  ;;  %v1434_v49 = vld [vmem:[%s10497_s3 + $0xc8] sm:$0xff] }
 0x12a   :  { %v6945_v50 = vpop.f32.mrf.mxu0  ;;  %5556 = vmatprep.subr.mxu1 %v1434_v49 }
 0x12b   :  { %463 = vrot.lane.b32.xlu0 %v6945_v50, %s6492_s21  ;;  %5557 = vmatpush3.msra.mxu1 %v1418_v12  ;;  %v1416_v12 = vld [vmem:[%s10497_s3 + $0x38] sm:$0xff] }
 0x12c   :  { %v6949_v51 = vpop.f32.mrf.mxu0  ;;  %5558 = vmatprep.subr.mxu1 %v1433_v46 }
 0x12e   :  { %v6951_v52 = vpop.f32.mrf.mxu0 }
 0x12f   :  { %643 = vrot.lane.b32.xlu0 %v6949_v51, %s6492_s21  ;;  %465 = vrot.lane.b32.xlu1 %v6951_v52, %s6492_s21 }
 0x130   :  { %v6957_v53 = vpop.f32.mrf.mxu0 }
 0x132   :  { %v6959_v54 = vpop.f32.mrf.mxu0 }
 0x133   :  { %645 = vrot.lane.b32.xlu1 %v6957_v53, %s6492_s21  ;;  %467 = vrot.lane.b32.xlu0 %v6959_v54, %s6492_s21 }
 0x134   :  { %v6965_v55 = vpop.f32.mrf.mxu0 }
 0x136   :  { %v6967_v56 = vpop.f32.mrf.mxu0 }
 0x137   :  { %647 = vrot.lane.b32.xlu1 %v6965_v55, %s6492_s21  ;;  %469 = vrot.lane.b32.xlu0 %v6967_v56, %s6492_s21 }
 0x138   :  { %v6973_v57 = vpop.f32.mrf.mxu0 }
 0x13a   :  { %v6975_v58 = vpop.f32.mrf.mxu0 }
 0x13b   :  { %649 = vrot.lane.b32.xlu0 %v6973_v57, %s6492_s21  ;;  %471 = vrot.lane.b32.xlu1 %v6975_v58, %s6492_s21 }
 0x13c   :  { %v6981_v59 = vpop.f32.mrf.mxu0 }
 0x13e   :  { %v6983_v60 = vpop.f32.mrf.mxu0 }
 0x13f   :  { %651 = vrot.lane.b32.xlu1 %v6981_v59, %s6492_s21  ;;  %473 = vrot.lane.b32.xlu0 %v6983_v60, %s6492_s21 }
 0x140   :  { %v6989_v61 = vpop.f32.mrf.mxu0 }
 0x142   :  { %v6991_v62 = vpop.f32.mrf.mxu0 }
 0x143   :  { %653 = vrot.lane.b32.xlu1 %v6989_v61, %s6492_s21  ;;  %475 = vrot.lane.b32.xlu0 %v6991_v62, %s6492_s21 }
 0x144   :  { %v6997_v63 = vpop.f32.mrf.mxu0 }
 0x146   :  { %v6999_v0 = vpop.f32.mrf.mxu0 }
 0x147   :  { %655 = vrot.lane.b32.xlu0 %v6997_v63, %s6492_s21  ;;  %477 = vrot.lane.b32.xlu1 %v6999_v0, %s6492_s21 }
 0x148   :  { %v7005_v1 = vpop.f32.mrf.mxu0 }
 0x14a   :  { %v7013_v14 = vpop.f32.mrf.mxu0 }
 0x14b   :  { %657 = vrot.lane.b32.xlu1 %v7005_v1, %s6492_s21  ;;  %479 = vrot.lane.b32.xlu0 %v7013_v14, %s6492_s21 }
 0x14c   :  { %v7025_v19 = vpop.f32.mrf.mxu0 }
 0x14e   :  { %v7033_v26 = vpop.f32.mrf.mxu0 }
 0x14f   :  { %659 = vrot.lane.b32.xlu1 %v7025_v19, %s6492_s21  ;;  %481 = vrot.lane.b32.xlu0 %v7033_v26, %s6492_s21 }
 0x150   :  { %v7045_v10 = vpop.f32.mrf.mxu0 }
 0x152   :  { %v7050_v15 = vpop.f32.mrf.mxu0 }
 0x153   :  { %661 = vrot.lane.b32.xlu0 %v7045_v10, %s6492_s21  ;;  %483 = vrot.lane.b32.xlu1 %v7050_v15, %s6492_s21 }
 0x154   :  { %v7062_v23 = vpop.f32.mrf.mxu0 }
 0x155   :  { %v428_v28 = vpop.permute.xlu0 %427 }
 0x156   :  { %v7067_v4 = vpop.f32.mrf.mxu0  ;;  %v535_v18 = vmax.f32 %v6790_v2, %v428_v28  ;;  %v1417_v2 = vld [vmem:[%s10497_s3 + $0x40] sm:$0xff] }
 0x157   :  { %v608_v48 = vpop.permute.xlu1 %607  ;;  %663 = vrot.lane.b32.xlu1 %v7062_v23, %s6492_s21  ;;  %485 = vrot.lane.b32.xlu0 %v7067_v4, %s6492_s21 }
 0x158   :  { %v715_v47 = vmax.f32 %v6794_v3, %v608_v48  ;;  %v7089_v43 = vpop.f32.mrf.mxu0  ;;  %v1432_v48 = vld [vmem:[%s10497_s3 + $0xb8] sm:$0xff]  ;;  %5559 = vmatpush3.msra.mxu1 %v1417_v2  ;;  %v1430_v2 = vld [vmem:[%s10497_s3 + $0xa8] sm:$0xff] }
 0x159   :  { %v430_v45 = vpop.permute.xlu0 %429  ;;  %5560 = vmatprep.subr.mxu1 %v1432_v48  ;;  %v1414_v48 = vld [vmem:[%s10497_s3 + $0x28] sm:$0xff] }
 0x15a   :  { %v751_v44 = vmax.f32 %v535_v18, %v715_v47  ;;  %v536_v49 = vmax.f32 %v6798_v5, %v430_v45  ;;  %v1415_v5 = vld [vmem:[%s10497_s3 + $0x30] sm:$0xff]  ;;  %5561 = vmatpush3.msra.mxu1 %v1416_v12  ;;  %v1412_v12 = vld [vmem:[%s10497_s3 + $0x18] sm:$0xff] }
 0x15b   :  { %v610_v3 = vpop.permute.xlu1 %609  ;;  %451 = vrot.lane.b32.xlu0 %v6919_v38, %s6492_s21  ;;  %665 = vrot.lane.b32.xlu1 %v7089_v43, %s6492_s21  ;;  %v1431_v38 = vld [vmem:[%s10497_s3 + $0xb0] sm:$0xff] }
 0x15c   :  { %v794_v47 = vadd.f32 %v7084_v21, %v751_v44  ;;  %v716_v28 = vmax.f32 %v6802_v6, %v610_v3  ;;  %5562 = vmatprep.subr.mxu1 %v1431_v38 }
 0x15d   :  { %v432_v30 = vpop.permute.xlu0 %431  ;;  %5563 = vmatpush3.msra.mxu1 %v1415_v5 }
 0x15e   :  { %v830_v18 = vmax.f32 %v794_v47, 0.0  ;;  %v752_v42 = vmax.f32 %v536_v49, %v716_v28  ;;  %v537_v45 = vmax.f32 %v6806_v7, %v432_v30  ;;  %v1429_v7 = vld [vmem:[%s10497_s3 + $0xa0] sm:$0xff]  ;;  %5564 = vmatprep.subr.mxu1 %v1430_v2 }
 0x15f   :  { %v612_v44 = vpop.permute.xlu1 %611  ;;  %631 = vrot.lane.b32.xlu0 %v6923_v39, %s6492_s21  ;;  %453 = vrot.lane.b32.xlu1 %v6925_v40, %s6492_s21 }
 0x160   :  { %867 = vst.msk [vmem:[#allocation2] sm:$0xff] %vm866_vm0, %v830_v18  ;;  %v795_v6 = vadd.f32 %v7084_v21, %v752_v42  ;;  %v717_v46 = vmax.f32 %v6810_v8, %v612_v44  ;;  %v1413_v8 = vld [vmem:[%s10497_s3 + $0x20] sm:$0xff]  ;;  %5565 = vmatpush3.msra.mxu1 %v1414_v48  ;;  %v1428_v42 = vld [vmem:[%s10497_s3 + $0x98] sm:$0xff] }
 0x161   :  { %v434_v3 = vpop.permute.xlu0 %433  ;;  %5566 = vmatprep.subr.mxu1 %v1429_v7  ;;  %v1410_v7 = vld [vmem:[%s10497_s3 + $0x8] sm:$0xff] }
 0x162   :  { %v831_v47 = vmax.f32 %v795_v6, 0.0  ;;  %v753_v49 = vmax.f32 %v537_v45, %v717_v46  ;;  %v538_v44 = vmax.f32 %v6814_v9, %v434_v3  ;;  %5567 = vmatpush3.msra.mxu1 %v1413_v8  ;;  %v1427_v6 = vld [vmem:[%s10497_s3 + $0x90] sm:$0xff]  ;;  %v1426_v9 = vld [vmem:[%s10497_s3 + $0x88] sm:$0xff]  ;;  %v1425_v8 = vld [vmem:[%s10497_s3 + $0x80] sm:$0xff] }
 0x163   :  { %633 = vrot.lane.b32.xlu1 %v6927_v41, %s6492_s21  ;;  %5568 = vmatprep.subr.mxu1 %v1428_v42  ;;  %v1411_v46 = vld [vmem:[%s10497_s3 + $0x10] sm:$0xff] }
 0x164   :  { %869 = vst.msk [vmem:[#allocation2 + $0x8] sm:$0xf] %vm868_vm1, %v831_v47  ;;  %v796_v38 = vadd.f32 %v7084_v21, %v753_v49  ;;  %5569 = vmatpush3.msra.mxu1 %v1412_v12 }
 0x165   :  { %874 = vst.msk [vmem:[#allocation2 + $0xc] sm:$0xf0] %vm873_vm2, %v831_v47  ;;  %v614_v28 = vpop.permute.xlu0 %613  ;;  %v436_v30 = vpop.permute.xlu1 %435  ;;  %5570 = vmatprep.subr.mxu1 %v1427_v6 }
 0x166   :  { %v832_v18 = vmax.f32 %v796_v38, 0.0  ;;  %v718_v5 = vmax.f32 %v6821_v11, %v614_v28  ;;  %v539_v47 = vmax.f32 %v6827_v13, %v436_v30  ;;  %5571 = vmatpush3.msra.mxu1 %v1411_v46  ;;  %v1409_v13 = vld [vmem:[%s10497_s3] sm:$0xff] }
 0x167   :  { %v928_v45 = vld [vmem:[#allocation2] sm:$0xff]  ;;  %5572 = vmatprep.subr.mxu1 %v1426_v9 }
 0x168   :  { %875 = vst.msk [vmem:[#allocation2 + $0x14] sm:$0xff] %vm866_vm0, %v832_v18  ;;  %v754_v2 = vmax.f32 %v538_v44, %v718_v5  ;;  %952 = vst.msk [vmem:[#allocation3] sm:$0xff] %vm866_vm0, %v928_v45  ;;  %5573 = vmatpush3.msra.mxu1 %v1410_v7 }
 0x169   :  { %v616_v11 = vpop.permute.xlu1 %615  ;;  %v438_v3 = vpop.permute.xlu0 %437  ;;  %5574 = vmatprep.subr.mxu1 %v1425_v8 }
 0x16a   :  { %v797_v48 = vadd.f32 %v7084_v21, %v754_v2  ;;  %v719_v49 = vmax.f32 %v6839_v16, %v616_v11  ;;  %v540_v6 = vmax.f32 %v6842_v17, %v438_v3  ;;  %5575 = vmatpush3.msra.mxu1 %v1409_v13 }
 0x16b   :  { %v1169_v38 = vld [vmem:[#allocation2 + $0x3] sm:$0xff] }
 0x16c   :  { %v976_v42 = vld [vmem:[#allocation2 + $0x1] sm:$0xff]  ;;  %v833_v12 = vmax.f32 %v797_v48, 0.0  ;;  %v755_v18 = vmax.f32 %v539_v47, %v719_v49  ;;  %1217 = vrot.lane.b32.xlu0 %v1169_v38, %s6492_s21 }
 0x16d   :  { %v1121_v28 = vld [vmem:[#allocation2 + $0x2] sm:$0xff]  ;;  %1024 = vrot.lane.b32.xlu1 %v976_v42, %s6492_s21  ;;  %v618_v30 = vpop.permute.xlu1 %617  ;;  %v440_v44 = vpop.permute.xlu0 %439 }
 0x16e   :  { %1145 = vst.msk [vmem:[#allocation3 + $0x8] sm:$0xff] %vm866_vm0, %v1121_v28  ;;  %v1313_v16 = vld [vmem:[#allocation2 + $0x4] sm:$0xff]  ;;  %879 = vst.msk [vmem:[#allocation2 + $0x20] sm:$0xff] %vm866_vm0, %v833_v12  ;;  %v798_v5 = vadd.f32 %v7084_v21, %v755_v18  ;;  %v720_v45 = vmax.f32 %v6854_v20, %v618_v30  ;;  %v541_v20 = vmax.f32 %v6859_v22, %v440_v44 }
 0x16f   :  { %1337 = vst.msk [vmem:[#allocation3 + $0x10] sm:$0xff] %vm866_vm0, %v1313_v16  ;;  %v1170_v46 = vld [vmem:[#allocation2 + $0x13] sm:$0xff] }
 0x170   :  { %v977_v2 = vld [vmem:[#allocation2 + $0x11] sm:$0xff]  ;;  %v834_v11 = vmax.f32 %v798_v5, 0.0  ;;  %v756_v48 = vmax.f32 %v540_v6, %v720_v45  ;;  %1219 = vrot.lane.b32.xlu0 %v1170_v46, %s6492_s21 }
 0x171   :  { %v1314_v9 = vld [vmem:[#allocation2 + $0x14] sm:$0xff]  ;;  %1026 = vrot.lane.b32.xlu1 %v977_v2, %s6492_s21  ;;  %v620_v7 = vpop.permute.xlu0 %619  ;;  %v442_v38 = vpop.permute.xlu1 %441 }
 0x172   :  { %1338 = vst.msk [vmem:[#allocation3 + $0x28] sm:$0xff] %vm866_vm0, %v1314_v9  ;;  %v1122_v47 = vld [vmem:[#allocation2 + $0x12] sm:$0xff]  ;;  %v799_v17 = vadd.f32 %v7084_v21, %v756_v48  ;;  %v721_v3 = vmax.f32 %v6868_v24, %v620_v7  ;;  %v542_v16 = vmax.f32 %v6870_v25, %v442_v38 }
 0x173   :  { %v929_v49 = vld [vmem:[#allocation2 + $0x10] sm:$0xff]  ;;  %1146 = vst.msk [vmem:[#allocation3 + $0x20] sm:$0xff] %vm866_vm0, %v1122_v47 }
 0x174   :  { %953 = vst.msk [vmem:[#allocation3 + $0x18] sm:$0xff] %vm866_vm0, %v929_v49  ;;  %v835_v8 = vmax.f32 %v799_v17, 0.0  ;;  %v757_v42 = vmax.f32 %v541_v20, %v721_v3 }
 0x175   :  { %880 = vst.msk [vmem:[#allocation2 + $0x28] sm:$0xf] %vm868_vm1, %v834_v11  ;;  %v622_v28 = vpop.permute.xlu1 %621  ;;  %v444_v12 = vpop.permute.xlu0 %443  ;;  %v930_v18 = vld [vmem:[#allocation2 + $0x20] sm:$0xff] }
 0x176   :  { %884 = vst.msk [vmem:[#allocation2 + $0x2c] sm:$0xf0] %vm873_vm2, %v834_v11  ;;  %v800_v13 = vadd.f32 %v7084_v21, %v757_v42  ;;  %v722_v30 = vmax.f32 %v6879_v27, %v622_v28  ;;  %v543_v27 = vmax.f32 %v6884_v29, %v444_v12 }
 0x177   :  { %885 = vst.msk [vmem:[#allocation2 + $0x34] sm:$0xff] %vm866_vm0, %v835_v8  ;;  %954 = vst.msk [vmem:[#allocation3 + $0x30] sm:$0xff] %vm866_vm0, %v930_v18 }
 0x178   :  { %v836_v6 = vmax.f32 %v800_v13, 0.0  ;;  %v758_v22 = vmax.f32 %v542_v16, %v722_v30 }
 0x179   :  { %v1806_v5 = vld [vmem:[#allocation3 + $0x28] sm:$0xff]  ;;  %v624_v44 = vpop.permute.xlu1 %623  ;;  %v446_v45 = vpop.permute.xlu0 %445 }
 0x17a   :  { %6260 = vmatprep.mubr.msk.f32.mxu0 %vm866_vm0, %v1806_v5  ;;  %889 = vst.msk [vmem:[#allocation2 + $0x40] sm:$0xff] %vm866_vm0, %v836_v6  ;;  %v801_v25 = vadd.f32 %v7084_v21, %v758_v22  ;;  %v723_v9 = vmax.f32 %v6893_v31, %v624_v44  ;;  %v544_v31 = vmax.f32 %v6895_v32, %v446_v45 }
 0x17c   :  { %v1315_v24 = vld [vmem:[#allocation2 + $0x24] sm:$0xff]  ;;  %v837_v48 = vmax.f32 %v801_v25, 0.0  ;;  %v759_v47 = vmax.f32 %v543_v27, %v723_v9 }
 0x17d   :  { %v1171_v46 = vld [vmem:[#allocation2 + $0x23] sm:$0xff]  ;;  %1339 = vst.msk [vmem:[#allocation3 + $0x40] sm:$0xff] %vm866_vm0, %v1315_v24  ;;  %v626_v49 = vpop.permute.xlu0 %625  ;;  %v448_v7 = vpop.permute.xlu1 %447 }
 0x17e   :  { %v978_v2 = vld [vmem:[#allocation2 + $0x21] sm:$0xff]  ;;  %1221 = vrot.lane.b32.xlu0 %v1171_v46, %s6492_s21  ;;  %v1172_v38 = vld [vmem:[#allocation2 + $0x33] sm:$0xff]  ;;  %890 = vst.msk [vmem:[#allocation2 + $0x48] sm:$0xf] %vm868_vm1, %v837_v48  ;;  %v802_v29 = vadd.f32 %v7084_v21, %v759_v47  ;;  %v724_v3 = vmax.f32 %v6901_v33, %v626_v49  ;;  %v545_v33 = vmax.f32 %v6903_v34, %v448_v7 }
 0x17f   :  { %1028 = vrot.lane.b32.xlu1 %v978_v2, %s6492_s21  ;;  %v1123_v11 = vld [vmem:[#allocation2 + $0x22] sm:$0xff]  ;;  %v979_v17 = vld [vmem:[#allocation2 + $0x31] sm:$0xff]  ;;  %894 = vst.msk [vmem:[#allocation2 + $0x4c] sm:$0xf0] %vm873_vm2, %v837_v48 }
 0x180   :  { %1147 = vst.msk [vmem:[#allocation3 + $0x38] sm:$0xff] %vm866_vm0, %v1123_v11  ;;  %v1316_v20 = vld [vmem:[#allocation2 + $0x34] sm:$0xff]  ;;  %v838_v28 = vmax.f32 %v802_v29, 0.0  ;;  %v760_v12 = vmax.f32 %v544_v31, %v724_v3 }
 0x181   :  { %1340 = vst.msk [vmem:[#allocation3 + $0x58] sm:$0xff] %vm866_vm0, %v1316_v20  ;;  %v1124_v8 = vld [vmem:[#allocation2 + $0x32] sm:$0xff]  ;;  %v628_v18 = vpop.permute.xlu1 %627  ;;  %v932_v16 = vld [vmem:[#allocation2 + $0x40] sm:$0xff]  ;;  %v450_v5 = vpop.permute.xlu0 %449 }
 0x182   :  { %1223 = vrot.lane.b32.xlu0 %v1172_v38, %s6492_s21  ;;  %v931_v42 = vld [vmem:[#allocation2 + $0x30] sm:$0xff]  ;;  %1148 = vst.msk [vmem:[#allocation3 + $0x50] sm:$0xff] %vm866_vm0, %v1124_v8  ;;  %895 = vst.msk [vmem:[#allocation2 + $0x54] sm:$0xff] %vm866_vm0, %v838_v28  ;;  %v803_v32 = vadd.f32 %v7084_v21, %v760_v12  ;;  %v725_v30 = vmax.f32 %v6909_v35, %v628_v18  ;;  %v546_v25 = vmax.f32 %v6911_v36, %v450_v5 }
 0x183   :  { %1030 = vrot.lane.b32.xlu1 %v979_v17, %s6492_s21  ;;  %955 = vst.msk [vmem:[#allocation3 + $0x48] sm:$0xff] %vm866_vm0, %v931_v42  ;;  %956 = vst.msk [vmem:[#allocation3 + $0x60] sm:$0xff] %vm866_vm0, %v932_v16 }
 0x184   :  { %v1809_v13 = vld [vmem:[#allocation3 + $0x40] sm:$0xff]  ;;  %v839_v6 = vmax.f32 %v803_v32, 0.0  ;;  %v761_v22 = vmax.f32 %v545_v33, %v725_v30 }
 0x185   :  { %6261 = vmatmul.mubr.msk.f32.vlgmr.msra.gmra.mxu0 %vm866_vm0, %v1809_v13  ;;  %v630_v24 = vpop.permute.xlu1 %629  ;;  %v1173_v45 = vld [vmem:[#allocation2 + $0x43] sm:$0xff] }
 0x186   :  { %v980_v46 = vld [vmem:[#allocation2 + $0x41] sm:$0xff]  ;;  %899 = vst.msk [vmem:[#allocation2 + $0x60] sm:$0xff] %vm866_vm0, %v839_v6  ;;  %v804_v2 = vadd.f32 %v7084_v21, %v761_v22  ;;  %v726_v34 = vmax.f32 %v6917_v37, %v630_v24  ;;  %1225 = vrot.lane.b32.xlu0 %v1173_v45, %s6492_s21 }
 0x187   :  { %v1317_v35 = vld [vmem:[#allocation2 + $0x44] sm:$0xff]  ;;  %1032 = vrot.lane.b32.xlu1 %v980_v46, %s6492_s21 }
 0x188   :  { %v1812_v44 = vld [vmem:[#allocation3 + $0x58] sm:$0xff]  ;;  %v1125_v27 = vld [vmem:[#allocation2 + $0x42] sm:$0xff]  ;;  %1341 = vst.msk [vmem:[#allocation3 + $0x70] sm:$0xff] %vm866_vm0, %v1317_v35  ;;  %v840_v9 = vmax.f32 %v804_v2, 0.0  ;;  %v762_v11 = vmax.f32 %v546_v25, %v726_v34 }
 0x189   :  { %6263 = vmatprep.mubr.msk.f32.mxu0 %vm866_vm0, %v1812_v44  ;;  %1149 = vst.msk [vmem:[#allocation3 + $0x68] sm:$0xff] %vm866_vm0, %v1125_v27  ;;  %v1174_v48 = vld [vmem:[#allocation2 + $0x53] sm:$0xff] }
 0x18a   :  { %v981_v47 = vld [vmem:[#allocation2 + $0x51] sm:$0xff]  ;;  %900 = vst.msk [vmem:[#allocation2 + $0x68] sm:$0xf] %vm868_vm1, %v840_v9  ;;  %v805_v36 = vadd.f32 %v7084_v21, %v762_v11  ;;  %1227 = vrot.lane.b32.xlu0 %v1174_v48, %s6492_s21 }
 0x18b   :  { %v1318_v49 = vld [vmem:[#allocation2 + $0x54] sm:$0xff]  ;;  %904 = vst.msk [vmem:[#allocation2 + $0x6c] sm:$0xf0] %vm873_vm2, %v840_v9  ;;  %1034 = vrot.lane.b32.xlu1 %v981_v47, %s6492_s21 }
 0x18c   :  { %1342 = vst.msk [vmem:[#allocation3 + $0x88] sm:$0xff] %vm866_vm0, %v1318_v49  ;;  %v1126_v37 = vld [vmem:[#allocation2 + $0x52] sm:$0xff]  ;;  %v841_v38 = vmax.f32 %v805_v36, 0.0 }
 0x18d   :  { %v933_v7 = vld [vmem:[#allocation2 + $0x50] sm:$0xff]  ;;  %1150 = vst.msk [vmem:[#allocation3 + $0x80] sm:$0xff] %vm866_vm0, %v1126_v37  ;;  %v934_v17 = vld [vmem:[#allocation2 + $0x60] sm:$0xff] }
 0x18e   :  { %957 = vst.msk [vmem:[#allocation3 + $0x78] sm:$0xff] %vm866_vm0, %v933_v7  ;;  %905 = vst.msk [vmem:[#allocation2 + $0x74] sm:$0xff] %vm866_vm0, %v841_v38 }
 0x18f   :  { %v1815_v20 = vld [vmem:[#allocation3 + $0x70] sm:$0xff]  ;;  %958 = vst.msk [vmem:[#allocation3 + $0x90] sm:$0xff] %vm866_vm0, %v934_v17 }
 0x190   :  { %6264 = vmatmul.mubr.msk.f32.gmra.mxu0 %vm866_vm0, %v1815_v20 }
 0x191   :  { %v1175_v31 = vld [vmem:[#allocation2 + $0x63] sm:$0xff] }
 0x192   :  { %v982_v3 = vld [vmem:[#allocation2 + $0x61] sm:$0xff]  ;;  %1229 = vrot.lane.b32.xlu0 %v1175_v31, %s6492_s21 }
 0x193   :  { %v1818_v29 = vld [vmem:[#allocation3 + $0x88] sm:$0xff]  ;;  %1036 = vrot.lane.b32.xlu1 %v982_v3, %s6492_s21 }
 0x194   :  { %6266 = vmatprep.mubr.msk.f32.mxu0 %vm866_vm0, %v1818_v29  ;;  %v1319_v8 = vld [vmem:[#allocation2 + $0x64] sm:$0xff] }
 0x195   :  { %v1127_v42 = vld [vmem:[#allocation2 + $0x62] sm:$0xff]  ;;  %1343 = vst.msk [vmem:[#allocation3 + $0xa0] sm:$0xff] %vm866_vm0, %v1319_v8  ;;  %v1176_v28 = vld [vmem:[#allocation2 + $0x73] sm:$0xff] }
 0x196   :  { %1151 = vst.msk [vmem:[#allocation3 + $0x98] sm:$0xff] %vm866_vm0, %v1127_v42  ;;  %v983_v12 = vld [vmem:[#allocation2 + $0x71] sm:$0xff]  ;;  %1231 = vrot.lane.b32.xlu0 %v1176_v28, %s6492_s21 }
 0x197   :  { %v1320_v18 = vld [vmem:[#allocation2 + $0x74] sm:$0xff]  ;;  %1038 = vrot.lane.b32.xlu1 %v983_v12, %s6492_s21 }
 0x198   :  { %1344 = vst.msk [vmem:[#allocation3 + $0xb8] sm:$0xff] %vm866_vm0, %v1320_v18  ;;  %v1128_v13 = vld [vmem:[#allocation2 + $0x72] sm:$0xff] }
 0x199   :  { %v935_v16 = vld [vmem:[#allocation2 + $0x70] sm:$0xff]  ;;  %1152 = vst.msk [vmem:[#allocation3 + $0xb0] sm:$0xff] %vm866_vm0, %v1128_v13 }
 0x19a   :  { %959 = vst.msk [vmem:[#allocation3 + $0xa8] sm:$0xff] %vm866_vm0, %v935_v16 }
 0x19c   :  { %v1821_v32 = vld [vmem:[#allocation3 + $0xa0] sm:$0xff] }
 0x19d   :  { %6267 = vmatmul.mubr.msk.f32.gmra.mxu0 %vm866_vm0, %v1821_v32  ;;  %v464_v33 = vpop.permute.xlu0 %463 }
 0x19e   :  { %v553_v22 = vmax.f32 %v6945_v50, %v464_v33 }
 0x19f   :  { %v1824_v30 = vld [vmem:[#allocation3 + $0xb8] sm:$0xff] }
 0x1a0   :  { %6269 = vmatprep.mubr.msk.f32.mxu0 %vm866_vm0, %v1824_v30 }
 0x1a1   :  { %v644_v5 = vpop.permute.xlu0 %643  ;;  %v466_v6 = vpop.permute.xlu1 %465 }
 0x1a2   :  { %v733_v24 = vmax.f32 %v6949_v51, %v644_v5  ;;  %v554_v25 = vmax.f32 %v6951_v52, %v466_v6 }
 0x1a4   :  { %v769_v44 = vmax.f32 %v553_v22, %v733_v24 }
 0x1a5   :  { %v646_v45 = vpop.permute.xlu1 %645  ;;  %v468_v46 = vpop.permute.xlu0 %467 }
 0x1a6   :  { %v812_v2 = vadd.f32 %v7084_v21, %v769_v44  ;;  %v734_v34 = vmax.f32 %v6957_v53, %v646_v45  ;;  %v555_v50 = vmax.f32 %v6959_v54, %v468_v46 }
 0x1a8   :  { %v848_v35 = vmax.f32 %v812_v2, 0.0  ;;  %v770_v27 = vmax.f32 %v554_v25, %v734_v34 }
 0x1a9   :  { %v648_v9 = vpop.permute.xlu1 %647  ;;  %v470_v11 = vpop.permute.xlu0 %469 }
 0x1aa   :  { %870 = vst.msk [vmem:[#allocation2 + $0xc0] sm:$0xff] %vm866_vm0, %v848_v35  ;;  %v813_v48 = vadd.f32 %v7084_v21, %v770_v27  ;;  %v735_v51 = vmax.f32 %v6965_v55, %v648_v9  ;;  %v556_v53 = vmax.f32 %v6967_v56, %v470_v11 }
 0x1ac   :  { %v849_v47 = vmax.f32 %v813_v48, 0.0  ;;  %v771_v49 = vmax.f32 %v555_v50, %v735_v51 }
 0x1ad   :  { %v650_v36 = vpop.permute.xlu0 %649  ;;  %v472_v37 = vpop.permute.xlu1 %471 }
 0x1ae   :  { %871 = vst.msk [vmem:[#allocation2 + $0xc8] sm:$0xf] %vm868_vm1, %v849_v47  ;;  %v814_v52 = vadd.f32 %v7084_v21, %v771_v49  ;;  %v736_v7 = vmax.f32 %v6973_v57, %v650_v36  ;;  %v557_v31 = vmax.f32 %v6975_v58, %v472_v37 }
 0x1af   :  { %876 = vst.msk [vmem:[#allocation2 + $0xcc] sm:$0xf0] %vm873_vm2, %v849_v47 }
 0x1b0   :  { %v850_v38 = vmax.f32 %v814_v52, 0.0  ;;  %v772_v17 = vmax.f32 %v556_v53, %v736_v7 }
 0x1b1   :  { %v652_v20 = vpop.permute.xlu1 %651  ;;  %v474_v54 = vpop.permute.xlu0 %473  ;;  %v940_v29 = vld [vmem:[#allocation2 + $0xc0] sm:$0xff] }
 0x1b2   :  { %877 = vst.msk [vmem:[#allocation2 + $0xd4] sm:$0xff] %vm866_vm0, %v850_v38  ;;  %v815_v55 = vadd.f32 %v7084_v21, %v772_v17  ;;  %v737_v3 = vmax.f32 %v6981_v59, %v652_v20  ;;  %964 = vst.msk [vmem:[#allocation3 + $0x120] sm:$0xff] %vm866_vm0, %v940_v29  ;;  %v558_v16 = vmax.f32 %v6983_v60, %v474_v54 }
 0x1b4   :  { %v851_v8 = vmax.f32 %v815_v55, 0.0  ;;  %v773_v42 = vmax.f32 %v557_v31, %v737_v3 }
 0x1b5   :  { %v654_v56 = vpop.permute.xlu1 %653  ;;  %v476_v28 = vpop.permute.xlu0 %475  ;;  %v1181_v57 = vld [vmem:[#allocation2 + $0xc3] sm:$0xff] }
 0x1b6   :  { %v988_v12 = vld [vmem:[#allocation2 + $0xc1] sm:$0xff]  ;;  %881 = vst.msk [vmem:[#allocation2 + $0xe0] sm:$0xff] %vm866_vm0, %v851_v8  ;;  %v816_v13 = vadd.f32 %v7084_v21, %v773_v42  ;;  %v738_v32 = vmax.f32 %v6989_v61, %v654_v56  ;;  %1241 = vrot.lane.b32.xlu0 %v1181_v57, %s6492_s21  ;;  %v559_v61 = vmax.f32 %v6991_v62, %v476_v28 }
 0x1b7   :  { %v1133_v18 = vld [vmem:[#allocation2 + $0xc2] sm:$0xff]  ;;  %1048 = vrot.lane.b32.xlu1 %v988_v12, %s6492_s21 }
 0x1b8   :  { %1157 = vst.msk [vmem:[#allocation3 + $0x128] sm:$0xff] %vm866_vm0, %v1133_v18  ;;  %v1325_v58 = vld [vmem:[#allocation2 + $0xc4] sm:$0xff]  ;;  %v852_v59 = vmax.f32 %v816_v13, 0.0  ;;  %v774_v33 = vmax.f32 %v558_v16, %v738_v32 }
 0x1b9   :  { %1349 = vst.msk [vmem:[#allocation3 + $0x130] sm:$0xff] %vm866_vm0, %v1325_v58  ;;  %v656_v30 = vpop.permute.xlu0 %655  ;;  %v478_v5 = vpop.permute.xlu1 %477  ;;  %v1182_v6 = vld [vmem:[#allocation2 + $0xd3] sm:$0xff] }
 0x1ba   :  { %v989_v22 = vld [vmem:[#allocation2 + $0xd1] sm:$0xff]  ;;  %882 = vst.msk [vmem:[#allocation2 + $0xe8] sm:$0xf] %vm868_vm1, %v852_v59  ;;  %v817_v60 = vadd.f32 %v7084_v21, %v774_v33  ;;  %v739_v44 = vmax.f32 %v6997_v63, %v656_v30  ;;  %1243 = vrot.lane.b32.xlu0 %v1182_v6, %s6492_s21  ;;  %v560_v63 = vmax.f32 %v6999_v0, %v478_v5 }
 0x1bb   :  { %v1326_v24 = vld [vmem:[#allocation2 + $0xd4] sm:$0xff]  ;;  %886 = vst.msk [vmem:[#allocation2 + $0xec] sm:$0xf0] %vm873_vm2, %v852_v59  ;;  %1050 = vrot.lane.b32.xlu1 %v989_v22, %s6492_s21 }
 0x1bc   :  { %1350 = vst.msk [vmem:[#allocation3 + $0x148] sm:$0xff] %vm866_vm0, %v1326_v24  ;;  %v1134_v45 = vld [vmem:[#allocation2 + $0xd2] sm:$0xff]  ;;  %v853_v2 = vmax.f32 %v817_v60, 0.0  ;;  %v775_v25 = vmax.f32 %v559_v61, %v739_v44 }
 0x1bd   :  { %v941_v46 = vld [vmem:[#allocation2 + $0xd0] sm:$0xff]  ;;  %1158 = vst.msk [vmem:[#allocation3 + $0x140] sm:$0xff] %vm866_vm0, %v1134_v45  ;;  %v658_v34 = vpop.permute.xlu1 %657  ;;  %v480_v35 = vpop.permute.xlu0 %479  ;;  %v942_v27 = vld [vmem:[#allocation2 + $0xe0] sm:$0xff]  ;;  %v7323_v6 = vld [vmem:[%s10497_s3 + $0x138] sm:$0xff] }
 0x1be   :  { %965 = vst.msk [vmem:[#allocation3 + $0x138] sm:$0xff] %vm866_vm0, %v941_v46  ;;  %887 = vst.msk [vmem:[#allocation2 + $0xf4] sm:$0xff] %vm866_vm0, %v853_v2  ;;  %v818_v62 = vadd.f32 %v7084_v21, %v775_v25  ;;  %v740_v9 = vmax.f32 %v7005_v1, %v658_v34  ;;  %v561_v37 = vmax.f32 %v7013_v14, %v480_v35  ;;  %6204 = vmatprep.subr.mxu1 %v7323_v6  ;;  %v10533_v45 = vld [vmem:[#allocation11_spill] sm:$0xff] }
 0x1bf   :  { %966 = vst.msk [vmem:[#allocation3 + $0x150] sm:$0xff] %vm866_vm0, %v942_v27 }
 0x1c0   :  { %v854_v11 = vmax.f32 %v818_v62, 0.0  ;;  %v776_v48 = vmax.f32 %v560_v63, %v740_v9 }
 0x1c1   :  { %v660_v50 = vpop.permute.xlu1 %659  ;;  %v482_v51 = vpop.permute.xlu0 %481  ;;  %v1183_v47 = vld [vmem:[#allocation2 + $0xe3] sm:$0xff] }
 0x1c2   :  { %v990_v49 = vld [vmem:[#allocation2 + $0xe1] sm:$0xff]  ;;  %891 = vst.msk [vmem:[#allocation2 + $0x100] sm:$0xff] %vm866_vm0, %v854_v11  ;;  %v819_v36 = vadd.f32 %v7084_v21, %v776_v48  ;;  %v741_v52 = vmax.f32 %v7025_v19, %v660_v50  ;;  %1245 = vrot.lane.b32.xlu0 %v1183_v47, %s6492_s21  ;;  %v562_v19 = vmax.f32 %v7033_v26, %v482_v51 }
 0x1c3   :  { %1052 = vrot.lane.b32.xlu1 %v990_v49, %s6492_s21  ;;  %v1327_v0 = vld [vmem:[#allocation2 + $0xe4] sm:$0xff] }
 0x1c4   :  { %v1135_v1 = vld [vmem:[#allocation2 + $0xe2] sm:$0xff]  ;;  %1351 = vst.msk [vmem:[#allocation3 + $0x160] sm:$0xff] %vm866_vm0, %v1327_v0  ;;  %v855_v53 = vmax.f32 %v819_v36, 0.0  ;;  %v777_v7 = vmax.f32 %v561_v37, %v741_v52  ;;  %v7343_v36 = vpop.f32.mrf.mxu0 }
 0x1c5   :  { %1159 = vst.msk [vmem:[#allocation3 + $0x158] sm:$0xff] %vm866_vm0, %v1135_v1  ;;  %v662_v38 = vpop.permute.xlu0 %661  ;;  %v484_v17 = vpop.permute.xlu1 %483  ;;  %v1184_v20 = vld [vmem:[#allocation2 + $0xf3] sm:$0xff] }
 0x1c6   :  { %v991_v54 = vld [vmem:[#allocation2 + $0xf1] sm:$0xff]  ;;  %892 = vst.msk [vmem:[#allocation2 + $0x108] sm:$0xf] %vm868_vm1, %v855_v53  ;;  %v820_v14 = vadd.f32 %v7084_v21, %v777_v7  ;;  %v742_v55 = vmax.f32 %v7045_v10, %v662_v38  ;;  %1247 = vrot.lane.b32.xlu0 %v1184_v20, %s6492_s21  ;;  %v563_v10 = vmax.f32 %v7050_v15, %v484_v17  ;;  %v7351_v0 = vpop.f32.mrf.mxu0 }
 0x1c7   :  { %v1328_v29 = vld [vmem:[#allocation2 + $0xf4] sm:$0xff]  ;;  %896 = vst.msk [vmem:[#allocation2 + $0x10c] sm:$0xf0] %vm873_vm2, %v855_v53  ;;  %1054 = vrot.lane.b32.xlu1 %v991_v54, %s6492_s21 }
 0x1c8   :  { %1352 = vst.msk [vmem:[#allocation3 + $0x178] sm:$0xff] %vm866_vm0, %v1328_v29  ;;  %v1136_v31 = vld [vmem:[#allocation2 + $0xf2] sm:$0xff]  ;;  %v856_v8 = vmax.f32 %v820_v14, 0.0  ;;  %v778_v42 = vmax.f32 %v562_v19, %v742_v55  ;;  %v7362_v54 = vpop.f32.mrf.mxu0 }
 0x1c9   :  { %v943_v3 = vld [vmem:[#allocation2 + $0xf0] sm:$0xff]  ;;  %1160 = vst.msk [vmem:[#allocation3 + $0x170] sm:$0xff] %vm866_vm0, %v1136_v31  ;;  %v664_v56 = vpop.permute.xlu1 %663  ;;  %v486_v28 = vpop.permute.xlu0 %485  ;;  %v944_v57 = vld [vmem:[#allocation2 + $0x100] sm:$0xff] }
 0x1ca   :  { %967 = vst.msk [vmem:[#allocation3 + $0x168] sm:$0xff] %vm866_vm0, %v943_v3  ;;  %897 = vst.msk [vmem:[#allocation2 + $0x114] sm:$0xff] %vm866_vm0, %v856_v8  ;;  %v821_v26 = vadd.f32 %v7084_v21, %v778_v42  ;;  %v743_v12 = vmax.f32 %v7062_v23, %v664_v56  ;;  %v564_v30 = vmax.f32 %v7067_v4, %v486_v28  ;;  %v7371_v55 = vpop.f32.mrf.mxu0  ;;  %v1447_v56 = vld [vmem:[%s10497_s3 + $0x130] sm:$0xff]  ;;  %v5413_v28 = vld [vmem:[%s10497_s3 + $0x3b8] sm:$0xff] }
 0x1cb   :  { %968 = vst.msk [vmem:[#allocation3 + $0x180] sm:$0xff] %vm866_vm0, %v944_v57  ;;  %6284 = vmatprep.subr.mxu0 %v5413_v28  ;;  %v10534_v57 = vld [vmem:[#allocation12_spill] sm:$0xff] }
 0x1cc   :  { %v857_v18 = vmax.f32 %v821_v26, 0.0  ;;  %v779_v13 = vmax.f32 %v563_v10, %v743_v12  ;;  %v10535_v26 = vld [vmem:[#allocation13_spill] sm:$0xff]  ;;  %6285 = vmatpush3.msra.mxu0 %v5413_v28 }
 0x1cd   :  { %v452_v16 = vpop.permute.xlu0 %451  ;;  %v666_v32 = vpop.permute.xlu1 %665  ;;  %v1185_v58 = vld [vmem:[#allocation2 + $0x103] sm:$0xff] }
 0x1ce   :  { %v992_v59 = vld [vmem:[#allocation2 + $0x101] sm:$0xff]  ;;  %901 = vst.msk [vmem:[#allocation2 + $0x120] sm:$0xff] %vm866_vm0, %v857_v18  ;;  %v822_v33 = vadd.f32 %v7084_v21, %v779_v13  ;;  %v744_v5 = vmax.f32 %v7089_v43, %v666_v32  ;;  %1249 = vrot.lane.b32.xlu0 %v1185_v58, %s6492_s21  ;;  %v547_v46 = vmax.f32 %v10533_v45, %v452_v16  ;;  %v5412_v18 = vld [vmem:[%s10497_s3 + $0x3b0] sm:$0xff]  ;;  %v7398_v13 = vpop.f32.mrf.mxu0 }
 0x1cf   :  { %1056 = vrot.lane.b32.xlu1 %v992_v59, %s6492_s21  ;;  %v1329_v15 = vld [vmem:[#allocation2 + $0x104] sm:$0xff]  ;;  %6286 = vmatprep.subr.mxu0 %v5412_v18 }
 0x1d0   :  { %v1137_v23 = vld [vmem:[#allocation2 + $0x102] sm:$0xff]  ;;  %1353 = vst.msk [vmem:[#allocation3 + $0x190] sm:$0xff] %vm866_vm0, %v1329_v15  ;;  %v858_v4 = vmax.f32 %v822_v33, 0.0  ;;  %v780_v22 = vmax.f32 %v564_v30, %v744_v5  ;;  %6287 = vmatpush3.msra.mxu0 %v5412_v18 }
 0x1d1   :  { %1161 = vst.msk [vmem:[#allocation3 + $0x188] sm:$0xff] %vm866_vm0, %v1137_v23  ;;  %v632_v43 = vpop.permute.xlu0 %631  ;;  %v454_v24 = vpop.permute.xlu1 %453  ;;  %v1186_v60 = vld [vmem:[#allocation2 + $0x113] sm:$0xff]  ;;  %v1446_v33 = vld [vmem:[%s10497_s3 + $0x128] sm:$0xff] }
 0x1d2   :  { %v993_v61 = vld [vmem:[#allocation2 + $0x111] sm:$0xff]  ;;  %902 = vst.msk [vmem:[#allocation2 + $0x128] sm:$0xf] %vm868_vm1, %v858_v4  ;;  %v823_v2 = vadd.f32 %v7084_v21, %v780_v22  ;;  %v727_v25 = vmax.f32 %v6923_v39, %v632_v43  ;;  %1251 = vrot.lane.b32.xlu0 %v1186_v60, %s6492_s21  ;;  %v548_v11 = vmax.f32 %v6925_v40, %v454_v24  ;;  %v7411_v5 = vld [vmem:[#allocation3 + $0x148] sm:$0xff]  ;;  %v7419_v23 = vpop.f32.mrf.mxu0  ;;  %v7423_v22 = vld [vmem:[#allocation3 + $0x160] sm:$0xff] }
 0x1d3   :  { %v1330_v44 = vld [vmem:[#allocation2 + $0x114] sm:$0xff]  ;;  %906 = vst.msk [vmem:[#allocation2 + $0x12c] sm:$0xf0] %vm873_vm2, %v858_v4  ;;  %1058 = vrot.lane.b32.xlu1 %v993_v61, %s6492_s21  ;;  %v5411_v15 = vld [vmem:[%s10497_s3 + $0x3a8] sm:$0xff]  ;;  %v1445_v43 = vld [vmem:[%s10497_s3 + $0x120] sm:$0xff] }
 0x1d4   :  { %1354 = vst.msk [vmem:[#allocation3 + $0x1a8] sm:$0xff] %vm866_vm0, %v1330_v44  ;;  %v1138_v34 = vld [vmem:[#allocation2 + $0x112] sm:$0xff]  ;;  %v859_v27 = vmax.f32 %v823_v2, 0.0  ;;  %v763_v62 = vmax.f32 %v547_v46, %v727_v25  ;;  %6288 = vmatprep.subr.mxu0 %v5411_v15  ;;  %v5410_v46 = vld [vmem:[%s10497_s3 + $0x3a0] sm:$0xff] }
 0x1d5   :  { %v945_v35 = vld [vmem:[#allocation2 + $0x110] sm:$0xff]  ;;  %1162 = vst.msk [vmem:[#allocation3 + $0x1a0] sm:$0xff] %vm866_vm0, %v1138_v34  ;;  %v634_v63 = vpop.permute.xlu1 %633  ;;  %v946_v9 = vld [vmem:[#allocation2 + $0x120] sm:$0xff]  ;;  %v7432_v24 = vld [vmem:[#allocation3 + $0x178] sm:$0xff]  ;;  %6289 = vmatpush3.msra.mxu0 %v5411_v15 }
 0x1d6   :  { %969 = vst.msk [vmem:[#allocation3 + $0x198] sm:$0xff] %vm866_vm0, %v945_v35  ;;  %907 = vst.msk [vmem:[#allocation2 + $0x134] sm:$0xff] %vm866_vm0, %v859_v27  ;;  %v806_v39 = vadd.f32 %v7084_v21, %v763_v62  ;;  %v728_v48 = vmax.f32 %v6927_v41, %v634_v63  ;;  %v1444_v44 = vld [vmem:[%s10497_s3 + $0x118] sm:$0xff]  ;;  %v1443_v25 = vld [vmem:[%s10497_s3 + $0x110] sm:$0xff]  ;;  %6290 = vmatprep.subr.mxu0 %v5410_v46 }
 0x1d7   :  { %970 = vst.msk [vmem:[#allocation3 + $0x1b0] sm:$0xff] %vm866_vm0, %v946_v9  ;;  %v7446_v45 = vld [vmem:[#allocation3 + $0x190] sm:$0xff]  ;;  %v1442_v9 = vld [vmem:[%s10497_s3 + $0x108] sm:$0xff]  ;;  %6291 = vmatpush3.msra.mxu0 %v5410_v46 }
 0x1d8   :  { %v842_v50 = vmax.f32 %v806_v39, 0.0  ;;  %v764_v51 = vmax.f32 %v548_v11, %v728_v48  ;;  %v5409_v11 = vld [vmem:[%s10497_s3 + $0x398] sm:$0xff]  ;;  %v1441_v48 = vld [vmem:[%s10497_s3 + $0x100] sm:$0xff] }
 0x1d9   :  { %v1187_v47 = vld [vmem:[#allocation2 + $0x123] sm:$0xff]  ;;  %6292 = vmatprep.subr.mxu0 %v5409_v11 }
 0x1da   :  { %v994_v49 = vld [vmem:[#allocation2 + $0x121] sm:$0xff]  ;;  %909 = vst.msk [vmem:[#allocation2 + $0x80] sm:$0xff] %vm866_vm0, %v842_v50  ;;  %v807_v37 = vadd.f32 %v7084_v21, %v764_v51  ;;  %1253 = vrot.lane.b32.xlu0 %v1187_v47, %s6492_s21  ;;  %v5408_v51 = vld [vmem:[%s10497_s3 + $0x390] sm:$0xff]  ;;  %6293 = vmatpush3.msra.mxu0 %v5409_v11 }
 0x1db   :  { %1060 = vrot.lane.b32.xlu1 %v994_v49, %s6492_s21  ;;  %v1331_v52 = vld [vmem:[#allocation2 + $0x124] sm:$0xff]  ;;  %v5349_v49 = vld [vmem:[%s10497_s3 + $0x238] sm:$0xff]  ;;  %6294 = vmatprep.subr.mxu0 %v5408_v51 }
 0x1dc   :  { %v1139_v40 = vld [vmem:[#allocation2 + $0x122] sm:$0xff]  ;;  %1355 = vst.msk [vmem:[#allocation3 + $0x1c0] sm:$0xff] %vm866_vm0, %v1331_v52  ;;  %v843_v41 = vmax.f32 %v807_v37, 0.0  ;;  %6295 = vmatpush3.msra.mxu0 %v5408_v51 }
 0x1dd   :  { %1163 = vst.msk [vmem:[#allocation3 + $0x1b8] sm:$0xff] %vm866_vm0, %v1139_v40  ;;  %v1188_v1 = vld [vmem:[#allocation2 + $0x133] sm:$0xff]  ;;  %v7454_v2 = vld [vmem:[#allocation3 + $0x1a8] sm:$0xff]  ;;  %v5406_v40 = vld [vmem:[%s10497_s3 + $0x380] sm:$0xff] }
 0x1de   :  { %v995_v53 = vld [vmem:[#allocation2 + $0x131] sm:$0xff]  ;;  %910 = vst.msk [vmem:[#allocation2 + $0x88] sm:$0xf] %vm868_vm1, %v843_v41  ;;  %v1218_v21 = vpop.permute.xlu0 %1217  ;;  %1255 = vrot.lane.b32.xlu0 %v1188_v1, %s6492_s21  ;;  %v5407_v37 = vld [vmem:[%s10497_s3 + $0x388] sm:$0xff] }
 0x1df   :  { %v1332_v7 = vld [vmem:[#allocation2 + $0x134] sm:$0xff]  ;;  %914 = vst.msk [vmem:[#allocation2 + $0x8c] sm:$0xf0] %vm873_vm2, %v843_v41  ;;  %1062 = vrot.lane.b32.xlu1 %v995_v53, %s6492_s21  ;;  %v1025_v38 = vpop.permute.xlu1 %1024  ;;  %6296 = vmatprep.subr.mxu0 %v5407_v37 }
 0x1e0   :  { %1356 = vst.msk [vmem:[#allocation3 + $0x1d8] sm:$0xff] %vm866_vm0, %v1332_v7  ;;  %v1140_v17 = vld [vmem:[#allocation2 + $0x132] sm:$0xff]  ;;  %6297 = vmatpush3.msra.mxu0 %v5407_v37 }
 0x1e1   :  { %v947_v20 = vld [vmem:[#allocation2 + $0x130] sm:$0xff]  ;;  %1289 = vst.msk [vmem:[#allocation3 + $0x8] sm:$0xff] %vm1096_vm3, %v1218_v21  ;;  %1097 = vst.msk [vmem:[#allocation3] sm:$0xff] %vm1096_vm3, %v1025_v38  ;;  %v936_v29 = vld [vmem:[#allocation2 + $0x80] sm:$0xff]  ;;  %6298 = vmatprep.subr.mxu0 %v5406_v40 }
 0x1e2   :  { %1164 = vst.msk [vmem:[#allocation3 + $0x1d0] sm:$0xff] %vm866_vm0, %v1140_v17  ;;  %971 = vst.msk [vmem:[#allocation3 + $0x1c8] sm:$0xff] %vm866_vm0, %v947_v20  ;;  %v1220_v14 = vpop.permute.xlu0 %1219  ;;  %487 = vrot.lane.b32.xlu0 %v7343_v36, %s6492_s21  ;;  %v7509_v1 = vld [vmem:[%s10497_s3 + $0x4b8] sm:$0xff]  ;;  %6299 = vmatpush3.msra.mxu0 %v5406_v40 }
 0x1e3   :  { %v1027_v19 = vpop.permute.xlu1 %1026  ;;  %489 = vrot.lane.b32.xlu1 %v7362_v54, %s6492_s21  ;;  %960 = vst.msk [vmem:[#allocation3 + $0xc0] sm:$0xff] %vm866_vm0, %v936_v29  ;;  %v7467_v63 = vld [vmem:[#allocation3 + $0x1c0] sm:$0xff]  ;;  %5856 = vmatprep.subr.mxu0 %v7509_v1 }
 0x1e4   :  { %1290 = vst.msk [vmem:[#allocation3 + $0x20] sm:$0xff] %vm1096_vm3, %v1220_v14  ;;  %1098 = vst.msk [vmem:[#allocation3 + $0x18] sm:$0xff] %vm1096_vm3, %v1027_v19 }
 0x1e5   :  { %v1321_v31 = vld [vmem:[#allocation2 + $0x84] sm:$0xff] }
 0x1e6   :  { %667 = vrot.lane.b32.xlu0 %v7351_v0, %s6492_s21  ;;  %1345 = vst.msk [vmem:[#allocation3 + $0xd0] sm:$0xff] %vm866_vm0, %v1321_v31  ;;  %v1129_v42 = vld [vmem:[#allocation2 + $0x82] sm:$0xff] }
 0x1e7   :  { %669 = vrot.lane.b32.xlu1 %v7371_v55, %s6492_s21  ;;  %1153 = vst.msk [vmem:[#allocation3 + $0xc8] sm:$0xff] %vm866_vm0, %v1129_v42  ;;  %v1177_v59 = vld [vmem:[#allocation2 + $0x83] sm:$0xff]  ;;  %v7476_v39 = vld [vmem:[#allocation3 + $0x1d8] sm:$0xff] }
 0x1e8   :  { %v1362_v3 = vld [vmem:[#allocation3 + $0x8] sm:$0xff]  ;;  %v1361_v8 = vld [vmem:[#allocation3] sm:$0xff] }
 0x1e9   :  { %1561 = vmatprep.mubr.f32.mxu1 %v1362_v3  ;;  %v984_v30 = vld [vmem:[#allocation2 + $0x81] sm:$0xff] }
 0x1ea   :  { %1562 = vmatmul.mubr.f32.vlgmr.msra.gmra.mxu1 %v1361_v8  ;;  %455 = vrot.lane.b32.xlu0 %v10534_v57, %s6492_s21 }
 0x1eb   :  { %6205 = vmatpush3.msra.mxu1 %v7323_v6  ;;  %635 = vrot.lane.b32.xlu1 %v10535_v26, %s6492_s21  ;;  %v7390_v10 = vld [vmem:[#allocation3 + $0x20] sm:$0xff]  ;;  %v7392_v12 = vld [vmem:[#allocation3 + $0x18] sm:$0xff] }
 0x1ec   :  { %1566 = vmatprep.mubr.f32.mxu1 %v7390_v10  ;;  %6206 = vmatprep.subr.mxu1 %v1447_v56 }
 0x1ed   :  { %v7403_v58 = vld [vmem:[#allocation3 + $0xd0] sm:$0xff]  ;;  %6207 = vmatpush3.msra.mxu1 %v1447_v56 }
 0x1ee   :  { %1567 = vmatmul.mubr.f32.gmra.mxu1 %v7392_v12  ;;  %6270 = vmatmul.mubr.msk.f32.gmra.mxu0 %vm866_vm0, %v7403_v58 }
 0x1ef   :  { %1233 = vrot.lane.b32.xlu0 %v1177_v59, %s6492_s21  ;;  %1040 = vrot.lane.b32.xlu1 %v984_v30, %s6492_s21 }
 0x1f0   :  { %v1222_v16 = vpop.permute.xlu0 %1221  ;;  %6272 = vmatprep.mubr.msk.f32.mxu0 %vm866_vm0, %v7411_v5  ;;  %6208 = vmatprep.subr.mxu1 %v1446_v33 }
 0x1f1   :  { %v1029_v32 = vpop.permute.xlu1 %1028  ;;  %1291 = vst.msk [vmem:[#allocation3 + $0x38] sm:$0xff] %vm1096_vm3, %v1222_v16  ;;  %6209 = vmatpush3.msra.mxu1 %v1446_v33 }
 0x1f2   :  { %1099 = vst.msk [vmem:[#allocation3 + $0x30] sm:$0xff] %vm1096_vm3, %v1029_v32  ;;  %6273 = vmatmul.mubr.msk.f32.gmra.mxu0 %vm866_vm0, %v7423_v22  ;;  %6210 = vmatprep.subr.mxu1 %v1445_v43 }
 0x1f3   :  { %491 = vrot.lane.b32.xlu0 %v7398_v13, %s6492_s21  ;;  %671 = vrot.lane.b32.xlu1 %v7419_v23, %s6492_s21 }
 0x1f4   :  { %v1224_v6 = vpop.permute.xlu0 %1223  ;;  %6275 = vmatprep.mubr.msk.f32.mxu0 %vm866_vm0, %v7432_v24  ;;  %6211 = vmatpush3.msra.mxu1 %v1445_v43 }
 0x1f5   :  { %v1031_v4 = vpop.permute.xlu1 %1030  ;;  %1292 = vst.msk [vmem:[#allocation3 + $0x50] sm:$0xff] %vm1096_vm3, %v1224_v6  ;;  %6212 = vmatprep.subr.mxu1 %v1444_v44 }
 0x1f6   :  { %1100 = vst.msk [vmem:[#allocation3 + $0x48] sm:$0xff] %vm1096_vm3, %v1031_v4  ;;  %6276 = vmatmul.mubr.msk.f32.gmra.mxu0 %vm866_vm0, %v7446_v45  ;;  %6213 = vmatpush3.msra.mxu1 %v1444_v44 }
 0x1f7   :  { %6278 = vmatprep.mubr.msk.f32.mxu0 %vm866_vm0, %v7454_v2  ;;  %6214 = vmatprep.subr.mxu1 %v1443_v25 }
 0x1f8   :  { %v7438_v60 = vld [vmem:[#allocation3 + $0x38] sm:$0xff]  ;;  %v1226_v34 = vpop.permute.xlu0 %1225  ;;  %6215 = vmatpush3.msra.mxu1 %v1443_v25 }
 0x1f9   :  { %v7440_v61 = vld [vmem:[#allocation3 + $0x30] sm:$0xff]  ;;  %1571 = vmatprep.mubr.f32.mxu1 %v7438_v60  ;;  %1293 = vst.msk [vmem:[#allocation3 + $0x68] sm:$0xff] %vm1096_vm3, %v1226_v34  ;;  %v1033_v62 = vpop.permute.xlu1 %1032  ;;  %6216 = vmatprep.subr.mxu1 %v1442_v9 }
 0x1fa   :  { %1572 = vmatmul.mubr.f32.gmra.mxu1 %v7440_v61  ;;  %1101 = vst.msk [vmem:[#allocation3 + $0x60] sm:$0xff] %vm1096_vm3, %v1033_v62  ;;  %6279 = vmatmul.mubr.msk.f32.gmra.mxu0 %vm866_vm0, %v7467_v63 }
 0x1fb   :  { %6281 = vmatprep.mubr.msk.f32.mxu0 %vm866_vm0, %v7476_v39  ;;  %6217 = vmatpush3.msra.mxu1 %v1442_v9 }
 0x1fc   :  { %v7461_v35 = vld [vmem:[#allocation3 + $0x50] sm:$0xff]  ;;  %v1228_v50 = vpop.permute.xlu0 %1227  ;;  %6218 = vmatprep.subr.mxu1 %v1441_v48 }
 0x1fd   :  { %v7463_v27 = vld [vmem:[#allocation3 + $0x48] sm:$0xff]  ;;  %1576 = vmatprep.mubr.f32.mxu1 %v7461_v35  ;;  %1294 = vst.msk [vmem:[#allocation3 + $0x80] sm:$0xff] %vm1096_vm3, %v1228_v50  ;;  %v1035_v47 = vpop.permute.xlu1 %1034  ;;  %6219 = vmatpush3.msra.mxu1 %v1441_v48 }
 0x1fe   :  { %1577 = vmatmul.mubr.f32.gmra.mxu1 %v7463_v27  ;;  %1102 = vst.msk [vmem:[#allocation3 + $0x78] sm:$0xff] %vm1096_vm3, %v1035_v47  ;;  %5648 = vmatprep.subr.mxu1 %v5349_v49 }
 0x200   :  { %v7497_v52 = vld [vmem:[#allocation3 + $0x68] sm:$0xff] }
 0x201   :  { %1581 = vmatprep.mubr.f32.mxu1 %v7497_v52  ;;  %v7503_v41 = vld [vmem:[#allocation3 + $0x60] sm:$0xff] }
 0x202   :  { %1582 = vmatmul.mubr.f32.gmra.mxu1 %v7503_v41 }
 0x204   :  { %v1230_v53 = vpop.permute.xlu0 %1229  ;;  %v7511_v7 = vld [vmem:[#allocation3 + $0x80] sm:$0xff] }
 0x205   :  { %1295 = vst.msk [vmem:[#allocation3 + $0x98] sm:$0xff] %vm1096_vm3, %v1230_v53  ;;  %v1037_v21 = vpop.permute.xlu1 %1036  ;;  %1586 = vmatprep.mubr.f32.mxu1 %v7511_v7  ;;  %v7515_v38 = vld [vmem:[#allocation3 + $0x78] sm:$0xff] }
 0x206   :  { %1103 = vst.msk [vmem:[#allocation3 + $0x90] sm:$0xff] %vm1096_vm3, %v1037_v21  ;;  %1587 = vmatmul.mubr.f32.gmra.mxu1 %v7515_v38 }
 0x208   :  { %v1232_v17 = vpop.permute.xlu0 %1231 }
 0x209   :  { %1296 = vst.msk [vmem:[#allocation3 + $0xb0] sm:$0xff] %vm1096_vm3, %v1232_v17  ;;  %v1039_v20 = vpop.permute.xlu1 %1038 }
 0x20a   :  { %1104 = vst.msk [vmem:[#allocation3 + $0xa8] sm:$0xff] %vm1096_vm3, %v1039_v20 }
 0x20c   :  { %v7522_v29 = vld [vmem:[#allocation3 + $0x98] sm:$0xff] }
 0x20d   :  { %1591 = vmatprep.mubr.f32.mxu1 %v7522_v29  ;;  %v7525_v14 = vld [vmem:[#allocation3 + $0x90] sm:$0xff] }
 0x20e   :  { %1592 = vmatmul.mubr.f32.gmra.mxu1 %v7525_v14 }
 0x210   :  { %v7528_v19 = vld [vmem:[#allocation3 + $0xb0] sm:$0xff] }
 0x211   :  { %1596 = vmatprep.mubr.f32.mxu1 %v7528_v19  ;;  %v7531_v31 = vld [vmem:[#allocation3 + $0xa8] sm:$0xff] }
 0x212   :  { %1597 = vmatmul.mubr.f32.gmra.mxu1 %v7531_v31 }
 0x228   :  { %v1242_v3 = vpop.permute.xlu0 %1241 }
 0x229   :  { %v1049_v8 = vpop.permute.xlu1 %1048  ;;  %1301 = vst.msk [vmem:[#allocation3 + $0x128] sm:$0xff] %vm1096_vm3, %v1242_v3 }
 0x22a   :  { %1109 = vst.msk [vmem:[#allocation3 + $0x120] sm:$0xff] %vm1096_vm3, %v1049_v8 }
 0x22c   :  { %v1244_v42 = vpop.permute.xlu0 %1243 }
 0x22d   :  { %v1051_v56 = vpop.permute.xlu1 %1050  ;;  %1302 = vst.msk [vmem:[#allocation3 + $0x140] sm:$0xff] %vm1096_vm3, %v1244_v42 }
 0x22e   :  { %1110 = vst.msk [vmem:[#allocation3 + $0x138] sm:$0xff] %vm1096_vm3, %v1051_v56 }
 0x230   :  { %v1386_v28 = vld [vmem:[#allocation3 + $0x128] sm:$0xff] }
 0x231   :  { %v1385_v18 = vld [vmem:[#allocation3 + $0x120] sm:$0xff]  ;;  %1601 = vmatprep.mubr.f32.mxu1 %v1386_v28 }
 0x232   :  { %1602 = vmatmul.mubr.f32.gmra.mxu1 %v1385_v18 }
 0x234   :  { %v1246_v16 = vpop.permute.xlu0 %1245  ;;  %v7538_v59 = vld [vmem:[#allocation3 + $0x140] sm:$0xff] }
 0x235   :  { %v1053_v32 = vpop.permute.xlu1 %1052  ;;  %v7540_v33 = vld [vmem:[#allocation3 + $0x138] sm:$0xff]  ;;  %1303 = vst.msk [vmem:[#allocation3 + $0x158] sm:$0xff] %vm1096_vm3, %v1246_v16  ;;  %1606 = vmatprep.mubr.f32.mxu1 %v7538_v59 }
 0x236   :  { %1111 = vst.msk [vmem:[#allocation3 + $0x150] sm:$0xff] %vm1096_vm3, %v1053_v32  ;;  %1607 = vmatmul.mubr.f32.gmra.mxu1 %v7540_v33  ;;  %v1363_v32 = vld [vmem:[#allocation3 + $0x10] sm:$0xff] }
 0x238   :  { %v1248_v30 = vpop.permute.xlu0 %1247 }
 0x239   :  { %v1055_v15 = vpop.permute.xlu1 %1054  ;;  %1304 = vst.msk [vmem:[#allocation3 + $0x170] sm:$0xff] %vm1096_vm3, %v1248_v30 }
 0x23a   :  { %1112 = vst.msk [vmem:[#allocation3 + $0x168] sm:$0xff] %vm1096_vm3, %v1055_v15 }
 0x23c   :  { %v7548_v6 = vld [vmem:[#allocation3 + $0x158] sm:$0xff] }
 0x23d   :  { %v7550_v4 = vld [vmem:[#allocation3 + $0x150] sm:$0xff]  ;;  %1611 = vmatprep.mubr.f32.mxu1 %v7548_v6 }
 0x23e   :  { %1612 = vmatmul.mubr.f32.gmra.mxu1 %v7550_v4 }
 0x240   :  { %v1250_v43 = vpop.permute.xlu0 %1249  ;;  %v7554_v46 = vld [vmem:[#allocation3 + $0x170] sm:$0xff] }
 0x241   :  { %v1057_v44 = vpop.permute.xlu1 %1056  ;;  %v7556_v25 = vld [vmem:[#allocation3 + $0x168] sm:$0xff]  ;;  %1305 = vst.msk [vmem:[#allocation3 + $0x188] sm:$0xff] %vm1096_vm3, %v1250_v43  ;;  %1616 = vmatprep.mubr.f32.mxu1 %v7554_v46 }
 0x242   :  { %1113 = vst.msk [vmem:[#allocation3 + $0x180] sm:$0xff] %vm1096_vm3, %v1057_v44  ;;  %1617 = vmatmul.mubr.f32.gmra.mxu1 %v7556_v25 }
 0x244   :  { %v1252_v34 = vpop.permute.xlu0 %1251 }
 0x245   :  { %v1059_v62 = vpop.permute.xlu1 %1058  ;;  %1306 = vst.msk [vmem:[#allocation3 + $0x1a0] sm:$0xff] %vm1096_vm3, %v1252_v34 }
 0x246   :  { %1114 = vst.msk [vmem:[#allocation3 + $0x198] sm:$0xff] %vm1096_vm3, %v1059_v62 }
 0x248   :  { %v7564_v9 = vld [vmem:[#allocation3 + $0x188] sm:$0xff] }
 0x249   :  { %v7566_v11 = vld [vmem:[#allocation3 + $0x180] sm:$0xff]  ;;  %1621 = vmatprep.mubr.f32.mxu1 %v7564_v9 }
 0x24a   :  { %1622 = vmatmul.mubr.f32.gmra.mxu1 %v7566_v11 }
 0x24c   :  { %v1254_v48 = vpop.permute.xlu0 %1253  ;;  %v7570_v51 = vld [vmem:[#allocation3 + $0x1a0] sm:$0xff] }
 0x24d   :  { %v1061_v50 = vpop.permute.xlu1 %1060  ;;  %v7572_v47 = vld [vmem:[#allocation3 + $0x198] sm:$0xff]  ;;  %1307 = vst.msk [vmem:[#allocation3 + $0x1b8] sm:$0xff] %vm1096_vm3, %v1254_v48  ;;  %1626 = vmatprep.mubr.f32.mxu1 %v7570_v51  ;;  %v1366_v48 = vld [vmem:[#allocation3 + $0x28] sm:$0xff] }
 0x24e   :  { %1115 = vst.msk [vmem:[#allocation3 + $0x1b0] sm:$0xff] %vm1096_vm3, %v1061_v50  ;;  %1627 = vmatmul.mubr.f32.gmra.mxu1 %v7572_v47  ;;  %v5348_v50 = vld [vmem:[%s10497_s3 + $0x230] sm:$0xff] }
 0x250   :  { %v1256_v49 = vpop.permute.xlu0 %1255 }
 0x251   :  { %v1063_v37 = vpop.permute.xlu1 %1062  ;;  %1308 = vst.msk [vmem:[#allocation3 + $0x1d0] sm:$0xff] %vm1096_vm3, %v1256_v49  ;;  %v7613_v49 = vld [vmem:[#allocation3 + $0x40] sm:$0xff] }
 0x252   :  { %1116 = vst.msk [vmem:[#allocation3 + $0x1c8] sm:$0xff] %vm1096_vm3, %v1063_v37  ;;  %v5332_v37 = vld [vmem:[%s10497_s3 + $0x1b0] sm:$0xff] }
 0x254   :  { %v488_v40 = vpop.permute.xlu0 %487  ;;  %v7580_v21 = vld [vmem:[#allocation3 + $0x1b8] sm:$0xff] }
 0x255   :  { %v490_v53 = vpop.permute.xlu1 %489  ;;  %v7582_v17 = vld [vmem:[#allocation3 + $0x1b0] sm:$0xff]  ;;  %1631 = vmatprep.mubr.f32.mxu1 %v7580_v21  ;;  %v565_v56 = vmax.f32 %v7343_v36, %v488_v40  ;;  %v5333_v36 = vld [vmem:[%s10497_s3 + $0x1b8] sm:$0xff] }
 0x256   :  { %1632 = vmatmul.mubr.f32.gmra.mxu1 %v7582_v17  ;;  %v566_v28 = vmax.f32 %v7362_v54, %v490_v53 }
 0x258   :  { %v668_v20 = vpop.permute.xlu0 %667  ;;  %v7586_v8 = vld [vmem:[#allocation3 + $0x1d0] sm:$0xff] }
 0x259   :  { %v670_v3 = vpop.permute.xlu1 %669  ;;  %v7588_v42 = vld [vmem:[#allocation3 + $0x1c8] sm:$0xff]  ;;  %v745_v18 = vmax.f32 %v7351_v0, %v668_v20  ;;  %1636 = vmatprep.mubr.f32.mxu1 %v7586_v8  ;;  %v7603_v0 = vld [vmem:[%s10496_s2] ss:$0 sm:$0xff] }
 0x25a   :  { %v746_v16 = vmax.f32 %v7371_v55, %v670_v3  ;;  %1637 = vmatmul.mubr.f32.gmra.mxu1 %v7588_v42  ;;  %v5331_v3 = vld [vmem:[%s10497_s3 + $0x1a8] sm:$0xff] }
 0x25b   :  { %v781_v30 = vmax.f32 %v565_v56, %v745_v18  ;;  %6220 = vmatprep.mubr.msk.f32.mxu1 %vm866_vm0, %v1363_v32  ;;  %v7631_v18 = vld [vmem:[#allocation3 + $0x58] sm:$0xff]  ;;  %v7639_v32 = vld [vmem:[#allocation3 + $0x70] sm:$0xff] }
 0x25c   :  { %v782_v15 = vmax.f32 %v566_v28, %v746_v16  ;;  %v456_v43 = vpop.permute.xlu0 %455  ;;  %v5346_v16 = vld [vmem:[%s10497_s3 + $0x220] sm:$0xff] }
 0x25d   :  { %v636_v44 = vpop.permute.xlu1 %635  ;;  %v824_v54 = vadd.f32 %v7603_v0, %v781_v30  ;;  %v549_v34 = vmax.f32 %v10534_v57, %v456_v43  ;;  %v5347_v57 = vld [vmem:[%s10497_s3 + $0x228] sm:$0xff]  ;;  %v5330_v30 = vld [vmem:[%s10497_s3 + $0x1a0] sm:$0xff]  ;;  %v5345_v43 = vld [vmem:[%s10497_s3 + $0x218] sm:$0xff] }
 0x25e   :  { %v825_v55 = vadd.f32 %v7603_v0, %v782_v15  ;;  %v729_v62 = vmax.f32 %v10535_v26, %v636_v44  ;;  %6221 = vmatmul.mubr.msk.f32.vlgmr.msra.gmra.mxu1 %vm866_vm0, %v1366_v48  ;;  %v5344_v48 = vld [vmem:[%s10497_s3 + $0x210] sm:$0xff] }
 0x25f   :  { %v860_v40 = vmax.f32 %v824_v54, 0.0  ;;  %6223 = vmatprep.mubr.msk.f32.mxu1 %vm866_vm0, %v7613_v49  ;;  %5649 = vmatpush3.msra.mxu1 %v5333_v36  ;;  %v5329_v36 = vld [vmem:[%s10497_s3 + $0x198] sm:$0xff]  ;;  %v7652_v54 = vpop.f32.mrf.mxu0 }
 0x260   :  { %v861_v53 = vmax.f32 %v825_v55, 0.0  ;;  %v765_v20 = vmax.f32 %v549_v34, %v729_v62  ;;  %5650 = vmatprep.subr.mxu1 %v5348_v50  ;;  %v7656_v62 = vld [vmem:[#allocation3 + $0x88] sm:$0xff] }
 0x261   :  { %v1234_v26 = vpop.permute.xlu0 %1233  ;;  %911 = vst.msk [vmem:[#allocation2 + $0x140] sm:$0xff] %vm866_vm0, %v860_v40  ;;  %v1041_v28 = vpop.permute.xlu1 %1040  ;;  %5651 = vmatpush3.msra.mxu1 %v5332_v37  ;;  %v7664_v37 = vld [vmem:[#allocation3 + $0xa0] sm:$0xff]  ;;  %v5343_v40 = vld [vmem:[%s10497_s3 + $0x208] sm:$0xff] }
 0x262   :  { %912 = vst.msk [vmem:[#allocation2 + $0x148] sm:$0xf] %vm868_vm1, %v861_v53  ;;  %v808_v56 = vadd.f32 %v7603_v0, %v765_v20  ;;  %6224 = vmatmul.mubr.msk.f32.gmra.mxu1 %vm866_vm0, %v7631_v18  ;;  %5652 = vmatprep.subr.mxu1 %v5347_v57 }
 0x263   :  { %916 = vst.msk [vmem:[#allocation2 + $0x14c] sm:$0xf0] %vm873_vm2, %v861_v53  ;;  %6226 = vmatprep.mubr.msk.f32.mxu1 %vm866_vm0, %v7639_v32  ;;  %5653 = vmatpush3.msra.mxu1 %v5331_v3  ;;  %v7677_v3 = vld [vmem:[#allocation3 + $0xb8] sm:$0xff] }
 0x264   :  { %1297 = vst.msk [vmem:[#allocation3 + $0xc8] sm:$0xff] %vm1096_vm3, %v1234_v26  ;;  %1105 = vst.msk [vmem:[#allocation3 + $0xc0] sm:$0xff] %vm1096_vm3, %v1041_v28  ;;  %v844_v15 = vmax.f32 %v808_v56, 0.0  ;;  %5654 = vmatprep.subr.mxu1 %v5346_v16  ;;  %v7674_v26 = vpop.f32.mrf.mxu0  ;;  %v5327_v56 = vld [vmem:[%s10497_s3 + $0x188] sm:$0xff] }
 0x265   :  { %v492_v44 = vpop.permute.xlu0 %491  ;;  %v672_v34 = vpop.permute.xlu1 %671  ;;  %5655 = vmatpush3.msra.mxu1 %v5330_v30  ;;  %v1387_v30 = vld [vmem:[#allocation3 + $0x130] sm:$0xff] }
 0x266   :  { %915 = vst.msk [vmem:[#allocation2 + $0x94] sm:$0xff] %vm866_vm0, %v844_v15  ;;  %v567_v55 = vmax.f32 %v7398_v13, %v492_v44  ;;  %v747_v50 = vmax.f32 %v7419_v23, %v672_v34  ;;  %6227 = vmatmul.mubr.msk.f32.gmra.mxu1 %vm866_vm0, %v7656_v62  ;;  %5656 = vmatprep.subr.mxu1 %v5345_v43  ;;  %v5328_v13 = vld [vmem:[%s10497_s3 + $0x190] sm:$0xff]  ;;  %v5342_v15 = vld [vmem:[%s10497_s3 + $0x200] sm:$0xff] }
 0x267   :  { %6229 = vmatprep.mubr.msk.f32.mxu1 %vm866_vm0, %v7664_v37  ;;  %5657 = vmatpush3.msra.mxu1 %v5329_v36  ;;  %v5326_v44 = vld [vmem:[%s10497_s3 + $0x180] sm:$0xff] }
 0x268   :  { %v783_v53 = vmax.f32 %v567_v55, %v747_v50  ;;  %5658 = vmatprep.subr.mxu1 %v5344_v48  ;;  %v948_v43 = vld [vmem:[#allocation2 + $0x140] sm:$0xff]  ;;  %v5341_v55 = vld [vmem:[%s10497_s3 + $0x1f8] sm:$0xff]  ;;  %v7699_v48 = vpop.f32.mrf.mxu0 }
 0x269   :  { %v1189_v23 = vld [vmem:[#allocation2 + $0x143] sm:$0xff]  ;;  %5659 = vmatpush3.msra.mxu1 %v5328_v13  ;;  %972 = vst.msk [vmem:[#allocation3 + $0x1e0] sm:$0xff] %vm866_vm0, %v948_v43  ;;  %v5325_v50 = vld [vmem:[%s10497_s3 + $0x178] sm:$0xff] }
 0x26a   :  { %v996_v20 = vld [vmem:[#allocation2 + $0x141] sm:$0xff]  ;;  %1257 = vrot.lane.b32.xlu0 %v1189_v23, %s6492_s21  ;;  %v826_v16 = vadd.f32 %v7603_v0, %v783_v53  ;;  %6230 = vmatmul.mubr.msk.f32.gmra.mxu1 %vm866_vm0, %v7677_v3  ;;  %v5340_v53 = vld [vmem:[%s10497_s3 + $0x1f0] sm:$0xff] }
 0x26b   :  { %v1333_v57 = vld [vmem:[#allocation2 + $0x144] sm:$0xff]  ;;  %1064 = vrot.lane.b32.xlu1 %v996_v20, %s6492_s21  ;;  %5660 = vmatprep.subr.mxu1 %v5343_v40  ;;  %v5324_v23 = vld [vmem:[%s10497_s3 + $0x170] sm:$0xff] }
 0x26c   :  { %1357 = vst.msk [vmem:[#allocation3 + $0x1f0] sm:$0xff] %vm866_vm0, %v1333_v57  ;;  %v1141_v28 = vld [vmem:[#allocation2 + $0x142] sm:$0xff]  ;;  %6232 = vmatprep.mubr.msk.f32.mxu1 %vm866_vm0, %v1387_v30  ;;  %v862_v36 = vmax.f32 %v826_v16, 0.0  ;;  %5661 = vmatpush3.msra.mxu1 %v5327_v56  ;;  %v5337_v30 = vld [vmem:[%s10497_s3 + $0x1d8] sm:$0xff] }
 0x26d   :  { %1165 = vst.msk [vmem:[#allocation3 + $0x1e8] sm:$0xff] %vm866_vm0, %v1141_v28  ;;  %v1322_v34 = vld [vmem:[#allocation2 + $0x94] sm:$0xff]  ;;  %5662 = vmatprep.subr.mxu1 %v5342_v15  ;;  %v5339_v57 = vld [vmem:[%s10497_s3 + $0x1e8] sm:$0xff]  ;;  %v5338_v28 = vld [vmem:[%s10497_s3 + $0x1e0] sm:$0xff] }
 0x26e   :  { %493 = vrot.lane.b32.xlu0 %v7652_v54, %s6492_s21  ;;  %1346 = vst.msk [vmem:[#allocation3 + $0xe8] sm:$0xff] %vm866_vm0, %v1322_v34  ;;  %v1130_v13 = vld [vmem:[#allocation2 + $0x92] sm:$0xff]  ;;  %917 = vst.msk [vmem:[#allocation2 + $0x154] sm:$0xff] %vm866_vm0, %v862_v36  ;;  %5663 = vmatpush3.msra.mxu1 %v5326_v44  ;;  %v5323_v56 = vld [vmem:[%s10497_s3 + $0x168] sm:$0xff] }
 0x26f   :  { %v937_v40 = vld [vmem:[#allocation2 + $0x90] sm:$0xff]  ;;  %495 = vrot.lane.b32.xlu1 %v7699_v48, %s6492_s21  ;;  %1154 = vst.msk [vmem:[#allocation3 + $0xe0] sm:$0xff] %vm866_vm0, %v1130_v13  ;;  %6233 = vmatmul.mubr.msk.f32.gmra.mxu1 %vm866_vm0, %v7411_v5  ;;  %v7729_v5 = vpop.f32.mrf.mxu0  ;;  %v5322_v16 = vld [vmem:[%s10497_s3 + $0x160] sm:$0xff] }
 0x270   :  { %961 = vst.msk [vmem:[#allocation3 + $0xd8] sm:$0xff] %vm866_vm0, %v937_v40  ;;  %5664 = vmatprep.subr.mxu1 %v5341_v55  ;;  %6235 = vmatprep.mubr.msk.f32.mxu1 %vm866_vm0, %v7423_v22  ;;  %v1178_v43 = vld [vmem:[#allocation2 + $0x93] sm:$0xff] }
 0x271   :  { %5665 = vmatpush3.msra.mxu1 %v5325_v50  ;;  %v985_v36 = vld [vmem:[#allocation2 + $0x91] sm:$0xff] }
 0x272   :  { %5666 = vmatprep.subr.mxu1 %v5340_v53  ;;  %673 = vrot.lane.b32.xlu0 %v7674_v26, %s6492_s21  ;;  %v7760_v55 = vld [vmem:[%s10497_s3 + $0x438] sm:$0xff]  ;;  %v7773_v34 = vld [vmem:[%s10497_s3 + $0x4b0] sm:$0xff]  ;;  %v5335_v53 = vld [vmem:[%s10497_s3 + $0x1c8] sm:$0xff] }
 0x273   :  { %v7722_v20 = vld [vmem:[#allocation3 + $0x1f0] sm:$0xff]  ;;  %5667 = vmatpush3.msra.mxu1 %v5324_v23  ;;  %675 = vrot.lane.b32.xlu1 %v7729_v5, %s6492_s21  ;;  %v10536_v23 = vld [vmem:[#allocation14_spill] sm:$0xff] }
 0x274   :  { %6282 = vmatmul.mubr.msk.f32.gmra.mxu0 %vm866_vm0, %v7722_v20  ;;  %6236 = vmatmul.mubr.msk.f32.gmra.mxu1 %vm866_vm0, %v7432_v24  ;;  %v5336_v50 = vld [vmem:[%s10497_s3 + $0x1d0] sm:$0xff] }
 0x275   :  { %5668 = vmatprep.subr.mxu1 %v5339_v57  ;;  %6300 = vmatprep.mubr.msk.f32.mxu0 %vm866_vm0, %v7613_v49  ;;  %v1334_v15 = vld [vmem:[#allocation2 + $0x154] sm:$0xff]  ;;  %v7809_v57 = vld [vmem:[%s10497_s3 + $0x428] sm:$0xff] }
 0x276   :  { %6238 = vmatprep.mubr.msk.f32.mxu1 %vm866_vm0, %v7446_v45  ;;  %5669 = vmatpush3.msra.mxu1 %v5323_v56  ;;  %1358 = vst.msk [vmem:[#allocation3 + $0x208] sm:$0xff] %vm866_vm0, %v1334_v15  ;;  %v1142_v49 = vld [vmem:[#allocation2 + $0x152] sm:$0xff]  ;;  %v5319_v56 = vld [vmem:[%s10497_s3 + $0x148] sm:$0xff]  ;;  %v5318_v15 = vld [vmem:[%s10497_s3 + $0x140] sm:$0xff] }
 0x277   :  { %5670 = vmatprep.subr.mxu1 %v5338_v28  ;;  %v949_v44 = vld [vmem:[#allocation2 + $0x150] sm:$0xff]  ;;  %1235 = vrot.lane.b32.xlu0 %v1178_v43, %s6492_s21  ;;  %1166 = vst.msk [vmem:[#allocation3 + $0x200] sm:$0xff] %vm866_vm0, %v1142_v49  ;;  %v7821_v28 = vld [vmem:[%s10497_s3 + $0x4a0] sm:$0xff]  ;;  %v7850_v43 = vld [vmem:[%s10497_s3 + $0x418] sm:$0xff] }
 0x278   :  { %6301 = vmatmul.mubr.msk.f32.vlgmr.msra.gmra.mxu0 %vm866_vm0, %v7631_v18  ;;  %5671 = vmatpush3.msra.mxu1 %v5322_v16  ;;  %973 = vst.msk [vmem:[#allocation3 + $0x1f8] sm:$0xff] %vm866_vm0, %v949_v44  ;;  %v5321_v18 = vld [vmem:[%s10497_s3 + $0x158] sm:$0xff]  ;;  %v7783_v13 = vld [vmem:[%s10497_s3 + $0x430] sm:$0xff]  ;;  %v5334_v16 = vld [vmem:[%s10497_s3 + $0x1c0] sm:$0xff] }
 0x279   :  { %1042 = vrot.lane.b32.xlu1 %v985_v36, %s6492_s21  ;;  %6239 = vmatmul.mubr.msk.f32.gmra.mxu1 %vm866_vm0, %v7454_v2  ;;  %v5320_v40 = vld [vmem:[%s10497_s3 + $0x150] sm:$0xff]  ;;  %v10539_v44 = vld [vmem:[#allocation17_spill] sm:$0xff]  ;;  %v7874_v36 = vld [vmem:[%s10497_s3 + $0x488] sm:$0xff] }
 0x27a   :  { %5672 = vmatprep.subr.mxu1 %v5337_v30  ;;  %6303 = vmatprep.mubr.msk.f32.mxu0 %vm866_vm0, %v7639_v32  ;;  %v7795_v32 = vld [vmem:[%s10497_s3 + $0x4a8] sm:$0xff]  ;;  %v7831_v30 = vld [vmem:[%s10497_s3 + $0x420] sm:$0xff]  ;;  %v7858_v49 = vld [vmem:[%s10497_s3 + $0x490] sm:$0xff] }
 0x27b   :  { %5857 = vmatpush3.msra.mxu0 %v7760_v55  ;;  %6241 = vmatprep.mubr.msk.f32.mxu1 %vm866_vm0, %v7467_v63 }
 0x27c   :  { %5673 = vmatpush3.msra.mxu1 %v5321_v18  ;;  %5858 = vmatprep.subr.mxu0 %v7773_v34  ;;  %v2303_v18 = vld [vmem:[#allocation3 + $0xe8] sm:$0xff] }
 0x27d   :  { %5674 = vmatprep.subr.mxu1 %v5336_v50  ;;  %5859 = vmatpush3.msra.mxu0 %v7783_v13  ;;  %v997_v50 = vld [vmem:[#allocation2 + $0x151] sm:$0xff] }
 0x27e   :  { %5675 = vmatpush3.msra.mxu1 %v5320_v40  ;;  %6304 = vmatmul.mubr.msk.f32.gmra.mxu0 %vm866_vm0, %v7656_v62  ;;  %v10537_v62 = vld [vmem:[#allocation16_spill] sm:$0xff]  ;;  %v7897_v40 = vld [vmem:[%s10497_s3 + $0x400] sm:$0xff] }
 0x27f   :  { %5860 = vmatprep.subr.mxu0 %v7795_v32  ;;  %457 = vrot.lane.b32.xlu0 %v10536_v23, %s6492_s21 }
 0x280   :  { %459 = vrot.lane.b32.xlu1 %v10537_v62, %s6492_s21  ;;  %6242 = vmatmul.mubr.msk.f32.gmra.mxu1 %vm866_vm0, %v7476_v39 }
 0x281   :  { %5676 = vmatprep.subr.mxu1 %v5335_v53  ;;  %6306 = vmatprep.mubr.msk.f32.mxu0 %vm866_vm0, %v7664_v37  ;;  %v7842_v37 = vld [vmem:[%s10497_s3 + $0x498] sm:$0xff] }
 0x282   :  { %5861 = vmatpush3.msra.mxu0 %v7809_v57  ;;  %5677 = vmatpush3.msra.mxu1 %v5319_v56  ;;  %v7905_v53 = vld [vmem:[%s10497_s3 + $0x478] sm:$0xff]  ;;  %v7923_v56 = vld [vmem:[%s10497_s3 + $0x470] sm:$0xff] }
 0x283   :  { %2005 = vmatprep.mubr.f32.mxu1 %v7390_v10  ;;  %5862 = vmatprep.subr.mxu0 %v7821_v28  ;;  %v10538_v10 = vld [vmem:[#allocation15_spill] sm:$0xff] }
 0x284   :  { %5678 = vmatprep.subr.mxu1 %v5334_v16  ;;  %5863 = vmatpush3.msra.mxu0 %v7831_v30  ;;  %v10541_v16 = vld [vmem:[#allocation19_spill] sm:$0xff] }
 0x285   :  { %5679 = vmatpush3.msra.mxu1 %v5318_v15  ;;  %6307 = vmatmul.mubr.msk.f32.gmra.mxu0 %vm866_vm0, %v7677_v3  ;;  %v7866_v3 = vld [vmem:[%s10497_s3 + $0x410] sm:$0xff] }
 0x286   :  { %5864 = vmatprep.subr.mxu0 %v7842_v37  ;;  %637 = vrot.lane.b32.xlu0 %v10538_v10, %s6492_s21  ;;  %v7931_v15 = vld [vmem:[%s10497_s3 + $0x3f0] sm:$0xff] }
 0x287   :  { %639 = vrot.lane.b32.xlu1 %v10539_v44, %s6492_s21  ;;  %2006 = vmatmul.mubr.f32.vlgmr.msra.gmra.mxu1 %v7392_v12  ;;  %v1190_v12 = vld [vmem:[#allocation2 + $0x153] sm:$0xff] }
 0x288   :  { %6309 = vmatprep.mubr.msk.f32.mxu0 %vm866_vm0, %v7403_v58  ;;  %5865 = vmatpush3.msra.mxu0 %v7850_v43  ;;  %v7883_v58 = vld [vmem:[%s10497_s3 + $0x408] sm:$0xff] }
 0x289   :  { %2010 = vmatprep.mubr.f32.mxu1 %v7438_v60  ;;  %5866 = vmatprep.subr.mxu0 %v7858_v49  ;;  %v7890_v60 = vld [vmem:[%s10497_s3 + $0x480] sm:$0xff] }
 0x28a   :  { %5867 = vmatpush3.msra.mxu0 %v7866_v3  ;;  %1259 = vrot.lane.b32.xlu0 %v1190_v12, %s6492_s21  ;;  %v7942_v12 = vld [vmem:[%s10497_s3 + $0x468] sm:$0xff] }
 0x28b   :  { %6310 = vmatmul.mubr.msk.f32.gmra.mxu0 %vm866_vm0, %v2303_v18  ;;  %5868 = vmatprep.subr.mxu0 %v7874_v36  ;;  %v7950_v18 = vld [vmem:[%s10497_s3 + $0x3e8] sm:$0xff] }
 0x28c   :  { %1066 = vrot.lane.b32.xlu1 %v997_v50, %s6492_s21  ;;  %2011 = vmatmul.mubr.f32.gmra.mxu1 %v7440_v61  ;;  %v10540_v61 = vld [vmem:[#allocation18_spill] sm:$0xff]  ;;  %10542 = vst [vmem:[#allocation11_spill] sm:$0xff] %v7950_v18  ;;  %v5389_v50 = vld [vmem:[%s10497_s3 + $0x2f8] sm:$0xff] }
 0x28d   :  { %6312 = vmatprep.mubr.msk.f32.mxu0 %vm866_vm0, %v7423_v22  ;;  %5869 = vmatpush3.msra.mxu0 %v7883_v58  ;;  %v7915_v22 = vld [vmem:[%s10497_s3 + $0x3f8] sm:$0xff] }
 0x28e   :  { %2015 = vmatprep.mubr.f32.mxu1 %v7461_v35  ;;  %5870 = vmatprep.subr.mxu0 %v7890_v60 }
 0x28f   :  { %5871 = vmatpush3.msra.mxu0 %v7897_v40  ;;  %461 = vrot.lane.b32.xlu0 %v10540_v61, %s6492_s21 }
 0x290   :  { %6313 = vmatmul.mubr.msk.f32.gmra.mxu0 %vm866_vm0, %v7432_v24  ;;  %5872 = vmatprep.subr.mxu0 %v7905_v53  ;;  %v5405_v24 = vld [vmem:[%s10497_s3 + $0x378] sm:$0xff] }
 0x291   :  { %641 = vrot.lane.b32.xlu1 %v10541_v16, %s6492_s21  ;;  %2016 = vmatmul.mubr.f32.gmra.mxu1 %v7463_v27  ;;  %v7979_v16 = vld [vmem:[%s10497_s3 + $0x458] sm:$0xff] }
 0x292   :  { %6315 = vmatprep.mubr.msk.f32.mxu0 %vm866_vm0, %v7446_v45  ;;  %5873 = vmatpush3.msra.mxu0 %v7915_v22  ;;  %v7958_v45 = vld [vmem:[%s10497_s3 + $0x460] sm:$0xff]  ;;  %10544 = vst [vmem:[#allocation13_spill] sm:$0xff] %v7979_v16 }
 0x293   :  { %2020 = vmatprep.mubr.f32.mxu1 %v7497_v52  ;;  %5874 = vmatprep.subr.mxu0 %v7923_v56 }
 0x294   :  { %5875 = vmatpush3.msra.mxu0 %v7931_v15  ;;  %5752 = vmatprep.subr.mxu1 %v5405_v24  ;;  %v5404_v24 = vld [vmem:[%s10497_s3 + $0x370] sm:$0xff] }
 0x295   :  { %6316 = vmatmul.mubr.msk.f32.gmra.mxu0 %vm866_vm0, %v7454_v2  ;;  %5876 = vmatprep.subr.mxu0 %v7942_v12  ;;  %v7969_v2 = vld [vmem:[%s10497_s3 + $0x3e0] sm:$0xff] }
 0x296   :  { %2021 = vmatmul.mubr.f32.gmra.mxu1 %v7503_v41  ;;  %6318 = vmatprep.mubr.msk.f32.mxu0 %vm866_vm0, %v7467_v63  ;;  %10543 = vst [vmem:[#allocation12_spill] sm:$0xff] %v7969_v2  ;;  %v7986_v63 = vld [vmem:[%s10497_s3 + $0x3d8] sm:$0xff] }
 0x297   :  { %5877 = vmatpush3.msra.mxu0 %v7950_v18  ;;  %2025 = vmatprep.mubr.f32.mxu1 %v7511_v7  ;;  %10545 = vst [vmem:[#allocation14_spill] sm:$0xff] %v7986_v63  ;;  %v7994_v18 = vld [vmem:[%s10497_s3 + $0x450] sm:$0xff] }
 0x298   :  { %5878 = vmatprep.subr.mxu0 %v7958_v45  ;;  %5753 = vmatpush3.msra.mxu1 %v5389_v50  ;;  %10546 = vst [vmem:[#allocation16_spill] sm:$0xff] %v7994_v18  ;;  %v5388_v50 = vld [vmem:[%s10497_s3 + $0x2f0] sm:$0xff] }
 0x299   :  { %5879 = vmatpush3.msra.mxu0 %v7969_v2  ;;  %5754 = vmatprep.subr.mxu1 %v5404_v24  ;;  %v5403_v24 = vld [vmem:[%s10497_s3 + $0x368] sm:$0xff] }
 0x29a   :  { %6319 = vmatmul.mubr.msk.f32.gmra.mxu0 %vm866_vm0, %v7476_v39  ;;  %5880 = vmatprep.subr.mxu0 %v7979_v16  ;;  %v8005_v39 = vld [vmem:[%s10497_s3 + $0x3d0] sm:$0xff]  ;;  %v8015_v16 = vld [vmem:[%s10497_s3 + $0x448] sm:$0xff] }
 0x29b   :  { %2026 = vmatmul.mubr.f32.gmra.mxu1 %v7515_v38  ;;  %6321 = vmatprep.mubr.msk.f32.mxu0 %vm866_vm0, %v7722_v20  ;;  %v8021_v20 = vld [vmem:[%s10497_s3 + $0x3c8] sm:$0xff] }
 0x29c   :  { %5881 = vmatpush3.msra.mxu0 %v7986_v63  ;;  %2030 = vmatprep.mubr.f32.mxu1 %v7522_v29  ;;  %10547 = vst [vmem:[#allocation15_spill] sm:$0xff] %v8021_v20  ;;  %v2327_v2 = vld [vmem:[#allocation3 + $0x208] sm:$0xff]  ;;  %v8029_v63 = vld [vmem:[%s10497_s3 + $0x440] sm:$0xff] }
 0x29d   :  { %5882 = vmatprep.subr.mxu0 %v7994_v18  ;;  %5755 = vmatpush3.msra.mxu1 %v5388_v50  ;;  %v5387_v18 = vld [vmem:[%s10497_s3 + $0x2e8] sm:$0xff]  ;;  %v8039_v50 = vld [vmem:[%s10497_s3 + $0x3c0] sm:$0xff] }
 0x29e   :  { %5883 = vmatpush3.msra.mxu0 %v8005_v39  ;;  %5756 = vmatprep.subr.mxu1 %v5403_v24  ;;  %v5386_v24 = vld [vmem:[%s10497_s3 + $0x2e0] sm:$0xff] }
 0x29f   :  { %6322 = vmatmul.mubr.msk.f32.gmra.mxu0 %vm866_vm0, %v2327_v2  ;;  %5884 = vmatprep.subr.mxu0 %v8015_v16  ;;  %v5402_v2 = vld [vmem:[%s10497_s3 + $0x360] sm:$0xff] }
 0x2a0   :  { %2031 = vmatmul.mubr.f32.gmra.mxu1 %v7525_v14  ;;  %5885 = vmatpush3.msra.mxu0 %v8021_v20  ;;  %v8053_v20 = vld [vmem:[#allocation3 + $0xc8] sm:$0xff] }
 0x2a1   :  { %2957 = vmatprep.mubr.f32.mxu0 %v7461_v35  ;;  %2035 = vmatprep.mubr.f32.mxu1 %v7528_v19  ;;  %v5401_v35 = vld [vmem:[%s10497_s3 + $0x358] sm:$0xff] }
 0x2a2   :  { %5886 = vmatprep.subr.mxu0 %v8029_v63  ;;  %5757 = vmatpush3.msra.mxu1 %v5387_v18  ;;  %v8060_v18 = vld [vmem:[#allocation3 + $0xc0] sm:$0xff] }
 0x2a3   :  { %5887 = vmatpush3.msra.mxu0 %v8039_v50  ;;  %5758 = vmatprep.subr.mxu1 %v5402_v2  ;;  %v5400_v2 = vld [vmem:[%s10497_s3 + $0x350] sm:$0xff] }
 0x2a4   :  { %2958 = vmatmul.mubr.f32.vlgmr.msra.gmra.mxu0 %v7463_v27  ;;  %2036 = vmatmul.mubr.f32.gmra.mxu1 %v7531_v31  ;;  %v5385_v27 = vld [vmem:[%s10497_s3 + $0x2d8] sm:$0xff] }
 0x2a5   :  { %2962 = vmatprep.mubr.f32.mxu0 %v7497_v52  ;;  %2040 = vmatprep.mubr.f32.mxu1 %v8053_v20  ;;  %v5384_v52 = vld [vmem:[%s10497_s3 + $0x2d0] sm:$0xff] }
 0x2a6   :  { %5759 = vmatpush3.msra.mxu1 %v5386_v24  ;;  %v5391_v24 = vld [vmem:[%s10497_s3 + $0x308] sm:$0xff] }
 0x2a7   :  { %5760 = vmatprep.subr.mxu1 %v5401_v35  ;;  %v5375_v35 = vld [vmem:[%s10497_s3 + $0x288] sm:$0xff] }
 0x2a8   :  { %2963 = vmatmul.mubr.f32.gmra.mxu0 %v7503_v41  ;;  %2041 = vmatmul.mubr.f32.gmra.mxu1 %v8060_v18  ;;  %v5399_v41 = vld [vmem:[%s10497_s3 + $0x348] sm:$0xff] }
 0x2a9   :  { %2967 = vmatprep.mubr.f32.mxu0 %v7511_v7  ;;  %2045 = vmatprep.mubr.f32.mxu1 %v7538_v59  ;;  %v5383_v7 = vld [vmem:[%s10497_s3 + $0x2c8] sm:$0xff]  ;;  %v5380_v59 = vld [vmem:[%s10497_s3 + $0x2b0] sm:$0xff] }
 0x2aa   :  { %5761 = vmatpush3.msra.mxu1 %v5385_v27 }
 0x2ab   :  { %5762 = vmatprep.subr.mxu1 %v5400_v2 }
 0x2ac   :  { %2968 = vmatmul.mubr.f32.gmra.mxu0 %v7515_v38  ;;  %2046 = vmatmul.mubr.f32.gmra.mxu1 %v7540_v33  ;;  %v5398_v38 = vld [vmem:[%s10497_s3 + $0x340] sm:$0xff]  ;;  %v5395_v33 = vld [vmem:[%s10497_s3 + $0x328] sm:$0xff] }
 0x2ad   :  { %2972 = vmatprep.mubr.f32.mxu0 %v7522_v29  ;;  %2050 = vmatprep.mubr.f32.mxu1 %v7548_v6  ;;  %v5382_v29 = vld [vmem:[%s10497_s3 + $0x2c0] sm:$0xff]  ;;  %v5379_v6 = vld [vmem:[%s10497_s3 + $0x2a8] sm:$0xff] }
 0x2ae   :  { %5763 = vmatpush3.msra.mxu1 %v5384_v52 }
 0x2af   :  { %5764 = vmatprep.subr.mxu1 %v5399_v41 }
 0x2b0   :  { %2973 = vmatmul.mubr.f32.gmra.mxu0 %v7525_v14  ;;  %2051 = vmatmul.mubr.f32.gmra.mxu1 %v7550_v4  ;;  %v5397_v14 = vld [vmem:[%s10497_s3 + $0x338] sm:$0xff]  ;;  %v8120_v4 = vpop.f32.mrf.mxu1 }
 0x2b1   :  { %2977 = vmatprep.mubr.f32.mxu0 %v7528_v19  ;;  %2055 = vmatprep.mubr.f32.mxu1 %v7554_v46  ;;  %v5381_v19 = vld [vmem:[%s10497_s3 + $0x2b8] sm:$0xff]  ;;  %v5394_v46 = vld [vmem:[%s10497_s3 + $0x320] sm:$0xff] }
 0x2b2   :  { %5765 = vmatpush3.msra.mxu1 %v5383_v7 }
 0x2b3   :  { %5766 = vmatprep.subr.mxu1 %v5398_v38 }
 0x2b4   :  { %2978 = vmatmul.mubr.f32.gmra.mxu0 %v7531_v31  ;;  %2056 = vmatmul.mubr.f32.gmra.mxu1 %v7556_v25  ;;  %v5396_v31 = vld [vmem:[%s10497_s3 + $0x330] sm:$0xff]  ;;  %v5378_v25 = vld [vmem:[%s10497_s3 + $0x2a0] sm:$0xff] }
 0x2b5   :  { %2982 = vmatprep.mubr.f32.mxu0 %v8053_v20  ;;  %2060 = vmatprep.mubr.f32.mxu1 %v7564_v9  ;;  %v5393_v9 = vld [vmem:[%s10497_s3 + $0x318] sm:$0xff] }
 0x2b6   :  { %5767 = vmatpush3.msra.mxu1 %v5382_v29 }
 0x2b7   :  { %5768 = vmatprep.subr.mxu1 %v5397_v14 }
 0x2b8   :  { %2983 = vmatmul.mubr.f32.gmra.mxu0 %v8060_v18  ;;  %2061 = vmatmul.mubr.f32.gmra.mxu1 %v7566_v11  ;;  %v5377_v11 = vld [vmem:[%s10497_s3 + $0x298] sm:$0xff] }
 0x2b9   :  { %2065 = vmatprep.mubr.f32.mxu1 %v7570_v51  ;;  %5769 = vmatpush3.msra.mxu1 %v5381_v19  ;;  %v8136_v51 = vpop.f32.mrf.mxu1 }
 0x2ba   :  { %5770 = vmatprep.subr.mxu1 %v5396_v31 }
 0x2bb   :  { %5771 = vmatpush3.msra.mxu1 %v5380_v59  ;;  %v8152_v27 = vpop.f32.mrf.mxu1 }
 0x2bc   :  { %2066 = vmatmul.mubr.f32.gmra.mxu1 %v7572_v47  ;;  %5772 = vmatprep.subr.mxu1 %v5395_v33  ;;  %v5392_v47 = vld [vmem:[%s10497_s3 + $0x310] sm:$0xff] }
 0x2bd   :  { %2070 = vmatprep.mubr.f32.mxu1 %v7580_v21  ;;  %5773 = vmatpush3.msra.mxu1 %v5379_v6  ;;  %v5376_v21 = vld [vmem:[%s10497_s3 + $0x290] sm:$0xff]  ;;  %v8161_v2 = vpop.f32.mrf.mxu1 }
 0x2be   :  { %5774 = vmatprep.subr.mxu1 %v5394_v46 }
 0x2bf   :  { %5775 = vmatpush3.msra.mxu1 %v5378_v25  ;;  %v8164_v52 = vpop.f32.mrf.mxu1 }
 0x2c0   :  { %2071 = vmatmul.mubr.f32.gmra.mxu1 %v7582_v17  ;;  %5776 = vmatprep.subr.mxu1 %v5393_v9  ;;  %v5390_v17 = vld [vmem:[%s10497_s3 + $0x300] sm:$0xff] }
 0x2c1   :  { %2075 = vmatprep.mubr.f32.mxu1 %v7586_v8  ;;  %5777 = vmatpush3.msra.mxu1 %v5377_v11  ;;  %v5374_v8 = vld [vmem:[%s10497_s3 + $0x280] sm:$0xff]  ;;  %v8166_v41 = vpop.f32.mrf.mxu1 }
 0x2c2   :  { %5778 = vmatprep.subr.mxu1 %v5392_v47 }
 0x2c3   :  { %5779 = vmatpush3.msra.mxu1 %v5376_v21  ;;  %v8168_v7 = vpop.f32.mrf.mxu1 }
 0x2c4   :  { %2076 = vmatmul.mubr.f32.gmra.mxu1 %v7588_v42  ;;  %5780 = vmatprep.subr.mxu1 %v5391_v24  ;;  %v2281_v24 = vld [vmem:[#allocation3 + $0x38] sm:$0xff] }
 0x2c5   :  { %5781 = vmatpush3.msra.mxu1 %v5375_v35  ;;  %v8170_v38 = vpop.f32.mrf.mxu1 }
 0x2c6   :  { %5782 = vmatprep.subr.mxu1 %v5390_v17 }
 0x2c7   :  { %5783 = vmatpush3.msra.mxu1 %v5374_v8  ;;  %v8172_v42 = vpop.f32.mrf.mxu1 }
 0x2c8   :  { %6404 = vmatprep.subr.mxu1 %v7509_v1  ;;  %10548 = vst [vmem:[#allocation17_spill] sm:$0xff] %v8172_v42 }
 0x2c9   :  { %v8174_v29 = vpop.f32.mrf.mxu1 }
 0x2ca   :  { %10549 = vst [vmem:[#allocation18_spill] sm:$0xff] %v8174_v29 }
 0x2cb   :  { %v8178_v31 = vpop.f32.mrf.mxu1 }
 0x2cd   :  { %v8180_v33 = vpop.f32.mrf.mxu1 }
 0x2cf   :  { %v8184_v46 = vpop.f32.mrf.mxu1 }
 0x2d0   :  { %10550 = vst [vmem:[#allocation20_spill] sm:$0xff] %v8184_v46  ;;  %v2280_v46 = vld [vmem:[#allocation3 + $0x30] sm:$0xff] }
 0x2dc   :  { %v1258_v14 = vpop.permute.xlu0 %1257 }
 0x2dd   :  { %1309 = vst.msk [vmem:[#allocation3 + $0x1e8] sm:$0xff] %vm1096_vm3, %v1258_v14  ;;  %v1065_v19 = vpop.permute.xlu1 %1064  ;;  %v8194_v14 = vpop.f32.mrf.mxu1 }
 0x2de   :  { %1117 = vst.msk [vmem:[#allocation3 + $0x1e0] sm:$0xff] %vm1096_vm3, %v1065_v19 }
 0x2e0   :  { %v494_v1 = vpop.permute.xlu0 %493 }
 0x2e1   :  { %v496_v59 = vpop.permute.xlu1 %495  ;;  %v568_v11 = vmax.f32 %v7652_v54, %v494_v1  ;;  %v2284_v54 = vld [vmem:[#allocation3 + $0x50] sm:$0xff] }
 0x2e2   :  { %v569_v35 = vmax.f32 %v7699_v48, %v496_v59 }
 0x2e4   :  { %v8182_v6 = vld [vmem:[#allocation3 + $0x1e8] sm:$0xff]  ;;  %v674_v25 = vpop.permute.xlu0 %673 }
 0x2e5   :  { %2080 = vmatprep.mubr.f32.mxu1 %v8182_v6  ;;  %v8187_v9 = vld [vmem:[#allocation3 + $0x1e0] sm:$0xff]  ;;  %v748_v47 = vmax.f32 %v7674_v26, %v674_v25  ;;  %v676_v21 = vpop.permute.xlu1 %675  ;;  %v2283_v25 = vld [vmem:[#allocation3 + $0x48] sm:$0xff] }
 0x2e6   :  { %2081 = vmatmul.mubr.f32.gmra.mxu1 %v8187_v9  ;;  %v749_v17 = vmax.f32 %v7729_v5, %v676_v21  ;;  %v8202_v5 = vpop.f32.mrf.mxu1 }
 0x2e7   :  { %2481 = vmatprep.mubr.f32.mxu1 %v2281_v24  ;;  %v784_v8 = vmax.f32 %v568_v11, %v748_v47 }
 0x2e8   :  { %v785_v19 = vmax.f32 %v569_v35, %v749_v17  ;;  %v2293_v35 = vld [vmem:[#allocation3 + $0x98] sm:$0xff] }
 0x2e9   :  { %v827_v29 = vadd.f32 %v7603_v0, %v784_v8  ;;  %v1236_v42 = vpop.permute.xlu0 %1235 }
 0x2ea   :  { %2482 = vmatmul.mubr.f32.vlgmr.msra.gmra.mxu1 %v2280_v46  ;;  %v828_v26 = vadd.f32 %v7603_v0, %v785_v19  ;;  %1298 = vst.msk [vmem:[#allocation3 + $0xe0] sm:$0xff] %vm1096_vm3, %v1236_v42  ;;  %v2287_v46 = vld [vmem:[#allocation3 + $0x68] sm:$0xff] }
 0x2eb   :  { %v1043_v1 = vpop.permute.xlu1 %1042  ;;  %2486 = vmatprep.mubr.f32.mxu1 %v2284_v54  ;;  %6420 = vmatpush3.msra.mxu1 %v7760_v55  ;;  %v863_v48 = vmax.f32 %v827_v29, 0.0  ;;  %v8211_v55 = vpop.f32.mrf.mxu1  ;;  %v2290_v29 = vld [vmem:[#allocation3 + $0x80] sm:$0xff] }
 0x2ec   :  { %1106 = vst.msk [vmem:[#allocation3 + $0xd8] sm:$0xff] %vm1096_vm3, %v1043_v1  ;;  %6405 = vmatprep.subr.mxu1 %v7773_v34  ;;  %v864_v59 = vmax.f32 %v828_v26, 0.0  ;;  %v2286_v34 = vld [vmem:[#allocation3 + $0x60] sm:$0xff]  ;;  %v2292_v26 = vld [vmem:[#allocation3 + $0x90] sm:$0xff] }
 0x2ed   :  { %6421 = vmatpush3.msra.mxu1 %v7783_v13  ;;  %921 = vst.msk [vmem:[#allocation2 + $0x160] sm:$0xff] %vm866_vm0, %v863_v48 }
 0x2ee   :  { %2487 = vmatmul.mubr.f32.gmra.mxu1 %v2283_v25  ;;  %6406 = vmatprep.subr.mxu1 %v7795_v32  ;;  %922 = vst.msk [vmem:[#allocation2 + $0x168] sm:$0xf] %vm868_vm1, %v864_v59 }
 0x2ef   :  { %926 = vst.msk [vmem:[#allocation2 + $0x16c] sm:$0xf0] %vm873_vm2, %v864_v59  ;;  %2491 = vmatprep.mubr.f32.mxu1 %v2287_v46  ;;  %6422 = vmatpush3.msra.mxu1 %v7809_v57  ;;  %v2296_v59 = vld [vmem:[#allocation3 + $0xb0] sm:$0xff] }
 0x2f0   :  { %6407 = vmatprep.subr.mxu1 %v7821_v28 }
 0x2f1   :  { %6423 = vmatpush3.msra.mxu1 %v7831_v30  ;;  %v458_v13 = vpop.permute.xlu0 %457  ;;  %v8214_v42 = vld [vmem:[#allocation3 + $0xe0] sm:$0xff]  ;;  %v2289_v30 = vld [vmem:[#allocation3 + $0x78] sm:$0xff] }
 0x2f2   :  { %2492 = vmatmul.mubr.f32.gmra.mxu1 %v2286_v34  ;;  %6408 = vmatprep.subr.mxu1 %v7842_v37  ;;  %v460_v32 = vpop.permute.xlu1 %459  ;;  %v8220_v57 = vpop.f32.mrf.mxu1 }
 0x2f3   :  { %2987 = vmatprep.mubr.f32.mxu0 %v8214_v42  ;;  %v8218_v11 = vld [vmem:[#allocation3 + $0xd8] sm:$0xff]  ;;  %2496 = vmatprep.mubr.f32.mxu1 %v2290_v29  ;;  %v551_v1 = vmax.f32 %v10537_v62, %v460_v32  ;;  %v10553_v32 = vld [vmem:[#allocation12_spill] sm:$0xff] }
 0x2f4   :  { %2988 = vmatmul.mubr.f32.gmra.mxu0 %v8218_v11  ;;  %6424 = vmatpush3.msra.mxu1 %v7850_v43  ;;  %v8224_v28 = vpop.f32.mrf.mxu1  ;;  %v950_v47 = vld [vmem:[#allocation2 + $0x160] sm:$0xff] }
 0x2f5   :  { %6409 = vmatprep.subr.mxu1 %v7858_v49  ;;  %v1191_v21 = vld [vmem:[#allocation2 + $0x163] sm:$0xff]  ;;  %974 = vst.msk [vmem:[#allocation3 + $0x210] sm:$0xff] %vm866_vm0, %v950_v47  ;;  %v550_v49 = vmax.f32 %v10536_v23, %v458_v13  ;;  %v10556_v47 = vld [vmem:[#allocation16_spill] sm:$0xff] }
 0x2f6   :  { %v998_v37 = vld [vmem:[#allocation2 + $0x161] sm:$0xff]  ;;  %2497 = vmatmul.mubr.f32.gmra.mxu1 %v2289_v30  ;;  %1261 = vrot.lane.b32.xlu0 %v1191_v21, %s6492_s21  ;;  %v8235_v54 = vpop.f32.mrf.mxu1 }
 0x2f7   :  { %v1143_v24 = vld [vmem:[#allocation2 + $0x162] sm:$0xff]  ;;  %1068 = vrot.lane.b32.xlu1 %v998_v37, %s6492_s21  ;;  %2501 = vmatprep.mubr.f32.mxu1 %v2293_v35 }
 0x2f8   :  { %1167 = vst.msk [vmem:[#allocation3 + $0x218] sm:$0xff] %vm866_vm0, %v1143_v24  ;;  %v1335_v43 = vld [vmem:[#allocation2 + $0x164] sm:$0xff]  ;;  %v638_v17 = vpop.permute.xlu0 %637  ;;  %6425 = vmatpush3.msra.mxu1 %v7866_v3  ;;  %v8244_v46 = vpop.f32.mrf.mxu1 }
 0x2f9   :  { %1359 = vst.msk [vmem:[#allocation3 + $0x220] sm:$0xff] %vm866_vm0, %v1335_v43  ;;  %v730_v8 = vmax.f32 %v10538_v10, %v638_v17  ;;  %v640_v19 = vpop.permute.xlu1 %639  ;;  %6410 = vmatprep.subr.mxu1 %v7874_v36  ;;  %v2295_v36 = vld [vmem:[#allocation3 + $0xa8] sm:$0xff]  ;;  %v2304_v43 = vld [vmem:[#allocation3 + $0x150] sm:$0xff] }
 0x2fa   :  { %v731_v48 = vmax.f32 %v10539_v44, %v640_v19  ;;  %2502 = vmatmul.mubr.f32.gmra.mxu1 %v2292_v26  ;;  %v8300_v26 = vld [vmem:[#allocation3 + $0x168] sm:$0xff] }
 0x2fb   :  { %v766_v25 = vmax.f32 %v550_v49, %v730_v8  ;;  %2506 = vmatprep.mubr.f32.mxu1 %v2296_v59  ;;  %6426 = vmatpush3.msra.mxu1 %v7883_v58  ;;  %v8285_v49 = vld [vmem:[#allocation3 + $0x170] sm:$0xff]  ;;  %v8295_v8 = vld [vmem:[%s10497_s3 + $0x4f8] sm:$0xff]  ;;  %v5523_v59 = vld [vmem:[%s10497_s3 + $0x628] sm:$0xff] }
 0x2fc   :  { %v767_v3 = vmax.f32 %v551_v1, %v731_v48  ;;  %v1260_v23 = vpop.permute.xlu0 %1259  ;;  %6411 = vmatprep.subr.mxu1 %v7890_v60  ;;  %v8307_v1 = vld [vmem:[#allocation3 + $0x188] sm:$0xff] }
 0x2fd   :  { %v809_v10 = vadd.f32 %v7603_v0, %v766_v25  ;;  %1310 = vst.msk [vmem:[#allocation3 + $0x200] sm:$0xff] %vm1096_vm3, %v1260_v23  ;;  %6427 = vmatpush3.msra.mxu1 %v7897_v40  ;;  %v8321_v25 = vpop.f32.mrf.mxu0 }
 0x2fe   :  { %v810_v62 = vadd.f32 %v7603_v0, %v767_v3  ;;  %v1067_v44 = vpop.permute.xlu1 %1066  ;;  %2507 = vmatmul.mubr.f32.gmra.mxu1 %v2295_v36  ;;  %6412 = vmatprep.subr.mxu1 %v7905_v53  ;;  %v8250_v34 = vpop.f32.mrf.mxu1  ;;  %v8326_v36 = vld [vmem:[#allocation3 + $0x1a0] sm:$0xff] }
 0x2ff   :  { %v845_v58 = vmax.f32 %v809_v10, 0.0  ;;  %1118 = vst.msk [vmem:[#allocation3 + $0x1f8] sm:$0xff] %vm1096_vm3, %v1067_v44  ;;  %2511 = vmatprep.mubr.f32.mxu1 %v8053_v20  ;;  %6428 = vmatpush3.msra.mxu1 %v7915_v22  ;;  %v10552_v20 = vld [vmem:[#allocation19_spill] sm:$0xff] }
 0x300   :  { %v846_v60 = vmax.f32 %v810_v62, 0.0  ;;  %6413 = vmatprep.subr.mxu1 %v7923_v56  ;;  %v8256_v13 = vpop.f32.mrf.mxu1  ;;  %v10551_v56 = vld [vmem:[#allocation11_spill] sm:$0xff] }
 0x301   :  { %919 = vst.msk [vmem:[#allocation2 + $0xa0] sm:$0xff] %vm866_vm0, %v845_v58  ;;  %v462_v40 = vpop.permute.xlu0 %461  ;;  %6429 = vmatpush3.msra.mxu1 %v7931_v15  ;;  %v5522_v58 = vld [vmem:[%s10497_s3 + $0x620] sm:$0xff] }
 0x302   :  { %920 = vst.msk [vmem:[#allocation2 + $0xa8] sm:$0xf] %vm868_vm1, %v846_v60  ;;  %v552_v53 = vmax.f32 %v10540_v61, %v462_v40  ;;  %2512 = vmatmul.mubr.f32.gmra.mxu1 %v8060_v18  ;;  %6414 = vmatprep.subr.mxu1 %v7942_v12  ;;  %v8268_v15 = vpop.f32.mrf.mxu1  ;;  %v2305_v61 = vld [vmem:[#allocation3 + $0x158] sm:$0xff]  ;;  %v10555_v12 = vld [vmem:[#allocation14_spill] sm:$0xff]  ;;  %v8338_v40 = vpop.f32.mrf.mxu0 }
 0x303   :  { %924 = vst.msk [vmem:[#allocation2 + $0xac] sm:$0xf0] %vm873_vm2, %v846_v60  ;;  %v642_v22 = vpop.permute.xlu1 %641  ;;  %2516 = vmatprep.mubr.f32.mxu1 %v8214_v42  ;;  %6430 = vmatpush3.msra.mxu1 %v10551_v56  ;;  %v10554_v18 = vld [vmem:[#allocation13_spill] sm:$0xff] }
 0x304   :  { %v732_v29 = vmax.f32 %v10552_v20, %v642_v22  ;;  %6415 = vmatprep.subr.mxu1 %v7958_v45  ;;  %v8276_v24 = vpop.f32.mrf.mxu1  ;;  %v8336_v60 = vld [vmem:[#allocation3 + $0x198] sm:$0xff] }
 0x305   :  { %6431 = vmatpush3.msra.mxu1 %v10553_v32  ;;  %v5521_v22 = vld [vmem:[%s10497_s3 + $0x618] sm:$0xff]  ;;  %v5520_v32 = vld [vmem:[%s10497_s3 + $0x610] sm:$0xff] }
 0x306   :  { %v768_v30 = vmax.f32 %v552_v53, %v732_v29  ;;  %2517 = vmatmul.mubr.f32.gmra.mxu1 %v8218_v11  ;;  %6416 = vmatprep.subr.mxu1 %v10554_v18  ;;  %v8350_v56 = vld [vmem:[#allocation3 + $0x1b8] sm:$0xff]  ;;  %v2320_v18 = vld [vmem:[#allocation3 + $0x1d0] sm:$0xff] }
 0x307   :  { %2521 = vmatprep.mubr.f32.mxu1 %v2305_v61  ;;  %6432 = vmatpush3.msra.mxu1 %v10555_v12  ;;  %v5519_v12 = vld [vmem:[%s10497_s3 + $0x608] sm:$0xff] }
 0x308   :  { %v811_v42 = vadd.f32 %v7603_v0, %v768_v30  ;;  %6417 = vmatprep.subr.mxu1 %v10556_v47  ;;  %v938_v21 = vld [vmem:[#allocation2 + $0xa0] sm:$0xff]  ;;  %v8359_v30 = vld [vmem:[#allocation3 + $0x1b0] sm:$0xff] }
 0x309   :  { %v1179_v37 = vld [vmem:[#allocation2 + $0xa3] sm:$0xff]  ;;  %6433 = vmatpush3.msra.mxu1 %v8005_v39  ;;  %962 = vst.msk [vmem:[#allocation3 + $0xf0] sm:$0xff] %vm866_vm0, %v938_v21  ;;  %v5581_v21 = vadd.f32 %v8161_v2, %v8152_v27 }
 0x30a   :  { %v986_v45 = vld [vmem:[#allocation2 + $0xa1] sm:$0xff]  ;;  %v847_v11 = vmax.f32 %v811_v42, 0.0  ;;  %1237 = vrot.lane.b32.xlu0 %v1179_v37, %s6492_s21  ;;  %2522 = vmatmul.mubr.f32.gmra.mxu1 %v2304_v43  ;;  %v8283_v17 = vpop.f32.mrf.mxu1 }
 0x30b   :  { %v1131_v35 = vld [vmem:[#allocation2 + $0xa2] sm:$0xff]  ;;  %1044 = vrot.lane.b32.xlu1 %v986_v45, %s6492_s21  ;;  %6418 = vmatprep.subr.mxu1 %v8015_v16  ;;  %v5525_v16 = vld [vmem:[%s10497_s3 + $0x638] sm:$0xff] }
 0x30c   :  { %1155 = vst.msk [vmem:[#allocation3 + $0xf8] sm:$0xff] %vm866_vm0, %v1131_v35  ;;  %v1323_v0 = vld [vmem:[#allocation2 + $0xa4] sm:$0xff]  ;;  %925 = vst.msk [vmem:[#allocation2 + $0xb4] sm:$0xff] %vm866_vm0, %v847_v11  ;;  %2526 = vmatprep.mubr.f32.mxu1 %v8285_v49  ;;  %v8297_v19 = vpop.f32.mrf.mxu1  ;;  %6364 = vmatprep.subr.mxu0 %v5525_v16  ;;  %v5578_v35 = vadd.f32 %v8136_v51, %v8120_v4 }
 0x30d   :  { %1347 = vst.msk [vmem:[#allocation3 + $0x100] sm:$0xff] %vm866_vm0, %v1323_v0  ;;  %v10557_v39 = vld [vmem:[#allocation15_spill] sm:$0xff]  ;;  %6365 = vmatpush3.msra.mxu0 %v5525_v16  ;;  %v5518_v47 = vld [vmem:[%s10497_s3 + $0x600] sm:$0xff]  ;;  %v5587_v0 = vadd.f32 %v8170_v38, %v8168_v7  ;;  %v5584_v16 = vadd.f32 %v8166_v41, %v8164_v52  ;;  %v2325_v38 = vld [vmem:[#allocation3 + $0x1f8] sm:$0xff] }
 0x30e   :  { %6434 = vmatpush3.msra.mxu1 %v10557_v39  ;;  %v8314_v48 = vpop.f32.mrf.mxu1  ;;  %v2319_v37 = vld [vmem:[#allocation3 + $0x1c8] sm:$0xff]  ;;  %v2326_v39 = vld [vmem:[#allocation3 + $0x200] sm:$0xff] }
 0x30f   :  { %6419 = vmatprep.subr.mxu1 %v8029_v63  ;;  %2527 = vmatmul.mubr.f32.gmra.mxu1 %v8300_v26  ;;  %v5524_v63 = vld [vmem:[%s10497_s3 + $0x630] sm:$0xff] }
 0x310   :  { %6435 = vmatpush3.msra.mxu1 %v8039_v50  ;;  %2531 = vmatprep.mubr.f32.mxu1 %v8307_v1  ;;  %v8316_v50 = vld [vmem:[#allocation3 + $0x180] sm:$0xff]  ;;  %v8329_v44 = vpop.f32.mrf.mxu1 }
 0x311   :  { %6324 = vmatprep.subr.mxu1 %v8295_v8  ;;  %6366 = vmatprep.subr.mxu0 %v5524_v63 }
 0x312   :  { %6367 = vmatpush3.msra.mxu0 %v5524_v63  ;;  %v5593_v63 = vadd.f32 %v8180_v33, %v8178_v31  ;;  %v5468_v33 = vld [vmem:[%s10497_s3 + $0x4f0] sm:$0xff] }
 0x313   :  { %v1180_v3 = vld [vmem:[#allocation2 + $0xb3] sm:$0xff]  ;;  %2532 = vmatmul.mubr.f32.gmra.mxu1 %v8316_v50  ;;  %6368 = vmatprep.subr.mxu0 %v5523_v59 }
 0x314   :  { %v987_v23 = vld [vmem:[#allocation2 + $0xb1] sm:$0xff]  ;;  %1239 = vrot.lane.b32.xlu0 %v1180_v3, %s6492_s21  ;;  %2536 = vmatprep.mubr.f32.mxu1 %v8326_v36 }
 0x315   :  { %v1132_v10 = vld [vmem:[#allocation2 + $0xb2] sm:$0xff]  ;;  %1046 = vrot.lane.b32.xlu1 %v987_v23, %s6492_s21  ;;  %6369 = vmatpush3.msra.mxu0 %v5523_v59  ;;  %v10559_v23 = vld [vmem:[#allocation18_spill] sm:$0xff] }
 0x316   :  { %1156 = vst.msk [vmem:[#allocation3 + $0x110] sm:$0xff] %vm866_vm0, %v1132_v10  ;;  %v939_v62 = vld [vmem:[#allocation2 + $0xb0] sm:$0xff]  ;;  %v8341_v53 = vpop.f32.mrf.mxu1  ;;  %6370 = vmatprep.subr.mxu0 %v5522_v58  ;;  %v10558_v3 = vld [vmem:[#allocation17_spill] sm:$0xff] }
 0x317   :  { %963 = vst.msk [vmem:[#allocation3 + $0x108] sm:$0xff] %vm866_vm0, %v939_v62  ;;  %2537 = vmatmul.mubr.f32.gmra.mxu1 %v8336_v60  ;;  %v1324_v20 = vld [vmem:[#allocation2 + $0xb4] sm:$0xff]  ;;  %6371 = vmatpush3.msra.mxu0 %v5522_v58  ;;  %v5590_v10 = vadd.f32 %v10559_v23, %v10558_v3  ;;  %v5599_v62 = vadd.f32 %v8211_v55, %v8202_v5  ;;  %v5467_v5 = vld [vmem:[%s10497_s3 + $0x4e8] sm:$0xff] }
 0x318   :  { %497 = vrot.lane.b32.xlu0 %v8321_v25, %s6492_s21  ;;  %2541 = vmatprep.mubr.f32.mxu1 %v8350_v56  ;;  %v8353_v29 = vpop.f32.mrf.mxu1  ;;  %1348 = vst.msk [vmem:[#allocation3 + $0x118] sm:$0xff] %vm866_vm0, %v1324_v20 }
 0x319   :  { %677 = vrot.lane.b32.xlu1 %v8338_v40, %s6492_s21  ;;  %6372 = vmatprep.subr.mxu0 %v5521_v22 }
 0x31a   :  { %v8362_v61 = vpop.f32.mrf.mxu1  ;;  %6373 = vmatpush3.msra.mxu0 %v5521_v22  ;;  %v10560_v22 = vld [vmem:[#allocation20_spill] sm:$0xff] }
 0x31b   :  { %2542 = vmatmul.mubr.f32.gmra.mxu1 %v8359_v30  ;;  %6374 = vmatprep.subr.mxu0 %v5520_v32  ;;  %v5596_v20 = vadd.f32 %v8194_v14, %v10560_v22  ;;  %v5466_v14 = vld [vmem:[%s10497_s3 + $0x4e0] sm:$0xff] }
 0x31c   :  { %2546 = vmatprep.mubr.f32.mxu1 %v2320_v18  ;;  %v8367_v42 = vpop.f32.mrf.mxu1  ;;  %6375 = vmatpush3.msra.mxu0 %v5520_v32 }
 0x31d   :  { %6376 = vmatprep.subr.mxu0 %v5519_v12 }
 0x31e   :  { %v6222_v45 = vpop.f32.mrf.mxu1  ;;  %6377 = vmatpush3.msra.mxu0 %v5519_v12  ;;  %v5605_v12 = vadd.f32 %v8244_v46, %v8235_v54  ;;  %v5611_v54 = vadd.f32 %v8276_v24, %v8268_v15  ;;  %v5462_v15 = vld [vmem:[%s10497_s3 + $0x4c0] sm:$0xff] }
 0x31f   :  { %2547 = vmatmul.mubr.f32.gmra.mxu1 %v2319_v37  ;;  %v1714_v11 = vadd.f32 %v6222_v45, %v5581_v21  ;;  %6378 = vmatprep.subr.mxu0 %v5518_v47 }
 0x320   :  { %2551 = vmatprep.mubr.f32.mxu1 %v8182_v6  ;;  %v1708_v43 = vpop.f32.mrf.mxu1  ;;  %6379 = vmatpush3.msra.mxu0 %v5518_v47  ;;  %v5602_v47 = vadd.f32 %v8224_v28, %v8220_v57  ;;  %v5463_v57 = vld [vmem:[%s10497_s3 + $0x4c8] sm:$0xff]  ;;  %v5608_v28 = vadd.f32 %v8256_v13, %v8250_v34  ;;  %v5517_v34 = vld [vmem:[%s10497_s3 + $0x5f8] sm:$0xff] }
 0x321   :  { %1788 = vst.msk [vmem:[#allocation4 + $0x8] sm:$0xff] %vm866_vm0, %v1714_v11  ;;  %v1709_v27 = vadd.f32 %v5578_v35, %v1708_v43  ;;  %v5617_v43 = vadd.f32 %v8329_v44, %v8314_v48  ;;  %v5623_v48 = vadd.f32 %v8367_v42, %v8362_v61 }
 0x322   :  { %v6225_v2 = vpop.f32.mrf.mxu1 }
 0x323   :  { %2552 = vmatmul.mubr.f32.gmra.mxu1 %v8187_v9  ;;  %1787 = vst.msk [vmem:[#allocation4] sm:$0xff] %vm866_vm0, %v1709_v27  ;;  %v1724_v4 = vadd.f32 %v6225_v2, %v5587_v0  ;;  %v5614_v0 = vadd.f32 %v8297_v19, %v8283_v17  ;;  %v6262_v19 = vpop.f32.mrf.mxu0 }
 0x324   :  { %2556 = vmatprep.mubr.f32.mxu1 %v2326_v39  ;;  %v1718_v51 = vpop.f32.mrf.mxu1 }
 0x325   :  { %1790 = vst.msk [vmem:[#allocation4 + $0x18] sm:$0xff] %vm866_vm0, %v1724_v4  ;;  %v1719_v7 = vadd.f32 %v5584_v16, %v1718_v51  ;;  %v5620_v16 = vadd.f32 %v8353_v29, %v8341_v53 }
 0x326   :  { %v6228_v59 = vpop.f32.mrf.mxu1 }
 0x327   :  { %2557 = vmatmul.mubr.f32.gmra.mxu1 %v2325_v38  ;;  %1789 = vst.msk [vmem:[#allocation4 + $0x10] sm:$0xff] %vm866_vm0, %v1719_v7  ;;  %v1734_v52 = vadd.f32 %v6228_v59, %v5593_v63  ;;  %v2152_v59 = vpop.f32.mrf.mxu0 }
 0x328   :  { %3017 = vmatprep.mubr.f32.mxu1 %v2320_v18  ;;  %v1728_v41 = vpop.f32.mrf.mxu1 }
 0x329   :  { %1792 = vst.msk [vmem:[#allocation4 + $0x28] sm:$0xff] %vm866_vm0, %v1734_v52  ;;  %v1729_v31 = vadd.f32 %v5590_v10, %v1728_v41  ;;  %v6265_v53 = vpop.f32.mrf.mxu0 }
 0x32a   :  { %v6231_v58 = vpop.f32.mrf.mxu1  ;;  %v2231_v10 = vld [vmem:[#allocation4] sm:$0xff] }
 0x32b   :  { %3018 = vmatmul.mubr.f32.vlgmr.msra.gmra.mxu1 %v2319_v37  ;;  %1791 = vst.msk [vmem:[#allocation4 + $0x20] sm:$0xff] %vm866_vm0, %v1729_v31  ;;  %v1744_v32 = vadd.f32 %v6231_v58, %v5599_v62  ;;  %v2232_v62 = vld [vmem:[#allocation4 + $0x8] sm:$0xff]  ;;  %v2162_v22 = vpop.f32.mrf.mxu0 }
 0x32c   :  { %3022 = vmatprep.mubr.f32.mxu1 %v8182_v6  ;;  %6325 = vmatpush3.msra.mxu1 %v8295_v8  ;;  %v1738_v55 = vpop.f32.mrf.mxu1  ;;  %v5465_v8 = vld [vmem:[%s10497_s3 + $0x4d8] sm:$0xff] }
 0x32d   :  { %6326 = vmatprep.subr.mxu1 %v5468_v33  ;;  %1794 = vst.msk [vmem:[#allocation4 + $0x38] sm:$0xff] %vm866_vm0, %v1744_v32  ;;  %v1739_v18 = vadd.f32 %v5596_v20, %v1738_v55 }
 0x32e   :  { %6327 = vmatpush3.msra.mxu1 %v5468_v33 }
 0x32f   :  { %3023 = vmatmul.mubr.f32.gmra.mxu1 %v8187_v9  ;;  %6328 = vmatprep.subr.mxu1 %v5467_v5  ;;  %1793 = vst.msk [vmem:[#allocation4 + $0x30] sm:$0xff] %vm866_vm0, %v1739_v18  ;;  %v6234_v6 = vpop.f32.mrf.mxu1  ;;  %v5464_v9 = vld [vmem:[%s10497_s3 + $0x4d0] sm:$0xff] }
 0x330   :  { %3027 = vmatprep.mubr.f32.mxu1 %v2326_v39  ;;  %6329 = vmatpush3.msra.mxu1 %v5467_v5  ;;  %v1754_v21 = vadd.f32 %v6234_v6, %v5605_v12  ;;  %v2233_v5 = vld [vmem:[#allocation4 + $0x10] sm:$0xff]  ;;  %v6268_v12 = vpop.f32.mrf.mxu0 }
 0x331   :  { %6330 = vmatprep.subr.mxu1 %v5466_v14  ;;  %v1748_v37 = vpop.f32.mrf.mxu1 }
 0x332   :  { %6331 = vmatpush3.msra.mxu1 %v5466_v14  ;;  %1796 = vst.msk [vmem:[#allocation4 + $0x48] sm:$0xff] %vm866_vm0, %v1754_v21  ;;  %v1749_v46 = vadd.f32 %v5602_v47, %v1748_v37  ;;  %v2234_v47 = vld [vmem:[#allocation4 + $0x18] sm:$0xff] }
 0x333   :  { %3028 = vmatmul.mubr.f32.gmra.mxu1 %v2325_v38  ;;  %6332 = vmatprep.subr.mxu1 %v5465_v8 }
 0x334   :  { %v6237_v45 = vpop.f32.mrf.mxu1  ;;  %6333 = vmatpush3.msra.mxu1 %v5465_v8  ;;  %1795 = vst.msk [vmem:[#allocation4 + $0x40] sm:$0xff] %vm866_vm0, %v1749_v46 }
 0x335   :  { %v1764_v35 = vadd.f32 %v6237_v45, %v5611_v54  ;;  %6334 = vmatprep.subr.mxu1 %v5464_v9  ;;  %v2172_v54 = vpop.f32.mrf.mxu0 }
 0x336   :  { %v1758_v11 = vpop.f32.mrf.mxu1  ;;  %6335 = vmatpush3.msra.mxu1 %v5464_v9 }
 0x337   :  { %1798 = vst.msk [vmem:[#allocation4 + $0x58] sm:$0xff] %vm866_vm0, %v1764_v35  ;;  %v1759_v24 = vadd.f32 %v5608_v28, %v1758_v11  ;;  %6336 = vmatprep.subr.mxu1 %v5463_v57  ;;  %v6271_v11 = vpop.f32.mrf.mxu0 }
 0x338   :  { %6337 = vmatpush3.msra.mxu1 %v5463_v57  ;;  %v2235_v57 = vld [vmem:[#allocation4 + $0x20] sm:$0xff] }
 0x339   :  { %1797 = vst.msk [vmem:[#allocation4 + $0x50] sm:$0xff] %vm866_vm0, %v1759_v24  ;;  %v6240_v13 = vpop.f32.mrf.mxu1  ;;  %6338 = vmatprep.subr.mxu1 %v5462_v15 }
 0x33a   :  { %v1774_v27 = vadd.f32 %v6240_v13, %v5617_v43  ;;  %6339 = vmatpush3.msra.mxu1 %v5462_v15 }
 0x33b   :  { %v1768_v2 = vpop.f32.mrf.mxu1  ;;  %5960 = vmatprep.subr.mxu1 %v5517_v34  ;;  %v2236_v34 = vld [vmem:[#allocation4 + $0x28] sm:$0xff] }
 0x33c   :  { %1800 = vst.msk [vmem:[#allocation4 + $0x68] sm:$0xff] %vm866_vm0, %v1774_v27  ;;  %v1769_v39 = vadd.f32 %v5614_v0, %v1768_v2  ;;  %v2182_v0 = vpop.f32.mrf.mxu0 }
 0x33e   :  { %1799 = vst.msk [vmem:[#allocation4 + $0x60] sm:$0xff] %vm866_vm0, %v1769_v39 }
 0x340   :  { %v6243_v44 = vpop.f32.mrf.mxu1 }
 0x341   :  { %v1784_v4 = vadd.f32 %v6243_v44, %v5623_v48 }
 0x342   :  { %v1778_v51 = vpop.f32.mrf.mxu1 }
 0x343   :  { %1802 = vst.msk [vmem:[#allocation4 + $0x78] sm:$0xff] %vm866_vm0, %v1784_v4  ;;  %v1779_v17 = vadd.f32 %v5620_v16, %v1778_v51  ;;  %v2237_v4 = vld [vmem:[#allocation4 + $0x30] sm:$0xff] }
 0x345   :  { %1801 = vst.msk [vmem:[#allocation4 + $0x70] sm:$0xff] %vm866_vm0, %v1779_v17  ;;  %v6274_v17 = vpop.f32.mrf.mxu0 }
 0x347   :  { %v5680_v63 = vpop.f32.mrf.mxu1 }
 0x349   :  { %v5681_v7 = vpop.f32.mrf.mxu1 }
 0x34a   :  { %v5682_v38 = vadd.f32 %v5681_v7, %v5680_v63 }
 0x34c   :  { %v2153_v3 = vadd.f32 %v5682_v38, %v2152_v59  ;;  %v5683_v23 = vpop.f32.mrf.mxu1  ;;  %v2238_v59 = vld [vmem:[#allocation4 + $0x38] sm:$0xff] }
 0x34e   :  { %v2247_v61 = vadd.f32 %v2231_v10, %v2153_v3  ;;  %v5684_v42 = vpop.f32.mrf.mxu1 }
 0x34f   :  { %v5685_v52 = vadd.f32 %v5684_v42, %v5683_v23  ;;  %v2192_v23 = vpop.f32.mrf.mxu0 }
 0x350   :  { %2263 = vst.msk [vmem:[#allocation4] sm:$0xff] %vm866_vm0, %v2247_v61 }
 0x351   :  { %v2158_v29 = vadd.f32 %v6262_v19, %v5685_v52  ;;  %v5686_v41 = vpop.f32.mrf.mxu1 }
 0x353   :  { %v2248_v31 = vadd.f32 %v2232_v62, %v2158_v29  ;;  %v5687_v33 = vpop.f32.mrf.mxu1 }
 0x354   :  { %v5688_v58 = vadd.f32 %v5687_v33, %v5686_v41  ;;  %v2239_v41 = vld [vmem:[#allocation4 + $0x40] sm:$0xff] }
 0x355   :  { %2264 = vst.msk [vmem:[#allocation4 + $0x8] sm:$0xff] %vm866_vm0, %v2248_v31  ;;  %v6277_v31 = vpop.f32.mrf.mxu0 }
 0x356   :  { %v2163_v20 = vadd.f32 %v5688_v58, %v2162_v22  ;;  %v5689_v32 = vpop.f32.mrf.mxu1  ;;  %v2758_v22 = vld [vmem:[#allocation3 + $0x58] sm:$0xff] }
 0x358   :  { %v2249_v55 = vadd.f32 %v2233_v5, %v2163_v20  ;;  %v5690_v18 = vpop.f32.mrf.mxu1  ;;  %v5501_v5 = vld [vmem:[%s10497_s3 + $0x578] sm:$0xff] }
 0x359   :  { %v5691_v14 = vadd.f32 %v5690_v18, %v5689_v32 }
 0x35a   :  { %2265 = vst.msk [vmem:[#allocation4 + $0x10] sm:$0xff] %vm866_vm0, %v2249_v55  ;;  %v2240_v55 = vld [vmem:[#allocation4 + $0x48] sm:$0xff] }
 0x35b   :  { %v2168_v6 = vadd.f32 %v6265_v53, %v5691_v14  ;;  %v5692_v8 = vpop.f32.mrf.mxu1  ;;  %v8470_v14 = vld [vmem:[#allocation3 + $0x70] sm:$0xff] }
 0x35d   :  { %v2250_v21 = vadd.f32 %v2234_v47, %v2168_v6  ;;  %v5693_v37 = vpop.f32.mrf.mxu1  ;;  %v2202_v6 = vpop.f32.mrf.mxu0 }
 0x35e   :  { %v5694_v9 = vadd.f32 %v5693_v37, %v5692_v8  ;;  %v5500_v37 = vld [vmem:[%s10497_s3 + $0x570] sm:$0xff] }
 0x35f   :  { %2266 = vst.msk [vmem:[#allocation4 + $0x18] sm:$0xff] %vm866_vm0, %v2250_v21  ;;  %v8477_v21 = vld [vmem:[#allocation3 + $0x88] sm:$0xff] }
 0x360   :  { %v2173_v46 = vadd.f32 %v5694_v9, %v2172_v54  ;;  %v5695_v45 = vpop.f32.mrf.mxu1  ;;  %v5515_v54 = vld [vmem:[%s10497_s3 + $0x5e8] sm:$0xff] }
 0x362   :  { %v2251_v28 = vadd.f32 %v2235_v57, %v2173_v46  ;;  %v5696_v35 = vpop.f32.mrf.mxu1  ;;  %v2241_v57 = vld [vmem:[#allocation4 + $0x50] sm:$0xff] }
 0x363   :  { %v5697_v15 = vadd.f32 %v5696_v35, %v5695_v45  ;;  %v5499_v45 = vld [vmem:[%s10497_s3 + $0x568] sm:$0xff]  ;;  %v8491_v35 = vld [vmem:[#allocation3 + $0xa0] sm:$0xff] }
 0x364   :  { %2267 = vst.msk [vmem:[#allocation4 + $0x20] sm:$0xff] %vm866_vm0, %v2251_v28  ;;  %v5698_v24 = vpop.f32.mrf.mxu1 }
 0x365   :  { %v2178_v43 = vadd.f32 %v6268_v12, %v5697_v15  ;;  %v5516_v12 = vld [vmem:[%s10497_s3 + $0x5f0] sm:$0xff]  ;;  %v6280_v15 = vpop.f32.mrf.mxu0 }
 0x366   :  { %v5699_v13 = vpop.f32.mrf.mxu1 }
 0x367   :  { %v2252_v27 = vadd.f32 %v2236_v34, %v2178_v43  ;;  %v5700_v2 = vadd.f32 %v5699_v13, %v5698_v24  ;;  %v8498_v34 = vld [vmem:[#allocation3 + $0xb8] sm:$0xff]  ;;  %v5498_v13 = vld [vmem:[%s10497_s3 + $0x560] sm:$0xff] }
 0x368   :  { %v5701_v39 = vpop.f32.mrf.mxu1  ;;  %v1262_v44 = vpop.permute.xlu0 %1261 }
 0x369   :  { %2268 = vst.msk [vmem:[#allocation4 + $0x28] sm:$0xff] %vm866_vm0, %v2252_v27  ;;  %v2183_v48 = vadd.f32 %v5700_v2, %v2182_v0  ;;  %v1069_v16 = vpop.permute.xlu1 %1068  ;;  %v5513_v2 = vld [vmem:[%s10497_s3 + $0x5d8] sm:$0xff] }
 0x36a   :  { %v5702_v51 = vpop.f32.mrf.mxu1  ;;  %1311 = vst.msk [vmem:[#allocation3 + $0x218] sm:$0xff] %vm1096_vm3, %v1262_v44  ;;  %1119 = vst.msk [vmem:[#allocation3 + $0x210] sm:$0xff] %vm1096_vm3, %v1069_v16  ;;  %v5497_v44 = vld [vmem:[%s10497_s3 + $0x558] sm:$0xff] }
 0x36b   :  { %v2253_v19 = vadd.f32 %v2237_v4, %v2183_v48  ;;  %v5703_v63 = vadd.f32 %v5702_v51, %v5701_v39  ;;  %v2242_v16 = vld [vmem:[#allocation4 + $0x58] sm:$0xff]  ;;  %v8514_v51 = vld [vmem:[#allocation3 + $0xd0] sm:$0xff] }
 0x36c   :  { %v5704_v7 = vpop.f32.mrf.mxu1 }
 0x36d   :  { %2269 = vst.msk [vmem:[#allocation4 + $0x30] sm:$0xff] %vm866_vm0, %v2253_v19  ;;  %v2188_v38 = vadd.f32 %v6271_v11, %v5703_v63  ;;  %v5514_v11 = vld [vmem:[%s10497_s3 + $0x5e0] sm:$0xff] }
 0x36e   :  { %v5705_v3 = vpop.f32.mrf.mxu1 }
 0x36f   :  { %v2254_v10 = vadd.f32 %v2238_v59, %v2188_v38  ;;  %v5706_v61 = vadd.f32 %v5705_v3, %v5704_v7  ;;  %v8521_v7 = vld [vmem:[#allocation3 + $0xe8] sm:$0xff]  ;;  %v5496_v38 = vld [vmem:[%s10497_s3 + $0x550] sm:$0xff]  ;;  %v2212_v59 = vpop.f32.mrf.mxu0 }
 0x370   :  { %v5707_v42 = vpop.f32.mrf.mxu1 }
 0x371   :  { %2270 = vst.msk [vmem:[#allocation4 + $0x38] sm:$0xff] %vm866_vm0, %v2254_v10  ;;  %v2193_v52 = vadd.f32 %v5706_v61, %v2192_v23  ;;  %v8459_v53 = vld [vmem:[#allocation3 + $0x218] sm:$0xff]  ;;  %v8461_v29 = vld [vmem:[#allocation3 + $0x210] sm:$0xff]  ;;  %v5511_v23 = vld [vmem:[%s10497_s3 + $0x5c8] sm:$0xff] }
 0x372   :  { %v5708_v62 = vpop.f32.mrf.mxu1  ;;  %3032 = vmatprep.mubr.f32.mxu1 %v8459_v53  ;;  %v5495_v61 = vld [vmem:[%s10497_s3 + $0x548] sm:$0xff] }
 0x373   :  { %v2255_v33 = vadd.f32 %v2239_v41, %v2193_v52  ;;  %v5709_v58 = vadd.f32 %v5708_v62, %v5707_v42  ;;  %3033 = vmatmul.mubr.f32.gmra.mxu1 %v8461_v29  ;;  %v2243_v42 = vld [vmem:[#allocation4 + $0x60] sm:$0xff] }
 0x374   :  { %v5710_v20 = vpop.f32.mrf.mxu1  ;;  %6340 = vmatprep.mubr.msk.f32.mxu1 %vm866_vm0, %v2758_v22  ;;  %v8535_v41 = vld [vmem:[#allocation3 + $0x100] sm:$0xff] }
 0x375   :  { %2271 = vst.msk [vmem:[#allocation4 + $0x40] sm:$0xff] %vm866_vm0, %v2255_v33  ;;  %v2198_v32 = vadd.f32 %v6274_v17, %v5709_v58  ;;  %v5512_v17 = vld [vmem:[%s10497_s3 + $0x5d0] sm:$0xff]  ;;  %v5510_v62 = vld [vmem:[%s10497_s3 + $0x5c0] sm:$0xff]  ;;  %v2782_v58 = vld [vmem:[#allocation3 + $0x178] sm:$0xff] }
 0x376   :  { %v5711_v18 = vpop.f32.mrf.mxu1  ;;  %v5494_v22 = vld [vmem:[%s10497_s3 + $0x540] sm:$0xff] }
 0x377   :  { %v2256_v8 = vadd.f32 %v2240_v55, %v2198_v32  ;;  %v5712_v47 = vadd.f32 %v5711_v18, %v5710_v20  ;;  %6341 = vmatmul.mubr.msk.f32.vlgmr.msra.gmra.mxu1 %vm866_vm0, %v8470_v14  ;;  %v8545_v20 = vpop.f32.mrf.mxu0 }
 0x378   :  { %v5713_v9 = vpop.f32.mrf.mxu1  ;;  %6343 = vmatprep.mubr.msk.f32.mxu1 %vm866_vm0, %v8477_v21  ;;  %5961 = vmatpush3.msra.mxu1 %v5501_v5 }
 0x379   :  { %2272 = vst.msk [vmem:[#allocation4 + $0x48] sm:$0xff] %vm866_vm0, %v2256_v8  ;;  %v2203_v46 = vadd.f32 %v5712_v47, %v2202_v6  ;;  %5962 = vmatprep.subr.mxu1 %v5516_v12  ;;  %v5509_v12 = vld [vmem:[%s10497_s3 + $0x5b8] sm:$0xff]  ;;  %v2244_v6 = vld [vmem:[#allocation4 + $0x68] sm:$0xff] }
 0x37a   :  { %v5714_v28 = vpop.f32.mrf.mxu1  ;;  %5963 = vmatpush3.msra.mxu1 %v5500_v37  ;;  %v8558_v37 = vld [vmem:[#allocation3 + $0x190] sm:$0xff] }
 0x37b   :  { %v2257_v24 = vadd.f32 %v2241_v57, %v2203_v46  ;;  %v5715_v43 = vadd.f32 %v5714_v28, %v5713_v9  ;;  %6344 = vmatmul.mubr.msk.f32.gmra.mxu1 %vm866_vm0, %v8491_v35  ;;  %5964 = vmatprep.subr.mxu1 %v5515_v54  ;;  %v5493_v9 = vld [vmem:[%s10497_s3 + $0x538] sm:$0xff]  ;;  %v8567_v57 = vld [vmem:[#allocation3 + $0x1a8] sm:$0xff]  ;;  %v5508_v28 = vld [vmem:[%s10497_s3 + $0x5b0] sm:$0xff] }
 0x37c   :  { %v5716_v0 = vpop.f32.mrf.mxu1  ;;  %v1238_v27 = vpop.permute.xlu0 %1237  ;;  %6346 = vmatprep.mubr.msk.f32.mxu1 %vm866_vm0, %v8498_v34  ;;  %5965 = vmatpush3.msra.mxu1 %v5499_v45 }
 0x37d   :  { %2273 = vst.msk [vmem:[#allocation4 + $0x50] sm:$0xff] %vm866_vm0, %v2257_v24  ;;  %v2208_v39 = vadd.f32 %v6277_v31, %v5715_v43  ;;  %v1045_v48 = vpop.permute.xlu1 %1044  ;;  %5966 = vmatprep.subr.mxu1 %v5514_v11  ;;  %v2222_v11 = vpop.f32.mrf.mxu0  ;;  %v5507_v24 = vld [vmem:[%s10497_s3 + $0x5a8] sm:$0xff]  ;;  %v2245_v43 = vld [vmem:[#allocation4 + $0x70] sm:$0xff] }
 0x37e   :  { %1299 = vst.msk [vmem:[#allocation3 + $0xf8] sm:$0xff] %vm1096_vm3, %v1238_v27  ;;  %v5717_v4 = vpop.f32.mrf.mxu1  ;;  %1107 = vst.msk [vmem:[#allocation3 + $0xf0] sm:$0xff] %vm1096_vm3, %v1045_v48  ;;  %5967 = vmatpush3.msra.mxu1 %v5498_v13  ;;  %v8588_v48 = vld [vmem:[#allocation3 + $0x1c0] sm:$0xff] }
 0x37f   :  { %v2258_v19 = vadd.f32 %v2242_v16, %v2208_v39  ;;  %v5718_v63 = vadd.f32 %v5717_v4, %v5716_v0  ;;  %6347 = vmatmul.mubr.msk.f32.gmra.mxu1 %vm866_vm0, %v8514_v51  ;;  %5968 = vmatprep.subr.mxu1 %v5513_v2  ;;  %v5491_v0 = vld [vmem:[%s10497_s3 + $0x528] sm:$0xff]  ;;  %v8596_v16 = vld [vmem:[#allocation3 + $0x1d8] sm:$0xff] }
 0x380   :  { %v5719_v3 = vpop.f32.mrf.mxu1  ;;  %6349 = vmatprep.mubr.msk.f32.mxu1 %vm866_vm0, %v8521_v7  ;;  %5969 = vmatpush3.msra.mxu1 %v5497_v44  ;;  %v5506_v44 = vld [vmem:[%s10497_s3 + $0x5a0] sm:$0xff]  ;;  %v5489_v4 = vld [vmem:[%s10497_s3 + $0x518] sm:$0xff] }
 0x381   :  { %2274 = vst.msk [vmem:[#allocation4 + $0x58] sm:$0xff] %vm866_vm0, %v2258_v19  ;;  %v2213_v10 = vadd.f32 %v5718_v63, %v2212_v59  ;;  %5970 = vmatprep.subr.mxu1 %v5512_v17  ;;  %v8612_v17 = vld [vmem:[#allocation3 + $0x1f0] sm:$0xff]  ;;  %v6446_v63 = vld [vmem:[%s10496_s2] ss:$0 sm:$0xff]  ;;  %v5503_v59 = vld [vmem:[%s10497_s3 + $0x588] sm:$0xff] }
 0x382   :  { %v5720_v52 = vpop.f32.mrf.mxu1  ;;  %5971 = vmatpush3.msra.mxu1 %v5496_v38  ;;  %v5504_v19 = vld [vmem:[%s10497_s3 + $0x590] sm:$0xff] }
 0x383   :  { %v2259_v31 = vadd.f32 %v2243_v42, %v2213_v10  ;;  %v5721_v33 = vadd.f32 %v5720_v52, %v5719_v3  ;;  %6350 = vmatmul.mubr.msk.f32.gmra.mxu1 %vm866_vm0, %v8535_v41  ;;  %5972 = vmatprep.subr.mxu1 %v5511_v23  ;;  %v5487_v23 = vld [vmem:[%s10497_s3 + $0x508] sm:$0xff]  ;;  %v8637_v10 = vld [vmem:[#allocation3 + $0x220] sm:$0xff] }
 0x384   :  { %v5722_v32 = vpop.f32.mrf.mxu1  ;;  %6352 = vmatprep.mubr.msk.f32.mxu1 %vm866_vm0, %v2782_v58  ;;  %5973 = vmatpush3.msra.mxu1 %v5495_v61  ;;  %v5502_v61 = vld [vmem:[%s10497_s3 + $0x580] sm:$0xff] }
 0x385   :  { %v8547_v5 = vld [vmem:[#allocation3 + $0xf8] sm:$0xff]  ;;  %2275 = vst.msk [vmem:[#allocation4 + $0x60] sm:$0xff] %vm866_vm0, %v2259_v31  ;;  %v2218_v55 = vadd.f32 %v6280_v15, %v5721_v33  ;;  %v8552_v18 = vld [vmem:[#allocation3 + $0xf0] sm:$0xff]  ;;  %5974 = vmatprep.subr.mxu1 %v5510_v62  ;;  %v5486_v42 = vld [vmem:[%s10497_s3 + $0x500] sm:$0xff] }
 0x386   :  { %2992 = vmatprep.mubr.f32.mxu0 %v8547_v5  ;;  %v5723_v8 = vpop.f32.mrf.mxu1  ;;  %v1240_v47 = vpop.permute.xlu0 %1239  ;;  %5975 = vmatpush3.msra.mxu1 %v5494_v22  ;;  %v3236_v52 = vld [vmem:[#allocation3 + $0x80] sm:$0xff]  ;;  %v3239_v22 = vld [vmem:[#allocation3 + $0x98] sm:$0xff] }
 0x387   :  { %2993 = vmatmul.mubr.f32.gmra.mxu0 %v8552_v18  ;;  %v2260_v54 = vadd.f32 %v2244_v6, %v2218_v55  ;;  %v5724_v46 = vadd.f32 %v5723_v8, %v5722_v32  ;;  %1300 = vst.msk [vmem:[#allocation3 + $0x110] sm:$0xff] %vm1096_vm3, %v1240_v47  ;;  %v1047_v45 = vpop.permute.xlu1 %1046  ;;  %6353 = vmatmul.mubr.msk.f32.gmra.mxu1 %vm866_vm0, %v8558_v37  ;;  %v3241_v32 = vld [vmem:[#allocation3 + $0xa8] sm:$0xff]  ;;  %v3255_v55 = vld [vmem:[#allocation3 + $0x118] sm:$0xff]  ;;  %v3248_v8 = vld [vmem:[#allocation3 + $0xe0] sm:$0xff]  ;;  %v6302_v47 = vpop.f32.mrf.mxu0 }
 0x388   :  { %2997 = vmatprep.mubr.f32.mxu0 %v8285_v49  ;;  %1108 = vst.msk [vmem:[#allocation3 + $0x108] sm:$0xff] %vm1096_vm3, %v1047_v45  ;;  %5976 = vmatprep.subr.mxu1 %v5509_v12  ;;  %v5492_v49 = vld [vmem:[%s10497_s3 + $0x530] sm:$0xff]  ;;  %v3245_v12 = vld [vmem:[#allocation3 + $0xc8] sm:$0xff] }
 0x389   :  { %6355 = vmatprep.mubr.msk.f32.mxu1 %vm866_vm0, %v8567_v57  ;;  %2276 = vst.msk [vmem:[#allocation4 + $0x68] sm:$0xff] %vm866_vm0, %v2260_v54  ;;  %v2223_v15 = vadd.f32 %v5724_v46, %v2222_v11  ;;  %5977 = vmatpush3.msra.mxu1 %v5493_v9  ;;  %v2246_v54 = vld [vmem:[#allocation4 + $0x78] sm:$0xff]  ;;  %v2628_v11 = vpop.f32.mrf.mxu0 }
 0x38a   :  { %v498_v13 = vpop.permute.xlu0 %497  ;;  %5978 = vmatprep.subr.mxu1 %v5508_v28  ;;  %v3247_v46 = vld [vmem:[#allocation3 + $0xd8] sm:$0xff] }
 0x38b   :  { %2998 = vmatmul.mubr.f32.gmra.mxu0 %v8300_v26  ;;  %v2261_v27 = vadd.f32 %v2245_v43, %v2223_v15  ;;  %v570_v2 = vmax.f32 %v8321_v25, %v498_v13  ;;  %v678_v39 = vpop.permute.xlu1 %677  ;;  %5979 = vmatpush3.msra.mxu1 %v5492_v49  ;;  %v5490_v25 = vld [vmem:[%s10497_s3 + $0x520] sm:$0xff] }
 0x38c   :  { %3002 = vmatprep.mubr.f32.mxu0 %v8307_v1  ;;  %v750_v26 = vmax.f32 %v8338_v40, %v678_v39  ;;  %6356 = vmatmul.mubr.msk.f32.gmra.mxu1 %vm866_vm0, %v8588_v48  ;;  %v5505_v1 = vld [vmem:[%s10497_s3 + $0x598] sm:$0xff] }
 0x38d   :  { %5980 = vmatprep.subr.mxu1 %v5507_v24  ;;  %2277 = vst.msk [vmem:[#allocation4 + $0x70] sm:$0xff] %vm866_vm0, %v2261_v27  ;;  %6358 = vmatprep.mubr.msk.f32.mxu1 %vm866_vm0, %v8596_v16 }
 0x38e   :  { %5981 = vmatpush3.msra.mxu1 %v5491_v0  ;;  %v786_v40 = vmax.f32 %v570_v2, %v750_v26  ;;  %v3254_v43 = vld [vmem:[#allocation3 + $0x110] sm:$0xff]  ;;  %v6305_v0 = vpop.f32.mrf.mxu0  ;;  %v2708_v2 = vld [vmem:[#allocation4 + $0x8] sm:$0xff] }
 0x38f   :  { %3003 = vmatmul.mubr.f32.gmra.mxu0 %v8316_v50  ;;  %5982 = vmatprep.subr.mxu1 %v5506_v44  ;;  %v8622_v50 = vld [vmem:[#allocation3 + $0x208] sm:$0xff] }
 0x390   :  { %3007 = vmatprep.mubr.f32.mxu0 %v8326_v36  ;;  %5983 = vmatpush3.msra.mxu1 %v5490_v25  ;;  %v829_v38 = vadd.f32 %v6446_v63, %v786_v40  ;;  %v5488_v36 = vld [vmem:[%s10497_s3 + $0x510] sm:$0xff]  ;;  %v3253_v39 = vld [vmem:[#allocation3 + $0x108] sm:$0xff]  ;;  %v2638_v25 = vpop.f32.mrf.mxu0 }
 0x391   :  { %6359 = vmatmul.mubr.msk.f32.gmra.mxu1 %vm866_vm0, %v8612_v17  ;;  %5984 = vmatprep.subr.mxu1 %v5505_v1 }
 0x392   :  { %6361 = vmatprep.mubr.msk.f32.mxu1 %vm866_vm0, %v8622_v50  ;;  %5985 = vmatpush3.msra.mxu1 %v5489_v4  ;;  %v865_v3 = vmax.f32 %v829_v38, 0.0  ;;  %v2709_v4 = vld [vmem:[#allocation4 + $0x10] sm:$0xff]  ;;  %v3260_v38 = vld [vmem:[#allocation3 + $0x1a0] sm:$0xff] }
 0x393   :  { %3008 = vmatmul.mubr.f32.gmra.mxu0 %v8336_v60  ;;  %5986 = vmatprep.subr.mxu1 %v5504_v19  ;;  %v3233_v60 = vld [vmem:[#allocation3 + $0x68] sm:$0xff] }
 0x394   :  { %3012 = vmatprep.mubr.f32.mxu0 %v8350_v56  ;;  %5987 = vmatpush3.msra.mxu1 %v5488_v36  ;;  %927 = vst.msk [vmem:[#allocation2 + $0x174] sm:$0xff] %vm866_vm0, %v865_v3  ;;  %v3232_v56 = vld [vmem:[#allocation3 + $0x60] sm:$0xff]  ;;  %v6308_v36 = vpop.f32.mrf.mxu0 }
 0x395   :  { %6362 = vmatmul.mubr.msk.f32.gmra.mxu1 %vm866_vm0, %v8637_v10  ;;  %5988 = vmatprep.subr.mxu1 %v5503_v59 }
 0x396   :  { %5989 = vmatpush3.msra.mxu1 %v5487_v23  ;;  %3433 = vmatprep.mubr.f32.mxu1 %v3233_v60  ;;  %v2710_v23 = vld [vmem:[#allocation4 + $0x18] sm:$0xff] }
 0x397   :  { %3013 = vmatmul.mubr.f32.gmra.mxu0 %v8359_v30  ;;  %5990 = vmatprep.subr.mxu1 %v5502_v61  ;;  %v3235_v30 = vld [vmem:[#allocation3 + $0x78] sm:$0xff] }
 0x398   :  { %6380 = vmatprep.mubr.msk.f32.mxu0 %vm866_vm0, %v8470_v14  ;;  %5991 = vmatpush3.msra.mxu1 %v5486_v42  ;;  %v3263_v42 = vld [vmem:[#allocation3 + $0x1b8] sm:$0xff] }
 0x399   :  { %3434 = vmatmul.mubr.f32.vlgmr.msra.gmra.mxu1 %v3232_v56 }
 0x39a   :  { %3438 = vmatprep.mubr.f32.mxu1 %v3236_v52  ;;  %v2648_v52 = vpop.f32.mrf.mxu0 }
 0x39b   :  { %6381 = vmatmul.mubr.msk.f32.vlgmr.msra.gmra.mxu0 %vm866_vm0, %v8477_v21  ;;  %v1192_v62 = vld [vmem:[#allocation2 + $0x173] sm:$0xff] }
 0x39c   :  { %v999_v31 = vld [vmem:[#allocation2 + $0x171] sm:$0xff]  ;;  %6383 = vmatprep.mubr.msk.f32.mxu0 %vm866_vm0, %v8491_v35  ;;  %1263 = vrot.lane.b32.xlu0 %v1192_v62, %s6492_s21 }
 0x39d   :  { %v1336_v33 = vld [vmem:[#allocation2 + $0x174] sm:$0xff]  ;;  %1070 = vrot.lane.b32.xlu1 %v999_v31, %s6492_s21  ;;  %3439 = vmatmul.mubr.f32.gmra.mxu1 %v3235_v30 }
 0x39e   :  { %1360 = vst.msk [vmem:[#allocation3 + $0x238] sm:$0xff] %vm866_vm0, %v1336_v33  ;;  %v1144_v14 = vld [vmem:[#allocation2 + $0x172] sm:$0xff]  ;;  %3443 = vmatprep.mubr.f32.mxu1 %v3239_v22  ;;  %v2711_v33 = vld [vmem:[#allocation4 + $0x20] sm:$0xff] }
 0x39f   :  { %v951_v58 = vld [vmem:[#allocation2 + $0x170] sm:$0xff]  ;;  %1168 = vst.msk [vmem:[#allocation3 + $0x230] sm:$0xff] %vm866_vm0, %v1144_v14  ;;  %6384 = vmatmul.mubr.msk.f32.gmra.mxu0 %vm866_vm0, %v8498_v34 }
 0x3a0   :  { %975 = vst.msk [vmem:[#allocation3 + $0x228] sm:$0xff] %vm866_vm0, %v951_v58  ;;  %6386 = vmatprep.mubr.msk.f32.mxu0 %vm866_vm0, %v8514_v51  ;;  %v3238_v21 = vld [vmem:[#allocation3 + $0x90] sm:$0xff]  ;;  %v3244_v51 = vld [vmem:[#allocation3 + $0xc0] sm:$0xff] }
 0x3a1   :  { %3444 = vmatmul.mubr.f32.gmra.mxu1 %v3238_v21  ;;  %v3242_v35 = vld [vmem:[#allocation3 + $0xb0] sm:$0xff] }
 0x3a2   :  { %3448 = vmatprep.mubr.f32.mxu1 %v3242_v35  ;;  %v3262_v30 = vld [vmem:[#allocation3 + $0x1b0] sm:$0xff]  ;;  %v6311_v35 = vpop.f32.mrf.mxu0 }
 0x3a3   :  { %6387 = vmatmul.mubr.msk.f32.gmra.mxu0 %vm866_vm0, %v8521_v7  ;;  %v3266_v22 = vld [vmem:[#allocation3 + $0x1d0] sm:$0xff] }
 0x3a4   :  { %6389 = vmatprep.mubr.msk.f32.mxu0 %vm866_vm0, %v8535_v41 }
 0x3a5   :  { %3449 = vmatmul.mubr.f32.gmra.mxu1 %v3241_v32  ;;  %v3279_v44 = vld [vmem:[#allocation3 + $0x238] sm:$0xff] }
 0x3a6   :  { %3453 = vmatprep.mubr.f32.mxu1 %v3245_v12  ;;  %v5725_v34 = vpop.f32.mrf.mxu1  ;;  %v2712_v12 = vld [vmem:[#allocation4 + $0x28] sm:$0xff] }
 0x3a7   :  { %6390 = vmatmul.mubr.msk.f32.gmra.mxu0 %vm866_vm0, %v3255_v55 }
 0x3a8   :  { %6392 = vmatprep.mubr.msk.f32.mxu0 %vm866_vm0, %v8558_v37  ;;  %v5726_v6 = vpop.f32.mrf.mxu1 }
 0x3a9   :  { %3454 = vmatmul.mubr.f32.gmra.mxu1 %v3244_v51  ;;  %v5727_v7 = vadd.f32 %v5726_v6, %v5725_v34  ;;  %v3265_v34 = vld [vmem:[#allocation3 + $0x1c8] sm:$0xff] }
 0x3aa   :  { %3458 = vmatprep.mubr.f32.mxu1 %v3248_v8  ;;  %v5784_v41 = vpop.f32.mrf.mxu1  ;;  %v3269_v8 = vld [vmem:[#allocation3 + $0x1e8] sm:$0xff] }
 0x3ab   :  { %6393 = vmatmul.mubr.msk.f32.gmra.mxu0 %vm866_vm0, %v8567_v57  ;;  %v2228_v9 = vadd.f32 %v8545_v20, %v5727_v7  ;;  %v2707_v20 = vld [vmem:[#allocation4] sm:$0xff] }
 0x3ac   :  { %6395 = vmatprep.mubr.msk.f32.mxu0 %vm866_vm0, %v8588_v48  ;;  %v5785_v45 = vpop.f32.mrf.mxu1 }
 0x3ad   :  { %v2262_v37 = vadd.f32 %v2246_v54, %v2228_v9  ;;  %3459 = vmatmul.mubr.f32.gmra.mxu1 %v3247_v46  ;;  %v5786_v28 = vadd.f32 %v5785_v45, %v5784_v41  ;;  %v2713_v54 = vld [vmem:[#allocation4 + $0x30] sm:$0xff]  ;;  %v3268_v46 = vld [vmem:[#allocation3 + $0x1e0] sm:$0xff] }
 0x3ae   :  { %3463 = vmatprep.mubr.f32.mxu1 %v8547_v5  ;;  %v5787_v57 = vpop.f32.mrf.mxu1 }
 0x3af   :  { %6396 = vmatmul.mubr.msk.f32.gmra.mxu0 %vm866_vm0, %v8596_v16  ;;  %2278 = vst.msk [vmem:[#allocation4 + $0x78] sm:$0xff] %vm866_vm0, %v2262_v37  ;;  %v2629_v49 = vadd.f32 %v5786_v28, %v2628_v11  ;;  %v3272_v28 = vld [vmem:[#allocation3 + $0x200] sm:$0xff] }
 0x3b0   :  { %6398 = vmatprep.mubr.msk.f32.mxu0 %vm866_vm0, %v8612_v17  ;;  %v5788_v15 = vpop.f32.mrf.mxu1  ;;  %v3256_v17 = vld [vmem:[#allocation3 + $0x180] sm:$0xff] }
 0x3b1   :  { %v2723_v24 = vadd.f32 %v2707_v20, %v2629_v49  ;;  %3464 = vmatmul.mubr.f32.gmra.mxu1 %v8552_v18  ;;  %v5789_v13 = vadd.f32 %v5788_v15, %v5787_v57  ;;  %v3257_v18 = vld [vmem:[#allocation3 + $0x188] sm:$0xff]  ;;  %v2714_v15 = vld [vmem:[#allocation4 + $0x38] sm:$0xff] }
 0x3b2   :  { %3468 = vmatprep.mubr.f32.mxu1 %v3254_v43  ;;  %v5790_v5 = vpop.f32.mrf.mxu1 }
 0x3b3   :  { %6399 = vmatmul.mubr.msk.f32.gmra.mxu0 %vm866_vm0, %v8622_v50  ;;  %2739 = vst.msk [vmem:[#allocation4] sm:$0xff] %vm866_vm0, %v2723_v24  ;;  %v2634_v27 = vadd.f32 %v6302_v47, %v5789_v13  ;;  %v2658_v47 = vpop.f32.mrf.mxu0  ;;  %v3271_v24 = vld [vmem:[#allocation3 + $0x1f8] sm:$0xff] }
 0x3b4   :  { %6401 = vmatprep.mubr.msk.f32.mxu0 %vm866_vm0, %v8637_v10  ;;  %v5791_v48 = vpop.f32.mrf.mxu1  ;;  %v3259_v10 = vld [vmem:[#allocation3 + $0x198] sm:$0xff] }
 0x3b5   :  { %v2724_v26 = vadd.f32 %v2708_v2, %v2634_v27  ;;  %3469 = vmatmul.mubr.f32.gmra.mxu1 %v3253_v39  ;;  %v5792_v16 = vadd.f32 %v5791_v48, %v5790_v5  ;;  %v6314_v57 = vpop.f32.mrf.mxu0  ;;  %v2715_v39 = vld [vmem:[#allocation4 + $0x40] sm:$0xff] }
 0x3b6   :  { %3473 = vmatprep.mubr.f32.mxu1 %v3257_v18  ;;  %v5793_v1 = vpop.f32.mrf.mxu1 }
 0x3b7   :  { %6402 = vmatmul.mubr.msk.f32.gmra.mxu0 %vm866_vm0, %v3279_v44  ;;  %2740 = vst.msk [vmem:[#allocation4 + $0x8] sm:$0xff] %vm866_vm0, %v2724_v26  ;;  %v2639_v40 = vadd.f32 %v5792_v16, %v2638_v25  ;;  %v2668_v5 = vpop.f32.mrf.mxu0 }
 0x3b8   :  { %v5794_v19 = vpop.f32.mrf.mxu1 }
 0x3b9   :  { %v2725_v63 = vadd.f32 %v2709_v4, %v2639_v40  ;;  %3474 = vmatmul.mubr.f32.gmra.mxu1 %v3256_v17  ;;  %v5795_v50 = vadd.f32 %v5794_v19, %v5793_v1  ;;  %v6317_v18 = vpop.f32.mrf.mxu0  ;;  %v2716_v1 = vld [vmem:[#allocation4 + $0x48] sm:$0xff] }
 0x3ba   :  { %3478 = vmatprep.mubr.f32.mxu1 %v3260_v38  ;;  %v5796_v59 = vpop.f32.mrf.mxu1  ;;  %v2717_v38 = vld [vmem:[#allocation4 + $0x50] sm:$0xff] }
 0x3bb   :  { %2741 = vst.msk [vmem:[#allocation4 + $0x10] sm:$0xff] %vm866_vm0, %v2725_v63  ;;  %v2644_v3 = vadd.f32 %v6305_v0, %v5795_v50  ;;  %v2678_v17 = vpop.f32.mrf.mxu0 }
 0x3bc   :  { %v5797_v61 = vpop.f32.mrf.mxu1 }
 0x3bd   :  { %v2726_v60 = vadd.f32 %v2710_v23, %v2644_v3  ;;  %3479 = vmatmul.mubr.f32.gmra.mxu1 %v3259_v10  ;;  %v5798_v56 = vadd.f32 %v5797_v61, %v5796_v59  ;;  %v6320_v59 = vpop.f32.mrf.mxu0  ;;  %v2718_v10 = vld [vmem:[#allocation4 + $0x58] sm:$0xff] }
 0x3be   :  { %3483 = vmatprep.mubr.f32.mxu1 %v3263_v42  ;;  %v5799_v62 = vpop.f32.mrf.mxu1 }
 0x3bf   :  { %2742 = vst.msk [vmem:[#allocation4 + $0x18] sm:$0xff] %vm866_vm0, %v2726_v60  ;;  %v2649_v31 = vadd.f32 %v5798_v56, %v2648_v52  ;;  %v2688_v56 = vpop.f32.mrf.mxu0 }
 0x3c0   :  { %v5800_v14 = vpop.f32.mrf.mxu1 }
 0x3c1   :  { %v2727_v58 = vadd.f32 %v2711_v33, %v2649_v31  ;;  %3484 = vmatmul.mubr.f32.gmra.mxu1 %v3262_v30  ;;  %v5801_v21 = vadd.f32 %v5800_v14, %v5799_v62  ;;  %v2719_v31 = vld [vmem:[#allocation4 + $0x60] sm:$0xff] }
 0x3c2   :  { %3488 = vmatprep.mubr.f32.mxu1 %v3266_v22  ;;  %v5802_v32 = vpop.f32.mrf.mxu1 }
 0x3c3   :  { %2743 = vst.msk [vmem:[#allocation4 + $0x20] sm:$0xff] %vm866_vm0, %v2727_v58  ;;  %v2654_v55 = vadd.f32 %v6308_v36, %v5801_v21  ;;  %v6323_v58 = vpop.f32.mrf.mxu0 }
 0x3c4   :  { %v5803_v51 = vpop.f32.mrf.mxu1 }
 0x3c5   :  { %v2728_v6 = vadd.f32 %v2712_v12, %v2654_v55  ;;  %3489 = vmatmul.mubr.f32.gmra.mxu1 %v3265_v34  ;;  %v5804_v7 = vadd.f32 %v5803_v51, %v5802_v32  ;;  %v2698_v34 = vpop.f32.mrf.mxu0 }
 0x3c6   :  { %3493 = vmatprep.mubr.f32.mxu1 %v3269_v8  ;;  %v5805_v41 = vpop.f32.mrf.mxu1  ;;  %v2721_v8 = vld [vmem:[#allocation4 + $0x70] sm:$0xff] }
 0x3c7   :  { %2744 = vst.msk [vmem:[#allocation4 + $0x28] sm:$0xff] %vm866_vm0, %v2728_v6  ;;  %v2659_v9 = vadd.f32 %v5804_v7, %v2658_v47 }
 0x3c8   :  { %v5806_v45 = vpop.f32.mrf.mxu1 }
 0x3c9   :  { %v2729_v37 = vadd.f32 %v2713_v54, %v2659_v9  ;;  %3494 = vmatmul.mubr.f32.gmra.mxu1 %v3268_v46  ;;  %v5807_v11 = vadd.f32 %v5806_v45, %v5805_v41  ;;  %v2722_v54 = vld [vmem:[#allocation4 + $0x78] sm:$0xff] }
 0x3ca   :  { %3498 = vmatprep.mubr.f32.mxu1 %v3272_v28  ;;  %v5808_v20 = vpop.f32.mrf.mxu1  ;;  %v5888_v28 = vpop.f32.mrf.mxu0 }
 0x3cb   :  { %2745 = vst.msk [vmem:[#allocation4 + $0x30] sm:$0xff] %vm866_vm0, %v2729_v37  ;;  %v2664_v49 = vadd.f32 %v6311_v35, %v5807_v11  ;;  %v2720_v35 = vld [vmem:[#allocation4 + $0x68] sm:$0xff] }
 0x3cc   :  { %v5809_v13 = vpop.f32.mrf.mxu1  ;;  %v5889_v11 = vpop.f32.mrf.mxu0 }
 0x3cd   :  { %v2730_v43 = vadd.f32 %v2714_v15, %v2664_v49  ;;  %3499 = vmatmul.mubr.f32.gmra.mxu1 %v3271_v24  ;;  %v5810_v0 = vadd.f32 %v5809_v13, %v5808_v20 }
 0x3ce   :  { %3503 = vmatprep.mubr.f32.mxu1 %v8459_v53  ;;  %v5891_v20 = vpop.f32.mrf.mxu0 }
 0x3cf   :  { %2746 = vst.msk [vmem:[#allocation4 + $0x38] sm:$0xff] %vm866_vm0, %v2730_v43  ;;  %v5811_v27 = vpop.f32.mrf.mxu1  ;;  %v2669_v2 = vadd.f32 %v5810_v0, %v2668_v5 }
 0x3d0   :  { %v5892_v15 = vpop.f32.mrf.mxu0 }
 0x3d1   :  { %3504 = vmatmul.mubr.f32.gmra.mxu1 %v8461_v29  ;;  %v5812_v48 = vpop.f32.mrf.mxu1  ;;  %v2731_v44 = vadd.f32 %v2715_v39, %v2669_v2  ;;  %v3960_v2 = vld [vmem:[%s10499_s5 + $0x170] sm:$0xff] }
 0x3d2   :  { %v5813_v26 = vadd.f32 %v5812_v48, %v5811_v27  ;;  %v5894_v43 = vpop.f32.mrf.mxu0  ;;  %4315 = vmatprep.subr.mxu1 %v3960_v2 }
 0x3d3   :  { %v5814_v16 = vpop.f32.mrf.mxu1  ;;  %2747 = vst.msk [vmem:[#allocation4 + $0x40] sm:$0xff] %vm866_vm0, %v2731_v44 }
 0x3d4   :  { %v2674_v25 = vadd.f32 %v6314_v57, %v5813_v26  ;;  %v5895_v0 = vpop.f32.mrf.mxu0 }
 0x3d5   :  { %v5815_v40 = vpop.f32.mrf.mxu1 }
 0x3d6   :  { %v2732_v53 = vadd.f32 %v2716_v1, %v2674_v25  ;;  %v5816_v4 = vadd.f32 %v5815_v40, %v5814_v16  ;;  %v5897_v27 = vpop.f32.mrf.mxu0  ;;  %v5893_v40 = vadd.f32 %v5892_v15, %v5891_v20  ;;  %v3190_v20 = vld [vmem:[#allocation4 + $0x38] sm:$0xff] }
 0x3d7   :  { %v5817_v19 = vpop.f32.mrf.mxu1 }
 0x3d8   :  { %2748 = vst.msk [vmem:[#allocation4 + $0x48] sm:$0xff] %vm866_vm0, %v2732_v53  ;;  %v2679_v63 = vadd.f32 %v5816_v4, %v2678_v17  ;;  %v5898_v48 = vpop.f32.mrf.mxu0  ;;  %v5890_v17 = vadd.f32 %v5889_v11, %v5888_v28 }
 0x3d9   :  { %v5818_v50 = vpop.f32.mrf.mxu1 }
 0x3da   :  { %v2733_v29 = vadd.f32 %v2717_v38, %v2679_v63  ;;  %v5819_v36 = vadd.f32 %v5818_v50, %v5817_v19  ;;  %v5900_v26 = vpop.f32.mrf.mxu0  ;;  %v3184_v63 = vld [vmem:[#allocation4 + $0x8] sm:$0xff]  ;;  %v5899_v50 = vadd.f32 %v5898_v48, %v5897_v27 }
 0x3db   :  { %v5820_v3 = vpop.f32.mrf.mxu1 }
 0x3dc   :  { %2749 = vst.msk [vmem:[#allocation4 + $0x50] sm:$0xff] %vm866_vm0, %v2733_v29  ;;  %v2684_v23 = vadd.f32 %v6317_v18, %v5819_v36  ;;  %v5901_v16 = vpop.f32.mrf.mxu0 }
 0x3dd   :  { %v5821_v61 = vpop.f32.mrf.mxu1 }
 0x3de   :  { %v2734_v60 = vadd.f32 %v2718_v10, %v2684_v23  ;;  %v5822_v42 = vadd.f32 %v5821_v61, %v5820_v3  ;;  %v5903_v53 = vpop.f32.mrf.mxu0  ;;  %v3183_v3 = vld [vmem:[#allocation4] sm:$0xff]  ;;  %v5896_v10 = vadd.f32 %v5895_v0, %v5894_v43 }
 0x3df   :  { %v5823_v52 = vpop.f32.mrf.mxu1 }
 0x3e0   :  { %2750 = vst.msk [vmem:[#allocation4 + $0x58] sm:$0xff] %vm866_vm0, %v2734_v60  ;;  %v2689_v62 = vadd.f32 %v5822_v42, %v2688_v56  ;;  %v3186_v56 = vld [vmem:[#allocation4 + $0x18] sm:$0xff] }
 0x3e1   :  { %v5824_v33 = vpop.f32.mrf.mxu1 }
 0x3e2   :  { %v2735_v30 = vadd.f32 %v2719_v31, %v2689_v62  ;;  %v5825_v14 = vadd.f32 %v5824_v33, %v5823_v52 }
 0x3e3   :  { %v5826_v22 = vpop.f32.mrf.mxu1 }
 0x3e4   :  { %2751 = vst.msk [vmem:[#allocation4 + $0x60] sm:$0xff] %vm866_vm0, %v2735_v30  ;;  %v2694_v21 = vadd.f32 %v6320_v59, %v5825_v14  ;;  %v5904_v59 = vpop.f32.mrf.mxu0  ;;  %v3185_v30 = vld [vmem:[#allocation4 + $0x10] sm:$0xff] }
 0x3e5   :  { %v5827_v32 = vpop.f32.mrf.mxu1  ;;  %v5905_v62 = vadd.f32 %v5904_v59, %v5903_v53  ;;  %v3191_v53 = vld [vmem:[#allocation4 + $0x40] sm:$0xff] }
 0x3e6   :  { %v2736_v55 = vadd.f32 %v2720_v35, %v2694_v21  ;;  %v5828_v12 = vadd.f32 %v5827_v32, %v5826_v22  ;;  %v5906_v42 = vpop.f32.mrf.mxu0  ;;  %v3188_v32 = vld [vmem:[#allocation4 + $0x28] sm:$0xff] }
 0x3e7   :  { %v5829_v51 = vpop.f32.mrf.mxu1 }
 0x3e8   :  { %2752 = vst.msk [vmem:[#allocation4 + $0x68] sm:$0xff] %vm866_vm0, %v2736_v55  ;;  %v2699_v6 = vadd.f32 %v5828_v12, %v2698_v34  ;;  %v5907_v35 = vpop.f32.mrf.mxu0 }
 0x3e9   :  { %v5830_v7 = vpop.f32.mrf.mxu1 }
 0x3ea   :  { %v2737_v47 = vadd.f32 %v2721_v8, %v2699_v6  ;;  %v5831_v41 = vadd.f32 %v5830_v7, %v5829_v51  ;;  %v3187_v51 = vld [vmem:[#allocation4 + $0x20] sm:$0xff]  ;;  %v5908_v8 = vadd.f32 %v5907_v35, %v5906_v42 }
 0x3eb   :  { %v8708_v24 = vpop.f32.mrf.mxu1 }
 0x3ec   :  { %2753 = vst.msk [vmem:[#allocation4 + $0x70] sm:$0xff] %vm866_vm0, %v2737_v47  ;;  %v2704_v9 = vadd.f32 %v6323_v58, %v5831_v41  ;;  %v5902_v58 = vadd.f32 %v5901_v16, %v5900_v26 }
 0x3ed   :  { %v8710_v13 = vpop.f32.mrf.mxu1 }
 0x3ee   :  { %v2738_v46 = vadd.f32 %v2722_v54, %v2704_v9  ;;  %v3189_v54 = vld [vmem:[#allocation4 + $0x30] sm:$0xff] }
 0x3ef   :  { %v8712_v5 = vpop.f32.mrf.mxu1 }
 0x3f0   :  { %2754 = vst.msk [vmem:[#allocation4 + $0x78] sm:$0xff] %vm866_vm0, %v2738_v46 }
 0x3f1   :  { %v8717_v39 = vpop.f32.mrf.mxu1 }
 0x3f2   :  { %v5929_v26 = vadd.f32 %v8717_v39, %v8712_v5 }
 0x3f3   :  { %v8719_v44 = vpop.f32.mrf.mxu1 }
 0x3f5   :  { %v8721_v18 = vpop.f32.mrf.mxu1 }
 0x40e   :  { %v1264_v45 = vpop.permute.xlu0 %1263 }
 0x40f   :  { %v1071_v37 = vpop.permute.xlu1 %1070  ;;  %1312 = vst.msk [vmem:[#allocation3 + $0x230] sm:$0xff] %vm1096_vm3, %v1264_v45 }
 0x410   :  { %1120 = vst.msk [vmem:[#allocation3 + $0x228] sm:$0xff] %vm1096_vm3, %v1071_v37 }
 0x416   :  { %v3278_v57 = vld [vmem:[#allocation3 + $0x230] sm:$0xff] }
 0x417   :  { %v3277_v49 = vld [vmem:[#allocation3 + $0x228] sm:$0xff]  ;;  %3508 = vmatprep.mubr.f32.mxu1 %v3278_v57 }
 0x418   :  { %3509 = vmatmul.mubr.f32.gmra.mxu1 %v3277_v49 }
 0x433   :  { %v8723_v25 = vpop.f32.mrf.mxu1 }
 0x435   :  { %v8725_v1 = vpop.f32.mrf.mxu1 }
 0x436   :  { %v5935_v59 = vadd.f32 %v8725_v1, %v8723_v25  ;;  %v3198_v25 = vld [vmem:[#allocation4 + $0x78] sm:$0xff] }
 0x437   :  { %v6342_v4 = vpop.f32.mrf.mxu1 }
 0x438   :  { %v3110_v19 = vadd.f32 %v6342_v4, %v5893_v40 }
 0x439   :  { %v3104_v38 = vpop.f32.mrf.mxu1 }
 0x43a   :  { %v3200_v29 = vadd.f32 %v3184_v63, %v3110_v19  ;;  %v3105_v36 = vadd.f32 %v5890_v17, %v3104_v38  ;;  %v5926_v17 = vadd.f32 %v8710_v13, %v8708_v24  ;;  %v3195_v24 = vld [vmem:[#allocation4 + $0x60] sm:$0xff] }
 0x43b   :  { %v6345_v23 = vpop.f32.mrf.mxu1 }
 0x43c   :  { %3216 = vst.msk [vmem:[#allocation4 + $0x8] sm:$0xff] %vm866_vm0, %v3200_v29  ;;  %v3199_v61 = vadd.f32 %v3183_v3, %v3105_v36  ;;  %v3120_v60 = vadd.f32 %v6345_v23, %v5899_v50  ;;  %v3196_v29 = vld [vmem:[#allocation4 + $0x68] sm:$0xff]  ;;  %v5932_v23 = vadd.f32 %v8721_v18, %v8719_v44 }
 0x43d   :  { %v3114_v52 = vpop.f32.mrf.mxu1 }
 0x43e   :  { %3215 = vst.msk [vmem:[#allocation4] sm:$0xff] %vm866_vm0, %v3199_v61  ;;  %v3202_v31 = vadd.f32 %v3186_v56, %v3120_v60  ;;  %v3115_v33 = vadd.f32 %v5896_v10, %v3114_v52  ;;  %v3192_v10 = vld [vmem:[#allocation4 + $0x48] sm:$0xff] }
 0x43f   :  { %v6348_v14 = vpop.f32.mrf.mxu1 }
 0x440   :  { %3218 = vst.msk [vmem:[#allocation4 + $0x18] sm:$0xff] %vm866_vm0, %v3202_v31  ;;  %v3201_v22 = vadd.f32 %v3185_v30, %v3115_v33  ;;  %v3130_v21 = vadd.f32 %v6348_v14, %v5905_v62  ;;  %v3193_v33 = vld [vmem:[#allocation4 + $0x50] sm:$0xff] }
 0x441   :  { %v3124_v55 = vpop.f32.mrf.mxu1  ;;  %v3197_v14 = vld [vmem:[#allocation4 + $0x70] sm:$0xff] }
 0x442   :  { %3217 = vst.msk [vmem:[#allocation4 + $0x10] sm:$0xff] %vm866_vm0, %v3201_v22  ;;  %v3204_v12 = vadd.f32 %v3188_v32, %v3130_v21  ;;  %v3125_v34 = vadd.f32 %v5902_v58, %v3124_v55  ;;  %v3959_v22 = vld [vmem:[%s10499_s5 + $0x168] sm:$0xff]  ;;  %v3957_v21 = vld [vmem:[%s10499_s5 + $0x158] sm:$0xff] }
 0x443   :  { %v6351_v6 = vpop.f32.mrf.mxu1  ;;  %4316 = vmatpush1.msra.mxu1 %v3959_v22  ;;  %v3932_v22 = vld [vmem:[%s10499_s5 + $0x90] sm:$0xff] }
 0x444   :  { %3220 = vst.msk [vmem:[#allocation4 + $0x28] sm:$0xff] %vm866_vm0, %v3204_v12  ;;  %v3203_v7 = vadd.f32 %v3187_v51, %v3125_v34  ;;  %4317 = vmatprep.subr.mxu1 %v3957_v21  ;;  %v4040_v21 = vld [vmem:[%s10499_s5 + $0x3f0] sm:$0xff] }
 0x445   :  { %v3134_v47 = vpop.f32.mrf.mxu1 }
 0x446   :  { %3219 = vst.msk [vmem:[#allocation4 + $0x20] sm:$0xff] %vm866_vm0, %v3203_v7  ;;  %v3135_v9 = vadd.f32 %v5908_v8, %v3134_v47  ;;  %v3194_v8 = vld [vmem:[#allocation4 + $0x58] sm:$0xff] }
 0x447   :  { %v5909_v41 = vpop.f32.mrf.mxu0  ;;  %v6354_v46 = vpop.f32.mrf.mxu1 }
 0x448   :  { %v3205_v37 = vadd.f32 %v3189_v54, %v3135_v9  ;;  %v3956_v54 = vld [vmem:[%s10499_s5 + $0x150] sm:$0xff] }
 0x449   :  { %v5910_v45 = vpop.f32.mrf.mxu0  ;;  %v3144_v11 = vpop.f32.mrf.mxu1  ;;  %4318 = vmatpush1.msra.mxu1 %v3956_v54 }
 0x44a   :  { %v5911_v28 = vadd.f32 %v5910_v45, %v5909_v41  ;;  %3221 = vst.msk [vmem:[#allocation4 + $0x30] sm:$0xff] %vm866_vm0, %v3205_v37  ;;  %v3954_v45 = vld [vmem:[%s10499_s5 + $0x140] sm:$0xff] }
 0x44b   :  { %v5912_v57 = vpop.f32.mrf.mxu0  ;;  %4319 = vmatprep.subr.mxu1 %v3954_v45  ;;  %v4034_v45 = vld [vmem:[%s10499_s5 + $0x3c0] sm:$0xff] }
 0x44c   :  { %v3140_v49 = vadd.f32 %v6351_v6, %v5911_v28  ;;  %v6357_v43 = vpop.f32.mrf.mxu1 }
 0x44d   :  { %v5913_v15 = vpop.f32.mrf.mxu0 }
 0x44e   :  { %v3206_v0 = vadd.f32 %v3190_v20, %v3140_v49  ;;  %v5914_v27 = vadd.f32 %v5913_v15, %v5912_v57  ;;  %v3154_v48 = vpop.f32.mrf.mxu1  ;;  %v3951_v49 = vld [vmem:[%s10499_s5 + $0x128] sm:$0xff] }
 0x44f   :  { %v5915_v2 = vpop.f32.mrf.mxu0 }
 0x450   :  { %3222 = vst.msk [vmem:[#allocation4 + $0x38] sm:$0xff] %vm866_vm0, %v3206_v0  ;;  %v3145_v16 = vadd.f32 %v5914_v27, %v3144_v11  ;;  %v3953_v11 = vld [vmem:[%s10499_s5 + $0x138] sm:$0xff]  ;;  %v3948_v0 = vld [vmem:[%s10499_s5 + $0x110] sm:$0xff]  ;;  %v3947_v27 = vld [vmem:[%s10499_s5 + $0x108] sm:$0xff] }
 0x451   :  { %v5916_v40 = vpop.f32.mrf.mxu0  ;;  %v6360_v4 = vpop.f32.mrf.mxu1  ;;  %4320 = vmatpush1.msra.mxu1 %v3953_v11  ;;  %v3924_v11 = vld [vmem:[%s10499_s5 + $0x50] sm:$0xff] }
 0x452   :  { %v5917_v19 = vadd.f32 %v5916_v40, %v5915_v2  ;;  %v3207_v63 = vadd.f32 %v3191_v53, %v3145_v16  ;;  %v3170_v38 = vadd.f32 %v6360_v4, %v5929_v26  ;;  %4321 = vmatprep.subr.mxu1 %v3951_v49  ;;  %v4056_v26 = vld [vmem:[%s10499_s5 + $0x470] sm:$0xff]  ;;  %v3945_v40 = vld [vmem:[%s10499_s5 + $0xf8] sm:$0xff]  ;;  %v4055_v53 = vld [vmem:[%s10499_s5 + $0x468] sm:$0xff] }
 0x453   :  { %v5918_v50 = vpop.f32.mrf.mxu0  ;;  %v3164_v36 = vpop.f32.mrf.mxu1  ;;  %4386 = vmatprep.subr.mxu0 %v4056_v26  ;;  %v3944_v4 = vld [vmem:[%s10499_s5 + $0xf0] sm:$0xff] }
 0x454   :  { %v3150_v3 = vadd.f32 %v6354_v46, %v5917_v19  ;;  %3223 = vst.msk [vmem:[#allocation4 + $0x40] sm:$0xff] %vm866_vm0, %v3207_v63  ;;  %v3212_v5 = vadd.f32 %v3196_v29, %v3170_v38  ;;  %v3165_v39 = vadd.f32 %v5926_v17, %v3164_v36  ;;  %v3659_v46 = vld [vmem:[#allocation4] sm:$0xff]  ;;  %4387 = vmatpush1.msra.mxu0 %v4055_v53  ;;  %v4053_v63 = vld [vmem:[%s10499_s5 + $0x458] sm:$0xff] }
 0x455   :  { %v5919_v61 = vpop.f32.mrf.mxu0  ;;  %v6363_v13 = vpop.f32.mrf.mxu1  ;;  %v3942_v38 = vld [vmem:[%s10499_s5 + $0xe0] sm:$0xff]  ;;  %4388 = vmatprep.subr.mxu0 %v4053_v63 }
 0x456   :  { %v3208_v60 = vadd.f32 %v3192_v10, %v3150_v3  ;;  %v5920_v42 = vadd.f32 %v5919_v61, %v5918_v50  ;;  %3228 = vst.msk [vmem:[#allocation4 + $0x68] sm:$0xff] %vm866_vm0, %v3212_v5  ;;  %v3211_v56 = vadd.f32 %v3195_v24, %v3165_v39  ;;  %v3180_v52 = vadd.f32 %v6363_v13, %v5935_v59  ;;  %v4052_v50 = vld [vmem:[%s10499_s5 + $0x450] sm:$0xff]  ;;  %v3941_v59 = vld [vmem:[%s10499_s5 + $0xd8] sm:$0xff]  ;;  %v4050_v3 = vld [vmem:[%s10499_s5 + $0x440] sm:$0xff] }
 0x457   :  { %v5921_v62 = vpop.f32.mrf.mxu0  ;;  %v3174_v1 = vpop.f32.mrf.mxu1  ;;  %v3661_v39 = vld [vmem:[#allocation4 + $0x10] sm:$0xff]  ;;  %4389 = vmatpush1.msra.mxu0 %v4052_v50  ;;  %v4049_v10 = vld [vmem:[%s10499_s5 + $0x438] sm:$0xff]  ;;  %v3938_v24 = vld [vmem:[%s10499_s5 + $0xc0] sm:$0xff] }
 0x458   :  { %3224 = vst.msk [vmem:[#allocation4 + $0x48] sm:$0xff] %vm866_vm0, %v3208_v60  ;;  %v3155_v31 = vadd.f32 %v5920_v42, %v3154_v48  ;;  %3227 = vst.msk [vmem:[#allocation4 + $0x60] sm:$0xff] %vm866_vm0, %v3211_v56  ;;  %v3214_v44 = vadd.f32 %v3198_v25, %v3180_v52  ;;  %v3175_v18 = vadd.f32 %v5932_v23, %v3174_v1  ;;  %v3660_v48 = vld [vmem:[#allocation4 + $0x8] sm:$0xff]  ;;  %4390 = vmatprep.subr.mxu0 %v4050_v3  ;;  %v4046_v60 = vld [vmem:[%s10499_s5 + $0x420] sm:$0xff] }
 0x459   :  { %v5922_v30 = vpop.f32.mrf.mxu0  ;;  %v5992_v58 = vpop.f32.mrf.mxu1  ;;  %v3939_v23 = vld [vmem:[%s10499_s5 + $0xc8] sm:$0xff]  ;;  %4391 = vmatpush1.msra.mxu0 %v4049_v10  ;;  %v3936_v52 = vld [vmem:[%s10499_s5 + $0xb0] sm:$0xff]  ;;  %v3917_v50 = vld [vmem:[%s10499_s5 + $0x18] sm:$0xff] }
 0x45a   :  { %v3209_v35 = vadd.f32 %v3193_v33, %v3155_v31  ;;  %v5923_v32 = vadd.f32 %v5922_v30, %v5921_v62  ;;  %3230 = vst.msk [vmem:[#allocation4 + $0x78] sm:$0xff] %vm866_vm0, %v3214_v44  ;;  %v3213_v55 = vadd.f32 %v3197_v14, %v3175_v18  ;;  %v4047_v13 = vld [vmem:[%s10499_s5 + $0x428] sm:$0xff]  ;;  %v4044_v62 = vld [vmem:[%s10499_s5 + $0x410] sm:$0xff]  ;;  %v3933_v18 = vld [vmem:[%s10499_s5 + $0x98] sm:$0xff] }
 0x45b   :  { %v6382_v12 = vpop.f32.mrf.mxu0  ;;  %v5993_v34 = vpop.f32.mrf.mxu1  ;;  %4392 = vmatprep.subr.mxu0 %v4047_v13  ;;  %v3935_v31 = vld [vmem:[%s10499_s5 + $0xa8] sm:$0xff]  ;;  %v4041_v30 = vld [vmem:[%s10499_s5 + $0x3f8] sm:$0xff]  ;;  %v4022_v10 = vld [vmem:[%s10499_s5 + $0x360] sm:$0xff] }
 0x45c   :  { %3225 = vst.msk [vmem:[#allocation4 + $0x50] sm:$0xff] %vm866_vm0, %v3209_v35  ;;  %v3160_v51 = vadd.f32 %v6357_v43, %v5923_v32  ;;  %3229 = vst.msk [vmem:[#allocation4 + $0x70] sm:$0xff] %vm866_vm0, %v3213_v55  ;;  %v5994_v6 = vadd.f32 %v5993_v34, %v5992_v58  ;;  %v3950_v43 = vld [vmem:[%s10499_s5 + $0x120] sm:$0xff]  ;;  %v4043_v33 = vld [vmem:[%s10499_s5 + $0x408] sm:$0xff]  ;;  %4393 = vmatpush1.msra.mxu0 %v4046_v60 }
 0x45d   :  { %v3580_v7 = vpop.f32.mrf.mxu0  ;;  %v5995_v9 = vpop.f32.mrf.mxu1  ;;  %4322 = vmatpush1.msra.mxu1 %v3950_v43  ;;  %v3662_v14 = vld [vmem:[#allocation4 + $0x18] sm:$0xff]  ;;  %4394 = vmatprep.subr.mxu0 %v4044_v62  ;;  %v3930_v55 = vld [vmem:[%s10499_s5 + $0x80] sm:$0xff]  ;;  %v4031_v43 = vld [vmem:[%s10499_s5 + $0x3a8] sm:$0xff] }
 0x45e   :  { %v3210_v47 = vadd.f32 %v3194_v8, %v3160_v51  ;;  %v3581_v41 = vadd.f32 %v5994_v6, %v3580_v7  ;;  %4323 = vmatprep.subr.mxu1 %v3948_v0  ;;  %4395 = vmatpush1.msra.mxu0 %v4043_v33  ;;  %v3929_v6 = vld [vmem:[%s10499_s5 + $0x78] sm:$0xff]  ;;  %v4023_v3 = vld [vmem:[%s10499_s5 + $0x368] sm:$0xff]  ;;  %v4008_v13 = vld [vmem:[%s10499_s5 + $0x2f0] sm:$0xff] }
 0x45f   :  { %v5996_v28 = vpop.f32.mrf.mxu1  ;;  %v6385_v20 = vpop.f32.mrf.mxu0  ;;  %4324 = vmatpush1.msra.mxu1 %v3947_v27  ;;  %4396 = vmatprep.subr.mxu0 %v4041_v30  ;;  %v4037_v8 = vld [vmem:[%s10499_s5 + $0x3d8] sm:$0xff]  ;;  %v4020_v60 = vld [vmem:[%s10499_s5 + $0x350] sm:$0xff]  ;;  %v4019_v62 = vld [vmem:[%s10499_s5 + $0x348] sm:$0xff] }
 0x460   :  { %3226 = vst.msk [vmem:[#allocation4 + $0x58] sm:$0xff] %vm866_vm0, %v3210_v47  ;;  %v3675_v37 = vadd.f32 %v3659_v46, %v3581_v41  ;;  %v5997_v57 = vadd.f32 %v5996_v28, %v5995_v9  ;;  %4325 = vmatprep.subr.mxu1 %v3945_v40  ;;  %4397 = vmatpush1.msra.mxu0 %v4040_v21  ;;  %v3927_v47 = vld [vmem:[%s10499_s5 + $0x68] sm:$0xff]  ;;  %v3663_v9 = vld [vmem:[#allocation4 + $0x20] sm:$0xff]  ;;  %v3921_v27 = vld [vmem:[%s10499_s5 + $0x38] sm:$0xff] }
 0x461   :  { %v5998_v15 = vpop.f32.mrf.mxu1  ;;  %v3590_v29 = vpop.f32.mrf.mxu0  ;;  %4326 = vmatpush1.msra.mxu1 %v3944_v4  ;;  %v4035_v41 = vld [vmem:[%s10499_s5 + $0x3c8] sm:$0xff]  ;;  %v3926_v46 = vld [vmem:[%s10499_s5 + $0x60] sm:$0xff]  ;;  %v4028_v40 = vld [vmem:[%s10499_s5 + $0x390] sm:$0xff] }
 0x462   :  { %3691 = vst.msk [vmem:[#allocation4] sm:$0xff] %vm866_vm0, %v3675_v37  ;;  %v3586_v2 = vadd.f32 %v6382_v12, %v5997_v57  ;;  %4327 = vmatprep.subr.mxu1 %v3942_v38  ;;  %v4038_v12 = vld [vmem:[%s10499_s5 + $0x3e0] sm:$0xff]  ;;  %v4032_v57 = vld [vmem:[%s10499_s5 + $0x3b0] sm:$0xff]  ;;  %v3666_v33 = vld [vmem:[#allocation4 + $0x38] sm:$0xff] }
 0x463   :  { %v5999_v16 = vpop.f32.mrf.mxu1  ;;  %4328 = vmatpush1.msra.mxu1 %v3941_v59  ;;  %v6388_v25 = vpop.f32.mrf.mxu0  ;;  %4398 = vmatprep.subr.mxu0 %v4038_v12  ;;  %v3915_v59 = vld [vmem:[%s10499_s5 + $0x8] sm:$0xff]  ;;  %v4016_v30 = vld [vmem:[%s10499_s5 + $0x330] sm:$0xff]  ;;  %v4014_v21 = vld [vmem:[%s10499_s5 + $0x320] sm:$0xff] }
 0x464   :  { %v3676_v17 = vadd.f32 %v3660_v48, %v3586_v2  ;;  %v6000_v19 = vadd.f32 %v5999_v16, %v5998_v15  ;;  %4329 = vmatprep.subr.mxu1 %v3939_v23  ;;  %4399 = vmatpush1.msra.mxu0 %v4037_v8  ;;  %v3923_v15 = vld [vmem:[%s10499_s5 + $0x48] sm:$0xff]  ;;  %v4029_v2 = vld [vmem:[%s10499_s5 + $0x398] sm:$0xff]  ;;  %v3920_v16 = vld [vmem:[%s10499_s5 + $0x30] sm:$0xff] }
 0x465   :  { %v6001_v36 = vpop.f32.mrf.mxu1  ;;  %4330 = vmatpush1.msra.mxu1 %v3938_v24  ;;  %v3600_v34 = vpop.f32.mrf.mxu0  ;;  %4400 = vmatprep.subr.mxu0 %v4035_v41  ;;  %v3664_v48 = vld [vmem:[#allocation4 + $0x28] sm:$0xff]  ;;  %v3914_v23 = vld [vmem:[%s10499_s5] sm:$0xff]  ;;  %v4013_v12 = vld [vmem:[%s10499_s5 + $0x318] sm:$0xff] }
 0x466   :  { %3692 = vst.msk [vmem:[#allocation4 + $0x8] sm:$0xff] %vm866_vm0, %v3676_v17  ;;  %v3591_v5 = vadd.f32 %v6000_v19, %v3590_v29  ;;  %4331 = vmatprep.subr.mxu1 %v3936_v52  ;;  %4401 = vmatpush1.msra.mxu0 %v4034_v45  ;;  %v3918_v17 = vld [vmem:[%s10499_s5 + $0x20] sm:$0xff]  ;;  %v4025_v29 = vld [vmem:[%s10499_s5 + $0x378] sm:$0xff]  ;;  %v4007_v52 = vld [vmem:[%s10499_s5 + $0x2e8] sm:$0xff] }
 0x467   :  { %v6002_v61 = vpop.f32.mrf.mxu1  ;;  %4332 = vmatpush1.msra.mxu1 %v3935_v31  ;;  %v6391_v49 = vpop.f32.mrf.mxu0  ;;  %4402 = vmatprep.subr.mxu0 %v4032_v57  ;;  %v4026_v19 = vld [vmem:[%s10499_s5 + $0x380] sm:$0xff]  ;;  %v4017_v31 = vld [vmem:[%s10499_s5 + $0x338] sm:$0xff]  ;;  %v4104_v45 = vld [vmem:[%s10499_s5 + $0x5f0] sm:$0xff] }
 0x468   :  { %v3677_v42 = vadd.f32 %v3661_v39, %v3591_v5  ;;  %v6003_v56 = vadd.f32 %v6002_v61, %v6001_v36  ;;  %4333 = vmatprep.subr.mxu1 %v3933_v18  ;;  %4403 = vmatpush1.msra.mxu0 %v4031_v43  ;;  %v3665_v5 = vld [vmem:[#allocation4 + $0x30] sm:$0xff]  ;;  %v3667_v8 = vld [vmem:[#allocation4 + $0x40] sm:$0xff]  ;;  %v4103_v57 = vld [vmem:[%s10499_s5 + $0x5e8] sm:$0xff] }
 0x469   :  { %v6004_v1 = vpop.f32.mrf.mxu1  ;;  %4334 = vmatpush1.msra.mxu1 %v3932_v22  ;;  %v3610_v63 = vpop.f32.mrf.mxu0  ;;  %4404 = vmatprep.subr.mxu0 %v4029_v2  ;;  %v4004_v18 = vld [vmem:[%s10499_s5 + $0x2d0] sm:$0xff]  ;;  %v4002_v22 = vld [vmem:[%s10499_s5 + $0x2c0] sm:$0xff]  ;;  %v3668_v43 = vld [vmem:[#allocation4 + $0x48] sm:$0xff] }
 0x46a   :  { %3693 = vst.msk [vmem:[#allocation4 + $0x10] sm:$0xff] %vm866_vm0, %v3677_v42  ;;  %v3596_v44 = vadd.f32 %v6385_v20, %v6003_v56  ;;  %4335 = vmatprep.subr.mxu1 %v3930_v55  ;;  %4405 = vmatpush1.msra.mxu0 %v4028_v40  ;;  %v4001_v55 = vld [vmem:[%s10499_s5 + $0x2b8] sm:$0xff]  ;;  %v4010_v41 = vld [vmem:[%s10499_s5 + $0x300] sm:$0xff]  ;;  %v4100_v2 = vld [vmem:[%s10499_s5 + $0x5d0] sm:$0xff] }
 0x46b   :  { %v6005_v58 = vpop.f32.mrf.mxu1  ;;  %4336 = vmatpush1.msra.mxu1 %v3929_v6  ;;  %4406 = vmatprep.subr.mxu0 %v4026_v19  ;;  %v6394_v42 = vpop.f32.mrf.mxu0  ;;  %v4011_v6 = vld [vmem:[%s10499_s5 + $0x308] sm:$0xff]  ;;  %v3990_v40 = vld [vmem:[%s10499_s5 + $0x260] sm:$0xff]  ;;  %v3989_v19 = vld [vmem:[%s10499_s5 + $0x258] sm:$0xff] }
 0x46c   :  { %v3678_v35 = vadd.f32 %v3662_v14, %v3596_v44  ;;  %v6006_v32 = vadd.f32 %v6005_v58, %v6004_v1  ;;  %4337 = vmatprep.subr.mxu1 %v3927_v47  ;;  %4407 = vmatpush1.msra.mxu0 %v4025_v29  ;;  %v4005_v1 = vld [vmem:[%s10499_s5 + $0x2d8] sm:$0xff]  ;;  %v3998_v47 = vld [vmem:[%s10499_s5 + $0x2a0] sm:$0xff]  ;;  %v3987_v29 = vld [vmem:[%s10499_s5 + $0x248] sm:$0xff] }
 0x46d   :  { %v6007_v51 = vpop.f32.mrf.mxu1  ;;  %4338 = vmatpush1.msra.mxu1 %v3926_v46  ;;  %4408 = vmatprep.subr.mxu0 %v4023_v3  ;;  %v3996_v46 = vld [vmem:[%s10499_s5 + $0x290] sm:$0xff] }
 0x46e   :  { %3694 = vst.msk [vmem:[#allocation4 + $0x18] sm:$0xff] %vm866_vm0, %v3678_v35  ;;  %v3601_v7 = vadd.f32 %v6006_v32, %v3600_v34  ;;  %4339 = vmatprep.subr.mxu1 %v3924_v11  ;;  %4409 = vmatpush1.msra.mxu0 %v4022_v10  ;;  %v3620_v35 = vpop.f32.mrf.mxu0  ;;  %v3995_v11 = vld [vmem:[%s10499_s5 + $0x288] sm:$0xff] }
 0x46f   :  { %v6008_v54 = vpop.f32.mrf.mxu1  ;;  %4340 = vmatpush1.msra.mxu1 %v3923_v15  ;;  %4410 = vmatprep.subr.mxu0 %v4020_v60  ;;  %v4101_v15 = vld [vmem:[%s10499_s5 + $0x5d8] sm:$0xff] }
 0x470   :  { %v3679_v37 = vadd.f32 %v3663_v9, %v3601_v7  ;;  %v6009_v28 = vadd.f32 %v6008_v54, %v6007_v51  ;;  %4341 = vmatprep.subr.mxu1 %v3921_v27  ;;  %4411 = vmatpush1.msra.mxu0 %v4019_v62  ;;  %v3999_v51 = vld [vmem:[%s10499_s5 + $0x2a8] sm:$0xff]  ;;  %v3992_v27 = vld [vmem:[%s10499_s5 + $0x270] sm:$0xff] }
 0x471   :  { %v6010_v20 = vpop.f32.mrf.mxu1  ;;  %4342 = vmatpush1.msra.mxu1 %v3920_v16  ;;  %4412 = vmatprep.subr.mxu0 %v4017_v31  ;;  %v3708_v16 = vld [vmem:[#allocation4 + $0x8] sm:$0xff]  ;;  %v3981_v31 = vld [vmem:[%s10499_s5 + $0x218] sm:$0xff] }
 0x472   :  { %3695 = vst.msk [vmem:[#allocation4 + $0x20] sm:$0xff] %vm866_vm0, %v3679_v37  ;;  %v3606_v0 = vadd.f32 %v6388_v25, %v6009_v28  ;;  %4343 = vmatprep.subr.mxu1 %v3918_v17  ;;  %4413 = vmatpush1.msra.mxu0 %v4016_v30  ;;  %v6397_v37 = vpop.f32.mrf.mxu0  ;;  %v4091_v62 = vld [vmem:[%s10499_s5 + $0x588] sm:$0xff]  ;;  %v3709_v30 = vld [vmem:[#allocation4 + $0x10] sm:$0xff] }
 0x473   :  { %v6011_v26 = vpop.f32.mrf.mxu1  ;;  %4344 = vmatpush1.msra.mxu1 %v3917_v50  ;;  %4414 = vmatprep.subr.mxu0 %v4014_v21  ;;  %v3707_v50 = vld [vmem:[#allocation4] sm:$0xff] }
 0x474   :  { %v3680_v53 = vadd.f32 %v3664_v48, %v3606_v0  ;;  %v6012_v4 = vadd.f32 %v6011_v26, %v6010_v20  ;;  %4345 = vmatprep.subr.mxu1 %v3915_v59  ;;  %4415 = vmatpush1.msra.mxu0 %v4013_v12  ;;  %v3993_v20 = vld [vmem:[%s10499_s5 + $0x278] sm:$0xff]  ;;  %v3669_v59 = vld [vmem:[#allocation4 + $0x50] sm:$0xff] }
 0x475   :  { %v6013_v38 = vpop.f32.mrf.mxu1  ;;  %4346 = vmatpush1.msra.mxu1 %v3914_v23  ;;  %4416 = vmatprep.subr.mxu0 %v4011_v6  ;;  %v4094_v23 = vld [vmem:[%s10499_s5 + $0x5a0] sm:$0xff] }
 0x476   :  { %3696 = vst.msk [vmem:[#allocation4 + $0x28] sm:$0xff] %vm866_vm0, %v3680_v53  ;;  %v3611_v36 = vadd.f32 %v6012_v4, %v3610_v63  ;;  %4347 = vmatprep.subr.mxu1 %v4008_v13  ;;  %4417 = vmatpush1.msra.mxu0 %v4010_v41  ;;  %v4098_v53 = vld [vmem:[%s10499_s5 + $0x5c0] sm:$0xff]  ;;  %v3630_v4 = vpop.f32.mrf.mxu0  ;;  %v4097_v63 = vld [vmem:[%s10499_s5 + $0x5b8] sm:$0xff]  ;;  %v4092_v13 = vld [vmem:[%s10499_s5 + $0x590] sm:$0xff] }
 0x477   :  { %v6014_v39 = vpop.f32.mrf.mxu1  ;;  %4348 = vmatpush2.msra.mxu1 %v4007_v52  ;;  %4418 = vmatprep.subr.mxu0 %v4104_v45  ;;  %v3983_v52 = vld [vmem:[%s10499_s5 + $0x228] sm:$0xff] }
 0x478   :  { %v3681_v61 = vadd.f32 %v3665_v5, %v3611_v36  ;;  %v6015_v24 = vadd.f32 %v6014_v39, %v6013_v38  ;;  %4349 = vmatprep.subr.mxu1 %v4005_v1  ;;  %4419 = vmatpush2.msra.mxu0 %v4103_v57  ;;  %v4095_v36 = vld [vmem:[%s10499_s5 + $0x5a8] sm:$0xff]  ;;  %v3723_v5 = vmax.f32 %v3707_v50, %v3708_v16  ;;  %v3986_v39 = vld [vmem:[%s10499_s5 + $0x240] sm:$0xff]  ;;  %v9028_v60 = vpop.f32.mrf.mxu0  ;;  %v3710_v1 = vld [vmem:[#allocation4 + $0x18] sm:$0xff] }
 0x479   :  { %v6016_v56 = vpop.f32.mrf.mxu1  ;;  %4350 = vmatpush2.msra.mxu1 %v4004_v18  ;;  %4420 = vmatprep.subr.mxu0 %v4101_v15  ;;  %v3972_v15 = vld [vmem:[%s10499_s5 + $0x1d0] sm:$0xff] }
 0x47a   :  { %3697 = vst.msk [vmem:[#allocation4 + $0x30] sm:$0xff] %vm866_vm0, %v3681_v61  ;;  %v3616_v25 = vadd.f32 %v6391_v49, %v6015_v24  ;;  %4351 = vmatprep.subr.mxu1 %v4002_v22  ;;  %4421 = vmatpush2.msra.mxu0 %v4100_v2  ;;  %v3984_v24 = vld [vmem:[%s10499_s5 + $0x230] sm:$0xff]  ;;  %v3727_v18 = vrot.slane %v3723_v5, 1  ;;  %v3640_v12 = vpop.f32.mrf.mxu0 }
 0x47b   :  { %v6017_v44 = vpop.f32.mrf.mxu1  ;;  %4352 = vmatpush2.msra.mxu1 %v4001_v55  ;;  %4422 = vmatprep.subr.mxu0 %v4098_v53  ;;  %v4086_v55 = vld [vmem:[%s10499_s5 + $0x560] sm:$0xff]  ;;  %v3969_v53 = vld [vmem:[%s10499_s5 + $0x1b8] sm:$0xff]  ;;  %v3968_v50 = vld [vmem:[%s10499_s5 + $0x1b0] sm:$0xff] }
 0x47c   :  { %v3682_v14 = vadd.f32 %v3666_v33, %v3616_v25  ;;  %v6018_v58 = vadd.f32 %v6017_v44, %v6016_v56  ;;  %4353 = vmatprep.subr.mxu1 %v3999_v51  ;;  %4423 = vmatpush2.msra.mxu0 %v4097_v63  ;;  %v4089_v33 = vld [vmem:[%s10499_s5 + $0x578] sm:$0xff] }
 0x47d   :  { %v6019_v32 = vpop.f32.mrf.mxu1  ;;  %4354 = vmatpush2.msra.mxu1 %v3998_v47  ;;  %4424 = vmatprep.subr.mxu0 %v4095_v36 }
 0x47e   :  { %3698 = vst.msk [vmem:[#allocation4 + $0x38] sm:$0xff] %vm866_vm0, %v3682_v14  ;;  %v3621_v34 = vadd.f32 %v6018_v58, %v3620_v35  ;;  %4355 = vmatprep.subr.mxu1 %v3996_v46  ;;  %4425 = vmatpush2.msra.mxu0 %v4094_v23  ;;  %v3980_v14 = vld [vmem:[%s10499_s5 + $0x210] sm:$0xff]  ;;  %v3978_v35 = vld [vmem:[%s10499_s5 + $0x200] sm:$0xff] }
 0x47f   :  { %v6020_v7 = vpop.f32.mrf.mxu1  ;;  %4356 = vmatpush2.msra.mxu1 %v3995_v11  ;;  %4426 = vmatprep.subr.mxu0 %v4092_v13  ;;  %v4088_v58 = vld [vmem:[%s10499_s5 + $0x570] sm:$0xff]  ;;  %v3671_v46 = vld [vmem:[#allocation4 + $0x60] sm:$0xff] }
 0x480   :  { %v3683_v9 = vadd.f32 %v3667_v8, %v3621_v34  ;;  %v6021_v54 = vadd.f32 %v6020_v7, %v6019_v32  ;;  %4357 = vmatprep.subr.mxu1 %v3993_v20  ;;  %4427 = vmatpush2.msra.mxu0 %v4091_v62  ;;  %v3977_v32 = vld [vmem:[%s10499_s5 + $0x1f8] sm:$0xff]  ;;  %v3733_v8 = vmax.f32 %v3709_v30, %v3710_v1  ;;  %v4082_v11 = vld [vmem:[%s10499_s5 + $0x540] sm:$0xff] }
 0x481   :  { %v6022_v28 = vpop.f32.mrf.mxu1  ;;  %4358 = vmatpush2.msra.mxu1 %v3992_v27  ;;  %4428 = vmatprep.subr.mxu0 %v4089_v33  ;;  %v4085_v7 = vld [vmem:[%s10499_s5 + $0x558] sm:$0xff] }
 0x482   :  { %3699 = vst.msk [vmem:[#allocation4 + $0x40] sm:$0xff] %vm866_vm0, %v3683_v9  ;;  %v3626_v49 = vadd.f32 %v6394_v42, %v6021_v54  ;;  %4359 = vmatprep.subr.mxu1 %v3990_v40  ;;  %v3670_v42 = vld [vmem:[#allocation4 + $0x58] sm:$0xff]  ;;  %4429 = vmatpush2.msra.mxu0 %v4088_v58  ;;  %v3975_v9 = vld [vmem:[%s10499_s5 + $0x1e8] sm:$0xff]  ;;  %v3737_v2 = vrot.slane %v3733_v8, 1 }
 0x483   :  { %v6023_v0 = vpop.f32.mrf.mxu1  ;;  %4360 = vmatpush2.msra.mxu1 %v3989_v19  ;;  %v4083_v54 = vld [vmem:[%s10499_s5 + $0x548] sm:$0xff]  ;;  %4430 = vmatprep.subr.mxu0 %v4086_v55  ;;  %v3965_v33 = vld [vmem:[%s10499_s5 + $0x198] sm:$0xff]  ;;  %v3962_v55 = vld [vmem:[%s10499_s5 + $0x180] sm:$0xff] }
 0x484   :  { %v3684_v48 = vadd.f32 %v3668_v43, %v3626_v49  ;;  %v6024_v26 = vadd.f32 %v6023_v0, %v6022_v28  ;;  %4361 = vmatprep.subr.mxu1 %v3987_v29  ;;  %v3974_v28 = vld [vmem:[%s10499_s5 + $0x1e0] sm:$0xff]  ;;  %4431 = vmatpush2.msra.mxu0 %v4085_v7  ;;  %v4080_v43 = vld [vmem:[%s10499_s5 + $0x530] sm:$0xff]  ;;  %v9082_v0 = vpop.f32.mrf.mxu0 }
 0x485   :  { %v6025_v17 = vpop.f32.mrf.mxu1  ;;  %4362 = vmatpush2.msra.mxu1 %v3986_v39  ;;  %4432 = vmatprep.subr.mxu0 %v4083_v54  ;;  %v3966_v39 = vld [vmem:[%s10499_s5 + $0x1a0] sm:$0xff] }
 0x486   :  { %3700 = vst.msk [vmem:[#allocation4 + $0x48] sm:$0xff] %vm866_vm0, %v3684_v48  ;;  %v3631_v38 = vadd.f32 %v6024_v26, %v3630_v4  ;;  %4363 = vmatprep.subr.mxu1 %v3984_v24  ;;  %v3971_v48 = vld [vmem:[%s10499_s5 + $0x1c8] sm:$0xff]  ;;  %4433 = vmatpush2.msra.mxu0 %v4082_v11  ;;  %v4077_v4 = vld [vmem:[%s10499_s5 + $0x518] sm:$0xff]  ;;  %v3650_v23 = vpop.f32.mrf.mxu0  ;;  %v9106_v24 = vmax.f32 %v3733_v8, %v3737_v2  ;;  %v4068_v8 = vld [vmem:[%s10499_s5 + $0x4d0] sm:$0xff] }
 0x487   :  { %v6026_v3 = vpop.f32.mrf.mxu1  ;;  %4364 = vmatpush2.msra.mxu1 %v3983_v52  ;;  %v4079_v26 = vld [vmem:[%s10499_s5 + $0x528] sm:$0xff]  ;;  %4434 = vmatprep.subr.mxu0 %v4080_v43  ;;  %v4064_v2 = vld [vmem:[%s10499_s5 + $0x4b0] sm:$0xff] }
 0x488   :  { %v3685_v10 = vadd.f32 %v3669_v59, %v3631_v38  ;;  %v6027_v61 = vadd.f32 %v6026_v3, %v6025_v17  ;;  %4365 = vmatprep.subr.mxu1 %v3981_v31  ;;  %v3672_v17 = vld [vmem:[#allocation4 + $0x68] sm:$0xff]  ;;  %4435 = vmatpush2.msra.mxu0 %v4079_v26  ;;  %v3711_v31 = vld [vmem:[#allocation4 + $0x20] sm:$0xff]  ;;  %v3800_v7 = vrot.slane %v9106_v24, 6  ;;  %v3796_v54 = vrot.slane %v9106_v24, 4 }
 0x489   :  { %v6028_v56 = vpop.f32.mrf.mxu1  ;;  %v3715_v51 = vld [vmem:[#allocation4 + $0x40] sm:$0xff]  ;;  %4366 = vmatpush2.msra.mxu1 %v3980_v14  ;;  %4436 = vmatprep.subr.mxu0 %v4077_v4  ;;  %v4059_v4 = vld [vmem:[%s10499_s5 + $0x488] sm:$0xff] }
 0x48a   :  { %3701 = vst.msk [vmem:[#allocation4 + $0x50] sm:$0xff] %vm866_vm0, %v3685_v10  ;;  %v3636_v25 = vadd.f32 %v6397_v37, %v6027_v61  ;;  %v9068_v37 = vmax.f32 %v3723_v5, %v3727_v18  ;;  %4367 = vmatprep.subr.mxu1 %v3978_v35  ;;  %v3712_v5 = vld [vmem:[#allocation4 + $0x28] sm:$0xff]  ;;  %v3673_v18 = vld [vmem:[#allocation4 + $0x70] sm:$0xff] }
 0x48b   :  { %v6029_v44 = vpop.f32.mrf.mxu1  ;;  %4368 = vmatpush2.msra.mxu1 %v3977_v32  ;;  %v3743_v30 = vmax.f32 %v3711_v31, %v3712_v5 }
 0x48c   :  { %v3686_v22 = vadd.f32 %v3670_v42, %v3636_v25  ;;  %v6030_v21 = vadd.f32 %v6029_v44, %v6028_v56  ;;  %4369 = vmatprep.subr.mxu1 %v3975_v9  ;;  %v3779_v63 = vrot.slane %v9068_v37, 6  ;;  %v3769_v38 = vrot.slane %v9068_v37, 2  ;;  %v4076_v56 = vld [vmem:[%s10499_s5 + $0x510] sm:$0xff]  ;;  %v4074_v44 = vld [vmem:[%s10499_s5 + $0x500] sm:$0xff]  ;;  %v4067_v9 = vld [vmem:[%s10499_s5 + $0x4c8] sm:$0xff] }
 0x48d   :  { %v6031_v34 = vpop.f32.mrf.mxu1  ;;  %v3716_v6 = vld [vmem:[#allocation4 + $0x48] sm:$0xff]  ;;  %4370 = vmatpush2.msra.mxu1 %v3974_v28  ;;  %4437 = vmatpush2.msra.mxu0 %v4076_v56  ;;  %v3674_v56 = vld [vmem:[#allocation4 + $0x78] sm:$0xff] }
 0x48e   :  { %3702 = vst.msk [vmem:[#allocation4 + $0x58] sm:$0xff] %vm866_vm0, %v3686_v22  ;;  %v3641_v47 = vadd.f32 %v6030_v21, %v3640_v12  ;;  %v3724_v41 = vmax.f32 %v3715_v51, %v3716_v6  ;;  %4371 = vmatprep.subr.mxu1 %v3972_v15  ;;  %v3963_v22 = vld [vmem:[%s10499_s5 + $0x188] sm:$0xff]  ;;  %v4073_v21 = vld [vmem:[%s10499_s5 + $0x4f8] sm:$0xff]  ;;  %4438 = vmatprep.subr.mxu0 %v4074_v44  ;;  %v4152_v51 = vld [vmem:[%s10499_s5 + $0x770] sm:$0xff] }
 0x48f   :  { %v6032_v45 = vpop.f32.mrf.mxu1  ;;  %4372 = vmatpush2.msra.mxu1 %v3971_v48  ;;  %v4071_v12 = vld [vmem:[%s10499_s5 + $0x4e8] sm:$0xff]  ;;  %4439 = vmatpush2.msra.mxu0 %v4073_v21 }
 0x490   :  { %v3687_v57 = vadd.f32 %v3671_v46, %v3641_v47  ;;  %v6033_v49 = vadd.f32 %v6032_v45, %v6031_v34  ;;  %v3728_v20 = vrot.slane %v3724_v41, 1  ;;  %4373 = vmatprep.subr.mxu1 %v3969_v53  ;;  %v4070_v34 = vld [vmem:[%s10499_s5 + $0x4e0] sm:$0xff]  ;;  %v3790_v47 = vrot.slane %v9106_v24, 2  ;;  %4440 = vmatprep.subr.mxu0 %v4071_v12  ;;  %v4061_v53 = vld [vmem:[%s10499_s5 + $0x498] sm:$0xff] }
 0x491   :  { %v6034_v27 = vpop.f32.mrf.mxu1  ;;  %v3717_v10 = vld [vmem:[#allocation4 + $0x50] sm:$0xff]  ;;  %4374 = vmatpush2.msra.mxu1 %v3968_v50  ;;  %4441 = vmatpush2.msra.mxu0 %v4070_v34 }
 0x492   :  { %3703 = vst.msk [vmem:[#allocation4 + $0x60] sm:$0xff] %vm866_vm0, %v3687_v57  ;;  %v3646_v16 = vadd.f32 %v9028_v60, %v6033_v49  ;;  %v3732_v40 = vmax.f32 %v3724_v41, %v3728_v20  ;;  %v3775_v60 = vrot.slane %v9068_v37, 4  ;;  %4375 = vmatprep.subr.mxu1 %v3966_v39  ;;  %v3747_v41 = vrot.slane %v3743_v30, 1  ;;  %4442 = vmatprep.subr.mxu0 %v4068_v8  ;;  %v4065_v49 = vld [vmem:[%s10499_s5 + $0x4b8] sm:$0xff] }
 0x493   :  { %v6035_v19 = vpop.f32.mrf.mxu1  ;;  %4376 = vmatpush2.msra.mxu1 %v3965_v33  ;;  %4443 = vmatpush2.msra.mxu0 %v4067_v9 }
 0x494   :  { %v3688_v29 = vadd.f32 %v3672_v17, %v3646_v16  ;;  %v6036_v36 = vadd.f32 %v6035_v19, %v6034_v27  ;;  %v3780_v59 = vrot.slane %v3732_v40, 5  ;;  %v3770_v3 = vrot.slane %v3732_v40, 1  ;;  %4377 = vmatprep.subr.mxu1 %v3963_v22  ;;  %v4062_v16 = vld [vmem:[%s10499_s5 + $0x4a0] sm:$0xff]  ;;  %4444 = vmatprep.subr.mxu0 %v4065_v49 }
 0x495   :  { %v3718_v61 = vld [vmem:[#allocation4 + $0x58] sm:$0xff]  ;;  %v3776_v13 = vrot.slane %v3732_v40, 3  ;;  %v3765_v42 = vrot.slane %v3732_v40, 7  ;;  %4378 = vmatpush2.msra.mxu1 %v3962_v55  ;;  %v3751_v48 = vmax.f32 %v3743_v30, %v3747_v41  ;;  %4445 = vmatpush2.msra.mxu0 %v4064_v2  ;;  %v4058_v19 = vld [vmem:[%s10499_s5 + $0x480] sm:$0xff] }
 0x496   :  { %3704 = vst.msk [vmem:[#allocation4 + $0x68] sm:$0xff] %vm866_vm0, %v3688_v29  ;;  %v3651_v52 = vadd.f32 %v6036_v36, %v3650_v23  ;;  %v3781_v62 = vsel %vm3766_vm4, %v3780_v59, %v3779_v63  ;;  %v3771_v25 = vsel %vm3766_vm4, %v3770_v3, %v3769_v38  ;;  %v3734_v1 = vmax.f32 %v3717_v10, %v3718_v61  ;;  %v4248_v29 = vld [vmem:[%s10499_s5 + $0xa70] sm:$0xff]  ;;  %v4149_v2 = vld [vmem:[%s10499_s5 + $0x758] sm:$0xff] }
 0x497   :  { %3782 = vrot.lane.b32.xlu0 %v3781_v62, %s6492_s21  ;;  %3772 = vrot.lane.b32.xlu1 %v3771_v25, %s6492_s21  ;;  %v9124_v14 = vsel %vm3766_vm4, %v3776_v13, %v3775_v60  ;;  %v9128_v58 = vsel %vm3766_vm4, %v3765_v42, %v9068_v37  ;;  %v3821_v63 = vrot.slane %v3751_v48, 6  ;;  %v3811_v38 = vrot.slane %v3751_v48, 2  ;;  %v3714_v62 = vld [vmem:[#allocation4 + $0x38] sm:$0xff]  ;;  %v3713_v25 = vld [vmem:[#allocation4 + $0x30] sm:$0xff] }
 0x498   :  { %v3689_v35 = vadd.f32 %v3673_v18, %v3651_v52  ;;  %v3738_v32 = vrot.slane %v3734_v1, 1  ;;  %4457 = vmatprep.subr.mxu1 %v4152_v51  ;;  %4446 = vmatprep.subr.mxu0 %v4062_v16  ;;  %v3817_v50 = vrot.slane %v3751_v48, 4  ;;  %v3858_v51 = vlaneseq }
 0x499   :  { %v3719_v11 = vld [vmem:[#allocation4 + $0x60] sm:$0xff]  ;;  %4447 = vmatpush2.msra.mxu0 %v4061_v53 }
 0x49a   :  { %3705 = vst.msk [vmem:[#allocation4 + $0x70] sm:$0xff] %vm866_vm0, %v3689_v35  ;;  %v3742_v6 = vmax.f32 %v3734_v1, %v3738_v32  ;;  %4448 = vmatprep.subr.mxu0 %v4059_v4  ;;  %v3753_v1 = vmax.f32 %v3713_v25, %v3714_v62  ;;  %v4146_v53 = vld [vmem:[%s10499_s5 + $0x740] sm:$0xff]  ;;  %v4133_v25 = vld [vmem:[%s10499_s5 + $0x6d8] sm:$0xff] }
 0x49b   :  { %4449 = vmatpush2.msra.mxu0 %v4058_v19  ;;  %v4145_v19 = vld [vmem:[%s10499_s5 + $0x738] sm:$0xff] }
 0x49c   :  { %v3801_v46 = vrot.slane %v3742_v6, 5  ;;  %v3791_v45 = vrot.slane %v3742_v6, 1  ;;  %v3797_v37 = vrot.slane %v3742_v6, 3  ;;  %v3787_v28 = vrot.slane %v3742_v6, 7  ;;  %4528 = vmatprep.subr.mxu0 %v4248_v29 }
 0x49d   :  { %v3720_v57 = vld [vmem:[#allocation4 + $0x68] sm:$0xff]  ;;  %v3757_v31 = vrot.slane %v3753_v1, 1  ;;  %v9214_v6 = vshrl.u32 %v3858_v51, 7  ;;  %v4233_v51 = vld [vmem:[%s10499_s5 + $0x9f8] sm:$0xff] }
 0x49e   :  { %v3802_v20 = vsel %vm3766_vm4, %v3801_v46, %v3800_v7  ;;  %v3792_v15 = vsel %vm3766_vm4, %v3791_v45, %v3790_v47  ;;  %v3744_v43 = vmax.f32 %v3719_v11, %v3720_v57  ;;  %v9164_v27 = vsel %vm3766_vm4, %v3797_v37, %v3796_v54  ;;  %v9225_v47 = vld [vmem:[%s10498_s4] sm:$0xff] }
 0x49f   :  { %3803 = vrot.lane.b32.xlu0 %v3802_v20, %s6492_s21  ;;  %3793 = vrot.lane.b32.xlu1 %v3792_v15, %s6492_s21  ;;  %v9173_v26 = vsel %vm3766_vm4, %v3787_v28, %v9106_v24  ;;  %v9202_v22 = vmax.f32 %v3753_v1, %v3757_v31  ;;  %v9217_v8 = vsub.s32 1, %v9214_v6  ;;  %v9220_v7 = vsub.s32 0, %v9214_v6  ;;  %v4241_v1 = vld [vmem:[%s10499_s5 + $0xa38] sm:$0xff] }
 0x4a0   :  { %v3748_v40 = vrot.slane %v3744_v43, 1  ;;  %v3872_v57 = vsub.s32 3, %v9214_v6  ;;  %v3868_v49 = vsub.s32 2, %v9214_v6  ;;  %v3880_v29 = vsub.s32 5, %v9214_v6 }
 0x4a1   :  { %v3721_v33 = vld [vmem:[#allocation4 + $0x70] sm:$0xff]  ;;  %v3842_v35 = vrot.slane %v9202_v22, 6  ;;  %v3832_v32 = vrot.slane %v9202_v22, 2  ;;  %v3865_v41 = vrot.slane %v9225_v47, %v9217_v8  ;;  %v3861_v9 = vrot.slane %v9225_v47, %v9220_v7 }
 0x4a2   :  { %v3752_v17 = vmax.f32 %v3744_v43, %v3748_v40  ;;  %v4151_v43 = vld [vmem:[%s10499_s5 + $0x768] sm:$0xff] }
 0x4a4   :  { %v3822_v36 = vrot.slane %v3752_v17, 5  ;;  %v3812_v59 = vrot.slane %v3752_v17, 1  ;;  %v3818_v3 = vrot.slane %v3752_v17, 3  ;;  %v3808_v5 = vrot.slane %v3752_v17, 7 }
 0x4a6   :  { %v3823_v39 = vsel %vm3766_vm4, %v3822_v36, %v3821_v63  ;;  %v3813_v23 = vsel %vm3766_vm4, %v3812_v59, %v3811_v38  ;;  %v9193_v10 = vsel %vm3766_vm4, %v3818_v3, %v3817_v50  ;;  %v9196_v61 = vsel %vm3766_vm4, %v3808_v5, %v3751_v48  ;;  %v4148_v48 = vld [vmem:[%s10499_s5 + $0x750] sm:$0xff]  ;;  %v4143_v50 = vld [vmem:[%s10499_s5 + $0x728] sm:$0xff] }
 0x4a7   :  { %3824 = vrot.lane.b32.xlu0 %v3823_v39, %s6492_s21  ;;  %3814 = vrot.lane.b32.xlu1 %v3813_v23, %s6492_s21  ;;  %v4140_v59 = vld [vmem:[%s10499_s5 + $0x710] sm:$0xff]  ;;  %v4139_v3 = vld [vmem:[%s10499_s5 + $0x708] sm:$0xff]  ;;  %v3881_v39 = vrot.slane %v9225_v47, %v3880_v29 }
 0x4a8   :  { %v4247_v5 = vld [vmem:[%s10499_s5 + $0xa68] sm:$0xff]  ;;  %v4137_v23 = vld [vmem:[%s10499_s5 + $0x6f8] sm:$0xff]  ;;  %v4218_v29 = vld [vmem:[%s10499_s5 + $0x980] sm:$0xff] }
 0x4d8   :  { %v6037_v24 = vpop.f32.mrf.mxu1 }
 0x4da   :  { %v6038_v13 = vpop.f32.mrf.mxu1 }
 0x4db   :  { %v6039_v60 = vadd.f32 %v6038_v13, %v6037_v24  ;;  %v4245_v24 = vld [vmem:[%s10499_s5 + $0xa58] sm:$0xff]  ;;  %v4136_v13 = vld [vmem:[%s10499_s5 + $0x6f0] sm:$0xff] }
 0x4dd   :  { %v3656_v42 = vadd.f32 %v9082_v0, %v6039_v60  ;;  %v4244_v60 = vld [vmem:[%s10499_s5 + $0xa50] sm:$0xff] }
 0x4df   :  { %v3690_v52 = vadd.f32 %v3674_v56, %v3656_v42  ;;  %v4134_v56 = vld [vmem:[%s10499_s5 + $0x6e0] sm:$0xff] }
 0x4e1   :  { %3706 = vst.msk [vmem:[#allocation4 + $0x78] sm:$0xff] %vm866_vm0, %v3690_v52  ;;  %v4242_v52 = vld [vmem:[%s10499_s5 + $0xa40] sm:$0xff] }
 0x4e8   :  { %v3722_v44 = vld [vmem:[#allocation4 + $0x78] sm:$0xff] }
 0x4e9   :  { %v3754_v18 = vmax.f32 %v3721_v33, %v3722_v44  ;;  %v4131_v33 = vld [vmem:[%s10499_s5 + $0x6c8] sm:$0xff]  ;;  %v4130_v44 = vld [vmem:[%s10499_s5 + $0x6c0] sm:$0xff] }
 0x4eb   :  { %v3758_v30 = vrot.slane %v3754_v18, 1 }
 0x4ed   :  { %v9204_v21 = vmax.f32 %v3754_v18, %v3758_v30  ;;  %v4128_v30 = vld [vmem:[%s10499_s5 + $0x6b0] sm:$0xff] }
 0x4ef   :  { %v3843_v0 = vrot.slane %v9204_v21, 5  ;;  %v3833_v55 = vrot.slane %v9204_v21, 1 }
 0x4f1   :  { %v3844_v12 = vsel %vm3766_vm4, %v3843_v0, %v3842_v35  ;;  %v3834_v34 = vsel %vm3766_vm4, %v3833_v55, %v3832_v32  ;;  %v4238_v35 = vld [vmem:[%s10499_s5 + $0xa20] sm:$0xff]  ;;  %v4127_v0 = vld [vmem:[%s10499_s5 + $0x6a8] sm:$0xff]  ;;  %v4236_v32 = vld [vmem:[%s10499_s5 + $0xa10] sm:$0xff] }
 0x4f2   :  { %3845 = vrot.lane.b32.xlu0 %v3844_v12, %s6492_s21  ;;  %3835 = vrot.lane.b32.xlu1 %v3834_v34, %s6492_s21  ;;  %v4125_v55 = vld [vmem:[%s10499_s5 + $0x698] sm:$0xff]  ;;  %v4235_v12 = vld [vmem:[%s10499_s5 + $0xa08] sm:$0xff] }
 0x4f3   :  { %v4124_v34 = vld [vmem:[%s10499_s5 + $0x690] sm:$0xff] }
 0x509   :  { %v3783_v54 = vpop.permute.xlu0 %3782  ;;  %v3773_v46 = vpop.permute.xlu1 %3772 }
 0x50a   :  { %v3849_v45 = vsel %vm866_vm0, %v9124_v14, %v3783_v54  ;;  %v3848_v37 = vsel %vm866_vm0, %v9128_v58, %v3773_v46  ;;  %v3873_v14 = vrot.slane %v9225_v47, %v3872_v57  ;;  %v3869_v58 = vrot.slane %v9225_v47, %v3868_v49  ;;  %v4121_v54 = vld [vmem:[%s10499_s5 + $0x678] sm:$0xff]  ;;  %v4230_v46 = vld [vmem:[%s10499_s5 + $0x9e0] sm:$0xff] }
 0x50b   :  { %v9235_v28 = vadd.f32 %v3865_v41, %v3849_v45  ;;  %v9237_v11 = vadd.f32 %v3861_v9, %v3848_v37  ;;  %v4122_v41 = vld [vmem:[%s10499_s5 + $0x680] sm:$0xff]  ;;  %v4232_v9 = vld [vmem:[%s10499_s5 + $0x9f0] sm:$0xff]  ;;  %v4119_v45 = vld [vmem:[%s10499_s5 + $0x668] sm:$0xff] }
 0x50c   :  { %v4229_v37 = vld [vmem:[%s10499_s5 + $0x9d8] sm:$0xff]  ;;  %v4118_v57 = vld [vmem:[%s10499_s5 + $0x660] sm:$0xff] }
 0x50d   :  { %v3907_v20 = vmax.f32 %v9235_v28, 0.0  ;;  %v3906_v15 = vmax.f32 %v9237_v11, 0.0  ;;  %v4000_v28 = vld [vmem:[%s10499_s5 + $0x2b0] sm:$0xff]  ;;  %v4150_v11 = vld [vmem:[%s10499_s5 + $0x760] sm:$0xff] }
 0x50f   :  { %4379 = vmatprep.mubr.f32.mxu1 %v3907_v20 }
 0x510   :  { %4380 = vmatmul.mubr.f32.vlgmr.msra.gmra.mxu1 %v3906_v15 }
 0x511   :  { %4458 = vmatpush1.msra.mxu1 %v4151_v43  ;;  %v3804_v16 = vpop.permute.xlu0 %3803  ;;  %v3794_v40 = vpop.permute.xlu1 %3793  ;;  %v4227_v43 = vld [vmem:[%s10499_s5 + $0x9c8] sm:$0xff] }
 0x512   :  { %v3851_v4 = vsel %vm866_vm0, %v9164_v27, %v3804_v16  ;;  %v3850_v17 = vsel %vm866_vm0, %v9173_v26, %v3794_v40  ;;  %4459 = vmatprep.subr.mxu1 %v4149_v2  ;;  %v4142_v27 = vld [vmem:[%s10499_s5 + $0x720] sm:$0xff]  ;;  %v4115_v2 = vld [vmem:[%s10499_s5 + $0x648] sm:$0xff]  ;;  %v4113_v16 = vld [vmem:[%s10499_s5 + $0x638] sm:$0xff] }
 0x513   :  { %v9270_v63 = vadd.f32 %v3873_v14, %v3851_v4  ;;  %v9272_v38 = vadd.f32 %v3869_v58, %v3850_v17  ;;  %4460 = vmatpush1.msra.mxu1 %v4148_v48  ;;  %v4116_v14 = vld [vmem:[%s10499_s5 + $0x650] sm:$0xff]  ;;  %v4226_v58 = vld [vmem:[%s10499_s5 + $0x9c0] sm:$0xff]  ;;  %v4223_v40 = vld [vmem:[%s10499_s5 + $0x9a8] sm:$0xff] }
 0x514   :  { %4461 = vmatprep.subr.mxu1 %v4146_v53  ;;  %v4224_v48 = vld [vmem:[%s10499_s5 + $0x9b0] sm:$0xff]  ;;  %v4221_v4 = vld [vmem:[%s10499_s5 + $0x998] sm:$0xff]  ;;  %v4110_v17 = vld [vmem:[%s10499_s5 + $0x620] sm:$0xff] }
 0x515   :  { %v3909_v26 = vmax.f32 %v9270_v63, 0.0  ;;  %v3908_v36 = vmax.f32 %v9272_v38, 0.0  ;;  %4462 = vmatpush1.msra.mxu1 %v4145_v19  ;;  %v4112_v53 = vld [vmem:[%s10499_s5 + $0x630] sm:$0xff]  ;;  %v4162_v38 = vld [vmem:[%s10499_s5 + $0x7c0] sm:$0xff] }
 0x516   :  { %4463 = vmatprep.subr.mxu1 %v4143_v50  ;;  %v4220_v19 = vld [vmem:[%s10499_s5 + $0x990] sm:$0xff]  ;;  %v4109_v50 = vld [vmem:[%s10499_s5 + $0x618] sm:$0xff] }
 0x517   :  { %4464 = vmatpush1.msra.mxu1 %v4142_v27  ;;  %4450 = vmatprep.mubr.f32.mxu0 %v3909_v26  ;;  %v4107_v27 = vld [vmem:[%s10499_s5 + $0x608] sm:$0xff]  ;;  %v4096_v63 = vld [vmem:[%s10499_s5 + $0x5b0] sm:$0xff] }
 0x518   :  { %4465 = vmatprep.subr.mxu1 %v4140_v59  ;;  %4451 = vmatmul.mubr.f32.vlgmr.msra.gmra.mxu0 %v3908_v36  ;;  %v4217_v59 = vld [vmem:[%s10499_s5 + $0x978] sm:$0xff] }
 0x519   :  { %4466 = vmatpush1.msra.mxu1 %v4139_v3  ;;  %v3825_v42 = vpop.permute.xlu0 %3824  ;;  %4529 = vmatpush1.msra.mxu0 %v4247_v5  ;;  %v4106_v3 = vld [vmem:[%s10499_s5 + $0x600] sm:$0xff]  ;;  %v4215_v5 = vld [vmem:[%s10499_s5 + $0x968] sm:$0xff] }
 0x51a   :  { %v3853_v62 = vsel %vm866_vm0, %v9193_v10, %v3825_v42  ;;  %4467 = vmatprep.subr.mxu1 %v4137_v23  ;;  %4530 = vmatprep.subr.mxu0 %v4245_v24  ;;  %v4239_v10 = vld [vmem:[%s10499_s5 + $0xa28] sm:$0xff]  ;;  %v4214_v23 = vld [vmem:[%s10499_s5 + $0x960] sm:$0xff] }
 0x51b   :  { %v9323_v31 = vadd.f32 %v3881_v39, %v3853_v62  ;;  %4468 = vmatpush1.msra.mxu1 %v4136_v13  ;;  %4531 = vmatpush1.msra.mxu0 %v4244_v60  ;;  %v4200_v39 = vld [vmem:[%s10499_s5 + $0x8f0] sm:$0xff]  ;;  %v4199_v24 = vld [vmem:[%s10499_s5 + $0x8e8] sm:$0xff]  ;;  %v4197_v60 = vld [vmem:[%s10499_s5 + $0x8d8] sm:$0xff] }
 0x51c   :  { %4469 = vmatprep.subr.mxu1 %v4134_v56  ;;  %4532 = vmatprep.subr.mxu0 %v4242_v52  ;;  %v4212_v13 = vld [vmem:[%s10499_s5 + $0x950] sm:$0xff]  ;;  %v4211_v42 = vld [vmem:[%s10499_s5 + $0x948] sm:$0xff]  ;;  %v4209_v52 = vld [vmem:[%s10499_s5 + $0x938] sm:$0xff] }
 0x51d   :  { %v3911_v18 = vmax.f32 %v9323_v31, 0.0  ;;  %4470 = vmatpush1.msra.mxu1 %v4133_v25  ;;  %4533 = vmatpush1.msra.mxu0 %v4241_v1  ;;  %v4196_v56 = vld [vmem:[%s10499_s5 + $0x8d0] sm:$0xff]  ;;  %v4194_v62 = vld [vmem:[%s10499_s5 + $0x8c0] sm:$0xff]  ;;  %v4193_v1 = vld [vmem:[%s10499_s5 + $0x8b8] sm:$0xff] }
 0x51e   :  { %4471 = vmatprep.subr.mxu1 %v4131_v33  ;;  %4534 = vmatprep.subr.mxu0 %v4239_v10  ;;  %v4208_v25 = vld [vmem:[%s10499_s5 + $0x930] sm:$0xff]  ;;  %v4206_v33 = vld [vmem:[%s10499_s5 + $0x920] sm:$0xff]  ;;  %v4191_v10 = vld [vmem:[%s10499_s5 + $0x8a8] sm:$0xff] }
 0x51f   :  { %4472 = vmatpush1.msra.mxu1 %v4130_v44  ;;  %4521 = vmatprep.mubr.f32.mxu1 %v3911_v18  ;;  %v4205_v44 = vld [vmem:[%s10499_s5 + $0x918] sm:$0xff]  ;;  %v4084_v31 = vld [vmem:[%s10499_s5 + $0x550] sm:$0xff] }
 0x520   :  { %4473 = vmatprep.subr.mxu1 %v4128_v30  ;;  %4535 = vmatpush1.msra.mxu0 %v4238_v35  ;;  %v4190_v30 = vld [vmem:[%s10499_s5 + $0x8a0] sm:$0xff]  ;;  %v4203_v35 = vld [vmem:[%s10499_s5 + $0x908] sm:$0xff] }
 0x521   :  { %4474 = vmatpush1.msra.mxu1 %v4127_v0  ;;  %4536 = vmatprep.subr.mxu0 %v4236_v32  ;;  %v4188_v0 = vld [vmem:[%s10499_s5 + $0x890] sm:$0xff]  ;;  %v4202_v32 = vld [vmem:[%s10499_s5 + $0x900] sm:$0xff] }
 0x522   :  { %4475 = vmatprep.subr.mxu1 %v4125_v55  ;;  %4537 = vmatpush1.msra.mxu0 %v4235_v12  ;;  %v4187_v55 = vld [vmem:[%s10499_s5 + $0x888] sm:$0xff]  ;;  %v4296_v12 = vld [vmem:[%s10499_s5 + $0xbf0] sm:$0xff] }
 0x523   :  { %4476 = vmatpush1.msra.mxu1 %v4124_v34  ;;  %4538 = vmatprep.subr.mxu0 %v4233_v51  ;;  %v4185_v34 = vld [vmem:[%s10499_s5 + $0x878] sm:$0xff]  ;;  %v4295_v51 = vld [vmem:[%s10499_s5 + $0xbe8] sm:$0xff] }
 0x524   :  { %4477 = vmatprep.subr.mxu1 %v4122_v41  ;;  %4539 = vmatpush1.msra.mxu0 %v4232_v9  ;;  %v4184_v41 = vld [vmem:[%s10499_s5 + $0x870] sm:$0xff]  ;;  %v4293_v9 = vld [vmem:[%s10499_s5 + $0xbd8] sm:$0xff] }
 0x525   :  { %4478 = vmatpush1.msra.mxu1 %v4121_v54  ;;  %4540 = vmatprep.subr.mxu0 %v4230_v46  ;;  %v4182_v54 = vld [vmem:[%s10499_s5 + $0x860] sm:$0xff]  ;;  %v4292_v46 = vld [vmem:[%s10499_s5 + $0xbd0] sm:$0xff] }
 0x526   :  { %4479 = vmatprep.subr.mxu1 %v4119_v45  ;;  %4541 = vmatpush1.msra.mxu0 %v4229_v37  ;;  %v4181_v45 = vld [vmem:[%s10499_s5 + $0x858] sm:$0xff]  ;;  %v4290_v37 = vld [vmem:[%s10499_s5 + $0xbc0] sm:$0xff] }
 0x527   :  { %4480 = vmatpush1.msra.mxu1 %v4118_v57  ;;  %4542 = vmatprep.subr.mxu0 %v4227_v43  ;;  %v4179_v57 = vld [vmem:[%s10499_s5 + $0x848] sm:$0xff]  ;;  %v4289_v43 = vld [vmem:[%s10499_s5 + $0xbb8] sm:$0xff] }
 0x528   :  { %4481 = vmatprep.subr.mxu1 %v4116_v14  ;;  %4543 = vmatpush1.msra.mxu0 %v4226_v58  ;;  %v4178_v14 = vld [vmem:[%s10499_s5 + $0x840] sm:$0xff]  ;;  %v4287_v58 = vld [vmem:[%s10499_s5 + $0xba8] sm:$0xff] }
 0x529   :  { %4482 = vmatpush1.msra.mxu1 %v4115_v2  ;;  %4544 = vmatprep.subr.mxu0 %v4224_v48  ;;  %v4176_v2 = vld [vmem:[%s10499_s5 + $0x830] sm:$0xff]  ;;  %v4286_v48 = vld [vmem:[%s10499_s5 + $0xba0] sm:$0xff] }
 0x52a   :  { %4483 = vmatprep.subr.mxu1 %v4113_v16  ;;  %4545 = vmatpush1.msra.mxu0 %v4223_v40  ;;  %v4175_v16 = vld [vmem:[%s10499_s5 + $0x828] sm:$0xff]  ;;  %v4284_v40 = vld [vmem:[%s10499_s5 + $0xb90] sm:$0xff] }
 0x52b   :  { %4484 = vmatpush1.msra.mxu1 %v4112_v53  ;;  %4546 = vmatprep.subr.mxu0 %v4221_v4  ;;  %v4173_v53 = vld [vmem:[%s10499_s5 + $0x818] sm:$0xff]  ;;  %v4283_v4 = vld [vmem:[%s10499_s5 + $0xb88] sm:$0xff] }
 0x52c   :  { %4485 = vmatprep.subr.mxu1 %v4110_v17  ;;  %4547 = vmatpush1.msra.mxu0 %v4220_v19  ;;  %v4172_v17 = vld [vmem:[%s10499_s5 + $0x810] sm:$0xff]  ;;  %v4281_v19 = vld [vmem:[%s10499_s5 + $0xb78] sm:$0xff] }
 0x52d   :  { %4486 = vmatpush1.msra.mxu1 %v4109_v50  ;;  %4548 = vmatprep.subr.mxu0 %v4218_v29  ;;  %v4170_v50 = vld [vmem:[%s10499_s5 + $0x800] sm:$0xff]  ;;  %v4280_v29 = vld [vmem:[%s10499_s5 + $0xb70] sm:$0xff] }
 0x52e   :  { %4487 = vmatprep.subr.mxu1 %v4107_v27  ;;  %4549 = vmatpush1.msra.mxu0 %v4217_v59  ;;  %v3876_v27 = vsub.s32 4, %v9214_v6  ;;  %v4169_v59 = vld [vmem:[%s10499_s5 + $0x7f8] sm:$0xff] }
 0x52f   :  { %4488 = vmatpush1.msra.mxu1 %v4106_v3  ;;  %4550 = vmatprep.subr.mxu0 %v4215_v5  ;;  %v4278_v3 = vld [vmem:[%s10499_s5 + $0xb60] sm:$0xff]  ;;  %v4167_v5 = vld [vmem:[%s10499_s5 + $0x7e8] sm:$0xff] }
 0x530   :  { %4489 = vmatprep.subr.mxu1 %v4200_v39  ;;  %4551 = vmatpush1.msra.mxu0 %v4214_v23  ;;  %v4277_v39 = vld [vmem:[%s10499_s5 + $0xb58] sm:$0xff]  ;;  %v3815_v23 = vpop.permute.xlu1 %3814 }
 0x531   :  { %4490 = vmatpush2.msra.mxu1 %v4199_v24  ;;  %4552 = vmatprep.subr.mxu0 %v4212_v13  ;;  %v4166_v24 = vld [vmem:[%s10499_s5 + $0x7e0] sm:$0xff]  ;;  %v4275_v13 = vld [vmem:[%s10499_s5 + $0xb48] sm:$0xff] }
 0x532   :  { %4491 = vmatprep.subr.mxu1 %v4197_v60  ;;  %4553 = vmatpush1.msra.mxu0 %v4211_v42  ;;  %v4164_v60 = vld [vmem:[%s10499_s5 + $0x7d0] sm:$0xff]  ;;  %v4274_v42 = vld [vmem:[%s10499_s5 + $0xb40] sm:$0xff] }
 0x533   :  { %4492 = vmatpush2.msra.mxu1 %v4196_v56  ;;  %4554 = vmatprep.subr.mxu0 %v4209_v52  ;;  %v3877_v56 = vrot.slane %v9225_v47, %v3876_v27  ;;  %v4163_v52 = vld [vmem:[%s10499_s5 + $0x7c8] sm:$0xff]  ;;  %v4105_v27 = vld [vmem:[%s10499_s5 + $0x5f8] sm:$0xff] }
 0x534   :  { %4493 = vmatprep.subr.mxu1 %v4194_v62  ;;  %4555 = vmatpush1.msra.mxu0 %v4208_v25  ;;  %v4272_v62 = vld [vmem:[%s10499_s5 + $0xb30] sm:$0xff]  ;;  %v3852_v25 = vsel %vm866_vm0, %v9196_v61, %v3815_v23  ;;  %v4269_v61 = vld [vmem:[%s10499_s5 + $0xb18] sm:$0xff] }
 0x535   :  { %4494 = vmatpush2.msra.mxu1 %v4193_v1  ;;  %4556 = vmatprep.subr.mxu0 %v4206_v33  ;;  %v4161_v1 = vld [vmem:[%s10499_s5 + $0x7b8] sm:$0xff]  ;;  %v4271_v33 = vld [vmem:[%s10499_s5 + $0xb28] sm:$0xff] }
 0x536   :  { %4495 = vmatprep.subr.mxu1 %v4191_v10  ;;  %4557 = vmatpush1.msra.mxu0 %v4205_v44  ;;  %v4160_v10 = vld [vmem:[%s10499_s5 + $0x7b0] sm:$0xff]  ;;  %v4158_v44 = vld [vmem:[%s10499_s5 + $0x7a0] sm:$0xff]  ;;  %v3985_v23 = vld [vmem:[%s10499_s5 + $0x238] sm:$0xff] }
 0x537   :  { %4496 = vmatpush2.msra.mxu1 %v4190_v30  ;;  %4558 = vmatprep.subr.mxu0 %v4203_v35  ;;  %v4268_v30 = vld [vmem:[%s10499_s5 + $0xb10] sm:$0xff]  ;;  %v9611_v35 = vadd.f32 %v3877_v56, %v3852_v25  ;;  %v3839_v56 = vrot.slane %v9204_v21, 3  ;;  %v3979_v25 = vld [vmem:[%s10499_s5 + $0x208] sm:$0xff] }
 0x538   :  { %4497 = vmatprep.subr.mxu1 %v4188_v0  ;;  %4559 = vmatpush1.msra.mxu0 %v4202_v32  ;;  %v4157_v0 = vld [vmem:[%s10499_s5 + $0x798] sm:$0xff]  ;;  %v4266_v32 = vld [vmem:[%s10499_s5 + $0xb00] sm:$0xff] }
 0x539   :  { %4498 = vmatpush2.msra.mxu1 %v4187_v55  ;;  %4560 = vmatprep.subr.mxu0 %v4296_v12  ;;  %v4155_v55 = vld [vmem:[%s10499_s5 + $0x788] sm:$0xff]  ;;  %v4265_v12 = vld [vmem:[%s10499_s5 + $0xaf8] sm:$0xff] }
 0x53a   :  { %4499 = vmatprep.subr.mxu1 %v4185_v34  ;;  %4561 = vmatpush2.msra.mxu0 %v4295_v51  ;;  %v4154_v34 = vld [vmem:[%s10499_s5 + $0x780] sm:$0xff]  ;;  %v4263_v51 = vld [vmem:[%s10499_s5 + $0xae8] sm:$0xff] }
 0x53b   :  { %4500 = vmatpush2.msra.mxu1 %v4184_v41  ;;  %4562 = vmatprep.subr.mxu0 %v4293_v9  ;;  %v4009_v41 = vld [vmem:[%s10499_s5 + $0x2f8] sm:$0xff]  ;;  %v3910_v9 = vmax.f32 %v9611_v35, 0.0  ;;  %v4228_v35 = vld [vmem:[%s10499_s5 + $0x9d0] sm:$0xff] }
 0x53c   :  { %4501 = vmatprep.subr.mxu1 %v4182_v54  ;;  %4563 = vmatpush2.msra.mxu0 %v4292_v46  ;;  %v3961_v54 = vld [vmem:[%s10499_s5 + $0x178] sm:$0xff]  ;;  %v4006_v46 = vld [vmem:[%s10499_s5 + $0x2e0] sm:$0xff] }
 0x53d   :  { %4502 = vmatpush2.msra.mxu1 %v4181_v45  ;;  %4564 = vmatprep.subr.mxu0 %v4290_v37  ;;  %v4262_v45 = vld [vmem:[%s10499_s5 + $0xae0] sm:$0xff] }
 0x53e   :  { %4503 = vmatprep.subr.mxu1 %v4179_v57  ;;  %4565 = vmatpush2.msra.mxu0 %v4289_v43  ;;  %v3958_v37 = vld [vmem:[%s10499_s5 + $0x160] sm:$0xff]  ;;  %v4260_v57 = vld [vmem:[%s10499_s5 + $0xad0] sm:$0xff]  ;;  %v4003_v43 = vld [vmem:[%s10499_s5 + $0x2c8] sm:$0xff] }
 0x53f   :  { %4504 = vmatpush2.msra.mxu1 %v4178_v14  ;;  %4566 = vmatprep.subr.mxu0 %v4287_v58  ;;  %v4259_v14 = vld [vmem:[%s10499_s5 + $0xac8] sm:$0xff] }
 0x540   :  { %4505 = vmatprep.subr.mxu1 %v4176_v2  ;;  %4567 = vmatpush2.msra.mxu0 %v4286_v48  ;;  %v3955_v58 = vld [vmem:[%s10499_s5 + $0x148] sm:$0xff]  ;;  %v4257_v2 = vld [vmem:[%s10499_s5 + $0xab8] sm:$0xff]  ;;  %v3952_v48 = vld [vmem:[%s10499_s5 + $0x130] sm:$0xff] }
 0x541   :  { %4506 = vmatpush2.msra.mxu1 %v4175_v16  ;;  %4568 = vmatprep.subr.mxu0 %v4284_v40  ;;  %v4254_v16 = vld [vmem:[%s10499_s5 + $0xaa0] sm:$0xff]  ;;  %v3997_v40 = vld [vmem:[%s10499_s5 + $0x298] sm:$0xff] }
 0x542   :  { %4507 = vmatprep.subr.mxu1 %v4173_v53  ;;  %4569 = vmatpush2.msra.mxu0 %v4283_v4  ;;  %v4253_v53 = vld [vmem:[%s10499_s5 + $0xa98] sm:$0xff] }
 0x543   :  { %4508 = vmatpush2.msra.mxu1 %v4172_v17  ;;  %4570 = vmatprep.subr.mxu0 %v4281_v19  ;;  %v3949_v4 = vld [vmem:[%s10499_s5 + $0x118] sm:$0xff]  ;;  %v4251_v17 = vld [vmem:[%s10499_s5 + $0xa88] sm:$0xff]  ;;  %v3994_v19 = vld [vmem:[%s10499_s5 + $0x280] sm:$0xff] }
 0x544   :  { %4509 = vmatprep.subr.mxu1 %v4170_v50  ;;  %4571 = vmatpush2.msra.mxu0 %v4280_v29  ;;  %v4250_v50 = vld [vmem:[%s10499_s5 + $0xa80] sm:$0xff] }
 0x545   :  { %4510 = vmatpush2.msra.mxu1 %v4169_v59  ;;  %4572 = vmatprep.subr.mxu0 %v4278_v3  ;;  %v3946_v29 = vld [vmem:[%s10499_s5 + $0x100] sm:$0xff]  ;;  %v3991_v59 = vld [vmem:[%s10499_s5 + $0x268] sm:$0xff] }
 0x546   :  { %4511 = vmatprep.subr.mxu1 %v4167_v5  ;;  %4573 = vmatpush2.msra.mxu0 %v4277_v39  ;;  %v3943_v3 = vld [vmem:[%s10499_s5 + $0xe8] sm:$0xff]  ;;  %v3988_v5 = vld [vmem:[%s10499_s5 + $0x250] sm:$0xff] }
 0x547   :  { %4512 = vmatpush2.msra.mxu1 %v4166_v24  ;;  %4574 = vmatprep.subr.mxu0 %v4275_v13  ;;  %v3940_v39 = vld [vmem:[%s10499_s5 + $0xd0] sm:$0xff]  ;;  %v3888_v24 = vsub.s32 7, %v9214_v6  ;;  %v3884_v13 = vsub.s32 6, %v9214_v6 }
 0x548   :  { %4513 = vmatprep.subr.mxu1 %v4164_v60  ;;  %4575 = vmatpush2.msra.mxu0 %v4274_v42  ;;  %v3937_v60 = vld [vmem:[%s10499_s5 + $0xb8] sm:$0xff]  ;;  %v3982_v42 = vld [vmem:[%s10499_s5 + $0x220] sm:$0xff] }
 0x549   :  { %4514 = vmatpush2.msra.mxu1 %v4163_v52  ;;  %4576 = vmatprep.subr.mxu0 %v4272_v62  ;;  %v3829_v52 = vrot.slane %v9204_v21, 7  ;;  %v3934_v62 = vld [vmem:[%s10499_s5 + $0xa0] sm:$0xff]  ;;  %v3931_v21 = vld [vmem:[%s10499_s5 + $0x88] sm:$0xff] }
 0x54a   :  { %4515 = vmatprep.subr.mxu1 %v4161_v1  ;;  %4577 = vmatpush2.msra.mxu0 %v4271_v33  ;;  %v3838_v1 = vrot.slane %v9202_v22, 4  ;;  %v3889_v33 = vrot.slane %v9225_v47, %v3888_v24  ;;  %v4189_v24 = vld [vmem:[%s10499_s5 + $0x898] sm:$0xff] }
 0x54b   :  { %4516 = vmatpush2.msra.mxu1 %v4160_v10  ;;  %4578 = vmatprep.subr.mxu0 %v4269_v61  ;;  %v3885_v10 = vrot.slane %v9225_v47, %v3884_v13  ;;  %v3976_v61 = vld [vmem:[%s10499_s5 + $0x1f0] sm:$0xff]  ;;  %v4033_v13 = vld [vmem:[%s10499_s5 + $0x3b8] sm:$0xff] }
 0x54c   :  { %4517 = vmatprep.subr.mxu1 %v4158_v44  ;;  %4579 = vmatpush2.msra.mxu0 %v4268_v30  ;;  %v3840_v44 = vsel %vm3766_vm4, %v3839_v56, %v3838_v1  ;;  %v3928_v47 = vld [vmem:[%s10499_s5 + $0x70] sm:$0xff]  ;;  %v4186_v56 = vld [vmem:[%s10499_s5 + $0x880] sm:$0xff]  ;;  %v4183_v1 = vld [vmem:[%s10499_s5 + $0x868] sm:$0xff] }
 0x54d   :  { %4518 = vmatpush2.msra.mxu1 %v4157_v0  ;;  %4580 = vmatprep.subr.mxu0 %v4266_v32  ;;  %v3830_v0 = vsel %vm3766_vm4, %v3829_v52, %v9202_v22  ;;  %v3925_v22 = vld [vmem:[%s10499_s5 + $0x58] sm:$0xff]  ;;  %v4030_v52 = vld [vmem:[%s10499_s5 + $0x3a0] sm:$0xff] }
 0x54e   :  { %4519 = vmatprep.subr.mxu1 %v4155_v55  ;;  %4581 = vmatpush2.msra.mxu0 %v4265_v12 }
 0x54f   :  { %4520 = vmatpush2.msra.mxu1 %v4154_v34  ;;  %4582 = vmatprep.subr.mxu0 %v4263_v51  ;;  %v3973_v34 = vld [vmem:[%s10499_s5 + $0x1d8] sm:$0xff] }
 0x550   :  { %4522 = vmatmul.mubr.f32.vlgmr.msra.gmra.mxu1 %v3910_v9  ;;  %6064 = vmatprep.subr.mxu1 %v4009_v41 }
 0x551   :  { %6065 = vmatpush3.msra.mxu1 %v3961_v54  ;;  %4663 = vmatprep.mubr.f32.mxu1 %v3907_v20  ;;  %v4256_v20 = vld [vmem:[%s10499_s5 + $0xab0] sm:$0xff]  ;;  %v3970_v54 = vld [vmem:[%s10499_s5 + $0x1c0] sm:$0xff] }
 0x552   :  { %6066 = vmatprep.subr.mxu1 %v4006_v46  ;;  %4583 = vmatpush2.msra.mxu0 %v4262_v45 }
 0x553   :  { %6067 = vmatpush3.msra.mxu1 %v3958_v37  ;;  %4584 = vmatprep.subr.mxu0 %v4260_v57  ;;  %v3922_v37 = vld [vmem:[%s10499_s5 + $0x40] sm:$0xff]  ;;  %v4057_v57 = vld [vmem:[%s10499_s5 + $0x478] sm:$0xff] }
 0x554   :  { %6068 = vmatprep.subr.mxu1 %v4003_v43  ;;  %4585 = vmatpush2.msra.mxu0 %v4259_v14  ;;  %v4102_v43 = vld [vmem:[%s10499_s5 + $0x5e0] sm:$0xff]  ;;  %v3967_v14 = vld [vmem:[%s10499_s5 + $0x1a8] sm:$0xff] }
 0x555   :  { %6069 = vmatpush3.msra.mxu1 %v3955_v58  ;;  %4586 = vmatprep.subr.mxu0 %v4257_v2  ;;  %v4054_v58 = vld [vmem:[%s10499_s5 + $0x460] sm:$0xff]  ;;  %v3919_v2 = vld [vmem:[%s10499_s5 + $0x28] sm:$0xff] }
 0x556   :  { %6070 = vmatprep.subr.mxu1 %v4000_v28  ;;  %4587 = vmatpush2.msra.mxu0 %v4256_v20  ;;  %v4099_v28 = vld [vmem:[%s10499_s5 + $0x5c8] sm:$0xff]  ;;  %v3964_v20 = vld [vmem:[%s10499_s5 + $0x190] sm:$0xff] }
 0x557   :  { %6071 = vmatpush3.msra.mxu1 %v3952_v48  ;;  %4588 = vmatprep.subr.mxu0 %v4254_v16  ;;  %v4051_v48 = vld [vmem:[%s10499_s5 + $0x448] sm:$0xff]  ;;  %v3916_v16 = vld [vmem:[%s10499_s5 + $0x10] sm:$0xff] }
 0x558   :  { %6072 = vmatprep.subr.mxu1 %v3997_v40  ;;  %4589 = vmatpush2.msra.mxu0 %v4253_v53  ;;  %v4201_v40 = vld [vmem:[%s10499_s5 + $0x8f8] sm:$0xff] }
 0x559   :  { %6073 = vmatpush3.msra.mxu1 %v3949_v4  ;;  %4590 = vmatprep.subr.mxu0 %v4251_v17  ;;  %v4093_v53 = vld [vmem:[%s10499_s5 + $0x598] sm:$0xff] }
 0x55a   :  { %6074 = vmatprep.subr.mxu1 %v3994_v19  ;;  %4591 = vmatpush2.msra.mxu0 %v4250_v50  ;;  %v4153_v4 = vld [vmem:[%s10499_s5 + $0x778] sm:$0xff]  ;;  %v4090_v19 = vld [vmem:[%s10499_s5 + $0x580] sm:$0xff] }
 0x55b   :  { %6075 = vmatpush3.msra.mxu1 %v3946_v29  ;;  %6099 = vmatprep.subr.mxu0 %v4105_v27  ;;  %v4045_v17 = vld [vmem:[%s10499_s5 + $0x418] sm:$0xff]  ;;  %v4198_v50 = vld [vmem:[%s10499_s5 + $0x8e0] sm:$0xff]  ;;  %v4195_v27 = vld [vmem:[%s10499_s5 + $0x8c8] sm:$0xff] }
 0x55c   :  { %6076 = vmatprep.subr.mxu1 %v3991_v59  ;;  %v4042_v29 = vld [vmem:[%s10499_s5 + $0x400] sm:$0xff]  ;;  %v4039_v59 = vld [vmem:[%s10499_s5 + $0x3e8] sm:$0xff] }
 0x55d   :  { %6077 = vmatpush3.msra.mxu1 %v3943_v3  ;;  %v4147_v3 = vld [vmem:[%s10499_s5 + $0x748] sm:$0xff] }
 0x55e   :  { %6078 = vmatprep.subr.mxu1 %v3988_v5  ;;  %v4036_v5 = vld [vmem:[%s10499_s5 + $0x3d0] sm:$0xff] }
 0x55f   :  { %6079 = vmatpush3.msra.mxu1 %v3940_v39  ;;  %v4144_v39 = vld [vmem:[%s10499_s5 + $0x730] sm:$0xff] }
 0x560   :  { %6080 = vmatprep.subr.mxu1 %v3985_v23  ;;  %v4081_v23 = vld [vmem:[%s10499_s5 + $0x538] sm:$0xff] }
 0x561   :  { %6081 = vmatpush3.msra.mxu1 %v3937_v60  ;;  %v4141_v60 = vld [vmem:[%s10499_s5 + $0x718] sm:$0xff] }
 0x562   :  { %6082 = vmatprep.subr.mxu1 %v3982_v42  ;;  %v4078_v42 = vld [vmem:[%s10499_s5 + $0x520] sm:$0xff] }
 0x563   :  { %6083 = vmatpush3.msra.mxu1 %v3934_v62  ;;  %v4138_v62 = vld [vmem:[%s10499_s5 + $0x700] sm:$0xff] }
 0x564   :  { %v3846_v30 = vpop.permute.xlu0 %3845  ;;  %v3836_v32 = vpop.permute.xlu1 %3835  ;;  %6084 = vmatprep.subr.mxu1 %v3979_v25  ;;  %v4075_v25 = vld [vmem:[%s10499_s5 + $0x508] sm:$0xff] }
 0x565   :  { %v3855_v55 = vsel %vm866_vm0, %v3840_v44, %v3846_v30  ;;  %v3854_v12 = vsel %vm866_vm0, %v3830_v0, %v3836_v32  ;;  %6085 = vmatpush3.msra.mxu1 %v3931_v21  ;;  %v4072_v21 = vld [vmem:[%s10499_s5 + $0x4f0] sm:$0xff]  ;;  %v4069_v0 = vld [vmem:[%s10499_s5 + $0x4d8] sm:$0xff] }
 0x566   :  { %v9753_v51 = vadd.f32 %v3889_v33, %v3855_v55  ;;  %v9755_v41 = vadd.f32 %v3885_v10, %v3854_v12  ;;  %6086 = vmatprep.subr.mxu1 %v3976_v61  ;;  %v4027_v33 = vld [vmem:[%s10499_s5 + $0x388] sm:$0xff]  ;;  %v4180_v61 = vld [vmem:[%s10499_s5 + $0x850] sm:$0xff]  ;;  %v4177_v32 = vld [vmem:[%s10499_s5 + $0x838] sm:$0xff] }
 0x567   :  { %6087 = vmatpush3.msra.mxu1 %v3928_v47  ;;  %v4135_v10 = vld [vmem:[%s10499_s5 + $0x6e8] sm:$0xff]  ;;  %v4024_v44 = vld [vmem:[%s10499_s5 + $0x370] sm:$0xff]  ;;  %v4021_v47 = vld [vmem:[%s10499_s5 + $0x358] sm:$0xff] }
 0x568   :  { %v3913_v46 = vmax.f32 %v9753_v51, 0.0  ;;  %v3912_v45 = vmax.f32 %v9755_v41, 0.0  ;;  %6088 = vmatprep.subr.mxu1 %v3973_v34  ;;  %v4132_v30 = vld [vmem:[%s10499_s5 + $0x6d0] sm:$0xff]  ;;  %v4129_v55 = vld [vmem:[%s10499_s5 + $0x6b8] sm:$0xff]  ;;  %v4066_v12 = vld [vmem:[%s10499_s5 + $0x4c0] sm:$0xff] }
 0x569   :  { %6089 = vmatpush3.msra.mxu1 %v3925_v22  ;;  %v4174_v34 = vld [vmem:[%s10499_s5 + $0x820] sm:$0xff]  ;;  %v4288_v51 = vld [vmem:[%s10499_s5 + $0xbb0] sm:$0xff] }
 0x56a   :  { %4592 = vmatprep.mubr.f32.mxu0 %v3913_v46  ;;  %6090 = vmatprep.subr.mxu1 %v3970_v54  ;;  %v4018_v22 = vld [vmem:[%s10499_s5 + $0x340] sm:$0xff] }
 0x56b   :  { %4593 = vmatmul.mubr.f32.vlgmr.msra.gmra.mxu0 %v3912_v45  ;;  %6091 = vmatpush3.msra.mxu1 %v3922_v37  ;;  %v4126_v54 = vld [vmem:[%s10499_s5 + $0x6a0] sm:$0xff]  ;;  %v4063_v37 = vld [vmem:[%s10499_s5 + $0x4a8] sm:$0xff] }
 0x56c   :  { %6100 = vmatpush3.msra.mxu0 %v4057_v57  ;;  %4733 = vmatprep.mubr.f32.mxu0 %v3909_v26  ;;  %v4048_v26 = vld [vmem:[%s10499_s5 + $0x430] sm:$0xff]  ;;  %v4171_v57 = vld [vmem:[%s10499_s5 + $0x808] sm:$0xff]  ;;  %v4907_v41 = vld [vmem:[%s10501_s7 + $0x20] sm:$0xff] }
 0x56d   :  { %6101 = vmatprep.subr.mxu0 %v4102_v43  ;;  %6092 = vmatprep.subr.mxu1 %v3967_v14  ;;  %v4015_v43 = vld [vmem:[%s10499_s5 + $0x328] sm:$0xff] }
 0x56e   :  { %6102 = vmatpush3.msra.mxu0 %v4054_v58  ;;  %6093 = vmatpush3.msra.mxu1 %v3919_v2  ;;  %v4123_v14 = vld [vmem:[%s10499_s5 + $0x688] sm:$0xff]  ;;  %v4060_v58 = vld [vmem:[%s10499_s5 + $0x490] sm:$0xff] }
 0x56f   :  { %6103 = vmatprep.subr.mxu0 %v4099_v28  ;;  %6094 = vmatprep.subr.mxu1 %v3964_v20  ;;  %v4168_v2 = vld [vmem:[%s10499_s5 + $0x7f0] sm:$0xff] }
 0x570   :  { %6104 = vmatpush3.msra.mxu0 %v4051_v48  ;;  %6095 = vmatpush3.msra.mxu1 %v3916_v16  ;;  %v4012_v28 = vld [vmem:[%s10499_s5 + $0x310] sm:$0xff]  ;;  %v4297_v48 = vld [vmem:[%s10499_s5 + $0xbf8] sm:$0xff] }
 0x571   :  { %6105 = vmatprep.subr.mxu0 %v4096_v63  ;;  %4664 = vmatmul.mubr.f32.vlgmr.msra.gmra.mxu1 %v3906_v15  ;;  %v4087_v15 = vld [vmem:[%s10499_s5 + $0x568] sm:$0xff]  ;;  %v4120_v20 = vld [vmem:[%s10499_s5 + $0x670] sm:$0xff]  ;;  %v4249_v16 = vld [vmem:[%s10499_s5 + $0xa78] sm:$0xff] }
 0x572   :  { %6106 = vmatpush3.msra.mxu0 %v4048_v26  ;;  %6134 = vmatprep.subr.mxu1 %v4201_v40  ;;  %v4294_v63 = vld [vmem:[%s10499_s5 + $0xbe0] sm:$0xff]  ;;  %v4165_v26 = vld [vmem:[%s10499_s5 + $0x7d8] sm:$0xff] }
 0x573   :  { %6107 = vmatprep.subr.mxu0 %v4093_v53  ;;  %6135 = vmatpush3.msra.mxu1 %v4153_v4  ;;  %v4246_v40 = vld [vmem:[%s10499_s5 + $0xa60] sm:$0xff]  ;;  %v4117_v53 = vld [vmem:[%s10499_s5 + $0x658] sm:$0xff]  ;;  %v4291_v4 = vld [vmem:[%s10499_s5 + $0xbc8] sm:$0xff] }
 0x574   :  { %6108 = vmatpush3.msra.mxu0 %v4045_v17  ;;  %4803 = vmatprep.mubr.f32.mxu1 %v3911_v18  ;;  %v4192_v18 = vld [vmem:[%s10499_s5 + $0x8b0] sm:$0xff]  ;;  %v4114_v17 = vld [vmem:[%s10499_s5 + $0x640] sm:$0xff] }
 0x575   :  { %6109 = vmatprep.subr.mxu0 %v4090_v19  ;;  %6136 = vmatprep.subr.mxu1 %v4198_v50  ;;  %v4240_v19 = vld [vmem:[%s10499_s5 + $0xa30] sm:$0xff]  ;;  %v4111_v50 = vld [vmem:[%s10499_s5 + $0x628] sm:$0xff] }
 0x576   :  { %6110 = vmatpush3.msra.mxu0 %v4042_v29  ;;  %6137 = vmatpush3.msra.mxu1 %v4150_v11  ;;  %v4285_v29 = vld [vmem:[%s10499_s5 + $0xb98] sm:$0xff]  ;;  %v4156_v11 = vld [vmem:[%s10499_s5 + $0x790] sm:$0xff] }
 0x577   :  { %6111 = vmatprep.subr.mxu0 %v4087_v15  ;;  %6138 = vmatprep.subr.mxu1 %v4195_v27  ;;  %v4237_v15 = vld [vmem:[%s10499_s5 + $0xa18] sm:$0xff]  ;;  %v4108_v27 = vld [vmem:[%s10499_s5 + $0x610] sm:$0xff] }
 0x578   :  { %6112 = vmatpush3.msra.mxu0 %v4039_v59  ;;  %6139 = vmatpush3.msra.mxu1 %v4147_v3  ;;  %v4282_v59 = vld [vmem:[%s10499_s5 + $0xb80] sm:$0xff] }
 0x579   :  { %6113 = vmatprep.subr.mxu0 %v4084_v31  ;;  %6140 = vmatprep.subr.mxu1 %v4192_v18  ;;  %v4234_v3 = vld [vmem:[%s10499_s5 + $0xa00] sm:$0xff]  ;;  %v4934_v31 = vld [vmem:[%s10501_s7 + $0xf8] sm:$0xff]  ;;  %v4279_v18 = vld [vmem:[%s10499_s5 + $0xb68] sm:$0xff] }
 0x57a   :  { %6114 = vmatpush3.msra.mxu0 %v4036_v5  ;;  %6141 = vmatpush3.msra.mxu1 %v4144_v39  ;;  %v4933_v5 = vld [vmem:[%s10501_s7 + $0xf0] sm:$0xff]  ;;  %v4231_v39 = vld [vmem:[%s10499_s5 + $0x9e8] sm:$0xff] }
 0x57b   :  { %6115 = vmatprep.subr.mxu0 %v4081_v23  ;;  %6142 = vmatprep.subr.mxu1 %v4189_v24  ;;  %v4932_v23 = vld [vmem:[%s10501_s7 + $0xe8] sm:$0xff]  ;;  %v4276_v24 = vld [vmem:[%s10499_s5 + $0xb50] sm:$0xff] }
 0x57c   :  { %6116 = vmatpush3.msra.mxu0 %v4033_v13  ;;  %6143 = vmatpush3.msra.mxu1 %v4141_v60  ;;  %v4931_v13 = vld [vmem:[%s10501_s7 + $0xe0] sm:$0xff]  ;;  %v4273_v60 = vld [vmem:[%s10499_s5 + $0xb38] sm:$0xff] }
 0x57d   :  { %6117 = vmatprep.subr.mxu0 %v4078_v42  ;;  %6144 = vmatprep.subr.mxu1 %v4186_v56  ;;  %v4929_v42 = vld [vmem:[%s10501_s7 + $0xd0] sm:$0xff]  ;;  %v4225_v56 = vld [vmem:[%s10499_s5 + $0x9b8] sm:$0xff] }
 0x57e   :  { %6118 = vmatpush3.msra.mxu0 %v4030_v52  ;;  %6145 = vmatpush3.msra.mxu1 %v4138_v62  ;;  %v4928_v52 = vld [vmem:[%s10501_s7 + $0xc8] sm:$0xff]  ;;  %v4270_v62 = vld [vmem:[%s10499_s5 + $0xb20] sm:$0xff] }
 0x57f   :  { %6119 = vmatprep.subr.mxu0 %v4075_v25  ;;  %6146 = vmatprep.subr.mxu1 %v4183_v1  ;;  %v4927_v25 = vld [vmem:[%s10501_s7 + $0xc0] sm:$0xff] }
 0x580   :  { %6120 = vmatpush3.msra.mxu0 %v4027_v33  ;;  %6147 = vmatpush3.msra.mxu1 %v4135_v10  ;;  %v4222_v1 = vld [vmem:[%s10499_s5 + $0x9a0] sm:$0xff]  ;;  %v4926_v33 = vld [vmem:[%s10501_s7 + $0xb8] sm:$0xff]  ;;  %v4267_v10 = vld [vmem:[%s10499_s5 + $0xb08] sm:$0xff] }
 0x581   :  { %6121 = vmatprep.subr.mxu0 %v4072_v21  ;;  %6148 = vmatprep.subr.mxu1 %v4180_v61  ;;  %v4925_v21 = vld [vmem:[%s10501_s7 + $0xb0] sm:$0xff]  ;;  %v4219_v61 = vld [vmem:[%s10499_s5 + $0x988] sm:$0xff] }
 0x582   :  { %6122 = vmatpush3.msra.mxu0 %v4024_v44  ;;  %6149 = vmatpush3.msra.mxu1 %v4132_v30  ;;  %v4924_v44 = vld [vmem:[%s10501_s7 + $0xa8] sm:$0xff]  ;;  %v4264_v30 = vld [vmem:[%s10499_s5 + $0xaf0] sm:$0xff] }
 0x583   :  { %6123 = vmatprep.subr.mxu0 %v4069_v0  ;;  %6150 = vmatprep.subr.mxu1 %v4177_v32  ;;  %v4923_v0 = vld [vmem:[%s10501_s7 + $0xa0] sm:$0xff]  ;;  %v4216_v32 = vld [vmem:[%s10499_s5 + $0x970] sm:$0xff] }
 0x584   :  { %6124 = vmatpush3.msra.mxu0 %v4021_v47  ;;  %6151 = vmatpush3.msra.mxu1 %v4129_v55  ;;  %v4922_v47 = vld [vmem:[%s10501_s7 + $0x98] sm:$0xff] }
 0x585   :  { %6125 = vmatprep.subr.mxu0 %v4066_v12  ;;  %6152 = vmatprep.subr.mxu1 %v4174_v34  ;;  %v4261_v55 = vld [vmem:[%s10499_s5 + $0xad8] sm:$0xff]  ;;  %v4921_v12 = vld [vmem:[%s10501_s7 + $0x90] sm:$0xff] }
 0x586   :  { %6126 = vmatpush3.msra.mxu0 %v4018_v22  ;;  %6153 = vmatpush3.msra.mxu1 %v4126_v54  ;;  %v4213_v34 = vld [vmem:[%s10499_s5 + $0x958] sm:$0xff]  ;;  %v4920_v22 = vld [vmem:[%s10501_s7 + $0x88] sm:$0xff]  ;;  %v4258_v54 = vld [vmem:[%s10499_s5 + $0xac0] sm:$0xff] }
 0x587   :  { %6127 = vmatprep.subr.mxu0 %v4063_v37  ;;  %6154 = vmatprep.subr.mxu1 %v4171_v57  ;;  %v4919_v37 = vld [vmem:[%s10501_s7 + $0x80] sm:$0xff] }
 0x588   :  { %6128 = vmatpush3.msra.mxu0 %v4015_v43  ;;  %6155 = vmatpush3.msra.mxu1 %v4123_v14  ;;  %v4210_v57 = vld [vmem:[%s10499_s5 + $0x940] sm:$0xff]  ;;  %v4918_v43 = vld [vmem:[%s10501_s7 + $0x78] sm:$0xff]  ;;  %v4255_v14 = vld [vmem:[%s10499_s5 + $0xaa8] sm:$0xff] }
 0x589   :  { %6129 = vmatprep.subr.mxu0 %v4060_v58  ;;  %6156 = vmatprep.subr.mxu1 %v4168_v2  ;;  %v4917_v58 = vld [vmem:[%s10501_s7 + $0x70] sm:$0xff]  ;;  %v4207_v2 = vld [vmem:[%s10499_s5 + $0x928] sm:$0xff] }
 0x58a   :  { %6130 = vmatpush3.msra.mxu0 %v4012_v28  ;;  %6157 = vmatpush3.msra.mxu1 %v4120_v20  ;;  %v4916_v28 = vld [vmem:[%s10501_s7 + $0x68] sm:$0xff]  ;;  %v4252_v20 = vld [vmem:[%s10499_s5 + $0xa90] sm:$0xff] }
 0x58b   :  { %4734 = vmatmul.mubr.f32.vlgmr.msra.gmra.mxu0 %v3908_v36  ;;  %6169 = vmatprep.subr.mxu0 %v4297_v48  ;;  %v4243_v36 = vld [vmem:[%s10499_s5 + $0xa48] sm:$0xff]  ;;  %v4915_v48 = vld [vmem:[%s10501_s7 + $0x60] sm:$0xff] }
 0x58c   :  { %6170 = vmatpush3.msra.mxu0 %v4249_v16  ;;  %4873 = vmatprep.mubr.f32.mxu0 %v3913_v46  ;;  %v4159_v46 = vld [vmem:[%s10499_s5 + $0x7a8] sm:$0xff]  ;;  %v4204_v16 = vld [vmem:[%s10499_s5 + $0x910] sm:$0xff] }
 0x58d   :  { %6171 = vmatprep.subr.mxu0 %v4294_v63  ;;  %6158 = vmatprep.subr.mxu1 %v4165_v26  ;;  %v4914_v63 = vld [vmem:[%s10501_s7 + $0x58] sm:$0xff]  ;;  %v4913_v26 = vld [vmem:[%s10501_s7 + $0x50] sm:$0xff] }
 0x58e   :  { %6172 = vmatpush3.msra.mxu0 %v4246_v40  ;;  %6159 = vmatpush3.msra.mxu1 %v4117_v53  ;;  %v4912_v40 = vld [vmem:[%s10501_s7 + $0x48] sm:$0xff]  ;;  %v4911_v53 = vld [vmem:[%s10501_s7 + $0x40] sm:$0xff] }
 0x58f   :  { %6173 = vmatprep.subr.mxu0 %v4291_v4  ;;  %6160 = vmatprep.subr.mxu1 %v4162_v38  ;;  %v4910_v4 = vld [vmem:[%s10501_s7 + $0x38] sm:$0xff]  ;;  %v4909_v38 = vld [vmem:[%s10501_s7 + $0x30] sm:$0xff] }
 0x590   :  { %6174 = vmatpush3.msra.mxu0 %v4243_v36  ;;  %6161 = vmatpush3.msra.mxu1 %v4114_v17  ;;  %v10561_v36 = vmov 0.0   ;;  %v4908_v17 = vld [vmem:[%s10501_s7 + $0x28] sm:$0xff] }
 0x591   :  { %6175 = vmatprep.subr.mxu0 %v4288_v51  ;;  %6162 = vmatprep.subr.mxu1 %v4159_v46  ;;  %v4905_v51 = vld [vmem:[%s10501_s7 + $0x10] sm:$0xff]  ;;  %v4904_v46 = vld [vmem:[%s10501_s7 + $0x8] sm:$0xff] }
 0x592   :  { %6176 = vmatpush3.msra.mxu0 %v4240_v19  ;;  %6163 = vmatpush3.msra.mxu1 %v4111_v50  ;;  %v4903_v19 = vld [vmem:[%s10501_s7] sm:$0xff]  ;;  %v4966_v50 = vld [vmem:[%s10501_s7 + $0x1f8] sm:$0xff] }
 0x593   :  { %6177 = vmatprep.subr.mxu0 %v4285_v29  ;;  %6164 = vmatprep.subr.mxu1 %v4156_v11  ;;  %v4965_v29 = vld [vmem:[%s10501_s7 + $0x1f0] sm:$0xff]  ;;  %v4964_v11 = vld [vmem:[%s10501_s7 + $0x1e8] sm:$0xff] }
 0x594   :  { %6178 = vmatpush3.msra.mxu0 %v4237_v15  ;;  %6165 = vmatpush3.msra.mxu1 %v4108_v27  ;;  %v4963_v15 = vld [vmem:[%s10501_s7 + $0x1e0] sm:$0xff]  ;;  %v4962_v27 = vld [vmem:[%s10501_s7 + $0x1d8] sm:$0xff] }
 0x595   :  { %6179 = vmatprep.subr.mxu0 %v4282_v59  ;;  %4804 = vmatmul.mubr.f32.vlgmr.msra.gmra.mxu1 %v3910_v9  ;;  %v4930_v9 = vld [vmem:[%s10501_s7 + $0xd8] sm:$0xff]  ;;  %v4961_v59 = vld [vmem:[%s10501_s7 + $0x1d0] sm:$0xff] }
 0x596   :  { %6180 = vmatpush3.msra.mxu0 %v4234_v3  ;;  %5011 = vmatprep.subr.mxu1 %v4934_v31  ;;  %v4960_v3 = vld [vmem:[%s10501_s7 + $0x1c8] sm:$0xff]  ;;  %v4959_v31 = vld [vmem:[%s10501_s7 + $0x1c0] sm:$0xff] }
 0x597   :  { %6181 = vmatprep.subr.mxu0 %v4279_v18  ;;  %5012 = vmatpush1.msra.mxu1 %v4933_v5  ;;  %v4958_v18 = vld [vmem:[%s10501_s7 + $0x1b8] sm:$0xff]  ;;  %v4957_v5 = vld [vmem:[%s10501_s7 + $0x1b0] sm:$0xff] }
 0x598   :  { %6182 = vmatpush3.msra.mxu0 %v4231_v39  ;;  %5013 = vmatprep.subr.mxu1 %v4932_v23  ;;  %v4956_v39 = vld [vmem:[%s10501_s7 + $0x1a8] sm:$0xff]  ;;  %v4955_v23 = vld [vmem:[%s10501_s7 + $0x1a0] sm:$0xff] }
 0x599   :  { %6183 = vmatprep.subr.mxu0 %v4276_v24  ;;  %5014 = vmatpush1.msra.mxu1 %v4931_v13  ;;  %v4954_v24 = vld [vmem:[%s10501_s7 + $0x198] sm:$0xff]  ;;  %v4953_v13 = vld [vmem:[%s10501_s7 + $0x190] sm:$0xff] }
 0x59a   :  { %6184 = vmatpush3.msra.mxu0 %v4228_v35  ;;  %5015 = vmatprep.subr.mxu1 %v4930_v9  ;;  %v4952_v35 = vld [vmem:[%s10501_s7 + $0x188] sm:$0xff]  ;;  %v4951_v9 = vld [vmem:[%s10501_s7 + $0x180] sm:$0xff] }
 0x59b   :  { %6185 = vmatprep.subr.mxu0 %v4273_v60  ;;  %5016 = vmatpush1.msra.mxu1 %v4929_v42  ;;  %v4950_v60 = vld [vmem:[%s10501_s7 + $0x178] sm:$0xff]  ;;  %v4949_v42 = vld [vmem:[%s10501_s7 + $0x170] sm:$0xff] }
 0x59c   :  { %6186 = vmatpush3.msra.mxu0 %v4225_v56  ;;  %5017 = vmatprep.subr.mxu1 %v4928_v52  ;;  %v4948_v56 = vld [vmem:[%s10501_s7 + $0x168] sm:$0xff]  ;;  %v4947_v52 = vld [vmem:[%s10501_s7 + $0x160] sm:$0xff] }
 0x59d   :  { %6187 = vmatprep.subr.mxu0 %v4270_v62  ;;  %5018 = vmatpush1.msra.mxu1 %v4927_v25  ;;  %v4946_v62 = vld [vmem:[%s10501_s7 + $0x158] sm:$0xff]  ;;  %v4945_v25 = vld [vmem:[%s10501_s7 + $0x150] sm:$0xff] }
 0x59e   :  { %6188 = vmatpush3.msra.mxu0 %v4222_v1  ;;  %5019 = vmatprep.subr.mxu1 %v4926_v33  ;;  %v4944_v1 = vld [vmem:[%s10501_s7 + $0x148] sm:$0xff]  ;;  %v4943_v33 = vld [vmem:[%s10501_s7 + $0x140] sm:$0xff] }
 0x59f   :  { %6189 = vmatprep.subr.mxu0 %v4267_v10  ;;  %5020 = vmatpush1.msra.mxu1 %v4925_v21  ;;  %v4942_v10 = vld [vmem:[%s10501_s7 + $0x138] sm:$0xff]  ;;  %v4941_v21 = vld [vmem:[%s10501_s7 + $0x130] sm:$0xff] }
 0x5a0   :  { %6190 = vmatpush3.msra.mxu0 %v4219_v61  ;;  %5021 = vmatprep.subr.mxu1 %v4924_v44  ;;  %v4940_v61 = vld [vmem:[%s10501_s7 + $0x128] sm:$0xff]  ;;  %v4939_v44 = vld [vmem:[%s10501_s7 + $0x120] sm:$0xff] }
 0x5a1   :  { %6191 = vmatprep.subr.mxu0 %v4264_v30  ;;  %5022 = vmatpush1.msra.mxu1 %v4923_v0  ;;  %v4938_v30 = vld [vmem:[%s10501_s7 + $0x118] sm:$0xff]  ;;  %v4937_v0 = vld [vmem:[%s10501_s7 + $0x110] sm:$0xff] }
 0x5a2   :  { %6192 = vmatpush3.msra.mxu0 %v4216_v32  ;;  %5023 = vmatprep.subr.mxu1 %v4922_v47  ;;  %v4998_v32 = vld [vmem:[%s10501_s7 + $0x2f8] sm:$0xff]  ;;  %v4997_v47 = vld [vmem:[%s10501_s7 + $0x2f0] sm:$0xff] }
 0x5a3   :  { %6193 = vmatprep.subr.mxu0 %v4261_v55  ;;  %5024 = vmatpush1.msra.mxu1 %v4921_v12  ;;  %v4996_v55 = vld [vmem:[%s10501_s7 + $0x2e8] sm:$0xff] }
 0x5a4   :  { %6194 = vmatpush3.msra.mxu0 %v4213_v34  ;;  %5025 = vmatprep.subr.mxu1 %v4920_v22  ;;  %v4936_v12 = vld [vmem:[%s10501_s7 + $0x108] sm:$0xff]  ;;  %v4995_v34 = vld [vmem:[%s10501_s7 + $0x2e0] sm:$0xff] }
 0x5a5   :  { %6195 = vmatprep.subr.mxu0 %v4258_v54  ;;  %5026 = vmatpush1.msra.mxu1 %v4919_v37  ;;  %v4935_v22 = vld [vmem:[%s10501_s7 + $0x100] sm:$0xff]  ;;  %v4994_v54 = vld [vmem:[%s10501_s7 + $0x2d8] sm:$0xff]  ;;  %v4993_v37 = vld [vmem:[%s10501_s7 + $0x2d0] sm:$0xff] }
 0x5a6   :  { %6196 = vmatpush3.msra.mxu0 %v4210_v57  ;;  %5027 = vmatprep.subr.mxu1 %v4918_v43  ;;  %v4992_v57 = vld [vmem:[%s10501_s7 + $0x2c8] sm:$0xff]  ;;  %v4991_v43 = vld [vmem:[%s10501_s7 + $0x2c0] sm:$0xff] }
 0x5a7   :  { %6197 = vmatprep.subr.mxu0 %v4255_v14  ;;  %5028 = vmatpush1.msra.mxu1 %v4917_v58  ;;  %v4990_v14 = vld [vmem:[%s10501_s7 + $0x2b8] sm:$0xff]  ;;  %v4989_v58 = vld [vmem:[%s10501_s7 + $0x2b0] sm:$0xff] }
 0x5a8   :  { %6198 = vmatpush3.msra.mxu0 %v4207_v2  ;;  %5029 = vmatprep.subr.mxu1 %v4916_v28  ;;  %v4988_v2 = vld [vmem:[%s10501_s7 + $0x2a8] sm:$0xff]  ;;  %v4987_v28 = vld [vmem:[%s10501_s7 + $0x2a0] sm:$0xff] }
 0x5a9   :  { %6199 = vmatprep.subr.mxu0 %v4252_v20  ;;  %5030 = vmatpush1.msra.mxu1 %v4915_v48  ;;  %v4986_v20 = vld [vmem:[%s10501_s7 + $0x298] sm:$0xff]  ;;  %v4985_v48 = vld [vmem:[%s10501_s7 + $0x290] sm:$0xff] }
 0x5aa   :  { %6200 = vmatpush3.msra.mxu0 %v4204_v16  ;;  %5031 = vmatprep.subr.mxu1 %v4914_v63  ;;  %v4984_v16 = vld [vmem:[%s10501_s7 + $0x288] sm:$0xff]  ;;  %v4983_v63 = vld [vmem:[%s10501_s7 + $0x280] sm:$0xff] }
 0x5ab   :  { %4874 = vmatmul.mubr.f32.vlgmr.msra.gmra.mxu0 %v3912_v45  ;;  %5032 = vmatpush1.msra.mxu1 %v4913_v26  ;;  %v4906_v45 = vld [vmem:[%s10501_s7 + $0x18] sm:$0xff] }
 0x5ac   :  { %5033 = vmatprep.subr.mxu1 %v4912_v40  ;;  %5146 = vmatprep.mubr.f32.mxu0 %v10561_v36  ;;  %v4982_v26 = vld [vmem:[%s10501_s7 + $0x278] sm:$0xff]  ;;  %v4981_v40 = vld [vmem:[%s10501_s7 + $0x270] sm:$0xff] }
 0x5ad   :  { %5034 = vmatpush1.msra.mxu1 %v4911_v53  ;;  %5082 = vmatprep.subr.mxu0 %v4998_v32  ;;  %v4980_v53 = vld [vmem:[%s10501_s7 + $0x268] sm:$0xff] }
 0x5ae   :  { %5035 = vmatprep.subr.mxu1 %v4910_v4  ;;  %5083 = vmatpush1.msra.mxu0 %v4997_v47  ;;  %v4979_v4 = vld [vmem:[%s10501_s7 + $0x260] sm:$0xff] }
 0x5af   :  { %5036 = vmatpush1.msra.mxu1 %v4909_v38  ;;  %5084 = vmatprep.subr.mxu0 %v4996_v55  ;;  %v4978_v38 = vld [vmem:[%s10501_s7 + $0x258] sm:$0xff] }
 0x5b0   :  { %5037 = vmatprep.subr.mxu1 %v4908_v17  ;;  %5085 = vmatpush1.msra.mxu0 %v4995_v34  ;;  %v4977_v17 = vld [vmem:[%s10501_s7 + $0x250] sm:$0xff] }
 0x5b1   :  { %5038 = vmatpush1.msra.mxu1 %v4907_v41  ;;  %5086 = vmatprep.subr.mxu0 %v4994_v54  ;;  %v4976_v41 = vld [vmem:[%s10501_s7 + $0x248] sm:$0xff]  ;;  %v6493_v54 = vmov 1983009808  }
 0x5b2   :  { %5039 = vmatprep.subr.mxu1 %v4906_v45  ;;  %5087 = vmatpush1.msra.mxu0 %v4993_v37  ;;  %v4975_v45 = vld [vmem:[%s10501_s7 + $0x240] sm:$0xff]  ;;  %v4887_v37 = vunpack.c.l.s4 %v6493_v54 }
 0x5b3   :  { %5040 = vmatpush1.msra.mxu1 %v4905_v51  ;;  %5088 = vmatprep.subr.mxu0 %v4992_v57  ;;  %v4974_v51 = vld [vmem:[%s10501_s7 + $0x238] sm:$0xff] }
 0x5b4   :  { %5041 = vmatprep.subr.mxu1 %v4904_v46  ;;  %5089 = vmatpush1.msra.mxu0 %v4991_v43  ;;  %v4973_v46 = vld [vmem:[%s10501_s7 + $0x230] sm:$0xff] }
 0x5b5   :  { %5042 = vmatpush1.msra.mxu1 %v4903_v19  ;;  %5090 = vmatprep.subr.mxu0 %v4990_v14  ;;  %v4972_v19 = vld [vmem:[%s10501_s7 + $0x228] sm:$0xff] }
 0x5b6   :  { %5043 = vmatprep.subr.mxu1 %v4966_v50  ;;  %5091 = vmatpush1.msra.mxu0 %v4989_v58  ;;  %v4971_v50 = vld [vmem:[%s10501_s7 + $0x220] sm:$0xff] }
 0x5b7   :  { %5044 = vmatpush2.msra.mxu1 %v4965_v29  ;;  %5092 = vmatprep.subr.mxu0 %v4988_v2  ;;  %v4970_v29 = vld [vmem:[%s10501_s7 + $0x218] sm:$0xff]  ;;  %v4888_v2 = vunpack.c.0.s8 %v4887_v37 }
 0x5b8   :  { %5045 = vmatprep.subr.mxu1 %v4964_v11  ;;  %5093 = vmatpush1.msra.mxu0 %v4987_v28  ;;  %v4969_v11 = vld [vmem:[%s10501_s7 + $0x210] sm:$0xff] }
 0x5b9   :  { %5046 = vmatpush2.msra.mxu1 %v4963_v15  ;;  %5094 = vmatprep.subr.mxu0 %v4986_v20  ;;  %v4968_v15 = vld [vmem:[%s10501_s7 + $0x208] sm:$0xff] }
 0x5ba   :  { %5047 = vmatprep.subr.mxu1 %v4962_v27  ;;  %5095 = vmatpush1.msra.mxu0 %v4985_v48  ;;  %v4967_v27 = vld [vmem:[%s10501_s7 + $0x200] sm:$0xff] }
 0x5bb   :  { %5048 = vmatpush2.msra.mxu1 %v4961_v59  ;;  %5096 = vmatprep.subr.mxu0 %v4984_v16  ;;  %v4298_v59 = vld [vmem:[%s10500_s6] sm:$0x7] }
 0x5bc   :  { %5049 = vmatprep.subr.mxu1 %v4960_v3  ;;  %5097 = vmatpush1.msra.mxu0 %v4983_v63  ;;  %v4311_v55 = vrot.slane %v4298_v59, %v3868_v49  ;;  %v4891_v63 = vsub.s32 %v4888_v2, %v9214_v6  ;;  %v5168_v6 = vld [vmem:[%s10503_s9 + $0x68] sm:$0xff] }
 0x5bd   :  { %5050 = vmatpush2.msra.mxu1 %v4959_v31  ;;  %5098 = vmatprep.subr.mxu0 %v4982_v26  ;;  %v4303_v31 = vrot.slane %v4298_v59, %v9220_v7 }
 0x5be   :  { %5051 = vmatprep.subr.mxu1 %v4958_v18  ;;  %5099 = vmatpush1.msra.mxu0 %v4981_v40 }
 0x5bf   :  { %5052 = vmatpush2.msra.mxu1 %v4957_v5  ;;  %5100 = vmatprep.subr.mxu0 %v4980_v53  ;;  %v5170_v53 = vld [vmem:[%s10503_s9 + $0x78] sm:$0xff] }
 0x5c0   :  { %5053 = vmatprep.subr.mxu1 %v4956_v39  ;;  %5101 = vmatpush1.msra.mxu0 %v4979_v4  ;;  %v4307_v39 = vrot.slane %v4298_v59, %v9217_v8  ;;  %v5169_v4 = vld [vmem:[%s10503_s9 + $0x70] sm:$0xff]  ;;  %v5156_v59 = vld [vmem:[%s10503_s9 + $0x8] sm:$0xff] }
 0x5c1   :  { %5054 = vmatpush2.msra.mxu1 %v4955_v23  ;;  %5102 = vmatprep.subr.mxu0 %v4978_v38 }
 0x5c2   :  { %5055 = vmatprep.subr.mxu1 %v4954_v24  ;;  %5103 = vmatpush1.msra.mxu0 %v4977_v17  ;;  %v5167_v17 = vld [vmem:[%s10503_s9 + $0x60] sm:$0xff] }
 0x5c3   :  { %5056 = vmatpush2.msra.mxu1 %v4953_v13  ;;  %5104 = vmatprep.subr.mxu0 %v4976_v41  ;;  %v5166_v41 = vld [vmem:[%s10503_s9 + $0x58] sm:$0xff] }
 0x5c4   :  { %5057 = vmatprep.subr.mxu1 %v4952_v35  ;;  %5105 = vmatpush1.msra.mxu0 %v4975_v45  ;;  %v5165_v45 = vld [vmem:[%s10503_s9 + $0x50] sm:$0xff] }
 0x5c5   :  { %5058 = vmatpush2.msra.mxu1 %v4951_v9  ;;  %5106 = vmatprep.subr.mxu0 %v4974_v51  ;;  %v5164_v51 = vld [vmem:[%s10503_s9 + $0x48] sm:$0xff] }
 0x5c6   :  { %5059 = vmatprep.subr.mxu1 %v4950_v60  ;;  %5107 = vmatpush1.msra.mxu0 %v4973_v46  ;;  %v5163_v46 = vld [vmem:[%s10503_s9 + $0x40] sm:$0xff] }
 0x5c7   :  { %5060 = vmatpush2.msra.mxu1 %v4949_v42  ;;  %5108 = vmatprep.subr.mxu0 %v4972_v19  ;;  %v5162_v19 = vld [vmem:[%s10503_s9 + $0x38] sm:$0xff] }
 0x5c8   :  { %5061 = vmatprep.subr.mxu1 %v4948_v56  ;;  %5109 = vmatpush1.msra.mxu0 %v4971_v50  ;;  %v5161_v50 = vld [vmem:[%s10503_s9 + $0x30] sm:$0xff] }
 0x5c9   :  { %5062 = vmatpush2.msra.mxu1 %v4947_v52  ;;  %5110 = vmatprep.subr.mxu0 %v4970_v29  ;;  %v5160_v29 = vld [vmem:[%s10503_s9 + $0x28] sm:$0xff] }
 0x5ca   :  { %5063 = vmatprep.subr.mxu1 %v4946_v62  ;;  %5111 = vmatpush1.msra.mxu0 %v4969_v11  ;;  %v5159_v11 = vld [vmem:[%s10503_s9 + $0x20] sm:$0xff] }
 0x5cb   :  { %5064 = vmatpush2.msra.mxu1 %v4945_v25  ;;  %5112 = vmatprep.subr.mxu0 %v4968_v15  ;;  %v5158_v15 = vld [vmem:[%s10503_s9 + $0x18] sm:$0xff] }
 0x5cc   :  { %5065 = vmatprep.subr.mxu1 %v4944_v1  ;;  %5113 = vmatpush1.msra.mxu0 %v4967_v27  ;;  %v5157_v27 = vld [vmem:[%s10503_s9 + $0x10] sm:$0xff] }
 0x5cd   :  { %5066 = vmatpush2.msra.mxu1 %v4943_v33  ;;  %5189 = vmatprep.subr.mxu0 %v10561_v36 }
 0x5ce   :  { %5067 = vmatprep.subr.mxu1 %v4942_v10 }
 0x5cf   :  { %5068 = vmatpush2.msra.mxu1 %v4941_v21 }
 0x5d0   :  { %5069 = vmatprep.subr.mxu1 %v4940_v61  ;;  %v4381_v3 = vpop.f32.mrf.mxu1 }
 0x5d1   :  { %5070 = vmatpush2.msra.mxu1 %v4939_v44  ;;  %v4382_v24 = vadd.f32 %v4381_v3, %v4303_v31  ;;  %v5155_v3 = vld [vmem:[%s10503_s9] sm:$0xff]  ;;  %v5178_v31 = vld [vmem:[%s10503_s9 + $0xb8] sm:$0xff] }
 0x5d2   :  { %5071 = vmatprep.subr.mxu1 %v4938_v30  ;;  %v4383_v18 = vpop.f32.mrf.mxu1 }
 0x5d3   :  { %5072 = vmatpush2.msra.mxu1 %v4937_v0  ;;  %v4384_v35 = vadd.f32 %v4383_v18, %v4307_v39  ;;  %v5177_v18 = vld [vmem:[%s10503_s9 + $0xb0] sm:$0xff]  ;;  %v5175_v39 = vld [vmem:[%s10503_s9 + $0xa0] sm:$0xff] }
 0x5d4   :  { %5073 = vmatprep.subr.mxu1 %v4936_v12 }
 0x5d5   :  { %5074 = vmatpush2.msra.mxu1 %v4935_v22 }
 0x5d8   :  { %v4452_v5 = vpop.f32.mrf.mxu0 }
 0x5d9   :  { %v4453_v9 = vadd.f32 %v4452_v5, %v4382_v24  ;;  %v5176_v5 = vld [vmem:[%s10503_s9 + $0xa8] sm:$0xff]  ;;  %v5173_v24 = vld [vmem:[%s10503_s9 + $0x90] sm:$0xff] }
 0x5da   :  { %v4454_v13 = vpop.f32.mrf.mxu0 }
 0x5db   :  { %v4455_v42 = vadd.f32 %v4454_v13, %v4384_v35  ;;  %v5172_v13 = vld [vmem:[%s10503_s9 + $0x88] sm:$0xff]  ;;  %v5171_v35 = vld [vmem:[%s10503_s9 + $0x80] sm:$0xff] }
 0x610   :  { %v4523_v23 = vpop.f32.mrf.mxu1 }
 0x611   :  { %v4524_v56 = vadd.f32 %v4523_v23, %v4453_v9  ;;  %v5174_v23 = vld [vmem:[%s10503_s9 + $0x98] sm:$0xff]  ;;  %v4999_v9 = vld [vmem:[%s10502_s8] sm:$0x3]  ;;  %s6494_s8 = smov [#allocation7]  }
 0x612   :  { %v4525_v60 = vpop.f32.mrf.mxu1  ;;  %s5289_s26 = sshll.u32 %s6494_s8, 4  ;;  %s5290_s26 = int_to_ptr.vmem [resolvable:$true] %s5289_s26 }
 0x613   :  { %v4526_v62 = vadd.f32 %v4525_v60, %v4455_v42  ;;  %v5004_v42 = vrot.slane %v4999_v9, %v9220_v7  ;;  %s6447_s6 = scalar_lea.vmem %s5290_s26, 96  ;;  %p6452_p1 = scmp.lt.s32.totalorder %s5290_s26, %s5290_s26 }
 0x614   :  { %p6448_p0 = scmp.ne.s32.totalorder %s5290_s26, %s6447_s6  ;;  %p6453_p2 = scmp.lt.s32.totalorder %s6447_s6, %s6447_s6 }
 0x616   :  { %p6454_p3 = por %p6453_p2, %p6452_p1 }
 0x618   :  { %p6455_p4 = pnand %p6454_p3, %p6448_p0 }
 0x62b   :  { %v4594_v52 = vpop.f32.mrf.mxu0 }
 0x62c   :  { %v4595_v25 = vadd.f32 %v4594_v52, %v4524_v56  ;;  %v5008_v56 = vrot.slane %v4999_v9, %v9217_v8 }
 0x62d   :  { %v4596_v1 = vpop.f32.mrf.mxu0 }
 0x62e   :  { %v4597_v33 = vadd.f32 %v4596_v1, %v4526_v62  ;;  %v4879_v10 = vmax.f32 %v4595_v25, 0.0 }
 0x630   :  { %v4880_v21 = vmax.f32 %v4597_v33, 0.0 }
 0x631   :  { %v6096_v44 = vpop.f32.mrf.mxu1 }
 0x632   :  { %v4885_v61 = vcombine.low %v4879_v10, %v4880_v21  ;;  %5075 = vmatprep.mubr.f32.mxu1 %v4880_v21 }
 0x633   :  { %5076 = vmatmul.mubr.f32.vlgmr.msra.gmra.mxu1 %v4879_v10  ;;  %v6097_v30 = vpop.f32.mrf.mxu1 }
 0x634   :  { %v6098_v12 = vadd.f32 %v6097_v30, %v6096_v44  ;;  %v4892_v40 = vrot.slane %v4885_v61, %v4891_v63 }
 0x636   :  { %v4666_v57 = vadd.f32 %v6098_v12, %v4311_v55 }
 0x64b   :  { %v6131_v0 = vpop.f32.mrf.mxu0 }
 0x64d   :  { %v6132_v47 = vpop.f32.mrf.mxu0 }
 0x64e   :  { %v6133_v22 = vadd.f32 %v6132_v47, %v6131_v0 }
 0x650   :  { %v4736_v58 = vadd.f32 %v6133_v22, %v4666_v57 }
 0x655   :  { %v6166_v32 = vpop.f32.mrf.mxu1 }
 0x657   :  { %v6167_v34 = vpop.f32.mrf.mxu1 }
 0x658   :  { %v6168_v43 = vadd.f32 %v6167_v34, %v6166_v32 }
 0x65a   :  { %v4806_v20 = vadd.f32 %v6168_v43, %v4736_v58 }
 0x66b   :  { %v6201_v14 = vpop.f32.mrf.mxu0 }
 0x66d   :  { %v6202_v28 = vpop.f32.mrf.mxu0 }
 0x66e   :  { %v6203_v48 = vadd.f32 %v6202_v28, %v6201_v14 }
 0x670   :  { %v4876_v16 = vadd.f32 %v6203_v48, %v4806_v20 }
 0x672   :  { %v4881_v26 = vmax.f32 %v4876_v16, 0.0 }
 0x674   :  { %5147 = vmatmul.mubr.f32.vlgmr.msra.gmra.mxu0 %v4881_v26  ;;  %v4899_v49 = vrot.slane %v4881_v26, %v4891_v63 }
 0x675   :  { %5190 = vmatpush1.msra.mxu0 %v5170_v53 }
 0x676   :  { %v4900_v38 = vcombine.low %v4892_v40, %v4899_v49  ;;  %5191 = vmatprep.subr.mxu0 %v10561_v36 }
 0x677   :  { %5192 = vmatpush1.msra.mxu0 %v5169_v4 }
 0x678   :  { %4902 = vst [vmem:[#allocation7] sm:$0x3f] %v4900_v38  ;;  %5193 = vmatprep.subr.mxu0 %v10561_v36 }
 0x679   :  { %5194 = vmatpush1.msra.mxu0 %v5168_v6 }
 0x67a   :  { %5195 = vmatprep.subr.mxu0 %v10561_v36 }
 0x67b   :  { %5196 = vmatpush1.msra.mxu0 %v5167_v17 }
 0x67c   :  { %5197 = vmatprep.subr.mxu0 %v10561_v36 }
 0x67d   :  { %5198 = vmatpush1.msra.mxu0 %v5166_v41 }
 0x67e   :  { %5199 = vmatprep.subr.mxu0 %v10561_v36 }
 0x67f   :  { %5200 = vmatpush1.msra.mxu0 %v5165_v45 }
 0x680   :  { %5201 = vmatprep.subr.mxu0 %v10561_v36 }
 0x681   :  { %5202 = vmatpush1.msra.mxu0 %v5164_v51 }
 0x682   :  { %5203 = vmatprep.subr.mxu0 %v10561_v36 }
 0x683   :  { %5204 = vmatpush1.msra.mxu0 %v5163_v46 }
 0x684   :  { %5205 = vmatprep.subr.mxu0 %v10561_v36 }
 0x685   :  { %5206 = vmatpush1.msra.mxu0 %v5162_v19 }
 0x686   :  { %5207 = vmatprep.subr.mxu0 %v10561_v36 }
 0x687   :  { %5208 = vmatpush1.msra.mxu0 %v5161_v50 }
 0x688   :  { %5209 = vmatprep.subr.mxu0 %v10561_v36 }
 0x689   :  { %5210 = vmatpush1.msra.mxu0 %v5160_v29 }
 0x68a   :  { %5211 = vmatprep.subr.mxu0 %v10561_v36 }
 0x68b   :  { %5212 = vmatpush1.msra.mxu0 %v5159_v11 }
 0x68c   :  { %5213 = vmatprep.subr.mxu0 %v10561_v36 }
 0x68d   :  { %5214 = vmatpush1.msra.mxu0 %v5158_v15 }
 0x68e   :  { %5215 = vmatprep.subr.mxu0 %v10561_v36 }
 0x68f   :  { %5216 = vmatpush1.msra.mxu0 %v5157_v27 }
 0x690   :  { %5217 = vmatprep.subr.mxu0 %v10561_v36 }
 0x691   :  { %5218 = vmatpush1.msra.mxu0 %v5156_v59 }
 0x692   :  { %5219 = vmatprep.subr.mxu0 %v10561_v36 }
 0x693   :  { %5220 = vmatpush1.msra.mxu0 %v5155_v3 }
 0x694   :  { %5237 = vmatprep.subr.mxu0 %v10561_v36 }
 0x695   :  { %5238 = vmatpush2.msra.mxu0 %v5178_v31 }
 0x696   :  { %5239 = vmatprep.subr.mxu0 %v10561_v36 }
 0x697   :  { %5240 = vmatpush2.msra.mxu0 %v5177_v18 }
 0x698   :  { %5241 = vmatprep.subr.mxu0 %v10561_v36 }
 0x699   :  { %5242 = vmatpush2.msra.mxu0 %v5176_v5 }
 0x69a   :  { %5243 = vmatprep.subr.mxu0 %v10561_v36 }
 0x69b   :  { %5244 = vmatpush2.msra.mxu0 %v5175_v39 }
 0x69c   :  { %5245 = vmatprep.subr.mxu0 %v10561_v36 }
 0x69d   :  { %5246 = vmatpush2.msra.mxu0 %v5174_v23 }
 0x69e   :  { %5247 = vmatprep.subr.mxu0 %v10561_v36 }
 0x69f   :  { %5248 = vmatpush2.msra.mxu0 %v5173_v24 }
 0x6a0   :  { %5249 = vmatprep.subr.mxu0 %v10561_v36 }
 0x6a1   :  { %5250 = vmatpush2.msra.mxu0 %v5172_v13 }
 0x6a2   :  { %5251 = vmatprep.subr.mxu0 %v10561_v36  ;;  %v5542_v36 = vld [vmem:[%s10504_s10] ss:$0 sm:$0xff] }
 0x6a3   :  { %5252 = vmatpush2.msra.mxu0 %v5171_v35 }
 0x6f3   :  { %v5077_v60 = vpop.f32.mrf.mxu1 }
 0x6f4   :  { %v5078_v62 = vadd.f32 %v5077_v60, %v5004_v42 }
 0x6f5   :  { %v5079_v52 = vpop.f32.mrf.mxu1 }
 0x6f6   :  { %v5080_v1 = vadd.f32 %v5079_v52, %v5008_v56 }
 0x734   :  { %v5148_v25 = vpop.f32.mrf.mxu0 }
 0x735   :  { %v5149_v33 = vadd.f32 %v5148_v25, %v5078_v62 }
 0x736   :  { %v5150_v10 = vpop.f32.mrf.mxu0 }
 0x737   :  { %v5151_v21 = vadd.f32 %v5150_v10, %v5080_v1  ;;  %v5153_v44 = vmax.f32 %v5149_v33, 0.0 }
 0x739   :  { %v5154_v61 = vmax.f32 %v5151_v21, 0.0 }
 0x73b   :  { %5543 = vmatprep.mubr.msk.f32.mxu0 %vm866_vm0, %v5154_v61 }
 0x73c   :  { %5254 = vmatmul.mubr.f32.vlgmr.msra.gmra.mxu0 %v5153_v44 }
 0x7fc   :  { %v5255_v30 = vpop.f32.mrf.mxu0 }
 0x7fd   :  { %v5256_v7 = vadd.f32 %v5542_v36, %v5255_v30 }
 0x7fe   :  { %v5257_v8 = vpop.f32.mrf.mxu0 }
 0x7ff   :  { %v5260_v0 = vsel %vm5259_vm5, %v5256_v7, -inf }
 0x800   :  { %5261 = vmax.xlane.f32.xlu0 %v5260_v0 }
 0x889   :  { %v5262_v32 = vpop.xlane.xlu0 %5261 }
 0x88a   :  { %v5263_v47 = vsub.f32 %v5256_v7, %v5262_v32 }
 0x88c   :  { %v5264_v55 = vmul.f32 1.442695, %v5263_v47 }
 0x88e   :  { %6441 = vpow2.f32 %v5264_v55 }
 0x89b   :  { %v6442_v12 = vpop.eup %6441 }
 0x89c   :  { %v5266_v34 = vsel %vm5259_vm5, %v6442_v12, 0.0 }
 0x89d   :  { %5267 = vadd.xlane.f32.xlu1 %v5266_v34 }
 0x89e   :  { %6458 = shalt.err (!%p6455_p4)
}
 0x89f   :  { %5292 = dma.vmem_to_hbm [thread:$0]  %s5290_s26, 96, %s10506_s12, [#allocation8]  }
 0x8a0   :  { %s6495_s27 = smov [#allocation5]  }
 0x8a1   :  { %s5279_s28 = sshll.u32 %s6495_s27, 4  ;;  %s5280_s28 = int_to_ptr.vmem [resolvable:$true] %s5279_s28 }
 0x8a2   :  { %s6467_s2 = scalar_lea.vmem %s5280_s28, 32  ;;  %p6472_p6 = scmp.lt.s32.totalorder %s5280_s28, %s5280_s28 }
 0x8a3   :  { %p6468_p5 = scmp.ne.s32.totalorder %s5280_s28, %s6467_s2  ;;  %p6473_p7 = scmp.lt.s32.totalorder %s6467_s2, %s6467_s2 }
 0x8a5   :  { %p6474_p8 = por %p6473_p7, %p6472_p6 }
 0x8a7   :  { %p6475_p9 = pnand %p6474_p8, %p6468_p5 }
 0x926   :  { %v5268_v22 = vpop.xlane.xlu1 %5267 }
 0x927   :  { %6443 = vlog2.f32 %v5268_v22 }
 0x934   :  { %v6444_v54 = vpop.eup %6443 }
 0x935   :  { %v5270_v37 = vmul.f32 0.6931472, %v6444_v54 }
 0x937   :  { %v5271_v57 = vsub.f32 %v5263_v47, %v5270_v37 }
 0x939   :  { %5272 = vst.msk [vmem:[#allocation5] sm:$0x3] %vm5259_vm5, %v5271_v57 }
 0x93a   :  { %6478 = shalt.err (!%p6475_p9)
}
 0x93b   :  { %5282 = dma.vmem_to_hbm [thread:$0]  %s5280_s28, 32, %s10505_s11, [#allocation6]  }
 0x93c   :  { %6487 = dma.done.wait [#allocation6], 32  }
 0x93d   :  { %6488 = vsyncadd [#allocation6], 4294967264 }
 0x93e   :  { %6489 = dma.done.wait [#allocation8], 96  }
 0x93f   :  { %6490 = vsyncadd [#allocation8], 4294967200 }
 0x940   :  { %5299 = vsyncpa [#allocation6], 1 }
 0x941   :  { %5300 = vsyncpa [#allocation8], 1 }

</bundles_post_ra>
